<compile_context>
chip_gen: v5e
topology: v5e:2x2
jax: 0.10.0
libtpu: 0.0.40
codegen_flags: <defaults>
</compile_context>

<pallas_src>
import functools

import jax
import jax.numpy as jnp
from jax.experimental import pallas as pl
from jax.experimental.pallas import tpu as pltpu


# Column offset of the image interior inside the bf16 VMEM halo slabs.
# 16 keeps the interior store sublane-aligned under bf16 (16, 128) tiling.
_PAD_COL = 16


# ------------------------------ kernel helpers ------------------------------- #

def _zero_halo(pad_ref, rows, cols):
    """Zero ONLY the 1-element halo ring the 3x3 taps actually read.

    Rows 0 / rows+1 over the read column span, plus the two halo columns over
    the interior rows.  The interior is fully overwritten each step, so a
    full-slab zero is wasted vst traffic (vst is the scarcest VLIW slot).
    This runs every grid step on purpose: with a parallel grid axis each
    TensorCore owns its own scratch and a pid==0-only init would be wrong.
    """
    c = pad_ref.shape[-1]
    dt = pad_ref.dtype
    c0 = _PAD_COL - 1            # leftmost column read (kw = 0)
    c1 = _PAD_COL + cols         # rightmost column read (kw = 2)
    pad_ref[0:1, c0:c1 + 1, :] = jnp.zeros((1, cols + 2, c), dt)
    pad_ref[rows + 1:rows + 2, c0:c1 + 1, :] = jnp.zeros((1, cols + 2, c), dt)
    pad_ref[1:rows + 1, c0:c0 + 1, :] = jnp.zeros((rows, 1, c), dt)
    pad_ref[1:rows + 1, c1:c1 + 1, :] = jnp.zeros((rows, 1, c), dt)


def _conv3x3(pad_ref, w_ref, ho, wo, c, s):
    """3x3 conv as three accumulating matmuls (one per kernel row kh).

    Per-kh im2col (K = 3*c) keeps at most three tap slabs live — no 9-way
    lane-axis concatenation through the XLU, 1/3 the peak im2col memory — and
    K = 3*c already covers the 256-deep MXU for c >= 86, so the deep-K (9*c)
    variant buys nothing except VMEM/vreg pressure.  pad_ref is bf16, so the
    taps feed the MXU directly with no per-slab cast.

    pad_ref: (rows+2, _PAD_COL*2 + cols, c) bf16 halo slab
    w_ref:   (3, 3*c, n_out) bf16, rows within each kh ordered (kw, cin)
    returns: (ho*wo, n_out) f32
    """
    n_out = w_ref.shape[-1]
    acc = jnp.zeros((ho * wo, n_out), jnp.float32)
    for kh in range(3):
        taps = []
        for kw in range(3):
            col0 = _PAD_COL - 1 + kw
            if s == 1:
                p = pad_ref[kh:kh + ho, col0:col0 + wo, :]
            else:
                # Strided ref reads: pull only the ho*wo needed positions
                # instead of loading s^2-times the data and discarding it.
                p = pad_ref[pl.ds(kh, ho, s), pl.ds(col0, wo, s), :]
            taps.append(p.reshape(ho * wo, c))
        slab = jnp.concatenate(taps, axis=-1)                  # (ho*wo, 3c) bf16
        acc = acc + jnp.dot(slab, w_ref[kh],
                            preferred_element_type=jnp.float32)
    return acc


# ----------------------------- Pallas kernel -------------------------------- #

def _basic_block_kernel(*refs, H, W, Cin, planes, stride, has_sc_conv):
    """Fused BasicBlock for one batch element (NHWC).

    refs (has_sc_conv=True):
        x, w1, s1, b1, w2, s2, b2, wsc, ssc, bsc, out, xpad, ypad
    refs (has_sc_conv=False):
        x, w1, s1, b1, w2, s2, b2, out, xpad, ypad

      x:    (1, H, W, Cin) f32
      w1:   (3, 3*Cin, planes) bf16      per-kh weight chunks, rows (kw, cin)
      w2:   (3, 3*planes, planes) bf16
      wsc:  (Cin, planes) bf16           1x1 projection shortcut
      s*/b*: (1, planes) f32             folded BatchNorm scale / bias
      out:  (1, Ho, Wo, planes)
      xpad: (H+2,  W+2*_PAD_COL,  Cin)    bf16 VMEM halo slab (conv1)
      ypad: (Ho+2, Wo+2*_PAD_COL, planes) bf16 VMEM halo slab (conv2)
    """
    if has_sc_conv:
        (x_ref, w1_ref, s1_ref, b1_ref, w2_ref, s2_ref, b2_ref,
         wsc_ref, ssc_ref, bsc_ref, o_ref, xpad_ref, ypad_ref) = refs
    else:
        (x_ref, w1_ref, s1_ref, b1_ref, w2_ref, s2_ref, b2_ref,
         o_ref, xpad_ref, ypad_ref) = refs

    Ho = (H - 1) // stride + 1
    Wo = (W - 1) // stride + 1

    # ------------- conv1 + bn1 + relu: halo built in VMEM, bf16 ------------- #
    _zero_halo(xpad_ref, H, W)
    xpad_ref[1:H + 1, _PAD_COL:_PAD_COL + W, :] = x_ref[0].astype(xpad_ref.dtype)

    y1 = _conv3x3(xpad_ref, w1_ref, Ho, Wo, Cin, stride)
    y1 = jnp.maximum(y1 * s1_ref[...] + b1_ref[...], 0.0)       # folded BN1 + ReLU

    # ------------- conv2 + bn2: intermediate never leaves VMEM -------------- #
    _zero_halo(ypad_ref, Ho, Wo)
    ypad_ref[1:Ho + 1, _PAD_COL:_PAD_COL + Wo, :] = (
        y1.reshape(Ho, Wo, planes).astype(ypad_ref.dtype))

    y2 = _conv3x3(ypad_ref, w2_ref, Ho, Wo, planes, 1)
    y2 = y2 * s2_ref[...] + b2_ref[...]                          # folded BN2

    # ------------- shortcut + residual add + final relu --------------------- #
    if has_sc_conv:
        if stride == 1:
            xs = xpad_ref[1:H + 1, _PAD_COL:_PAD_COL + W, :]     # aligned bf16 re-read
        else:
            xs = xpad_ref[pl.ds(1, Ho, stride), pl.ds(_PAD_COL, Wo, stride), :]
        sc = jnp.dot(xs.reshape(Ho * Wo, Cin), wsc_ref[...],
                     preferred_element_type=jnp.float32)
        sc = sc * ssc_ref[...] + bsc_ref[...]
    else:
        sc = x_ref[0].reshape(Ho * Wo, Cin)                      # identity, exact f32

    out = jnp.maximum(y2 + sc, 0.0)
    o_ref[0] = out.reshape(Ho, Wo, planes).astype(o_ref.dtype)


# ------------------------------ Pallas wrapper ------------------------------ #

def basic_block_pallas(x_nhwc, p, *, stride=1):
    """x_nhwc: (N, H, W, Cin); p: output of prepare_block_params."""
    N, H, W, Cin = x_nhwc.shape
    planes = p["planes"]
    has_sc_conv = "wsc" in p
    if not has_sc_conv:
        assert stride == 1 and Cin == planes, "identity shortcut needs stride=1, Cin==planes"
    Ho = (H - 1) // stride + 1
    Wo = (W - 1) // stride + 1
    wp_x = W + 2 * _PAD_COL
    wp_y = Wo + 2 * _PAD_COL

    kernel = functools.partial(_basic_block_kernel, H=H, W=W, Cin=Cin,
                               planes=planes, stride=stride,
                               has_sc_conv=has_sc_conv)

    def idx0_2(n):                # weights / folded BN: same block every step
        return (0, 0)

    def idx0_3(n):
        return (0, 0, 0)

    in_specs = [
        pl.BlockSpec((1, H, W, Cin), lambda n: (n, 0, 0, 0)),
        pl.BlockSpec((3, 3 * Cin, planes), idx0_3),
        pl.BlockSpec((1, planes), idx0_2),
        pl.BlockSpec((1, planes), idx0_2),
        pl.BlockSpec((3, 3 * planes, planes), idx0_3),
        pl.BlockSpec((1, planes), idx0_2),
        pl.BlockSpec((1, planes), idx0_2),
    ]
    args = [x_nhwc, p["w1"], p["s1"], p["b1"], p["w2"], p["s2"], p["b2"]]
    if has_sc_conv:
        in_specs += [pl.BlockSpec((Cin, planes), idx0_2),
                     pl.BlockSpec((1, planes), idx0_2),
                     pl.BlockSpec((1, planes), idx0_2)]
        args += [p["wsc"], p["ssc"], p["bsc"]]

    # Explicit scoped-VMEM budget (v5e defaults to only 16 MiB): rough per-step
    # live-set estimate with 2x margin, clamped to [32, 64] MiB so the request
    # is valid on every generation (v7x physical VMEM is 64 MiB).
    est = (2 * 4 * (H * W * Cin + Ho * Wo * planes)                       # dbl-buffered I/O blocks
           + 2 * ((H + 2) * wp_x * Cin + (Ho + 2) * wp_y * planes)        # bf16 halo slabs
           + 2 * (9 * Cin * planes + 9 * planes * planes + Cin * planes)  # bf16 weights
           + 4 * 6 * planes                                               # folded BN vectors
           + 2 * 2 * Ho * Wo * 3 * max(Cin, planes)                       # per-kh im2col slab
           + 4 * 3 * Ho * Wo * planes)                                    # f32 accumulators
    vmem_limit = int(min(64 << 20, max(32 << 20, 2 * est)))

    return pl.pallas_call(
        kernel,
        out_shape=jax.ShapeDtypeStruct((N, Ho, Wo, planes), x_nhwc.dtype),
        grid=(N,),
        in_specs=in_specs,
        out_specs=pl.BlockSpec((1, Ho, Wo, planes), lambda n: (n, 0, 0, 0)),
        scratch_shapes=[
            pltpu.VMEM((H + 2, wp_x, Cin), jnp.bfloat16),
            pltpu.VMEM((Ho + 2, wp_y, planes), jnp.bfloat16),
        ],
        compiler_params=pltpu.CompilerParams(
            dimension_semantics=("parallel",),
            vmem_limit_bytes=vmem_limit),
    )(*args)


# ------------------------ parameters & forward pass ------------------------- #

def init_basic_block(key, in_planes, planes, stride=1, dtype=jnp.float32):
    ks = jax.random.split(key, 6)

    def conv_w(k, cout, cin, kh, kw):
        fan_in = cin * kh * kw
        return jax.random.normal(k, (cout, cin, kh, kw), dtype) / jnp.sqrt(fan_in)

    def bn_p(k, c):
        k1, k2, k3, k4 = jax.random.split(k, 4)
        gamma = 1.0 + 0.1 * jax.random.normal(k1, (c,), dtype)
        beta = 0.1 * jax.random.normal(k2, (c,), dtype)
        mean = 0.1 * jax.random.normal(k3, (c,), dtype)
        var = jax.random.uniform(k4, (c,), dtype, minval=0.5, maxval=1.5)
        return (gamma, beta, mean, var)

    params = {
        "w1": conv_w(ks[0], planes, in_planes, 3, 3),
        "bn1": bn_p(ks[1], planes),
        "w2": conv_w(ks[2], planes, planes, 3, 3),
        "bn2": bn_p(ks[3], planes),
    }
    if stride != 1 or in_planes != planes:
        params["w_sc"] = conv_w(ks[4], planes, in_planes, 1, 1)
        params["bn_sc"] = bn_p(ks[5], planes)
    return params


def prepare_block_params(params, eps=1e-5):
    """One-time conversion to kernel layout (at model-build time, not per
    forward): OIHW conv weights -> (3, 3*Cin, Cout) bf16 per-kh chunks (rows
    ordered (kw, cin)), BatchNorm folded to f32 per-channel scale/bias
    (inference semantics)."""
    def fold(bn):
        gamma, beta, mean, var = bn
        scale = gamma / jnp.sqrt(var + eps)
        bias = beta - mean * scale
        return scale[None, :].astype(jnp.float32), bias[None, :].astype(jnp.float32)

    def slab3x3(w):  # (O, I, 3, 3) -> (3, 3*I, O)
        o, i = w.shape[0], w.shape[1]
        return (jnp.transpose(w, (2, 3, 1, 0)).reshape(3, 3 * i, o)
                .astype(jnp.bfloat16))

    planes, in_planes = params["w1"].shape[0], params["w1"].shape[1]
    s1, b1 = fold(params["bn1"])
    s2, b2 = fold(params["bn2"])
    p = {"planes": planes,
         "w1": slab3x3(params["w1"]), "s1": s1, "b1": b1,
         "w2": slab3x3(params["w2"]), "s2": s2, "b2": b2}
    if "w_sc" in params:
        p["wsc"] = (jnp.transpose(params["w_sc"], (2, 3, 1, 0))
                    .reshape(in_planes, planes).astype(jnp.bfloat16))
        p["ssc"], p["bsc"] = fold(params["bn_sc"])
    return p


def basic_block_forward(x_nchw, prepared, stride=1):
    """Matches BasicBlock.forward; NCHW in/out like PyTorch.  The transposes
    here are boundary glue only — keep NHWC end-to-end across a real stack."""
    x = jnp.transpose(x_nchw, (0, 2, 3, 1))           # NCHW -> NHWC
    out = basic_block_pallas(x, prepared, stride=stride)
    return jnp.transpose(out, (0, 3, 1, 2))           # NHWC -> NCHW


# ----------------------------- pure-JAX reference --------------------------- #

def ref_forward(x, params, stride=1, eps=1e-5):
    def conv(x, w, s):
        pad = [(1, 1), (1, 1)] if w.shape[-1] == 3 else [(0, 0), (0, 0)]
        return jax.lax.conv_general_dilated(
            x, w, (s, s), pad, dimension_numbers=("NCHW", "OIHW", "NCHW"))

    def bn(x, p):
        gamma, beta, mean, var = p
        scale = gamma / jnp.sqrt(var + eps)
        bias = beta - mean * scale
        return x * scale[None, :, None, None] + bias[None, :, None, None]

    out = jax.nn.relu(bn(conv(x, params["w1"], stride), params["bn1"]))
    out = bn(conv(out, params["w2"], 1), params["bn2"])
    sc = bn(conv(x, params["w_sc"], stride), params["bn_sc"]) if "w_sc" in params else x
    return jax.nn.relu(out + sc)


def _check(out, ref, tag):
    assert out.shape == ref.shape, (tag, out.shape, ref.shape)
    err = float(jnp.max(jnp.abs(out - ref)))
    # bf16 matmul operands (fp32 accumulation) -> loosen the fp32 tolerance.
    tol = 5e-2 * (1.0 + float(jnp.max(jnp.abs(ref))))
    assert err <= tol, f"{tag}: mismatch vs reference: {err} > {tol}"


# ----------------------------------- main ------------------------------------ #

if __name__ == "__main__":
    key = jax.random.PRNGKey(0)
    kx1, kp1, kx2, kp2 = jax.random.split(key, 4)

    # Case 1: projection (1x1 conv + BN) shortcut path.
    N, in_planes, planes, H, W, stride = 2, 4, 8, 16, 16, 1
    x1 = jax.random.normal(kx1, (N, in_planes, H, W), jnp.float32)
    params1 = init_basic_block(kp1, in_planes, planes, stride)
    out1 = jax.block_until_ready(
        basic_block_forward(x1, prepare_block_params(params1), stride=stride))
    _check(out1, ref_forward(x1, params1, stride=stride), "projection-shortcut")

    # Case 2: identity shortcut path (in_planes == planes, stride == 1).
    x2 = jax.random.normal(kx2, (2, 8, 8, 8), jnp.float32)
    params2 = init_basic_block(kp2, 8, 8, 1)
    out2 = jax.block_until_ready(
        basic_block_forward(x2, prepare_block_params(params2), stride=1))
    _check(out2, ref_forward(x2, params2, stride=1), "identity-shortcut")

    print("KERNEL_OK")
</pallas_src>

<mosaic_0001>
module attributes {stable_mosaic.version = 11 : i64} {
  func.func @_basic_block_kernel(%arg0: i32, %arg1: memref<1x16x16x4xf32, #tpu.memory_space<vmem>>, %arg2: memref<3x12x8xbf16, #tpu.memory_space<vmem>>, %arg3: memref<1x8xf32, #tpu.memory_space<vmem>>, %arg4: memref<1x8xf32, #tpu.memory_space<vmem>>, %arg5: memref<3x24x8xbf16, #tpu.memory_space<vmem>>, %arg6: memref<1x8xf32, #tpu.memory_space<vmem>>, %arg7: memref<1x8xf32, #tpu.memory_space<vmem>>, %arg8: memref<4x8xbf16, #tpu.memory_space<vmem>>, %arg9: memref<1x8xf32, #tpu.memory_space<vmem>>, %arg10: memref<1x8xf32, #tpu.memory_space<vmem>>, %arg11: memref<1x16x16x8xf32, #tpu.memory_space<vmem>>, %arg12: memref<18x48x4xbf16, #tpu.memory_space<vmem>>, %arg13: memref<18x48x8xbf16, #tpu.memory_space<vmem>>) attributes {dimension_semantics = [#tpu.dimension_semantics<parallel>], iteration_bounds = array<i64: 2>, scalar_prefetch = 0 : i64, scratch_operands = 2 : i64, tpu.core_type = #tpu.core_type<tc>, window_params = [{transform_indices = @transform_0, window_bounds = array<i64: 1, 16, 16, 4>}, {pipeline_mode = #tpu.pipeline_mode<synchronous>, transform_indices = @transform_1, window_bounds = array<i64: 3, 12, 8>}, {pipeline_mode = #tpu.pipeline_mode<synchronous>, transform_indices = @transform_2, window_bounds = array<i64: 1, 8>}, {pipeline_mode = #tpu.pipeline_mode<synchronous>, transform_indices = @transform_3, window_bounds = array<i64: 1, 8>}, {pipeline_mode = #tpu.pipeline_mode<synchronous>, transform_indices = @transform_4, window_bounds = array<i64: 3, 24, 8>}, {pipeline_mode = #tpu.pipeline_mode<synchronous>, transform_indices = @transform_5, window_bounds = array<i64: 1, 8>}, {pipeline_mode = #tpu.pipeline_mode<synchronous>, transform_indices = @transform_6, window_bounds = array<i64: 1, 8>}, {pipeline_mode = #tpu.pipeline_mode<synchronous>, transform_indices = @transform_7, window_bounds = array<i64: 4, 8>}, {pipeline_mode = #tpu.pipeline_mode<synchronous>, transform_indices = @transform_8, window_bounds = array<i64: 1, 8>}, {pipeline_mode = #tpu.pipeline_mode<synchronous>, transform_indices = @transform_9, window_bounds = array<i64: 1, 8>}, {transform_indices = @transform_10, window_bounds = array<i64: 1, 16, 16, 8>}]} {
    %cst = arith.constant 0.000000e+00 : bf16
    %0 = vector.broadcast %cst : bf16 to vector<1x18x4xbf16>
    %c0 = arith.constant 0 : index
    %c15 = arith.constant 15 : index
    %c0_0 = arith.constant 0 : index
    %1 = vector.load %arg12[%c0, %c15, %c0_0] : memref<18x48x4xbf16, #tpu.memory_space<vmem>>, vector<1x18x4xbf16>
    tpu.vector_store %arg12[%c0, %c15, %c0_0], %0 {strides = array<i32>} : memref<18x48x4xbf16, #tpu.memory_space<vmem>>, vector<1x18x4xbf16>,
    %cst_1 = arith.constant 0.000000e+00 : bf16
    %2 = vector.broadcast %cst_1 : bf16 to vector<1x18x4xbf16>
    %c17 = arith.constant 17 : index
    %c15_2 = arith.constant 15 : index
    %c0_3 = arith.constant 0 : index
    %3 = vector.load %arg12[%c17, %c15_2, %c0_3] : memref<18x48x4xbf16, #tpu.memory_space<vmem>>, vector<1x18x4xbf16>
    tpu.vector_store %arg12[%c17, %c15_2, %c0_3], %2 {strides = array<i32>} : memref<18x48x4xbf16, #tpu.memory_space<vmem>>, vector<1x18x4xbf16>,
    %cst_4 = arith.constant 0.000000e+00 : bf16
    %4 = vector.broadcast %cst_4 : bf16 to vector<16x1x4xbf16>
    %c1 = arith.constant 1 : index
    %c15_5 = arith.constant 15 : index
    %c0_6 = arith.constant 0 : index
    %5 = vector.load %arg12[%c1, %c15_5, %c0_6] : memref<18x48x4xbf16, #tpu.memory_space<vmem>>, vector<16x1x4xbf16>
    tpu.vector_store %arg12[%c1, %c15_5, %c0_6], %4 {strides = array<i32>} : memref<18x48x4xbf16, #tpu.memory_space<vmem>>, vector<16x1x4xbf16>,
    %cst_7 = arith.constant 0.000000e+00 : bf16
    %6 = vector.broadcast %cst_7 : bf16 to vector<16x1x4xbf16>
    %c1_8 = arith.constant 1 : index
    %c32 = arith.constant 32 : index
    %c0_9 = arith.constant 0 : index
    %7 = vector.load %arg12[%c1_8, %c32, %c0_9] : memref<18x48x4xbf16, #tpu.memory_space<vmem>>, vector<16x1x4xbf16>
    tpu.vector_store %arg12[%c1_8, %c32, %c0_9], %6 {strides = array<i32>} : memref<18x48x4xbf16, #tpu.memory_space<vmem>>, vector<16x1x4xbf16>,
    %c0_10 = arith.constant 0 : index
    %c0_11 = arith.constant 0 : index
    %c0_12 = arith.constant 0 : index
    %c0_13 = arith.constant 0 : index
    %8 = vector.load %arg1[%c0_10, %c0_11, %c0_12, %c0_13] : memref<1x16x16x4xf32, #tpu.memory_space<vmem>>, vector<1x16x16x4xf32>
    %9 = vector.shape_cast %8 : vector<1x16x16x4xf32> to vector<16x16x4xf32>
    %10 = arith.truncf %9 : vector<16x16x4xf32> to vector<16x16x4xbf16>
    %c1_14 = arith.constant 1 : index
    %c16 = arith.constant 16 : index
    %c0_15 = arith.constant 0 : index
    %11 = vector.load %arg12[%c1_14, %c16, %c0_15] : memref<18x48x4xbf16, #tpu.memory_space<vmem>>, vector<16x16x4xbf16>
    tpu.vector_store %arg12[%c1_14, %c16, %c0_15], %10 {strides = array<i32>} : memref<18x48x4xbf16, #tpu.memory_space<vmem>>, vector<16x16x4xbf16>,
    %cst_16 = arith.constant 0.000000e+00 : f32
    %12 = vector.broadcast %cst_16 : f32 to vector<256x8xf32>
    %c0_17 = arith.constant 0 : index
    %c15_18 = arith.constant 15 : index
    %c0_19 = arith.constant 0 : index
    %13 = vector.load %arg12[%c0_17, %c15_18, %c0_19] : memref<18x48x4xbf16, #tpu.memory_space<vmem>>, vector<16x16x4xbf16>
    %14 = vector.shape_cast %13 : vector<16x16x4xbf16> to vector<256x4xbf16>
    %c0_20 = arith.constant 0 : index
    %c16_21 = arith.constant 16 : index
    %c0_22 = arith.constant 0 : index
    %15 = vector.load %arg12[%c0_20, %c16_21, %c0_22] : memref<18x48x4xbf16, #tpu.memory_space<vmem>>, vector<16x16x4xbf16>
    %16 = vector.shape_cast %15 : vector<16x16x4xbf16> to vector<256x4xbf16>
    %c0_23 = arith.constant 0 : index
    %c17_24 = arith.constant 17 : index
    %c0_25 = arith.constant 0 : index
    %17 = vector.load %arg12[%c0_23, %c17_24, %c0_25] : memref<18x48x4xbf16, #tpu.memory_space<vmem>>, vector<16x16x4xbf16>
    %18 = vector.shape_cast %17 : vector<16x16x4xbf16> to vector<256x4xbf16>
    %19 = tpu.concatenate %14, %16, %18 in 1 : vector<256x4xbf16>, vector<256x4xbf16>, vector<256x4xbf16> -> vector<256x12xbf16>
    %c0_26 = arith.constant 0 : index
    %c0_27 = arith.constant 0 : index
    %c0_28 = arith.constant 0 : index
    %20 = vector.load %arg2[%c0_26, %c0_27, %c0_28] : memref<3x12x8xbf16, #tpu.memory_space<vmem>>, vector<1x12x8xbf16>
    %21 = vector.shape_cast %20 : vector<1x12x8xbf16> to vector<12x8xbf16>
    %cst_29 = arith.constant dense<0.000000e+00> : vector<256x8xf32>
    %22 = tpu.matmul %19, %21, %cst_29 {dimension_numbers = #tpu.dot_dimension_numbers<[1], [0], [0], [1], [0, 0, 1, 1], [], []>} : vector<256x12xbf16>, vector<12x8xbf16>, vector<256x8xf32> -> vector<256x8xf32>
    %23 = arith.addf %12, %22 : vector<256x8xf32>
    %c1_30 = arith.constant 1 : index
    %c15_31 = arith.constant 15 : index
    %c0_32 = arith.constant 0 : index
    %24 = vector.load %arg12[%c1_30, %c15_31, %c0_32] : memref<18x48x4xbf16, #tpu.memory_space<vmem>>, vector<16x16x4xbf16>
    %25 = vector.shape_cast %24 : vector<16x16x4xbf16> to vector<256x4xbf16>
    %c1_33 = arith.constant 1 : index
    %c16_34 = arith.constant 16 : index
    %c0_35 = arith.constant 0 : index
    %26 = vector.load %arg12[%c1_33, %c16_34, %c0_35] : memref<18x48x4xbf16, #tpu.memory_space<vmem>>, vector<16x16x4xbf16>
    %27 = vector.shape_cast %26 : vector<16x16x4xbf16> to vector<256x4xbf16>
    %c1_36 = arith.constant 1 : index
    %c17_37 = arith.constant 17 : index
    %c0_38 = arith.constant 0 : index
    %28 = vector.load %arg12[%c1_36, %c17_37, %c0_38] : memref<18x48x4xbf16, #tpu.memory_space<vmem>>, vector<16x16x4xbf16>
    %29 = vector.shape_cast %28 : vector<16x16x4xbf16> to vector<256x4xbf16>
    %30 = tpu.concatenate %25, %27, %29 in 1 : vector<256x4xbf16>, vector<256x4xbf16>, vector<256x4xbf16> -> vector<256x12xbf16>
    %c1_39 = arith.constant 1 : index
    %c0_40 = arith.constant 0 : index
    %c0_41 = arith.constant 0 : index
    %31 = vector.load %arg2[%c1_39, %c0_40, %c0_41] : memref<3x12x8xbf16, #tpu.memory_space<vmem>>, vector<1x12x8xbf16>
    %32 = vector.shape_cast %31 : vector<1x12x8xbf16> to vector<12x8xbf16>
    %cst_42 = arith.constant dense<0.000000e+00> : vector<256x8xf32>
    %33 = tpu.matmul %30, %32, %cst_42 {dimension_numbers = #tpu.dot_dimension_numbers<[1], [0], [0], [1], [0, 0, 1, 1], [], []>} : vector<256x12xbf16>, vector<12x8xbf16>, vector<256x8xf32> -> vector<256x8xf32>
    %34 = arith.addf %23, %33 : vector<256x8xf32>
    %c2 = arith.constant 2 : index
    %c15_43 = arith.constant 15 : index
    %c0_44 = arith.constant 0 : index
    %35 = vector.load %arg12[%c2, %c15_43, %c0_44] : memref<18x48x4xbf16, #tpu.memory_space<vmem>>, vector<16x16x4xbf16>
    %36 = vector.shape_cast %35 : vector<16x16x4xbf16> to vector<256x4xbf16>
    %c2_45 = arith.constant 2 : index
    %c16_46 = arith.constant 16 : index
    %c0_47 = arith.constant 0 : index
    %37 = vector.load %arg12[%c2_45, %c16_46, %c0_47] : memref<18x48x4xbf16, #tpu.memory_space<vmem>>, vector<16x16x4xbf16>
    %38 = vector.shape_cast %37 : vector<16x16x4xbf16> to vector<256x4xbf16>
    %c2_48 = arith.constant 2 : index
    %c17_49 = arith.constant 17 : index
    %c0_50 = arith.constant 0 : index
    %39 = vector.load %arg12[%c2_48, %c17_49, %c0_50] : memref<18x48x4xbf16, #tpu.memory_space<vmem>>, vector<16x16x4xbf16>
    %40 = vector.shape_cast %39 : vector<16x16x4xbf16> to vector<256x4xbf16>
    %41 = tpu.concatenate %36, %38, %40 in 1 : vector<256x4xbf16>, vector<256x4xbf16>, vector<256x4xbf16> -> vector<256x12xbf16>
    %c2_51 = arith.constant 2 : index
    %c0_52 = arith.constant 0 : index
    %c0_53 = arith.constant 0 : index
    %42 = vector.load %arg2[%c2_51, %c0_52, %c0_53] : memref<3x12x8xbf16, #tpu.memory_space<vmem>>, vector<1x12x8xbf16>
    %43 = vector.shape_cast %42 : vector<1x12x8xbf16> to vector<12x8xbf16>
    %cst_54 = arith.constant dense<0.000000e+00> : vector<256x8xf32>
    %44 = tpu.matmul %41, %43, %cst_54 {dimension_numbers = #tpu.dot_dimension_numbers<[1], [0], [0], [1], [0, 0, 1, 1], [], []>} : vector<256x12xbf16>, vector<12x8xbf16>, vector<256x8xf32> -> vector<256x8xf32>
    %45 = arith.addf %34, %44 : vector<256x8xf32>
    %c0_55 = arith.constant 0 : index
    %c0_56 = arith.constant 0 : index
    %46 = vector.load %arg3[%c0_55, %c0_56] : memref<1x8xf32, #tpu.memory_space<vmem>>, vector<1x8xf32>
    %47 = vector.broadcast %46 : vector<1x8xf32> to vector<256x8xf32>
    %48 = arith.mulf %45, %47 : vector<256x8xf32>
    %c0_57 = arith.constant 0 : index
    %c0_58 = arith.constant 0 : index
    %49 = vector.load %arg4[%c0_57, %c0_58] : memref<1x8xf32, #tpu.memory_space<vmem>>, vector<1x8xf32>
    %50 = vector.broadcast %49 : vector<1x8xf32> to vector<256x8xf32>
    %51 = arith.addf %48, %50 : vector<256x8xf32>
    %cst_59 = arith.constant 0.000000e+00 : f32
    %52 = vector.broadcast %cst_59 : f32 to vector<256x8xf32>
    %53 = arith.maximumf %51, %52 : vector<256x8xf32>
    %cst_60 = arith.constant 0.000000e+00 : bf16
    %54 = vector.broadcast %cst_60 : bf16 to vector<1x18x8xbf16>
    %c0_61 = arith.constant 0 : index
    %c15_62 = arith.constant 15 : index
    %c0_63 = arith.constant 0 : index
    %55 = vector.load %arg13[%c0_61, %c15_62, %c0_63] : memref<18x48x8xbf16, #tpu.memory_space<vmem>>, vector<1x18x8xbf16>
    tpu.vector_store %arg13[%c0_61, %c15_62, %c0_63], %54 {strides = array<i32>} : memref<18x48x8xbf16, #tpu.memory_space<vmem>>, vector<1x18x8xbf16>,
    %cst_64 = arith.constant 0.000000e+00 : bf16
    %56 = vector.broadcast %cst_64 : bf16 to vector<1x18x8xbf16>
    %c17_65 = arith.constant 17 : index
    %c15_66 = arith.constant 15 : index
    %c0_67 = arith.constant 0 : index
    %57 = vector.load %arg13[%c17_65, %c15_66, %c0_67] : memref<18x48x8xbf16, #tpu.memory_space<vmem>>, vector<1x18x8xbf16>
    tpu.vector_store %arg13[%c17_65, %c15_66, %c0_67], %56 {strides = array<i32>} : memref<18x48x8xbf16, #tpu.memory_space<vmem>>, vector<1x18x8xbf16>,
    %cst_68 = arith.constant 0.000000e+00 : bf16
    %58 = vector.broadcast %cst_68 : bf16 to vector<16x1x8xbf16>
    %c1_69 = arith.constant 1 : index
    %c15_70 = arith.constant 15 : index
    %c0_71 = arith.constant 0 : index
    %59 = vector.load %arg13[%c1_69, %c15_70, %c0_71] : memref<18x48x8xbf16, #tpu.memory_space<vmem>>, vector<16x1x8xbf16>
    tpu.vector_store %arg13[%c1_69, %c15_70, %c0_71], %58 {strides = array<i32>} : memref<18x48x8xbf16, #tpu.memory_space<vmem>>, vector<16x1x8xbf16>,
    %cst_72 = arith.constant 0.000000e+00 : bf16
    %60 = vector.broadcast %cst_72 : bf16 to vector<16x1x8xbf16>
    %c1_73 = arith.constant 1 : index
    %c32_74 = arith.constant 32 : index
    %c0_75 = arith.constant 0 : index
    %61 = vector.load %arg13[%c1_73, %c32_74, %c0_75] : memref<18x48x8xbf16, #tpu.memory_space<vmem>>, vector<16x1x8xbf16>
    tpu.vector_store %arg13[%c1_73, %c32_74, %c0_75], %60 {strides = array<i32>} : memref<18x48x8xbf16, #tpu.memory_space<vmem>>, vector<16x1x8xbf16>,
    %62 = vector.shape_cast %53 : vector<256x8xf32> to vector<16x16x8xf32>
    %63 = arith.truncf %62 : vector<16x16x8xf32> to vector<16x16x8xbf16>
    %c1_76 = arith.constant 1 : index
    %c16_77 = arith.constant 16 : index
    %c0_78 = arith.constant 0 : index
    %64 = vector.load %arg13[%c1_76, %c16_77, %c0_78] : memref<18x48x8xbf16, #tpu.memory_space<vmem>>, vector<16x16x8xbf16>
    tpu.vector_store %arg13[%c1_76, %c16_77, %c0_78], %63 {strides = array<i32>} : memref<18x48x8xbf16, #tpu.memory_space<vmem>>, vector<16x16x8xbf16>,
    %cst_79 = arith.constant 0.000000e+00 : f32
    %65 = vector.broadcast %cst_79 : f32 to vector<256x8xf32>
    %c0_80 = arith.constant 0 : index
    %c15_81 = arith.constant 15 : index
    %c0_82 = arith.constant 0 : index
    %66 = vector.load %arg13[%c0_80, %c15_81, %c0_82] : memref<18x48x8xbf16, #tpu.memory_space<vmem>>, vector<16x16x8xbf16>
    %67 = vector.shape_cast %66 : vector<16x16x8xbf16> to vector<256x8xbf16>
    %c0_83 = arith.constant 0 : index
    %c16_84 = arith.constant 16 : index
    %c0_85 = arith.constant 0 : index
    %68 = vector.load %arg13[%c0_83, %c16_84, %c0_85] : memref<18x48x8xbf16, #tpu.memory_space<vmem>>, vector<16x16x8xbf16>
    %69 = vector.shape_cast %68 : vector<16x16x8xbf16> to vector<256x8xbf16>
    %c0_86 = arith.constant 0 : index
    %c17_87 = arith.constant 17 : index
    %c0_88 = arith.constant 0 : index
    %70 = vector.load %arg13[%c0_86, %c17_87, %c0_88] : memref<18x48x8xbf16, #tpu.memory_space<vmem>>, vector<16x16x8xbf16>
    %71 = vector.shape_cast %70 : vector<16x16x8xbf16> to vector<256x8xbf16>
    %72 = tpu.concatenate %67, %69, %71 in 1 : vector<256x8xbf16>, vector<256x8xbf16>, vector<256x8xbf16> -> vector<256x24xbf16>
    %c0_89 = arith.constant 0 : index
    %c0_90 = arith.constant 0 : index
    %c0_91 = arith.constant 0 : index
    %73 = vector.load %arg5[%c0_89, %c0_90, %c0_91] : memref<3x24x8xbf16, #tpu.memory_space<vmem>>, vector<1x24x8xbf16>
    %74 = vector.shape_cast %73 : vector<1x24x8xbf16> to vector<24x8xbf16>
    %cst_92 = arith.constant dense<0.000000e+00> : vector<256x8xf32>
    %75 = tpu.matmul %72, %74, %cst_92 {dimension_numbers = #tpu.dot_dimension_numbers<[1], [0], [0], [1], [0, 0, 1, 1], [], []>} : vector<256x24xbf16>, vector<24x8xbf16>, vector<256x8xf32> -> vector<256x8xf32>
    %76 = arith.addf %65, %75 : vector<256x8xf32>
    %c1_93 = arith.constant 1 : index
    %c15_94 = arith.constant 15 : index
    %c0_95 = arith.constant 0 : index
    %77 = vector.load %arg13[%c1_93, %c15_94, %c0_95] : memref<18x48x8xbf16, #tpu.memory_space<vmem>>, vector<16x16x8xbf16>
    %78 = vector.shape_cast %77 : vector<16x16x8xbf16> to vector<256x8xbf16>
    %c1_96 = arith.constant 1 : index
    %c16_97 = arith.constant 16 : index
    %c0_98 = arith.constant 0 : index
    %79 = vector.load %arg13[%c1_96, %c16_97, %c0_98] : memref<18x48x8xbf16, #tpu.memory_space<vmem>>, vector<16x16x8xbf16>
    %80 = vector.shape_cast %79 : vector<16x16x8xbf16> to vector<256x8xbf16>
    %c1_99 = arith.constant 1 : index
    %c17_100 = arith.constant 17 : index
    %c0_101 = arith.constant 0 : index
    %81 = vector.load %arg13[%c1_99, %c17_100, %c0_101] : memref<18x48x8xbf16, #tpu.memory_space<vmem>>, vector<16x16x8xbf16>
    %82 = vector.shape_cast %81 : vector<16x16x8xbf16> to vector<256x8xbf16>
    %83 = tpu.concatenate %78, %80, %82 in 1 : vector<256x8xbf16>, vector<256x8xbf16>, vector<256x8xbf16> -> vector<256x24xbf16>
    %c1_102 = arith.constant 1 : index
    %c0_103 = arith.constant 0 : index
    %c0_104 = arith.constant 0 : index
    %84 = vector.load %arg5[%c1_102, %c0_103, %c0_104] : memref<3x24x8xbf16, #tpu.memory_space<vmem>>, vector<1x24x8xbf16>
    %85 = vector.shape_cast %84 : vector<1x24x8xbf16> to vector<24x8xbf16>
    %cst_105 = arith.constant dense<0.000000e+00> : vector<256x8xf32>
    %86 = tpu.matmul %83, %85, %cst_105 {dimension_numbers = #tpu.dot_dimension_numbers<[1], [0], [0], [1], [0, 0, 1, 1], [], []>} : vector<256x24xbf16>, vector<24x8xbf16>, vector<256x8xf32> -> vector<256x8xf32>
    %87 = arith.addf %76, %86 : vector<256x8xf32>
    %c2_106 = arith.constant 2 : index
    %c15_107 = arith.constant 15 : index
    %c0_108 = arith.constant 0 : index
    %88 = vector.load %arg13[%c2_106, %c15_107, %c0_108] : memref<18x48x8xbf16, #tpu.memory_space<vmem>>, vector<16x16x8xbf16>
    %89 = vector.shape_cast %88 : vector<16x16x8xbf16> to vector<256x8xbf16>
    %c2_109 = arith.constant 2 : index
    %c16_110 = arith.constant 16 : index
    %c0_111 = arith.constant 0 : index
    %90 = vector.load %arg13[%c2_109, %c16_110, %c0_111] : memref<18x48x8xbf16, #tpu.memory_space<vmem>>, vector<16x16x8xbf16>
    %91 = vector.shape_cast %90 : vector<16x16x8xbf16> to vector<256x8xbf16>
    %c2_112 = arith.constant 2 : index
    %c17_113 = arith.constant 17 : index
    %c0_114 = arith.constant 0 : index
    %92 = vector.load %arg13[%c2_112, %c17_113, %c0_114] : memref<18x48x8xbf16, #tpu.memory_space<vmem>>, vector<16x16x8xbf16>
    %93 = vector.shape_cast %92 : vector<16x16x8xbf16> to vector<256x8xbf16>
    %94 = tpu.concatenate %89, %91, %93 in 1 : vector<256x8xbf16>, vector<256x8xbf16>, vector<256x8xbf16> -> vector<256x24xbf16>
    %c2_115 = arith.constant 2 : index
    %c0_116 = arith.constant 0 : index
    %c0_117 = arith.constant 0 : index
    %95 = vector.load %arg5[%c2_115, %c0_116, %c0_117] : memref<3x24x8xbf16, #tpu.memory_space<vmem>>, vector<1x24x8xbf16>
    %96 = vector.shape_cast %95 : vector<1x24x8xbf16> to vector<24x8xbf16>
    %cst_118 = arith.constant dense<0.000000e+00> : vector<256x8xf32>
    %97 = tpu.matmul %94, %96, %cst_118 {dimension_numbers = #tpu.dot_dimension_numbers<[1], [0], [0], [1], [0, 0, 1, 1], [], []>} : vector<256x24xbf16>, vector<24x8xbf16>, vector<256x8xf32> -> vector<256x8xf32>
    %98 = arith.addf %87, %97 : vector<256x8xf32>
    %c0_119 = arith.constant 0 : index
    %c0_120 = arith.constant 0 : index
    %99 = vector.load %arg6[%c0_119, %c0_120] : memref<1x8xf32, #tpu.memory_space<vmem>>, vector<1x8xf32>
    %100 = vector.broadcast %99 : vector<1x8xf32> to vector<256x8xf32>
    %101 = arith.mulf %98, %100 : vector<256x8xf32>
    %c0_121 = arith.constant 0 : index
    %c0_122 = arith.constant 0 : index
    %102 = vector.load %arg7[%c0_121, %c0_122] : memref<1x8xf32, #tpu.memory_space<vmem>>, vector<1x8xf32>
    %103 = vector.broadcast %102 : vector<1x8xf32> to vector<256x8xf32>
    %104 = arith.addf %101, %103 : vector<256x8xf32>
    %c1_123 = arith.constant 1 : index
    %c16_124 = arith.constant 16 : index
    %c0_125 = arith.constant 0 : index
    %105 = vector.load %arg12[%c1_123, %c16_124, %c0_125] : memref<18x48x4xbf16, #tpu.memory_space<vmem>>, vector<16x16x4xbf16>
    %106 = vector.shape_cast %105 : vector<16x16x4xbf16> to vector<256x4xbf16>
    %c0_126 = arith.constant 0 : index
    %c0_127 = arith.constant 0 : index
    %107 = vector.load %arg8[%c0_126, %c0_127] : memref<4x8xbf16, #tpu.memory_space<vmem>>, vector<4x8xbf16>
    %cst_128 = arith.constant dense<0.000000e+00> : vector<256x8xf32>
    %108 = tpu.matmul %106, %107, %cst_128 {dimension_numbers = #tpu.dot_dimension_numbers<[1], [0], [0], [1], [0, 0, 1, 1], [], []>} : vector<256x4xbf16>, vector<4x8xbf16>, vector<256x8xf32> -> vector<256x8xf32>
    %c0_129 = arith.constant 0 : index
    %c0_130 = arith.constant 0 : index
    %109 = vector.load %arg9[%c0_129, %c0_130] : memref<1x8xf32, #tpu.memory_space<vmem>>, vector<1x8xf32>
    %110 = vector.broadcast %109 : vector<1x8xf32> to vector<256x8xf32>
    %111 = arith.mulf %108, %110 : vector<256x8xf32>
    %c0_131 = arith.constant 0 : index
    %c0_132 = arith.constant 0 : index
    %112 = vector.load %arg10[%c0_131, %c0_132] : memref<1x8xf32, #tpu.memory_space<vmem>>, vector<1x8xf32>
    %113 = vector.broadcast %112 : vector<1x8xf32> to vector<256x8xf32>
    %114 = arith.addf %111, %113 : vector<256x8xf32>
    %115 = arith.addf %104, %114 : vector<256x8xf32>
    %cst_133 = arith.constant 0.000000e+00 : f32
    %116 = vector.broadcast %cst_133 : f32 to vector<256x8xf32>
    %117 = arith.maximumf %115, %116 : vector<256x8xf32>
    %118 = vector.shape_cast %117 : vector<256x8xf32> to vector<16x16x8xf32>
    %c0_134 = arith.constant 0 : index
    %c0_135 = arith.constant 0 : index
    %c0_136 = arith.constant 0 : index
    %c0_137 = arith.constant 0 : index
    %119 = vector.load %arg11[%c0_134, %c0_135, %c0_136, %c0_137] : memref<1x16x16x8xf32, #tpu.memory_space<vmem>>, vector<1x16x16x8xf32>
    %120 = vector.shape_cast %119 : vector<1x16x16x8xf32> to vector<16x16x8xf32>
    %121 = vector.shape_cast %118 : vector<16x16x8xf32> to vector<1x16x16x8xf32>
    tpu.vector_store %arg11[%c0_134, %c0_135, %c0_136, %c0_137], %121 {strides = array<i32>} : memref<1x16x16x8xf32, #tpu.memory_space<vmem>>, vector<1x16x16x8xf32>,
    return
  }
  func.func @transform_0(%arg0: i32) -> (i32, i32, i32, i32) {
    %c0_i32 = arith.constant 0 : i32
    %c0_i32_0 = arith.constant 0 : i32
    %c0_i32_1 = arith.constant 0 : i32
    %c0_i32_2 = arith.constant 0 : i32
    return %arg0, %c0_i32, %c0_i32_0, %c0_i32_1 : i32, i32, i32, i32
  }
  func.func @transform_1(%arg0: i32) -> (i32, i32, i32) {
    %c0_i32 = arith.constant 0 : i32
    %c0_i32_0 = arith.constant 0 : i32
    %c0_i32_1 = arith.constant 0 : i32
    %c0_i32_2 = arith.constant 0 : i32
    return %c0_i32, %c0_i32_0, %c0_i32_1 : i32, i32, i32
  }
  func.func @transform_2(%arg0: i32) -> (i32, i32) {
    %c0_i32 = arith.constant 0 : i32
    %c0_i32_0 = arith.constant 0 : i32
    %c0_i32_1 = arith.constant 0 : i32
    return %c0_i32, %c0_i32_0 : i32, i32
  }
  func.func @transform_3(%arg0: i32) -> (i32, i32) {
    %c0_i32 = arith.constant 0 : i32
    %c0_i32_0 = arith.constant 0 : i32
    %c0_i32_1 = arith.constant 0 : i32
    return %c0_i32, %c0_i32_0 : i32, i32
  }
  func.func @transform_4(%arg0: i32) -> (i32, i32, i32) {
    %c0_i32 = arith.constant 0 : i32
    %c0_i32_0 = arith.constant 0 : i32
    %c0_i32_1 = arith.constant 0 : i32
    %c0_i32_2 = arith.constant 0 : i32
    return %c0_i32, %c0_i32_0, %c0_i32_1 : i32, i32, i32
  }
  func.func @transform_5(%arg0: i32) -> (i32, i32) {
    %c0_i32 = arith.constant 0 : i32
    %c0_i32_0 = arith.constant 0 : i32
    %c0_i32_1 = arith.constant 0 : i32
    return %c0_i32, %c0_i32_0 : i32, i32
  }
  func.func @transform_6(%arg0: i32) -> (i32, i32) {
    %c0_i32 = arith.constant 0 : i32
    %c0_i32_0 = arith.constant 0 : i32
    %c0_i32_1 = arith.constant 0 : i32
    return %c0_i32, %c0_i32_0 : i32, i32
  }
  func.func @transform_7(%arg0: i32) -> (i32, i32) {
    %c0_i32 = arith.constant 0 : i32
    %c0_i32_0 = arith.constant 0 : i32
    %c0_i32_1 = arith.constant 0 : i32
    return %c0_i32, %c0_i32_0 : i32, i32
  }
  func.func @transform_8(%arg0: i32) -> (i32, i32) {
    %c0_i32 = arith.constant 0 : i32
    %c0_i32_0 = arith.constant 0 : i32
    %c0_i32_1 = arith.constant 0 : i32
    return %c0_i32, %c0_i32_0 : i32, i32
  }
  func.func @transform_9(%arg0: i32) -> (i32, i32) {
    %c0_i32 = arith.constant 0 : i32
    %c0_i32_0 = arith.constant 0 : i32
    %c0_i32_1 = arith.constant 0 : i32
    return %c0_i32, %c0_i32_0 : i32, i32
  }
  func.func @transform_10(%arg0: i32) -> (i32, i32, i32, i32) {
    %c0_i32 = arith.constant 0 : i32
    %c0_i32_0 = arith.constant 0 : i32
    %c0_i32_1 = arith.constant 0 : i32
    %c0_i32_2 = arith.constant 0 : i32
    return %arg0, %c0_i32, %c0_i32_0, %c0_i32_1 : i32, i32, i32, i32
  }
}

</mosaic_0001>

<bundles_post_ra>
// kernel: tpu_custom_call.1
= control target key start
LH: loop header
LB: loop body
LE: loop exit
PB: predicated region body
PF: predicated region fallthrough
CT: control target
= control target key end

     0   :  { %s8979_s13 = smov 0   ;;  %s13749_s0 = inlined_call_operand.vmem [shape: f32[2,16,16,4], index: 0, kind: input, shape index: {}]   ;;  %s13750_s1 = inlined_call_operand.vmem [shape: bf16[3,12,8], index: 1, kind: input, shape index: {}]   ;;  %s13751_s2 = inlined_call_operand.vmem [shape: f32[1,8], index: 2, kind: input, shape index: {}]   ;;  %s13752_s3 = inlined_call_operand.vmem [shape: f32[1,8], index: 3, kind: input, shape index: {}]   ;;  %s13753_s4 = inlined_call_operand.vmem [shape: bf16[3,24,8], index: 4, kind: input, shape index: {}]   ;;  %s13754_s5 = inlined_call_operand.vmem [shape: f32[1,8], index: 5, kind: input, shape index: {}]   ;;  %s13755_s6 = inlined_call_operand.vmem [shape: f32[1,8], index: 6, kind: input, shape index: {}]   ;;  %s13756_s7 = inlined_call_operand.vmem [shape: bf16[4,8], index: 7, kind: input, shape index: {}]   ;;  %s13757_s8 = inlined_call_operand.vmem [shape: f32[1,8], index: 8, kind: input, shape index: {}]   ;;  %s13758_s9 = inlined_call_operand.vmem [shape: f32[1,8], index: 9, kind: input, shape index: {}]   ;;  %s13759_s10 = inlined_call_operand.vmem [shape: f32[2,16,16,8], index: 10, kind: output, shape index: {}]  }
   0x1 LB: > { %s8057_s14 = sadd.s32 4294967295, %s8918_s13   ;;  %p8061_p0 = scmp.ge.s32.totalorder %s8918_s13, 1  ;;  %s8918_s13 = sphi %s8979_s13, %s20_s13  }
   0x2   : > { %p312_p1 = scmp.lt.s32.totalorder %s8918_s13, 3 }
   0x4   : > { %p313_p2 = pnand %p8061_p0, %p312_p1 }
   0x6   : > { %316 = sbr.rel (%p313_p2) target bundleno = 1186 (0x4a2), region = 60 }
   0xb   : > { %vm367_vm0 = vcmask 27648   ;;  %p350_p3 = scmp.lt.s32.totalorder %s8057_s14, 1  ;;  %vm370_vm1 = vcmask 24576   ;;  %v13760_v0 = vmov 0   ;;  %vm371_vm2 = vsmask.f32 256 }
   0xc   : > { %368 = vst.msk [vmem:[#allocation2 + $0x8] sm:$0xf] %vm367_vm0, %v13760_v0  ;;  %v440_v1 = vld [vmem:[#allocation2 + $0x58] sm:$0x1]  ;;  %vm8994_vm3 = vmand %vm370_vm1, %vm371_vm2  ;;  %v373_v4 = vld [vmem:[#allocation2 + $0x10] sm:$0x1] }
   0xd   : > { %369 = vst.msk [vmem:[#allocation2 + $0xc] sm:$0xf] %vm367_vm0, %v13760_v0  ;;  %s14774_s14 = smov (!%p350_p3, %s8057_s14), 1  ;;  %v441_v3 = vsel %vm8994_vm3, 0, %v440_v1  ;;  %v434_v5 = vld [vmem:[#allocation2 + $0x28] sm:$0x1] }
   0xe   : > { %380 = vst.msk [vmem:[#allocation2 + $0x1a0] sm:$0xf] %vm367_vm0, %v13760_v0  ;;  %s8758_s15 = sshll.u32 %s14774_s14, 8  ;;  %vm996_vm4 = vsmask.f32 3328  ;;  %v374_v9 = vsel %vm8994_vm3, 0, %v373_v4 }
   0xf   : > { %381 = vst.msk [vmem:[#allocation2 + $0x1a4] sm:$0xf] %vm367_vm0, %v13760_v0  ;;  %s9010_s18 = scalar_lea.vmem %s13749_s0, %s8758_s15  ;;  %vm997_vm5 = vsmask.f32 7440  ;;  %v435_v10 = vsel %vm8994_vm3, 0, %v434_v5  ;;  %s8921_s19 = smov 4  }
  0x10   : > { %442 = vst [vmem:[#allocation2 + $0x58] sm:$0x1] %v441_v3  ;;  %v484_v6 = vld [vmem:[%s9010_s18 + $0x10] sm:$0xff]  ;;  %v485_v7 = vld [vmem:[%s9010_s18 + $0x18] sm:$0xff]  ;;  %v482_v8 = vld [vmem:[%s9010_s18] sm:$0xff]  ;;  %s8922_s20 = smov 8   ;;  %s12893_s28 = scalar_lea.vmem %s13759_s10, %s8758_s15 }
  0x11   : > { %v516_v11 = vpack.c.bf16 %v484_v6, %v484_v6  ;;  %v517_v12 = vpack.c.bf16 %v485_v7, %v485_v7  ;;  %v483_v13 = vld [vmem:[%s9010_s18 + $0x8] sm:$0xff]  ;;  %v514_v14 = vpack.c.bf16 %v482_v8, %v482_v8  ;;  %v486_v15 = vld [vmem:[%s9010_s18 + $0x20] sm:$0xff]  ;;  %375 = vst [vmem:[#allocation2 + $0x10] sm:$0x1] %v374_v9  ;;  %vm9064_vm6 = vmor %vm996_vm4, %vm997_vm5  ;;  %vm626_vm7 = vsmask.f32 4368 }
  0x12   : > { %v487_v16 = vld [vmem:[%s9010_s18 + $0x28] sm:$0xff]  ;;  %v515_v17 = vpack.c.bf16 %v483_v13, %v483_v13  ;;  %436 = vst [vmem:[#allocation2 + $0x28] sm:$0x1] %v435_v10  ;;  %v437_v19 = vld [vmem:[#allocation2 + $0x40] sm:$0x1]  ;;  %v518_v21 = vpack.c.bf16 %v486_v15, %v486_v15  ;;  %v488_v60 = vld [vmem:[%s9010_s18 + $0x30] sm:$0xff] }
  0x13   : > { %v9022_v18 = vld [vmem:[#allocation2 + $0x8] sm:$0xf]  ;;  %548 = vst.msk [vmem:[#allocation2 + $0x38] sm:$0xf] %vm367_vm0, %v516_v11  ;;  %v519_v24 = vpack.c.bf16 %v487_v16, %v487_v16  ;;  %v438_v29 = vsel %vm8994_vm3, 0, %v437_v19  ;;  %v9049_v36 = vld [vmem:[%s9010_s18 + $0xc0] sm:$0xff]  ;;  %v520_v15 = vpack.c.bf16 %v488_v60, %v488_v60  ;;  %vm9551_vm12 = vmor %vm371_vm2, %vm626_vm7 }
  0x14   : > { %v8760_v20 = vld [vmem:[#allocation2 + $0x8] sm:$0xff]  ;;  %v13808_v23 = vshrl.u32 %v9022_v18, 16  ;;  %549 = vst.msk [vmem:[#allocation2 + $0x3c] sm:$0xf] %vm367_vm0, %v517_v12  ;;  %v13804_v25 = vshll.u32 %v9022_v18, 16  ;;  %v538_v47 = vpack.c.bf16 %v9049_v36, %v9049_v36  ;;  %vm361_vm8 = vcmask 27651  }
  0x15   : > { %v9025_v22 = vld [vmem:[#allocation2 + $0xc] sm:$0xf]  ;;  %1351 = vrot.lane.b32.xlu1 %v8760_v20, %s8921_s19  ;;  %546 = vst.msk [vmem:[#allocation2 + $0x20] sm:$0xf] %vm367_vm0, %v514_v14  ;;  %v9038_v30 = vld [vmem:[#allocation2 + $0x148] sm:$0x1] }
  0x16   : > { %v13812_v26 = vshrl.u32 %v9025_v22, 16  ;;  %v13807_v27 = vshll.u32 %v9025_v22, 16  ;;  %v999_v28 = vrot.slane %v13808_v23, 4  ;;  %547 = vst.msk [vmem:[#allocation2 + $0x24] sm:$0xf] %vm367_vm0, %v515_v17  ;;  %v1000_v32 = vrot.slane %v13804_v25, 5 }
  0x17   : > { %v3172_v31 = vld [vmem:[#allocation2 + $0x58] sm:$0x1]  ;;  %550 = vst.msk [vmem:[#allocation2 + $0x50] sm:$0xf] %vm367_vm0, %v518_v21  ;;  %v9053_v39 = vld [vmem:[%s9010_s18 + $0xc8] sm:$0xff]  ;;  %v471_v46 = vsel %vm8994_vm3, 0, %v9038_v30 }
  0x18   : > { %v1003_v33 = vrot.slane %v13807_v27, 5  ;;  %v3211_v34 = vshll.u32 %v3172_v31, 16  ;;  %v1005_v35 = vrot.slane %v13812_v26, 4  ;;  %551 = vst.msk [vmem:[#allocation2 + $0x54] sm:$0xf] %vm367_vm0, %v519_v24  ;;  %v1001_v38 = vor.u32 %v1000_v32, %v999_v28 }
  0x19   : > { %v980_v37 = vld [vmem:[#allocation2 + $0x10] sm:$0x1]  ;;  %v981_v42 = vld [vmem:[#allocation2 + $0x28] sm:$0x1]  ;;  %439 = vst [vmem:[#allocation2 + $0x40] sm:$0x1] %v438_v29  ;;  %v539_v54 = vpack.c.bf16 %v9053_v39, %v9053_v39 }
  0x1a   : > { %v1006_v40 = vor.u32 %v1005_v35, %v1003_v33  ;;  %v1009_v41 = vshll.u32 %v980_v37, 16  ;;  %v1002_v43 = vrot.slane %v1001_v38, 4  ;;  %v1023_v44 = vshll.u32 %v981_v42, 16  ;;  %v9055_v45 = vld [vmem:[#allocation2 + $0x38] sm:$0xf] }
  0x1b   : > { %v8794_v48 = vld [vmem:[#allocation2 + $0x38] sm:$0xff]  ;;  %v9068_v50 = vrot.slane %v3211_v34, 5  ;;  %v13799_v58 = vshrl.u32 %v9055_v45, 16  ;;  %v13785_v59 = vshll.u32 %v9055_v45, 16  ;;  %472 = vst [vmem:[#allocation2 + $0x148] sm:$0x1] %v471_v46 }
  0x1c   : > { %v1007_v51 = vrot.slane %v1006_v40, 4  ;;  %v1011_v52 = vrot.slane %v1009_v41, 5  ;;  %v9070_v53 = vld [vmem:[#allocation2 + $0x3c] sm:$0xf]  ;;  %v1004_v55 = vsel %vm9064_vm6, %v1002_v43, %v1003_v33  ;;  %v9076_v56 = vld [vmem:[#allocation2 + $0x20] sm:$0xf]  ;;  %3539 = vrot.lane.b32.xlu0 %v8794_v48, %s8921_s19 }
  0x1d   : > { %v9078_v57 = vrot.slane %v1023_v44, 5  ;;  %v8777_v61 = vld [vmem:[#allocation2 + $0x20] sm:$0xff]  ;;  %v1383_v1 = vunpack.c.l.b16 %v1004_v55  ;;  %v13813_v4 = vshrl.u32 %v9076_v56, 16  ;;  %v13806_v5 = vshll.u32 %v9076_v56, 16  ;;  %570 = vst.msk [vmem:[#allocation2 + $0x140] sm:$0xf] %vm367_vm0, %v538_v47 }
  0x1e   : > { %v8761_v62 = vld [vmem:[#allocation2 + $0x20] sm:$0xff]  ;;  %v1012_v63 = vsel %vm9064_vm6, %v1007_v51, %v1011_v52  ;;  %v9090_v6 = vld [vmem:[#allocation2 + $0x50] sm:$0xf]  ;;  %v13802_v10 = vshrl.u32 %v9070_v53, 16  ;;  %2315 = vrot.lane.b32.xlu1 %v8777_v61, %s8921_s19  ;;  %v13796_v34 = vshll.u32 %v9070_v53, 16  ;;  %v3187_v38 = vrot.slane %v13799_v58, 4 }
  0x1f   : > { %v9086_v3 = vld [vmem:[#allocation2 + $0x24] sm:$0xf]  ;;  %v1384_v7 = vunpack.c.l.b16 %v1012_v63  ;;  %1353 = vrot.lane.b32.xlu2 %v8761_v62, %s8921_s19  ;;  %v9097_v11 = vld [vmem:[#allocation2 + $0x54] sm:$0xf]  ;;  %v13783_v12 = vshrl.u32 %v9090_v6, 16  ;;  %v13768_v13 = vshll.u32 %v9090_v6, 16 }
  0x20   : > { %v13829_v8 = vshrl.u32 %v9086_v3, 16  ;;  %v13824_v9 = vshll.u32 %v9086_v3, 16  ;;  %v1013_v14 = vrot.slane %v13813_v4, 4  ;;  %v13782_v16 = vshrl.u32 %v9097_v11, 16  ;;  %v8795_v21 = vld [vmem:[#allocation2 + $0x50] sm:$0xff] }
  0x21   : > { %v13771_v17 = vshll.u32 %v9097_v11, 16  ;;  %v1415_v19 = vpack.c.b16 %v1384_v7, %v1383_v1  ;;  %v1014_v20 = vrot.slane %v13806_v5, 5  ;;  %v3201_v24 = vrot.slane %v13783_v12, 4  ;;  %v3171_v35 = vld [vmem:[#allocation2 + $0x40] sm:$0x1] }
  0x22   : > { %v3202_v28 = vrot.slane %v13768_v13, 5  ;;  %v1017_v29 = vrot.slane %v13824_v9, 5  ;;  %v1019_v30 = vrot.slane %v13829_v8, 4  ;;  %v3207_v32 = vrot.slane %v13782_v16, 4  ;;  %v9124_v40 = vld [vmem:[#allocation2 + $0x20] sm:$0xf] }
  0x23   : > { %v3205_v31 = vrot.slane %v13771_v17, 5  ;;  %v1015_v33 = vor.u32 %v1014_v20, %v1013_v14  ;;  %v3188_v39 = vrot.slane %v13785_v59, 5  ;;  %v3191_v43 = vrot.slane %v13796_v34, 5  ;;  %571 = vst.msk [vmem:[#allocation2 + $0x144] sm:$0xf] %vm367_vm0, %v539_v54  ;;  %v509_v16 = vld [vmem:[%s9010_s18 + $0xd8] sm:$0xff] }
  0x24   : > { %v3203_v36 = vor.u32 %v3202_v28, %v3201_v24  ;;  %v1020_v37 = vor.u32 %v1019_v30, %v1017_v29  ;;  %v3193_v44 = vrot.slane %v13802_v10, 4  ;;  %3541 = vrot.lane.b32.xlu0 %v8795_v21, %s8921_s19  ;;  %v3197_v55 = vshll.u32 %v3171_v35, 16  ;;  %552 = vst.msk [vmem:[#allocation2 + $0x68] sm:$0xf] %vm367_vm0, %v520_v15  ;;  %v9145_v7 = vld [vmem:[#allocation2 + $0x24] sm:$0xf] }
  0x25   : > { %v3208_v41 = vor.u32 %v3207_v32, %v3205_v31  ;;  %v1016_v42 = vrot.slane %v1015_v33, 4  ;;  %v3189_v52 = vor.u32 %v3188_v39, %v3187_v38  ;;  %v13795_v62 = vshrl.u32 %v9124_v40, 16  ;;  %v8778_v28 = vld [vmem:[#allocation2 + $0x38] sm:$0xff]  ;;  %v1947_v30 = vld [vmem:[#allocation2 + $0x28] sm:$0x1] }
  0x26   : > { %v3204_v48 = vrot.slane %v3203_v36, 4  ;;  %v1021_v51 = vrot.slane %v1020_v37, 4  ;;  %v3194_v61 = vor.u32 %v3193_v44, %v3191_v43  ;;  %v13798_v33 = vshrl.u32 %v9145_v7, 16  ;;  %v9165_v39 = vld [vmem:[#allocation2 + $0x140] sm:$0xf]  ;;  %v511_v59 = vld [vmem:[%s9010_s18 + $0xe8] sm:$0xff] }
  0x27   : > { %v3209_v60 = vrot.slane %v3208_v41, 4  ;;  %v1018_v46 = vsel %vm9064_vm6, %v1016_v42, %v1017_v29  ;;  %1431 = vrot.lane.b32.xlu2 %v1415_v19, %s8922_s20  ;;  %v3190_v1 = vrot.slane %v3189_v52, 4  ;;  %v3199_v29 = vrot.slane %v3197_v55, 5  ;;  %v443_v41 = vld [vmem:[#allocation2 + $0x70] sm:$0x1] }
  0x28   : > { %v3206_v47 = vsel %vm9064_vm6, %v3204_v48, %v3205_v31  ;;  %v1026_v63 = vsel %vm9064_vm6, %v1021_v51, %v9078_v57  ;;  %v9143_v54 = vunpack.c.l.b16 %v1018_v46  ;;  %v3195_v21 = vrot.slane %v3194_v61, 4  ;;  %v1959_v61 = vld [vmem:[#allocation2 + $0x148] sm:$0x1]  ;;  %v1949_v17 = vld [vmem:[#allocation2 + $0x58] sm:$0x1] }
  0x29   : > { %v3214_v14 = vsel %vm9064_vm6, %v3209_v60, %v9068_v50  ;;  %v3573_v15 = vunpack.c.l.b16 %v3206_v47  ;;  %v9150_v20 = vunpack.c.l.b16 %v1026_v63  ;;  %v3192_v19 = vsel %vm9064_vm6, %v3190_v1, %v3191_v43  ;;  %v489_v47 = vld [vmem:[%s9010_s18 + $0x38] sm:$0xff] }
  0x2a   : > { %v3574_v24 = vunpack.c.l.b16 %v3214_v14  ;;  %v13786_v57 = vshll.u32 %v9124_v40, 16  ;;  %v3571_v32 = vunpack.c.l.b16 %v3192_v19  ;;  %v13788_v50 = vshll.u32 %v9145_v7, 16  ;;  %v9171_v51 = vld [vmem:[#allocation2 + $0x144] sm:$0xf]  ;;  %v9188_v19 = vld [vmem:[#allocation2 + $0x38] sm:$0xf] }
  0x2b   : > { %v1416_v31 = vpack.c.b16 %v9150_v20, %v9143_v54  ;;  %v3200_v36 = vsel %vm9064_vm6, %v3195_v21, %v3199_v29  ;;  %v1963_v37 = vrot.slane %v13795_v62, 4  ;;  %v1969_v44 = vrot.slane %v13798_v33, 4  ;;  %v9190_v29 = vld [vmem:[#allocation2 + $0x3c] sm:$0xf] }
  0x2c   : > { %v3604_v35 = vpack.c.b16 %v3574_v24, %v3573_v15  ;;  %v1964_v38 = vrot.slane %v13786_v57, 5  ;;  %v3572_v42 = vunpack.c.l.b16 %v3200_v36  ;;  %v1967_v43 = vrot.slane %v13788_v50, 5  ;;  %2317 = vrot.lane.b32.xlu0 %v8778_v28, %s8921_s19  ;;  %v9180_v15 = vld [vmem:[#allocation2 + $0x68] sm:$0xf] }
  0x2d   : > { %v1973_v48 = vshll.u32 %v1947_v30, 16  ;;  %v13767_v55 = vshrl.u32 %v9165_v39, 16  ;;  %v13762_v60 = vshll.u32 %v9165_v39, 16  ;;  %v13766_v46 = vshrl.u32 %v9171_v51, 16  ;;  %v9288_v57 = vld [vmem:[#allocation2 + $0x68] sm:$0xf] }
  0x2e   : > { %3621 = vrot.lane.b32.xlu1 %v3604_v35, %s8922_s20  ;;  %v1965_v52 = vor.u32 %v1964_v38, %v1963_v37  ;;  %v3603_v63 = vpack.c.b16 %v3572_v42, %v3571_v32  ;;  %v1970_v54 = vor.u32 %v1969_v44, %v1967_v43  ;;  %v13763_v14 = vshll.u32 %v9171_v51, 16 }
  0x2f   : > { %v1975_v1 = vrot.slane %v1973_v48, 5  ;;  %v2131_v21 = vrot.slane %v13767_v55, 4  ;;  %v2132_v24 = vrot.slane %v13762_v60, 5  ;;  %v2137_v28 = vrot.slane %v13766_v46, 4 }
  0x30   : > { %v1966_v20 = vrot.slane %v1965_v52, 4  ;;  %v1971_v30 = vrot.slane %v1970_v54, 4  ;;  %v2135_v32 = vrot.slane %v13763_v14, 5  ;;  %v2141_v35 = vshll.u32 %v1959_v61, 16 }
  0x31   : > { %v444_v36 = vsel %vm8994_vm3, 0, %v443_v41  ;;  %v2133_v38 = vor.u32 %v2132_v24, %v2131_v21  ;;  %v521_v42 = vpack.c.bf16 %v489_v47, %v489_v47  ;;  %v13765_v44 = vshrl.u32 %v9180_v15, 16 }
  0x32   : > { %v1968_v37 = vsel %vm9064_vm6, %v1966_v20, %v1967_v43  ;;  %445 = vst [vmem:[#allocation2 + $0x70] sm:$0x1] %v444_v36  ;;  %v1976_v48 = vsel %vm9064_vm6, %v1971_v30, %v1975_v1  ;;  %v2138_v54 = vor.u32 %v2137_v28, %v2135_v32  ;;  %v2143_v0 = vrot.slane %v2141_v35, 5  ;;  %v1948_v35 = vld [vmem:[#allocation2 + $0x40] sm:$0x1] }
  0x33   : > { %v2347_v52 = vunpack.c.l.b16 %v1968_v37  ;;  %v2348_v60 = vunpack.c.l.b16 %v1976_v48  ;;  %v2134_v14 = vrot.slane %v2133_v38, 4  ;;  %553 = vst.msk [vmem:[#allocation2 + $0x6c] sm:$0xf] %vm367_vm0, %v521_v42  ;;  %v13764_v41 = vshll.u32 %v9180_v15, 16  ;;  %v9215_v36 = vld [vmem:[#allocation2 + $0x50] sm:$0xf] }
  0x34   : > { %v3215_v43 = vrot.slane %v13765_v44, 4  ;;  %v2139_v61 = vrot.slane %v2138_v54, 4  ;;  %v13777_v47 = vshrl.u32 %v9188_v19, 16  ;;  %v13769_v20 = vshll.u32 %v9188_v19, 16  ;;  %3619 = vrot.lane.b32.xlu0 %v3603_v63, %s8922_s20  ;;  %v9228_v48 = vld [vmem:[#allocation2 + $0x54] sm:$0xf] }
  0x35   : > { %v13779_v21 = vshrl.u32 %v9190_v29, 16  ;;  %v2379_v1 = vpack.c.b16 %v2348_v60, %v2347_v52  ;;  %v2136_v24 = vsel %vm9064_vm6, %v2134_v14, %v2135_v32  ;;  %v3216_v28 = vrot.slane %v13764_v41, 5  ;;  %v8789_v44 = vld [vmem:[#allocation2 + $0x140] sm:$0xff] }
  0x36   : > { %1433 = vrot.lane.b32.xlu1 %v1416_v31, %s8922_s20  ;;  %v13770_v30 = vshll.u32 %v9190_v29, 16  ;;  %v2144_v37 = vsel %vm9064_vm6, %v2139_v61, %v2143_v0  ;;  %v2371_v38 = vunpack.c.l.b16 %v2136_v24  ;;  %v1977_v31 = vrot.slane %v13777_v47, 4  ;;  %v8762_v47 = vld [vmem:[#allocation2 + $0x38] sm:$0xff] }
  0x37   : > { %v1978_v60 = vrot.slane %v13769_v20, 5  ;;  %2395 = vrot.lane.b32.xlu2 %v2379_v1, %s8922_s20  ;;  %v2372_v63 = vunpack.c.l.b16 %v2144_v37  ;;  %v3217_v14 = vor.u32 %v3216_v28, %v3215_v43  ;;  %v1983_v42 = vrot.slane %v13779_v21, 4  ;;  %v982_v21 = vld [vmem:[#allocation2 + $0x40] sm:$0x1] }
  0x38   : > { %v1981_v32 = vrot.slane %v13770_v30, 5  ;;  %v1987_v54 = vshll.u32 %v1948_v35, 16  ;;  %v13774_v61 = vshrl.u32 %v9215_v36, 16  ;;  %v13773_v24 = vshll.u32 %v9215_v36, 16 }
  0x39   : > { %v3173_v0 = vld [vmem:[#allocation2 + $0x70] sm:$0x1]  ;;  %v1979_v52 = vor.u32 %v1978_v60, %v1977_v31  ;;  %v2391_v41 = vpack.c.b16 %v2372_v63, %v2371_v38  ;;  %v3218_v1 = vrot.slane %v3217_v14, 4  ;;  %v13778_v13 = vshrl.u32 %v9228_v48, 16 }
  0x3a   : > { %v3225_v37 = vshll.u32 %v3173_v0, 16  ;;  %v1984_v43 = vor.u32 %v1983_v42, %v1981_v32  ;;  %v9232_v28 = vld [vmem:[#allocation2 + $0x6c] sm:$0xf]  ;;  %v1989_v55 = vrot.slane %v1987_v54, 5  ;;  %v13772_v20 = vshll.u32 %v9228_v48, 16 }
  0x3b   : > { %v1980_v46 = vrot.slane %v1979_v52, 4  ;;  %v13776_v31 = vshrl.u32 %v9232_v28, 16  ;;  %v13775_v35 = vshll.u32 %v9232_v28, 16  ;;  %v1991_v63 = vrot.slane %v13774_v61, 4  ;;  %v9246_v0 = vld [vmem:[#allocation2 + $0x38] sm:$0xf] }
  0x3c   : > { %v3227_v60 = vrot.slane %v3225_v37, 5  ;;  %v1985_v30 = vrot.slane %v1984_v43, 4  ;;  %v1992_v14 = vrot.slane %v13773_v24, 5  ;;  %v1995_v42 = vrot.slane %v13772_v20, 5  ;;  %2339 = vrot.lane.b32.xlu0 %v8789_v44, %s8921_s19  ;;  %v9258_v61 = vld [vmem:[#allocation2 + $0x3c] sm:$0xf] }
  0x3d   : > { %v1982_v38 = vsel %vm9064_vm6, %v1980_v46, %v1981_v32  ;;  %v3219_v52 = vrot.slane %v13775_v35, 5  ;;  %v3221_v46 = vrot.slane %v13776_v31, 4  ;;  %v1997_v20 = vrot.slane %v13778_v13, 4  ;;  %v8780_v25 = vld [vmem:[#allocation2 + $0x68] sm:$0xff] }
  0x3e   : > { %2419 = vrot.lane.b32.xlu1 %v2391_v41, %s8922_s20  ;;  %v1990_v32 = vsel %vm9064_vm6, %v1985_v30, %v1989_v55  ;;  %v2349_v54 = vunpack.c.l.b16 %v1982_v38  ;;  %v1993_v43 = vor.u32 %v1992_v14, %v1991_v63  ;;  %v2001_v24 = vshll.u32 %v1949_v17, 16 }
  0x3f   : > { %v2350_v37 = vunpack.c.l.b16 %v1990_v32  ;;  %v3220_v44 = vsel %vm9064_vm6, %v3218_v1, %v3219_v52  ;;  %v3222_v41 = vor.u32 %v3221_v46, %v3219_v52  ;;  %v13781_v35 = vshrl.u32 %v9246_v0, 16 }
  0x40   : > { %v13780_v31 = vshll.u32 %v9246_v0, 16  ;;  %v3575_v55 = vunpack.c.l.b16 %v3220_v44  ;;  %v1994_v38 = vrot.slane %v1993_v43, 4  ;;  %v1998_v63 = vor.u32 %v1997_v20, %v1995_v42 }
  0x41   : > { %v2380_v30 = vpack.c.b16 %v2350_v37, %v2349_v54  ;;  %v3223_v14 = vrot.slane %v3222_v41, 4  ;;  %v2003_v32 = vrot.slane %v2001_v24, 5  ;;  %v13787_v17 = vshrl.u32 %v9258_v61, 16  ;;  %v490_v24 = vld [vmem:[%s9010_s18 + $0x40] sm:$0xff]  ;;  %v491_v54 = vld [vmem:[%s9010_s18 + $0x48] sm:$0xff] }
  0x42   : > { %v13784_v13 = vshll.u32 %v9258_v61, 16  ;;  %v1996_v1 = vsel %vm9064_vm6, %v1994_v38, %v1995_v42  ;;  %v1999_v52 = vrot.slane %v1998_v63, 4  ;;  %v1027_v46 = vrot.slane %v13781_v35, 4  ;;  %v473_v41 = vld [vmem:[#allocation2 + $0x160] sm:$0x1]  ;;  %v508_v35 = vld [vmem:[%s9010_s18 + $0xd0] sm:$0xff] }
  0x43   : > { %2397 = vrot.lane.b32.xlu2 %v2380_v30, %s8922_s20  ;;  %v1028_v20 = vrot.slane %v13780_v31, 5  ;;  %v3228_v37 = vsel %vm9064_vm6, %v3223_v14, %v3227_v60  ;;  %v2351_v43 = vunpack.c.l.b16 %v1996_v1  ;;  %v1033_v42 = vrot.slane %v13787_v17, 4 }
  0x44   : > { %v1031_v44 = vrot.slane %v13784_v13, 5  ;;  %v3576_v30 = vunpack.c.l.b16 %v3228_v37  ;;  %v2004_v38 = vsel %vm9064_vm6, %v1999_v52, %v2003_v32  ;;  %v1037_v31 = vshll.u32 %v982_v21, 16  ;;  %v510_v13 = vld [vmem:[%s9010_s18 + $0xe0] sm:$0xff]  ;;  %v8796_v21 = vld [vmem:[#allocation2 + $0x68] sm:$0xff] }
  0x45   : > { %v1029_v63 = vor.u32 %v1028_v20, %v1027_v46  ;;  %v2352_v60 = vunpack.c.l.b16 %v2004_v38  ;;  %v522_v1 = vpack.c.bf16 %v490_v24, %v490_v24  ;;  %v523_v12 = vpack.c.bf16 %v491_v54, %v491_v54  ;;  %v9292_v52 = vld [vmem:[#allocation2 + $0x6c] sm:$0xf]  ;;  %v1950_v54 = vld [vmem:[#allocation2 + $0x70] sm:$0x1]  ;;  %v449_v38 = vld [vmem:[#allocation2 + $0xa0] sm:$0x1] }
  0x46   : > { %1355 = vrot.lane.b32.xlu1 %v8762_v47, %s8921_s19  ;;  %v1034_v14 = vor.u32 %v1033_v42, %v1031_v44  ;;  %v3605_v17 = vpack.c.b16 %v3576_v30, %v3575_v55  ;;  %v1039_v50 = vrot.slane %v1037_v31, 5  ;;  %v474_v32 = vsel %vm8994_vm3, 0, %v473_v41  ;;  %v492_v42 = vld [vmem:[%s9010_s18 + $0x50] sm:$0xff] }
  0x47   : > { %v1030_v37 = vrot.slane %v1029_v63, 4  ;;  %v2381_v47 = vpack.c.b16 %v2352_v60, %v2351_v43  ;;  %554 = vst.msk [vmem:[#allocation2 + $0x80] sm:$0xf] %vm367_vm0, %v522_v1  ;;  %v540_v20 = vpack.c.bf16 %v508_v35, %v508_v35  ;;  %v541_v24 = vpack.c.bf16 %v509_v16, %v509_v16  ;;  %v493_v43 = vld [vmem:[%s9010_s18 + $0x58] sm:$0xff]  ;;  %v446_v60 = vld [vmem:[#allocation2 + $0x88] sm:$0x1] }
  0x48   : > { %v1035_v46 = vrot.slane %v1034_v14, 4  ;;  %3623 = vrot.lane.b32.xlu0 %v3605_v17, %s8922_s20  ;;  %555 = vst.msk [vmem:[#allocation2 + $0x84] sm:$0xf] %vm367_vm0, %v523_v12  ;;  %v542_v55 = vpack.c.bf16 %v510_v13, %v510_v13  ;;  %v543_v41 = vpack.c.bf16 %v511_v59, %v511_v59  ;;  %v13792_v30 = vshrl.u32 %v9288_v57, 16 }
  0x49   : > { %v1032_v31 = vsel %vm9064_vm6, %v1030_v37, %v1031_v44  ;;  %475 = vst [vmem:[#allocation2 + $0x160] sm:$0x1] %v474_v32  ;;  %v13791_v16 = vshll.u32 %v9288_v57, 16  ;;  %v13790_v17 = vshrl.u32 %v9292_v52, 16  ;;  %v13789_v59 = vshll.u32 %v9292_v52, 16 }
  0x4a   : > { %v1040_v63 = vsel %vm9064_vm6, %v1035_v46, %v1039_v50  ;;  %v1387_v35 = vunpack.c.l.b16 %v1032_v31  ;;  %572 = vst.msk [vmem:[#allocation2 + $0x158] sm:$0xf] %vm367_vm0, %v540_v20  ;;  %v2005_v12 = vrot.slane %v13792_v30, 4  ;;  %v2015_v13 = vshll.u32 %v1950_v54, 16  ;;  %v8779_v20 = vld [vmem:[#allocation2 + $0x50] sm:$0xff] }
  0x4b   : > { %v1388_v14 = vunpack.c.l.b16 %v1040_v63  ;;  %3543 = vrot.lane.b32.xlu2 %v8796_v21, %s8921_s19  ;;  %573 = vst.msk [vmem:[#allocation2 + $0x15c] sm:$0xf] %vm367_vm0, %v541_v24  ;;  %v2006_v50 = vrot.slane %v13791_v16, 5  ;;  %v2011_v44 = vrot.slane %v13790_v17, 4  ;;  %v450_v1 = vsel %vm8994_vm3, 0, %v449_v38  ;;  %v9324_v31 = vld [vmem:[%s9010_s18 + $0xf0] sm:$0xff] }
  0x4c   : > { %v524_v37 = vpack.c.bf16 %v492_v42, %v492_v42  ;;  %574 = vst.msk [vmem:[#allocation2 + $0x170] sm:$0xf] %vm367_vm0, %v542_v55  ;;  %v2009_v21 = vrot.slane %v13789_v59, 5  ;;  %v525_v46 = vpack.c.bf16 %v493_v43, %v493_v43  ;;  %v2017_v54 = vrot.slane %v2015_v13, 5  ;;  %v9331_v55 = vld [vmem:[%s9010_s18 + $0xf8] sm:$0xff] }
  0x4d   : > { %v1417_v32 = vpack.c.b16 %v1388_v14, %v1387_v35  ;;  %575 = vst.msk [vmem:[#allocation2 + $0x174] sm:$0xf] %vm367_vm0, %v543_v41  ;;  %v2007_v24 = vor.u32 %v2006_v50, %v2005_v12  ;;  %v447_v42 = vsel %vm8994_vm3, 0, %v446_v60  ;;  %v544_v12 = vpack.c.bf16 %v9324_v31, %v9324_v31 }
  0x4e   : > { %2399 = vrot.lane.b32.xlu1 %v2381_v47, %s8922_s20  ;;  %v2012_v63 = vor.u32 %v2011_v44, %v2009_v21  ;;  %451 = vst [vmem:[#allocation2 + $0xa0] sm:$0x1] %v450_v1  ;;  %v9328_v38 = vld [vmem:[#allocation2 + $0x80] sm:$0xf]  ;;  %v545_v1 = vpack.c.bf16 %v9331_v55, %v9331_v55  ;;  %vm362_vm9 = vsmask.f32 7950 }
  0x4f   : > { %v2008_v35 = vrot.slane %v2007_v24, 4  ;;  %556 = vst.msk [vmem:[#allocation2 + $0x98] sm:$0xf] %vm367_vm0, %v524_v37  ;;  %v9334_v47 = vld [vmem:[#allocation2 + $0x84] sm:$0xf]  ;;  %v13801_v44 = vshrl.u32 %v9328_v38, 16  ;;  %vm9518_vm10 = vmand %vm361_vm8, %vm362_vm9 }
  0x50   : > { %1435 = vrot.lane.b32.xlu0 %v1417_v32, %s8922_s20  ;;  %v8797_v41 = vld [vmem:[#allocation2 + $0x80] sm:$0xff]  ;;  %v2013_v14 = vrot.slane %v2012_v63, 4  ;;  %557 = vst.msk [vmem:[#allocation2 + $0x9c] sm:$0xf] %vm367_vm0, %v525_v46  ;;  %v13803_v63 = vshll.u32 %v9328_v38, 16  ;;  %v13805_v16 = vshll.u32 %v9334_v47, 16 }
  0x51   : > { %v1960_v43 = vld [vmem:[#allocation2 + $0x160] sm:$0x1]  ;;  %v9340_v60 = vld [vmem:[#allocation2 + $0x158] sm:$0xf]  ;;  %v2010_v50 = vsel %vm9064_vm6, %v2008_v35, %v2009_v21  ;;  %448 = vst [vmem:[#allocation2 + $0x88] sm:$0x1] %v447_v42 }
  0x52   : > { %v2155_v13 = vshll.u32 %v1960_v43, 16  ;;  %v9347_v37 = vld [vmem:[#allocation2 + $0x15c] sm:$0xf]  ;;  %v13793_v32 = vshrl.u32 %v9340_v60, 16  ;;  %v13794_v46 = vshll.u32 %v9340_v60, 16  ;;  %v2018_v24 = vsel %vm9064_vm6, %v2013_v14, %v2017_v54 }
  0x53   : > { %2319 = vrot.lane.b32.xlu2 %v8779_v20, %s8921_s19  ;;  %v13800_v21 = vshrl.u32 %v9347_v37, 16  ;;  %v13797_v42 = vshll.u32 %v9347_v37, 16  ;;  %v9357_v43 = vunpack.c.l.b16 %v2010_v50  ;;  %v13809_v20 = vshrl.u32 %v9334_v47, 16  ;;  %576 = vst.msk [vmem:[#allocation2 + $0x188] sm:$0xf] %vm367_vm0, %v544_v12 }
  0x54   : > { %v2157_v35 = vrot.slane %v2155_v13, 5  ;;  %v2145_v59 = vrot.slane %v13793_v32, 4  ;;  %v2146_v17 = vrot.slane %v13794_v46, 5  ;;  %v9370_v13 = vunpack.c.l.b16 %v2018_v24  ;;  %v8790_v46 = vld [vmem:[#allocation2 + $0x158] sm:$0xff]  ;;  %577 = vst.msk [vmem:[#allocation2 + $0x18c] sm:$0xf] %vm367_vm0, %v545_v1 }
  0x55   : > { %v2149_v54 = vrot.slane %v13797_v42, 5  ;;  %v2151_v14 = vrot.slane %v13800_v21, 4  ;;  %v3175_v50 = vld [vmem:[#allocation2 + $0xa0] sm:$0x1]  ;;  %v3229_v30 = vrot.slane %v13801_v44, 4  ;;  %v3233_v42 = vrot.slane %v13805_v16, 5 }
  0x56   : > { %3545 = vrot.lane.b32.xlu1 %v8797_v41, %s8921_s19  ;;  %v2147_v32 = vor.u32 %v2146_v17, %v2145_v59  ;;  %v9374_v62 = vld [vmem:[#allocation2 + $0x98] sm:$0xf]  ;;  %v3253_v34 = vshll.u32 %v3175_v50, 16  ;;  %v3230_v41 = vrot.slane %v13803_v63, 5  ;;  %v3235_v17 = vrot.slane %v13809_v20, 4 }
  0x57   : > { %v2152_v33 = vor.u32 %v2151_v14, %v2149_v54  ;;  %v9380_v58 = vld [vmem:[#allocation2 + $0x9c] sm:$0xf]  ;;  %v13810_v24 = vshrl.u32 %v9374_v62, 16  ;;  %v13811_v21 = vshll.u32 %v9374_v62, 16  ;;  %v9399_v20 = vld [vmem:[#allocation2 + $0x68] sm:$0xf] }
  0x58   : > { %v2148_v59 = vrot.slane %v2147_v32, 4  ;;  %v13818_v44 = vshrl.u32 %v9380_v58, 16  ;;  %v13816_v50 = vshll.u32 %v9380_v58, 16  ;;  %v3255_v10 = vrot.slane %v3253_v34, 5  ;;  %v3174_v5 = vld [vmem:[#allocation2 + $0x88] sm:$0x1] }
  0x59   : > { %v2153_v63 = vrot.slane %v2152_v33, 4  ;;  %v3243_v14 = vrot.slane %v13810_v24, 4  ;;  %v3244_v16 = vrot.slane %v13811_v21, 5  ;;  %v3231_v27 = vor.u32 %v3230_v41, %v3229_v30  ;;  %14253 = vst [vmem:[#allocation4_spill] sm:$0xff] %v9399_v20  ;;  %v984_v12 = vld [vmem:[#allocation2 + $0x70] sm:$0x1] }
  0x5a   : > { %v2150_v23 = vsel %vm9064_vm6, %v2148_v59, %v2149_v54  ;;  %v3247_v32 = vrot.slane %v13816_v50, 5  ;;  %v3249_v34 = vrot.slane %v13818_v44, 4  ;;  %v3236_v33 = vor.u32 %v3235_v17, %v3233_v42  ;;  %v8763_v50 = vld [vmem:[#allocation2 + $0x50] sm:$0xff] }
  0x5b   : > { %2341 = vrot.lane.b32.xlu2 %v8790_v46, %s8921_s19  ;;  %v2158_v24 = vsel %vm9064_vm6, %v2153_v63, %v2157_v35  ;;  %v2373_v21 = vunpack.c.l.b16 %v2150_v23  ;;  %v3245_v26 = vor.u32 %v3244_v16, %v3243_v14  ;;  %v3232_v30 = vrot.slane %v3231_v27, 4  ;;  %v9403_v46 = vld [vmem:[#allocation2 + $0x6c] sm:$0xf]  ;;  %v9424_v14 = vld [vmem:[#allocation2 + $0x50] sm:$0xf] }
  0x5c   : > { %v2374_v41 = vunpack.c.l.b16 %v2158_v24  ;;  %v3250_v4 = vor.u32 %v3249_v34, %v3247_v32  ;;  %v3237_v54 = vrot.slane %v3236_v33, 4  ;;  %v3239_v59 = vshll.u32 %v3174_v5, 16  ;;  %14254 = vst [vmem:[#allocation5_spill] sm:$0xff] %v9403_v46  ;;  %v8791_v34 = vld [vmem:[#allocation2 + $0x170] sm:$0xff] }
  0x5d   : > { %v3246_v17 = vrot.slane %v3245_v26, 4  ;;  %v3234_v63 = vsel %vm9064_vm6, %v3232_v30, %v3233_v42  ;;  %v13815_v23 = vshrl.u32 %v9399_v20, 16  ;;  %v13814_v27 = vshll.u32 %v9399_v20, 16 }
  0x5e   : > { %2321 = vrot.lane.b32.xlu1 %v8780_v25, %s8921_s19  ;;  %v2392_v5 = vpack.c.b16 %v2374_v41, %v2373_v21  ;;  %v3251_v16 = vrot.slane %v3250_v4, 4  ;;  %v3241_v31 = vrot.slane %v3239_v59, 5  ;;  %v3577_v35 = vunpack.c.l.b16 %v3234_v63 }
  0x5f   : > { %v3248_v25 = vsel %vm9064_vm6, %v3246_v17, %v3247_v32  ;;  %v13819_v26 = vshrl.u32 %v9403_v46, 16  ;;  %v13817_v42 = vshll.u32 %v9403_v46, 16  ;;  %v1055_v24 = vrot.slane %v13815_v23, 4  ;;  %v9435_v32 = vld [vmem:[#allocation2 + $0x54] sm:$0xf] }
  0x60   : > { %2421 = vrot.lane.b32.xlu0 %v2392_v5, %s8922_s20  ;;  %v2382_v4 = vpack.c.b16 %v9370_v13, %v9357_v43  ;;  %v3256_v55 = vsel %vm9064_vm6, %v3251_v16, %v3255_v10  ;;  %v3242_v1 = vsel %vm9064_vm6, %v3237_v54, %v3241_v31  ;;  %v1056_v21 = vrot.slane %v13814_v27, 5  ;;  %v983_v5 = vld [vmem:[#allocation2 + $0x58] sm:$0x1] }
  0x61   : > { %v3579_v33 = vunpack.c.l.b16 %v3248_v25  ;;  %v3578_v30 = vunpack.c.l.b16 %v3242_v1  ;;  %v1059_v41 = vrot.slane %v13817_v42, 5  ;;  %v1061_v59 = vrot.slane %v13819_v26, 4  ;;  %v479_v25 = vld [vmem:[#allocation2 + $0x190] sm:$0x1]  ;;  %v9444_v1 = vld [vmem:[#allocation2 + $0x188] sm:$0xf] }
  0x62   : > { %v1057_v17 = vor.u32 %v1056_v21, %v1055_v24  ;;  %v1065_v63 = vshll.u32 %v984_v12, 16  ;;  %v13823_v10 = vshrl.u32 %v9424_v14, 16  ;;  %v13820_v54 = vshll.u32 %v9424_v14, 16  ;;  %14255 = vst [vmem:[#allocation6_spill] sm:$0xff] %v9444_v1 }
  0x63   : > { %v3580_v16 = vunpack.c.l.b16 %v3256_v55  ;;  %v3606_v31 = vpack.c.b16 %v3578_v30, %v3577_v35  ;;  %v1062_v27 = vor.u32 %v1061_v59, %v1059_v41  ;;  %v13821_v23 = vshrl.u32 %v9435_v32, 16  ;;  %v9455_v30 = vld [vmem:[#allocation2 + $0x18c] sm:$0xf] }
  0x64   : > { %v1058_v42 = vrot.slane %v1057_v17, 4  ;;  %v1067_v44 = vrot.slane %v1065_v63, 5  ;;  %v13822_v26 = vshll.u32 %v9435_v32, 16  ;;  %v1041_v12 = vrot.slane %v13823_v10, 4  ;;  %14256 = vst [vmem:[#allocation7_spill] sm:$0xff] %v9455_v30 }
  0x65   : > { %3625 = vrot.lane.b32.xlu2 %v3606_v31, %s8922_s20  ;;  %v1063_v24 = vrot.slane %v1062_v27, 4  ;;  %v1042_v35 = vrot.slane %v13820_v54, 5  ;;  %v1047_v55 = vrot.slane %v13821_v23, 4  ;;  %v1051_v21 = vshll.u32 %v983_v5, 16  ;;  %v476_v63 = vld [vmem:[#allocation2 + $0x178] sm:$0x1] }
  0x66   : > { %2343 = vrot.lane.b32.xlu1 %v8791_v34, %s8921_s19  ;;  %v1060_v59 = vsel %vm9064_vm6, %v1058_v42, %v1059_v41  ;;  %v1045_v17 = vrot.slane %v13822_v26, 5  ;;  %v480_v34 = vsel %vm8994_vm3, 0, %v479_v25  ;;  %v13828_v27 = vshrl.u32 %v9444_v1, 16  ;;  %v9471_v25 = vld [vmem:[#allocation2 + $0x170] sm:$0xf] }
  0x67   : > { %v3607_v31 = vpack.c.b16 %v3580_v16, %v3579_v33  ;;  %v1068_v54 = vsel %vm9064_vm6, %v1063_v24, %v1067_v44  ;;  %v9466_v23 = vunpack.c.l.b16 %v1060_v59  ;;  %v1043_v5 = vor.u32 %v1042_v35, %v1041_v12  ;;  %481 = vst [vmem:[#allocation2 + $0x190] sm:$0x1] %v480_v34  ;;  %v9478_v12 = vld [vmem:[#allocation2 + $0x174] sm:$0xf] }
  0x68   : > { %1357 = vrot.lane.b32.xlu0 %v8763_v50, %s8921_s19  ;;  %v1048_v42 = vor.u32 %v1047_v55, %v1045_v17  ;;  %v1053_v41 = vrot.slane %v1051_v21, 5  ;;  %v13825_v26 = vshll.u32 %v9444_v1, 16  ;;  %v13826_v10 = vshrl.u32 %v9455_v30, 16 }
  0x69   : > { %v1044_v9 = vrot.slane %v1043_v5, 4  ;;  %v13827_v33 = vshll.u32 %v9455_v30, 16  ;;  %v2173_v44 = vrot.slane %v13828_v27, 4  ;;  %v477_v16 = vsel %vm8994_vm3, 0, %v476_v63 }
  0x6a   : > { %v1392_v50 = vunpack.c.l.b16 %v1068_v54  ;;  %v1049_v24 = vrot.slane %v1048_v42, 4  ;;  %v2174_v35 = vrot.slane %v13825_v26, 5  ;;  %v2179_v55 = vrot.slane %v13826_v10, 4  ;;  %478 = vst [vmem:[#allocation2 + $0x178] sm:$0x1] %v477_v16 }
  0x6b   : > { %v1046_v21 = vsel %vm9064_vm6, %v1044_v9, %v1045_v17  ;;  %v2177_v59 = vrot.slane %v13827_v33, 5  ;;  %v13833_v34 = vshrl.u32 %v9471_v25, 16  ;;  %v13830_v63 = vshll.u32 %v9471_v25, 16 }
  0x6c   : > { %v1054_v54 = vsel %vm9064_vm6, %v1049_v24, %v1053_v41  ;;  %v1389_v5 = vunpack.c.l.b16 %v1046_v21  ;;  %v2175_v42 = vor.u32 %v2174_v35, %v2173_v44  ;;  %v13832_v26 = vshrl.u32 %v9478_v12, 16 }
  0x6d   : > { %v1390_v16 = vunpack.c.l.b16 %v1054_v54  ;;  %v2180_v10 = vor.u32 %v2179_v55, %v2177_v59  ;;  %v13831_v9 = vshll.u32 %v9478_v12, 16  ;;  %v2159_v17 = vrot.slane %v13833_v34, 4  ;;  %v386_v55 = vld [vmem:[#allocation2 + $0x1c] sm:$0x8]  ;;  %v364_v34 = vld [vmem:[#allocation2 + $0x4] sm:$0x8] }
  0x6e   : > { %3627 = vrot.lane.b32.xlu1 %v3607_v31, %s8922_s20  ;;  %v1962_v33 = vld [vmem:[#allocation2 + $0x190] sm:$0x1]  ;;  %v2176_v27 = vrot.slane %v2175_v42, 4  ;;  %v2160_v8 = vrot.slane %v13830_v63, 5  ;;  %v2165_v41 = vrot.slane %v13832_v26, 4  ;;  %v14257_v42 = vshrl.u32 %v9086_v3, 16 }
  0x6f   : > { %v1418_v44 = vpack.c.b16 %v1390_v16, %v1389_v5  ;;  %v2181_v24 = vrot.slane %v2180_v10, 4  ;;  %v2183_v31 = vshll.u32 %v1962_v33, 16  ;;  %v2163_v35 = vrot.slane %v13831_v9, 5  ;;  %v452_v10 = vld [vmem:[#allocation2 + $0xb8] sm:$0x1]  ;;  %v494_v33 = vld [vmem:[%s9010_s18 + $0x60] sm:$0xff] }
  0x70   : > { %2401 = vrot.lane.b32.xlu0 %v2382_v4, %s8922_s20  ;;  %v2178_v21 = vsel %vm9064_vm6, %v2176_v27, %v2177_v59  ;;  %v2161_v54 = vor.u32 %v2160_v8, %v2159_v17  ;;  %v667_v5 = vrot.slane %v14257_v42, 7  ;;  %v1419_v16 = vpack.c.b16 %v1392_v50, %v9466_v23  ;;  %v8250_v4 = vld [vmem:[%s13750_s1] sm:$0xf] }
  0x71   : > { %1437 = vrot.lane.b32.xlu2 %v1418_v44, %s8922_s20  ;;  %v2185_v63 = vrot.slane %v2183_v31, 5  ;;  %v9514_v9 = vunpack.c.l.b16 %v2178_v21  ;;  %v1961_v43 = vld [vmem:[#allocation2 + $0x178] sm:$0x1]  ;;  %v2166_v13 = vor.u32 %v2165_v41, %v2163_v35  ;;  %v387_v23 = vsel %vm9518_vm10, 0, %v386_v55  ;;  %v495_v44 = vld [vmem:[%s9010_s18 + $0x68] sm:$0xff] }
  0x72   : > { %v2162_v27 = vrot.slane %v2161_v54, 4  ;;  %v2169_v59 = vshll.u32 %v1961_v43, 16  ;;  %v14260_v50 = vshll.u32 %v9086_v3, 16  ;;  %v8776_v41 = vld [vmem:[%s13750_s1] sm:$0x30]  ;;  %v14261_v42 = vshrl.u32 %v9076_v56, 16 }
  0x73   : > { %v2186_v31 = vsel %vm9064_vm6, %v2181_v24, %v2185_v63  ;;  %v2167_v21 = vrot.slane %v2166_v13, 4  ;;  %388 = vst [vmem:[#allocation2 + $0x1c] sm:$0x8] %v387_v23  ;;  %v453_v43 = vsel %vm8994_vm3, 0, %v452_v10  ;;  %v8798_v55 = vld [vmem:[#allocation2 + $0x98] sm:$0xff]  ;;  %v527_v13 = vpack.c.bf16 %v495_v44, %v495_v44 }
  0x74   : > { %v670_v17 = vor.u32 %v14260_v50, %v667_v5  ;;  %v658_v54 = vrot.slane %v14261_v42, 7  ;;  %v2378_v26 = vunpack.c.l.b16 %v2186_v31  ;;  %v2164_v3 = vsel %vm9064_vm6, %v2162_v27, %v2163_v35  ;;  %454 = vst [vmem:[#allocation2 + $0xb8] sm:$0x1] %v453_v43  ;;  %v9542_v23 = vld [vmem:[#allocation2 + $0x98] sm:$0xf] }
  0x75   : > { %v2171_v5 = vrot.slane %v2169_v59, 5  ;;  %v526_v50 = vpack.c.bf16 %v494_v33, %v494_v33  ;;  %v2375_v63 = vunpack.c.l.b16 %v2164_v3  ;;  %14262 = vst [vmem:[#allocation8_spill] sm:$0xff] %v9542_v23  ;;  %vm2548_vm11 = vcmask 1045504   ;;  %v9547_v31 = vld [vmem:[#allocation2 + $0x9c] sm:$0xf] }
  0x76   : > { %1439 = vrot.lane.b32.xlu1 %v1419_v16, %s8922_s20  ;;  %v663_v24 = vrot.slane %v658_v54, 4  ;;  %v8251_v10 = vor.u32 %v8776_v41, %v8250_v4  ;;  %14263 = vst [vmem:[#allocation9_spill] sm:$0xff] %v9547_v31  ;;  %v2394_v33 = vpack.c.b16 %v2378_v26, %v9514_v9  ;;  %v14266_v27 = vshrl.u32 %v9025_v22, 16  ;;  %v1952_v4 = vld [vmem:[#allocation2 + $0xa0] sm:$0x1] }
  0x77   : > { %v2172_v42 = vsel %vm9064_vm6, %v2167_v21, %v2171_v5  ;;  %558 = vst.msk [vmem:[#allocation2 + $0xb0] sm:$0xf] %vm367_vm0, %v526_v50  ;;  %v365_v44 = vsel %vm9518_vm10, 0, %v364_v34  ;;  %v14267_v26 = vshrl.u32 %v9022_v18, 16  ;;  %v13836_v43 = vshrl.u32 %v9542_v23, 16 }
  0x78   : > { %v2376_v16 = vunpack.c.l.b16 %v2172_v42  ;;  %559 = vst.msk [vmem:[#allocation2 + $0xb4] sm:$0xf] %vm367_vm0, %v527_v13  ;;  %v645_v59 = vrot.slane %v14266_v27, 7  ;;  %3547 = vrot.lane.b32.xlu0 %v8798_v55, %s8921_s19  ;;  %v9564_v41 = vsel %vm9551_vm12, %v663_v24, %v670_v17  ;;  %v9567_v21 = vsel %vm2548_vm11, %v8251_v10, 0 }
  0x79   : > { %366 = vst [vmem:[#allocation2 + $0x4] sm:$0x8] %v365_v44  ;;  %v636_v9 = vrot.slane %v14267_v26, 7  ;;  %2688 = vmatpush.bf16.msra.mxu1 %v9567_v21  ;;  %v14268_v34 = vshll.u32 %v9025_v22, 16  ;;  %v13834_v55 = vshll.u32 %v9542_v23, 16  ;;  %v13835_v17 = vshrl.u32 %v9547_v31, 16 }
  0x7a   : > { %v2393_v3 = vpack.c.b16 %v2376_v16, %v2375_v63  ;;  %v581_v50 = vld [vmem:[#allocation2 + $0x1c] sm:$0x8]  ;;  %v14269_v24 = vshll.u32 %v9076_v56, 16  ;;  %v13837_v10 = vshll.u32 %v9547_v31, 16  ;;  %v2033_v27 = vrot.slane %v13836_v43, 4  ;;  %v8781_v26 = vld [vmem:[#allocation2 + $0x80] sm:$0xff] }
  0x7b   : > { %v648_v5 = vor.u32 %v14268_v34, %v645_v59  ;;  %v641_v42 = vrot.slane %v636_v9, 4  ;;  %v651_v63 = vshrl.u32 %v581_v50, 16  ;;  %v3176_v16 = vld [vmem:[#allocation2 + $0xb8] sm:$0x1]  ;;  %v2034_v22 = vrot.slane %v13834_v55, 5  ;;  %v9597_v55 = vpop.permute.xlu2 %1353 }
  0x7c   : > { %v661_v13 = vor.u32 %v14269_v24, %v658_v54  ;;  %2423 = vrot.lane.b32.xlu2 %v2393_v3, %s8922_s20  ;;  %v2039_v59 = vrot.slane %v13835_v17, 4  ;;  %v2043_v44 = vshll.u32 %v1952_v4, 16  ;;  %v1226_v56 = vunpack.c.l.b16 %v9564_v41  ;;  %v9615_v23 = vld [vmem:[#allocation2 + $0x80] sm:$0xf] }
  0x7d   : > { %v14270_v54 = vshll.u32 %v9022_v18, 16  ;;  %v9592_v24 = vsel %vm9551_vm12, %v641_v42, %v648_v5  ;;  %v2037_v3 = vrot.slane %v13837_v10, 5  ;;  %v8067_v50 = vrot.slane %v651_v63, 11 }
  0x7e   : > { %2425 = vrot.lane.b32.xlu1 %v2394_v33, %s8922_s20  ;;  %v9599_v17 = vld [vmem:[#allocation2 + $0xb0] sm:$0xf]  ;;  %v3267_v4 = vshll.u32 %v3176_v16, 16  ;;  %v1224_v41 = vunpack.c.l.b16 %v9592_v24  ;;  %v2035_v43 = vor.u32 %v2034_v22, %v2033_v27  ;;  %vm1463_vm13 = vcmask 31744   ;;  %v8764_v16 = vld [vmem:[#allocation2 + $0x68] sm:$0xff] }
  0x7f   : > { %v639_v34 = vor.u32 %v14270_v54, %v636_v9  ;;  %14271 = vst [vmem:[#allocation10_spill] sm:$0xff] %v9599_v17  ;;  %v9602_v18 = vld [vmem:[#allocation2 + $0xb4] sm:$0xf]  ;;  %v13846_v9 = vshrl.u32 %v9599_v17, 16  ;;  %v13851_v5 = vshll.u32 %v9599_v17, 16  ;;  %v2040_v42 = vor.u32 %v2039_v59, %v2037_v3 }
  0x80   : > { %14272 = vst [vmem:[#allocation11_spill] sm:$0xff] %v9602_v18  ;;  %v2045_v54 = vrot.slane %v2043_v44, 5  ;;  %v662_v33 = vsel %vm9551_vm12, %v8067_v50, %v661_v13  ;;  %v13853_v63 = vshrl.u32 %v9602_v18, 16  ;;  %v13852_v10 = vshll.u32 %v9602_v18, 16  ;;  %v578_v31 = vld [vmem:[#allocation2 + $0x4] sm:$0x8]  ;;  %2323 = vrot.lane.b32.xlu0 %v8781_v26, %s8921_s19 }
  0x81   : > { %v2036_v24 = vrot.slane %v2035_v43, 4  ;;  %vm1512_vm14 = vcmask 64512   ;;  %v1225_v27 = vunpack.c.l.b16 %v662_v33  ;;  %v3257_v22 = vrot.slane %v13846_v9, 4  ;;  %v8765_v13 = vld [vmem:[#allocation2 + $0x80] sm:$0xff]  ;;  %v8792_v18 = vld [vmem:[#allocation2 + $0x188] sm:$0xff] }
  0x82   : > { %v3258_v59 = vrot.slane %v13851_v5, 5  ;;  %v629_v44 = vshrl.u32 %v578_v31, 16  ;;  %v3261_v50 = vrot.slane %v13852_v10, 5  ;;  %v3263_v43 = vrot.slane %v13853_v63, 4  ;;  %v9623_v17 = vld [vmem:[#allocation2 + $0x84] sm:$0xf] }
  0x83   : > { %v2038_v26 = vsel %vm9064_vm6, %v2036_v24, %v2037_v3  ;;  %v2041_v33 = vrot.slane %v2040_v42, 4  ;;  %v3269_v1 = vrot.slane %v3267_v4, 5  ;;  %14273 = vst [vmem:[#allocation12_spill] sm:$0xff] %v9623_v17  ;;  %v9625_v31 = vpack.c.b16 %v1226_v56, %v1225_v27  ;;  %v985_v27 = vld [vmem:[#allocation2 + $0x88] sm:$0x1] }
  0x84   : > { %v3259_v30 = vor.u32 %v3258_v59, %v3257_v22  ;;  %v8066_v9 = vrot.slane %v629_v44, 11  ;;  %v2357_v46 = vunpack.c.l.b16 %v2038_v26  ;;  %v3264_v5 = vor.u32 %v3263_v43, %v3261_v50  ;;  %1359 = vrot.lane.b32.xlu2 %v8764_v16, %s8921_s19  ;;  %v9647_v26 = vld [vmem:[#allocation2 + $0x84] sm:$0xf] }
  0x85   : > { %v2046_v10 = vsel %vm9064_vm6, %v2041_v33, %v2045_v54  ;;  %v13861_v63 = vshrl.u32 %v9615_v23, 16  ;;  %vm2515_vm15 = vcmask 97280   ;;  %v13859_v24 = vshll.u32 %v9615_v23, 16 }
  0x86   : > { %v3260_v20 = vrot.slane %v3259_v30, 4  ;;  %v640_v3 = vsel %vm9551_vm12, %v8066_v9, %v639_v34  ;;  %v2358_v4 = vunpack.c.l.b16 %v2046_v10  ;;  %1361 = vrot.lane.b32.xlu1 %v8765_v13, %s8921_s19  ;;  %v3265_v42 = vrot.slane %v3264_v5, 4  ;;  %v9641_v10 = vld [vmem:[#allocation2 + $0x80] sm:$0xf]  ;;  %v1432_v13 = vpop.permute.xlu2 %1431 }
  0x87   : > { %v1223_v56 = vunpack.c.l.b16 %v640_v3  ;;  %v13860_v16 = vshrl.u32 %v9623_v17, 16  ;;  %v13858_v30 = vshll.u32 %v9623_v17, 16  ;;  %v1069_v34 = vrot.slane %v13861_v63, 4  ;;  %v1352_v59 = vpop.permute.xlu1 %1351  ;;  %v392_v17 = vld [vmem:[#allocation2 + $0x4c] sm:$0x8] }
  0x88   : > { %v3262_v54 = vsel %vm9064_vm6, %v3260_v20, %v3261_v50  ;;  %v2384_v22 = vpack.c.b16 %v2358_v4, %v2357_v46  ;;  %v3270_v9 = vsel %vm9064_vm6, %v3265_v42, %v3269_v1  ;;  %v1070_v43 = vrot.slane %v13859_v24, 5  ;;  %2345 = vrot.lane.b32.xlu0 %v8792_v18, %s8921_s19  ;;  %v1951_v1 = vld [vmem:[#allocation2 + $0x88] sm:$0x1]  ;;  %v389_v24 = vld [vmem:[#allocation2 + $0x34] sm:$0x8] }
  0x89   : > { %v3581_v5 = vunpack.c.l.b16 %v3262_v54  ;;  %v1255_v44 = vpack.c.b16 %v1224_v41, %v1223_v56  ;;  %v3582_v20 = vunpack.c.l.b16 %v3270_v9  ;;  %v1073_v46 = vrot.slane %v13858_v30, 5  ;;  %v8230_v18 = vld [vmem:[%s13750_s1 + $0x8] sm:$0xf]  ;;  %v8793_v56 = vld [vmem:[%s13750_s1 + $0x8] sm:$0x30] }
  0x8a   : > { %v1075_v50 = vrot.slane %v13860_v16, 4  ;;  %v1079_v33 = vshll.u32 %v985_v27, 16  ;;  %v1071_v41 = vor.u32 %v1070_v43, %v1069_v34  ;;  %v13865_v4 = vshrl.u32 %v9641_v10, 16 }
  0x8b   : > { %v1466_v3 = vsel %vm1463_vm13, %v1255_v44, %v1352_v59  ;;  %v13864_v42 = vshll.u32 %v9641_v10, 16  ;;  %v3608_v54 = vpack.c.b16 %v3582_v20, %v3581_v5  ;;  %v13863_v59 = vshrl.u32 %v9647_v26, 16 }
  0x8c   : > { %v1514_v9 = vsel %vm1512_vm14, %v1466_v3, %v1432_v13  ;;  %v1076_v27 = vor.u32 %v1075_v50, %v1073_v46  ;;  %v1081_v30 = vrot.slane %v1079_v33, 5  ;;  %v1072_v34 = vrot.slane %v1071_v41, 4  ;;  %v1547_v41 = vld [vmem:[#allocation2 + $0x1c] sm:$0x8] }
  0x8d   : > { %8252 = vmatmul.msk.bf16.vlgmr.msra.gmra.mxu1 %vm2515_vm15, %v1514_v9  ;;  %v13862_v44 = vshll.u32 %v9647_v26, 16  ;;  %v2019_v43 = vrot.slane %v13865_v4, 4  ;;  %v2020_v63 = vrot.slane %v13864_v42, 5  ;;  %v2029_v5 = vshll.u32 %v1951_v1, 16  ;;  %v497_v42 = vld [vmem:[%s9010_s18 + $0x78] sm:$0xff] }
  0x8e   : > { %v1077_v16 = vrot.slane %v1076_v27, 4  ;;  %v8231_v20 = vor.u32 %v8793_v56, %v8230_v18  ;;  %2405 = vrot.lane.b32.xlu1 %v2384_v22, %s8922_s20  ;;  %v1074_v13 = vsel %vm9064_vm6, %v1072_v34, %v1073_v46  ;;  %v2025_v33 = vrot.slane %v13863_v59, 4  ;;  %v9685_v59 = vpop.permute.xlu0 %3539  ;;  %v505_v4 = vld [vmem:[%s9010_s18 + $0xb8] sm:$0xff] }
  0x8f   : > { %v2023_v50 = vrot.slane %v13862_v44, 5  ;;  %v390_v3 = vsel %vm9518_vm10, 0, %v389_v24  ;;  %v1393_v1 = vunpack.c.l.b16 %v1074_v13  ;;  %v2021_v18 = vor.u32 %v2020_v63, %v2019_v43 }
  0x90   : > { %v1082_v9 = vsel %vm9064_vm6, %v1077_v16, %v1081_v30  ;;  %v2031_v56 = vrot.slane %v2029_v5, 5  ;;  %391 = vst [vmem:[#allocation2 + $0x34] sm:$0x8] %v390_v3  ;;  %v2550_v27 = vsel %vm2548_vm11, %v8231_v20, 0  ;;  %v14274_v34 = vshrl.u32 %v9070_v53, 16  ;;  %3629 = vrot.lane.b32.xlu0 %v3608_v54, %s8922_s20 }
  0x91   : > { %v1394_v22 = vunpack.c.l.b16 %v1082_v9  ;;  %v2026_v46 = vor.u32 %v2025_v33, %v2023_v50  ;;  %v2022_v24 = vrot.slane %v2021_v18, 4  ;;  %2559 = vmatpush.bf16.msra.mxu0 %v2550_v27  ;;  %v14275_v16 = vshrl.u32 %v9055_v45, 16  ;;  %v496_v18 = vld [vmem:[%s9010_s18 + $0x70] sm:$0xff]  ;;  %8878 = vmatpush.bf16.msra.mxu3 %v2550_v27 }
  0x92   : > { %v2836_v44 = vrot.slane %v14274_v34, 7  ;;  %v1596_v30 = vshrl.u32 %v1547_v41, 16  ;;  %v14276_v43 = vshrl.u32 %v9145_v7, 16  ;;  %v9695_v20 = vsel %vm1463_vm13, %v9625_v31, %v9597_v55  ;;  %v467_v55 = vld [vmem:[#allocation2 + $0x130] sm:$0x1] }
  0x93   : > { %v2827_v63 = vrot.slane %v14275_v16, 7  ;;  %v2027_v13 = vrot.slane %v2026_v46, 4  ;;  %v14277_v33 = vshll.u32 %v9070_v53, 16  ;;  %v14278_v54 = vshrl.u32 %v9124_v40, 16 }
  0x94   : > { %v1612_v5 = vrot.slane %v14276_v43, 7  ;;  %v1420_v34 = vpack.c.b16 %v1394_v22, %v1393_v1  ;;  %v2024_v41 = vsel %vm9064_vm6, %v2022_v24, %v2023_v50  ;;  %v8146_v43 = vrot.slane %v1596_v30, 11 }
  0x95   : > { %v2839_v3 = vor.u32 %v14277_v33, %v2836_v44  ;;  %v1603_v9 = vrot.slane %v14278_v54, 7  ;;  %v2832_v16 = vrot.slane %v2827_v63, 4  ;;  %8879 = vmatpush.bf16.msrb.mxu3 %v9567_v21  ;;  %v2032_v53 = vsel %vm9064_vm6, %v2027_v13, %v2031_v56  ;;  %v504_v54 = vld [vmem:[%s9010_s18 + $0xb0] sm:$0xff] }
  0x96   : > { %v2355_v31 = vunpack.c.l.b16 %v2024_v41  ;;  %v14279_v44 = vshll.u32 %v9145_v7, 16  ;;  %v14280_v27 = vshll.u32 %v9124_v40, 16  ;;  %v2356_v22 = vunpack.c.l.b16 %v2032_v53 }
  0x97   : > { %v14281_v33 = vshll.u32 %v9055_v45, 16  ;;  %v1608_v24 = vrot.slane %v1603_v9, 4  ;;  %v528_v30 = vpack.c.bf16 %v496_v18, %v496_v18  ;;  %v2771_v21 = vld [vmem:[#allocation2 + $0x34] sm:$0x8]  ;;  %v2840_v56 = vsel %vm9551_vm12, %v2832_v16, %v2839_v3  ;;  %v2316_v18 = vpop.permute.xlu1 %2315 }
  0x98   : > { %v1615_v46 = vor.u32 %v14279_v44, %v1612_v5  ;;  %v1606_v1 = vor.u32 %v14280_v27, %v1603_v9  ;;  %v529_v5 = vpack.c.bf16 %v497_v42, %v497_v42  ;;  %v468_v40 = vsel %vm8994_vm3, 0, %v467_v55  ;;  %v1550_v13 = vld [vmem:[#allocation2 + $0x34] sm:$0x8]  ;;  %v9730_v55 = vld [vmem:[#allocation2 + $0xb0] sm:$0xf]  ;;  %1441 = vrot.lane.b32.xlu0 %v1420_v34, %s8922_s20 }
  0x99   : > { %v2830_v50 = vor.u32 %v14281_v33, %v2827_v63  ;;  %v2383_v41 = vpack.c.b16 %v2356_v22, %v2355_v31  ;;  %v2820_v45 = vshrl.u32 %v2771_v21, 16  ;;  %560 = vst.msk [vmem:[#allocation2 + $0xc8] sm:$0xf] %vm367_vm0, %v528_v30  ;;  %v536_v3 = vpack.c.bf16 %v504_v54, %v504_v54 }
  0x9a   : > { %v1607_v7 = vsel %vm9551_vm12, %v8146_v43, %v1606_v1  ;;  %v1616_v63 = vsel %vm9551_vm12, %v1608_v24, %v1615_v46  ;;  %561 = vst.msk [vmem:[#allocation2 + $0xcc] sm:$0xf] %vm367_vm0, %v529_v5  ;;  %v537_v16 = vpack.c.bf16 %v505_v4, %v505_v4  ;;  %v393_v42 = vsel %vm9518_vm10, 0, %v392_v17  ;;  %v9728_v43 = vpop.permute.xlu0 %3541  ;;  %v2396_v17 = vpop.permute.xlu2 %2395 }
  0x9b   : > { %v2187_v9 = vunpack.c.l.b16 %v1607_v7  ;;  %v2188_v53 = vunpack.c.l.b16 %v1616_v63  ;;  %14282 = vst [vmem:[#allocation13_spill] sm:$0xff] %v9730_v55  ;;  %2403 = vrot.lane.b32.xlu2 %v2383_v41, %s8922_s20  ;;  %v8268_v31 = vrot.slane %v2820_v45, 11  ;;  %v14283_v44 = vshrl.u32 %v9090_v6, 16 }
  0x9c   : > { %469 = vst [vmem:[#allocation2 + $0x130] sm:$0x1] %v468_v40  ;;  %v14284_v27 = vshrl.u32 %v9097_v11, 16  ;;  %v1618_v4 = vshrl.u32 %v1550_v13, 16  ;;  %v3412_v22 = vunpack.c.l.b16 %v2840_v56  ;;  %v14285_v24 = vshrl.u32 %v9190_v29, 16 }
  0x9d   : > { %v2849_v46 = vrot.slane %v14283_v44, 7  ;;  %v2219_v33 = vpack.c.b16 %v2188_v53, %v2187_v9  ;;  %568 = vst.msk [vmem:[#allocation2 + $0x128] sm:$0xf] %vm367_vm0, %v536_v3  ;;  %v14286_v34 = vshrl.u32 %v9188_v19, 16  ;;  %v2831_v21 = vsel %vm9551_vm12, %v8268_v31, %v2830_v50  ;;  %v9748_v56 = vld [vmem:[#allocation2 + $0xb4] sm:$0xf] }
  0x9e   : > { %v2858_v1 = vrot.slane %v14284_v27, 7  ;;  %v1634_v30 = vrot.slane %v14285_v24, 7  ;;  %569 = vst.msk [vmem:[#allocation2 + $0x12c] sm:$0xf] %vm367_vm0, %v537_v16  ;;  %v14287_v5 = vshll.u32 %v9097_v11, 16  ;;  %v13871_v13 = vshrl.u32 %v9730_v55, 16 }
  0x9f   : > { %v1625_v54 = vrot.slane %v14286_v34, 7  ;;  %v2854_v7 = vrot.slane %v2849_v46, 4  ;;  %14288 = vst [vmem:[#allocation14_spill] sm:$0xff] %v9748_v56  ;;  %v3411_v41 = vunpack.c.l.b16 %v2831_v21  ;;  %v2429_v45 = vsel %vm1463_vm13, %v2219_v33, %v2316_v18  ;;  %v8799_v3 = vld [vmem:[#allocation2 + $0xb0] sm:$0xff] }
  0xa0   : > { %v2861_v40 = vor.u32 %v14287_v5, %v2858_v1  ;;  %394 = vst [vmem:[#allocation2 + $0x4c] sm:$0x8] %v393_v42  ;;  %v8147_v63 = vrot.slane %v1618_v4, 11  ;;  %v14289_v9 = vshll.u32 %v9190_v29, 16  ;;  %v2476_v50 = vsel %vm1512_vm14, %v2429_v45, %v2396_v17  ;;  %v1953_v4 = vld [vmem:[#allocation2 + $0xb8] sm:$0x1] }
  0xa1   : > { %v14290_v11 = vshll.u32 %v9188_v19, 16  ;;  %v1630_v44 = vrot.slane %v1625_v54, 4  ;;  %v3443_v27 = vpack.c.b16 %v3412_v22, %v3411_v41  ;;  %8232 = vmatmul.msk.bf16.vlgmr.msra.gmra.mxu0 %vm2515_vm15, %v2476_v50  ;;  %v14291_v18 = vshll.u32 %v9090_v6, 16  ;;  %v8800_v33 = vld [vmem:[#allocation2 + $0xc8] sm:$0xff] }
  0xa2   : > { %v1637_v53 = vor.u32 %v14289_v9, %v1634_v30  ;;  %v9757_v16 = vsel %vm9551_vm12, %v2854_v7, %v2861_v40  ;;  %v13870_v29 = vshll.u32 %v9730_v55, 16  ;;  %v13869_v1 = vshrl.u32 %v9748_v56, 16  ;;  %v9776_v30 = vpop.permute.xlu1 %3621  ;;  %v2318_v34 = vpop.permute.xlu0 %2317  ;;  %3551 = vrot.lane.b32.xlu1 %v8800_v33, %s8921_s19  ;;  %v498_v55 = vld [vmem:[%s9010_s18 + $0x80] sm:$0xff] }
  0xa3   : > { %v1628_v31 = vor.u32 %v14290_v11, %v1625_v54  ;;  %v9764_v42 = vor.u32 %v14291_v18, %v2849_v46  ;;  %v13868_v22 = vshll.u32 %v9748_v56, 16  ;;  %v2047_v24 = vrot.slane %v13871_v13, 4  ;;  %v992_v6 = vld [vmem:[#allocation2 + $0x130] sm:$0x1]  ;;  %3549 = vrot.lane.b32.xlu2 %v8799_v3, %s8921_s19 }
  0xa4   : > { %v1638_v19 = vsel %vm9551_vm12, %v1630_v44, %v1637_v53  ;;  %v2048_v7 = vrot.slane %v13870_v29, 5  ;;  %v9781_v5 = vld [vmem:[#allocation2 + $0x128] sm:$0xf]  ;;  %v1177_v40 = vshll.u32 %v992_v6, 16  ;;  %v2053_v45 = vrot.slane %v13869_v1, 4 }
  0xa5   : > { %v1629_v17 = vsel %vm9551_vm12, %v8147_v63, %v1628_v31  ;;  %v2190_v21 = vunpack.c.l.b16 %v1638_v19  ;;  %v2051_v41 = vrot.slane %v13868_v22, 5  ;;  %v2057_v63 = vshll.u32 %v1953_v4, 16  ;;  %v9788_v9 = vld [vmem:[#allocation2 + $0x12c] sm:$0xf]  ;;  %v458_v44 = vld [vmem:[#allocation2 + $0xe8] sm:$0x1] }
  0xa6   : > { %v2189_v54 = vunpack.c.l.b16 %v1629_v17  ;;  %14292 = vst [vmem:[#allocation15_spill] sm:$0xff] %v9788_v9  ;;  %v13873_v53 = vshrl.u32 %v9781_v5, 16  ;;  %v13872_v50 = vshll.u32 %v9781_v5, 16  ;;  %v2049_v31 = vor.u32 %v2048_v7, %v2047_v24  ;;  %v8352_v4 = vld [vmem:[%s13750_s1 + $0x10] sm:$0xf]  ;;  %v8782_v22 = vld [vmem:[#allocation2 + $0x98] sm:$0xff] }
  0xa7   : > { %v3653_v18 = vsel %vm1463_vm13, %v3443_v27, %v9685_v59  ;;  %v13881_v3 = vshrl.u32 %v9788_v9, 16  ;;  %v13876_v33 = vshll.u32 %v9788_v9, 16  ;;  %v2774_v17 = vld [vmem:[#allocation2 + $0x4c] sm:$0x8]  ;;  %v2054_v19 = vor.u32 %v2053_v45, %v2051_v41  ;;  %v8810_v59 = vld [vmem:[%s13750_s1 + $0x10] sm:$0x30] }
  0xa8   : > { %v2220_v11 = vpack.c.b16 %v2190_v21, %v2189_v54  ;;  %v1167_v6 = vrot.slane %v13873_v53, 4  ;;  %v1168_v24 = vrot.slane %v13872_v50, 5  ;;  %v1179_v54 = vrot.slane %v1177_v40, 5  ;;  %v8783_v45 = vld [vmem:[#allocation2 + $0xb0] sm:$0xff]  ;;  %v499_v9 = vld [vmem:[%s9010_s18 + $0x88] sm:$0xff] }
  0xa9   : > { %v2842_v21 = vshrl.u32 %v2774_v17, 16  ;;  %v1171_v27 = vrot.slane %v13876_v33, 5  ;;  %v1173_v7 = vrot.slane %v13881_v3, 4  ;;  %v2050_v29 = vrot.slane %v2049_v31, 4 }
  0xaa   : > { %v2432_v1 = vsel %vm1463_vm13, %v2220_v11, %v2318_v34  ;;  %v1169_v13 = vor.u32 %v1168_v24, %v1167_v6  ;;  %v2055_v17 = vrot.slane %v2054_v19, 4  ;;  %v2059_v50 = vrot.slane %v2057_v63, 5  ;;  %v2398_v11 = vpop.permute.xlu2 %2397  ;;  %v1434_v31 = vpop.permute.xlu1 %1433  ;;  %2327 = vrot.lane.b32.xlu1 %v8783_v45, %s8921_s19  ;;  %v9830_v6 = vld [vmem:[#allocation2 + $0xc8] sm:$0xf]  ;;  %v395_v45 = vld [vmem:[#allocation2 + $0x64] sm:$0x8] }
  0xab   : > { %v8269_v40 = vrot.slane %v2842_v21, 11  ;;  %v1174_v53 = vor.u32 %v1173_v7, %v1171_v27  ;;  %v2052_v46 = vsel %vm9064_vm6, %v2050_v29, %v2051_v41  ;;  %v8353_v56 = vor.u32 %v8810_v59, %v8352_v4  ;;  %2325 = vrot.lane.b32.xlu2 %v8782_v22, %s8921_s19  ;;  %v455_v4 = vld [vmem:[#allocation2 + $0xd0] sm:$0x1]  ;;  %v9838_v22 = vld [vmem:[#allocation2 + $0xcc] sm:$0xf]  ;;  %v8773_v7 = vld [vmem:[#allocation2 + $0x140] sm:$0xff] }
  0xac   : > { %v459_v33 = vsel %vm8994_vm3, 0, %v458_v44  ;;  %v1170_v3 = vrot.slane %v1169_v13, 4  ;;  %v2060_v63 = vsel %vm9064_vm6, %v2055_v17, %v2059_v50  ;;  %v9822_v19 = vunpack.c.l.b16 %v2052_v46 }
  0xad   : > { %v2853_v34 = vsel %vm9551_vm12, %v8269_v40, %v9764_v42  ;;  %460 = vst [vmem:[#allocation2 + $0xe8] sm:$0x1] %v459_v33  ;;  %v1175_v29 = vrot.slane %v1174_v53, 4  ;;  %v1516_v13 = vsel %vm1512_vm14, %v9695_v20, %v1434_v31  ;;  %v9828_v44 = vunpack.c.l.b16 %v2060_v63  ;;  %v3620_v42 = vpop.permute.xlu0 %3619  ;;  %v8772_v40 = vld [vmem:[#allocation2 + $0x128] sm:$0xff] }
  0xae   : > { %v3413_v41 = vunpack.c.l.b16 %v2853_v34  ;;  %v1172_v46 = vsel %vm9064_vm6, %v1170_v3, %v1171_v27  ;;  %8253 = vmatmul.msk.bf16.gmra.mxu1 %vm2515_vm15, %v1516_v13  ;;  %v9836_v53 = vsel %vm2548_vm11, %v8353_v56, 0  ;;  %v530_v50 = vpack.c.bf16 %v498_v55, %v498_v55  ;;  %v422_v27 = vld [vmem:[#allocation2 + $0x13c] sm:$0x8] }
  0xaf   : > { %v531_v33 = vpack.c.bf16 %v499_v9, %v499_v9  ;;  %v1180_v20 = vsel %vm9064_vm6, %v1175_v29, %v1179_v54  ;;  %v1407_v24 = vunpack.c.l.b16 %v1172_v46  ;;  %v14293_v21 = vunpack.c.l.b16 %v9757_v16  ;;  %3781 = vmatpush.bf16.msra.mxu2 %v9836_v53 }
  0xb0   : > { %v2478_v3 = vsel %vm1512_vm14, %v2432_v1, %v2398_v11  ;;  %v1408_v56 = vunpack.c.l.b16 %v1180_v20  ;;  %562 = vst.msk [vmem:[#allocation2 + $0xe0] sm:$0xf] %vm367_vm0, %v530_v50  ;;  %v3700_v55 = vsel %vm1512_vm14, %v3653_v18, %v3620_v42  ;;  %v456_v9 = vsel %vm8994_vm3, 0, %v455_v4  ;;  %v9859_v11 = vld [vmem:[#allocation2 + $0xb0] sm:$0xf] }
  0xb1   : > { %v9844_v59 = vpack.c.b16 %v14293_v21, %v3413_v41  ;;  %v13885_v54 = vshrl.u32 %v9830_v6, 16  ;;  %563 = vst.msk [vmem:[#allocation2 + $0xe4] sm:$0xf] %vm367_vm0, %v531_v33  ;;  %v13883_v1 = vshll.u32 %v9830_v6, 16  ;;  %v13884_v17 = vshrl.u32 %v9838_v22, 16  ;;  %8233 = vmatmul.msk.bf16.gmra.mxu0 %vm2515_vm15, %v2478_v3 }
  0xb2   : > { %v13882_v34 = vshll.u32 %v9838_v22, 16  ;;  %v1427_v18 = vpack.c.b16 %v1408_v56, %v1407_v24  ;;  %8354 = vmatmul.msk.bf16.vlgmr.msra.gmra.mxu2 %vm2515_vm15, %v3700_v55  ;;  %457 = vst [vmem:[#allocation2 + $0xd0] sm:$0x1] %v456_v9  ;;  %v423_v63 = vsel %vm9518_vm10, 0, %v422_v27  ;;  %v14294_v29 = vshrl.u32 %v9165_v39, 16  ;;  %1377 = vrot.lane.b32.xlu1 %v8773_v7, %s8921_s19 }
  0xb3   : > { %v3271_v31 = vrot.slane %v13885_v54, 4  ;;  %v3272_v42 = vrot.slane %v13883_v1, 5  ;;  %v3277_v46 = vrot.slane %v13884_v17, 4  ;;  %v14295_v50 = vshrl.u32 %v9171_v51, 16  ;;  %424 = vst [vmem:[#allocation2 + $0x13c] sm:$0x8] %v423_v63  ;;  %1375 = vrot.lane.b32.xlu2 %v8772_v40, %s8921_s19 }
  0xb4   : > { %v1867_v41 = vrot.slane %v14294_v29, 7  ;;  %v3178_v13 = vld [vmem:[#allocation2 + $0xe8] sm:$0x1]  ;;  %v3275_v4 = vrot.slane %v13882_v34, 5  ;;  %1455 = vrot.lane.b32.xlu0 %v1427_v18, %s8922_s20  ;;  %v14296_v24 = vshll.u32 %v9165_v39, 16  ;;  %v396_v27 = vsel %vm9518_vm10, 0, %v395_v45 }
  0xb5   : > { %v1876_v33 = vrot.slane %v14295_v50, 7  ;;  %v3295_v20 = vshll.u32 %v3178_v13, 16  ;;  %v3273_v56 = vor.u32 %v3272_v42, %v3271_v31  ;;  %v14297_v9 = vshll.u32 %v9171_v51, 16  ;;  %397 = vst [vmem:[#allocation2 + $0x64] sm:$0x8] %v396_v27  ;;  %v8766_v45 = vld [vmem:[#allocation2 + $0x98] sm:$0xff] }
  0xb6   : > { %v9880_v21 = vor.u32 %v14296_v24, %v1867_v41  ;;  %v1872_v3 = vrot.slane %v1867_v41, 4  ;;  %v3278_v55 = vor.u32 %v3277_v46, %v3275_v4  ;;  %v14298_v63 = vshrl.u32 %v9180_v15, 16 }
  0xb7   : > { %v1879_v29 = vor.u32 %v14297_v9, %v1876_v33  ;;  %v3297_v18 = vrot.slane %v3295_v20, 5  ;;  %v14299_v13 = vshrl.u32 %v9232_v28, 16  ;;  %v9893_v24 = vld [vmem:[#allocation2 + $0xe0] sm:$0xf]  ;;  %v3274_v7 = vrot.slane %v3273_v56, 4 }
  0xb8   : > { %v2871_v39 = vrot.slane %v14298_v63, 7  ;;  %v3279_v40 = vrot.slane %v3278_v55, 4  ;;  %v9898_v42 = vld [vmem:[#allocation2 + $0xe4] sm:$0xf]  ;;  %v13886_v46 = vshrl.u32 %v9893_v24, 16  ;;  %v13887_v33 = vshll.u32 %v9893_v24, 16 }
  0xb9   : > { %v2880_v41 = vrot.slane %v14299_v13, 7  ;;  %v1880_v31 = vsel %vm9551_vm12, %v1872_v3, %v1879_v29  ;;  %14300 = vst [vmem:[#allocation16_spill] sm:$0xff] %v9898_v42  ;;  %v14301_v27 = vshll.u32 %v9180_v15, 16  ;;  %v9904_v63 = vld [vmem:[#allocation2 + $0xb4] sm:$0xf]  ;;  %v13889_v56 = vshrl.u32 %v9898_v42, 16 }
  0xba   : > { %v2212_v20 = vunpack.c.l.b16 %v1880_v31  ;;  %14302 = vst [vmem:[#allocation17_spill] sm:$0xff] %v9904_v63  ;;  %v13888_v55 = vshll.u32 %v9898_v42, 16  ;;  %v3177_v13 = vld [vmem:[#allocation2 + $0xd0] sm:$0x1]  ;;  %v3276_v3 = vsel %vm9064_vm6, %v3274_v7, %v3275_v4  ;;  %v2876_v29 = vrot.slane %v2871_v39, 4 }
  0xbb   : > { %v2874_v9 = vor.u32 %v14301_v27, %v2871_v39  ;;  %v3285_v34 = vrot.slane %v13886_v46, 4  ;;  %v3286_v31 = vrot.slane %v13887_v33, 5  ;;  %v3281_v1 = vshll.u32 %v3177_v13, 16  ;;  %v1583_v54 = vld [vmem:[#allocation2 + $0x13c] sm:$0x8] }
  0xbc   : > { %v3583_v15 = vunpack.c.l.b16 %v3276_v3  ;;  %v3289_v27 = vrot.slane %v13888_v55, 5  ;;  %v3291_v17 = vrot.slane %v13889_v56, 4  ;;  %v14303_v16 = vshll.u32 %v9232_v28, 16  ;;  %1363 = vrot.lane.b32.xlu0 %v8766_v45, %s8921_s19  ;;  %v2777_v33 = vld [vmem:[#allocation2 + $0x64] sm:$0x8] }
  0xbd   : > { %v3287_v39 = vor.u32 %v3286_v31, %v3285_v34  ;;  %v3283_v7 = vrot.slane %v3281_v1, 5  ;;  %v1860_v46 = vshrl.u32 %v1583_v54, 16  ;;  %v13892_v13 = vshll.u32 %v9904_v63, 16 }
  0xbe   : > { %v2883_v51 = vor.u32 %v14303_v16, %v2880_v41  ;;  %v3292_v3 = vor.u32 %v3291_v17, %v3289_v27  ;;  %v2864_v50 = vshrl.u32 %v2777_v33, 16  ;;  %v14304_v56 = vshrl.u32 %v9859_v11, 16  ;;  %v2420_v33 = vpop.permute.xlu1 %2419 }
  0xbf   : > { %v3288_v28 = vrot.slane %v3287_v39, 4  ;;  %v3284_v16 = vsel %vm9064_vm6, %v3279_v40, %v3283_v7  ;;  %v8158_v41 = vrot.slane %v1860_v46, 11  ;;  %v14305_v31 = vshll.u32 %v9859_v11, 16 }
  0xc0   : > { %v2884_v55 = vsel %vm9551_vm12, %v2876_v29, %v2883_v51  ;;  %v1097_v42 = vrot.slane %v14304_v56, 4  ;;  %v3293_v34 = vrot.slane %v3292_v3, 4  ;;  %v3584_v1 = vunpack.c.l.b16 %v3284_v16  ;;  %v987_v56 = vld [vmem:[#allocation2 + $0xb8] sm:$0x1]  ;;  %v584_v29 = vld [vmem:[#allocation2 + $0x34] sm:$0x8] }
  0xc1   : > { %v3416_v45 = vunpack.c.l.b16 %v2884_v55  ;;  %v8270_v54 = vrot.slane %v2864_v50, 11  ;;  %v1098_v4 = vrot.slane %v14305_v31, 5  ;;  %v3290_v17 = vsel %vm9064_vm6, %v3288_v28, %v3289_v27  ;;  %v2340_v28 = vpop.permute.xlu0 %2339 }
  0xc2   : > { %v1871_v51 = vsel %vm9551_vm12, %v8158_v41, %v9880_v21  ;;  %v1101_v40 = vrot.slane %v13892_v13, 5  ;;  %v14306_v46 = vshrl.u32 %v9904_v63, 16  ;;  %v3298_v50 = vsel %vm9064_vm6, %v3293_v34, %v3297_v18 }
  0xc3   : > { %v3585_v39 = vunpack.c.l.b16 %v3290_v17  ;;  %v3609_v7 = vpack.c.b16 %v3584_v1, %v3583_v15  ;;  %v2211_v3 = vunpack.c.l.b16 %v1871_v51  ;;  %v3586_v27 = vunpack.c.l.b16 %v3298_v50 }
  0xc4   : > { %v1103_v55 = vrot.slane %v14306_v46, 4  ;;  %v2875_v16 = vsel %vm9551_vm12, %v8270_v54, %v2874_v9  ;;  %v1099_v21 = vor.u32 %v1098_v4, %v1097_v42  ;;  %v1107_v63 = vshll.u32 %v987_v56, 16  ;;  %v9957_v54 = vld [vmem:[#allocation2 + $0x98] sm:$0xf] }
  0xc5   : > { %3631 = vrot.lane.b32.xlu2 %v3609_v7, %s8922_s20  ;;  %v2231_v31 = vpack.c.b16 %v2212_v20, %v2211_v3  ;;  %v3415_v13 = vunpack.c.l.b16 %v2875_v16  ;;  %v673_v46 = vshrl.u32 %v584_v29, 16  ;;  %v14307_v18 = vpack.c.b16 %v9828_v44, %v9822_v19  ;;  %v8801_v7 = vld [vmem:[#allocation2 + $0xe0] sm:$0xff] }
  0xc6   : > { %v1104_v41 = vor.u32 %v1103_v55, %v1101_v40  ;;  %v3610_v15 = vpack.c.b16 %v3586_v27, %v3585_v39  ;;  %v1100_v34 = vrot.slane %v1099_v21, 4  ;;  %v14308_v17 = vshrl.u32 %v9246_v0, 16  ;;  %v986_v39 = vld [vmem:[#allocation2 + $0xa0] sm:$0x1]  ;;  %v1553_v27 = vld [vmem:[#allocation2 + $0x4c] sm:$0x8] }
  0xc7   : > { %2407 = vrot.lane.b32.xlu0 %v14307_v18, %s8922_s20  ;;  %v9954_v42 = vsel %vm1463_vm13, %v9844_v59, %v9728_v43  ;;  %v2465_v20 = vsel %vm1463_vm13, %v2231_v31, %v2340_v28  ;;  %v1109_v9 = vrot.slane %v1107_v63, 5  ;;  %v8068_v4 = vrot.slane %v673_v46, 11  ;;  %v9967_v43 = vld [vmem:[#allocation2 + $0x9c] sm:$0xf]  ;;  %v1356_v18 = vpop.permute.xlu1 %1355 }
  0xc8   : > { %v1105_v1 = vrot.slane %v1104_v41, 4  ;;  %v680_v51 = vrot.slane %v14308_v17, 7  ;;  %3633 = vrot.lane.b32.xlu1 %v3610_v15, %s8922_s20  ;;  %v9960_v19 = vpack.c.b16 %v3416_v45, %v3415_v13  ;;  %v1102_v44 = vsel %vm9064_vm6, %v1100_v34, %v1101_v40  ;;  %v9987_v17 = vld [vmem:[#allocation2 + $0x158] sm:$0xf] }
  0xc9   : > { %v2500_v56 = vsel %vm1512_vm14, %v2465_v20, %v2420_v33  ;;  %v14309_v55 = vshll.u32 %v9246_v0, 16  ;;  %v1397_v63 = vunpack.c.l.b16 %v1102_v44  ;;  %v14310_v13 = vshrl.u32 %v9258_v61, 16 }
  0xca   : > { %v1110_v59 = vsel %vm9064_vm6, %v1105_v1, %v1109_v9  ;;  %8244 = vmatmul.msk.bf16.vlgmr.msra.gmra.mxu3 %vm2515_vm15, %v2500_v56  ;;  %v685_v50 = vrot.slane %v680_v51, 4  ;;  %v13941_v0 = vshrl.u32 %v9957_v54, 16  ;;  %v13919_v3 = vshll.u32 %v9957_v54, 16 }
  0xcb   : > { %v683_v29 = vor.u32 %v14309_v55, %v680_v51  ;;  %v689_v45 = vrot.slane %v14310_v13, 7  ;;  %v1398_v40 = vunpack.c.l.b16 %v1110_v59  ;;  %8880 = vmatpush.bf16.msra.mxu3 %v9836_v53  ;;  %v14311_v28 = vshll.u32 %v9258_v61, 16  ;;  %v9989_v53 = vpop.permute.xlu2 %3543  ;;  %v10000_v59 = vld [vmem:[#allocation2 + $0x15c] sm:$0xf] }
  0xcc   : > { %v13920_v41 = vshrl.u32 %v9967_v43, 16  ;;  %v13918_v31 = vshll.u32 %v9967_v43, 16  ;;  %v1083_v15 = vrot.slane %v13941_v0, 4  ;;  %v1084_v34 = vrot.slane %v13919_v3, 5 }
  0xcd   : > { %v684_v33 = vsel %vm9551_vm12, %v8068_v4, %v683_v29  ;;  %v692_v16 = vor.u32 %v14311_v28, %v689_v45  ;;  %v1422_v46 = vpack.c.b16 %v1398_v40, %v1397_v63  ;;  %v1093_v1 = vshll.u32 %v986_v39, 16 }
  0xce   : > { %v1227_v21 = vunpack.c.l.b16 %v684_v33  ;;  %v1087_v51 = vrot.slane %v13918_v31, 5  ;;  %v1089_v20 = vrot.slane %v13920_v41, 4  ;;  %v1640_v9 = vshrl.u32 %v1553_v27, 16  ;;  %v428_v41 = vld [vmem:[#allocation2 + $0x16c] sm:$0x8] }
  0xcf   : > { %v693_v61 = vsel %vm9551_vm12, %v685_v50, %v692_v16  ;;  %3553 = vrot.lane.b32.xlu0 %v8801_v7, %s8921_s19  ;;  %v1085_v44 = vor.u32 %v1084_v34, %v1083_v15  ;;  %v1095_v56 = vrot.slane %v1093_v1, 5  ;;  %v14312_v55 = vshrl.u32 %v9215_v36, 16  ;;  %v10006_v7 = vpop.permute.xlu0 %3623 }
  0xd0   : > { %v1228_v4 = vunpack.c.l.b16 %v693_v61  ;;  %v1090_v63 = vor.u32 %v1089_v20, %v1087_v51  ;;  %v8148_v13 = vrot.slane %v1640_v9, 11  ;;  %v14313_v50 = vshrl.u32 %v9228_v48, 16  ;;  %1445 = vrot.lane.b32.xlu1 %v1422_v46, %s8922_s20  ;;  %v8784_v46 = vld [vmem:[#allocation2 + $0xc8] sm:$0xff] }
  0xd1   : > { %v1647_v29 = vrot.slane %v14312_v55, 7  ;;  %v13898_v39 = vshrl.u32 %v9987_v17, 16  ;;  %v1086_v33 = vrot.slane %v1085_v44, 4  ;;  %v14314_v27 = vshll.u32 %v9215_v36, 16  ;;  %v994_v44 = vld [vmem:[#allocation2 + $0x160] sm:$0x1] }
  0xd2   : > { %v1656_v45 = vrot.slane %v14313_v50, 7  ;;  %v1257_v40 = vpack.c.b16 %v1228_v4, %v1227_v21  ;;  %v1091_v15 = vrot.slane %v1090_v63, 4  ;;  %v14315_v34 = vshll.u32 %v9228_v48, 16 }
  0xd3   : > { %v1650_v28 = vor.u32 %v14314_v27, %v1647_v29  ;;  %v1652_v16 = vrot.slane %v1647_v29, 4  ;;  %v13897_v61 = vshll.u32 %v9987_v17, 16  ;;  %v13896_v20 = vshrl.u32 %v10000_v59, 16 }
  0xd4   : > { %v1659_v1 = vor.u32 %v14315_v34, %v1656_v45  ;;  %v10015_v9 = vsel %vm1463_vm13, %v1257_v40, %v1356_v18  ;;  %v1088_v21 = vsel %vm9064_vm6, %v1086_v33, %v1087_v51  ;;  %v13895_v4 = vshll.u32 %v10000_v59, 16  ;;  %v10026_v18 = vld [vmem:[#allocation2 + $0x140] sm:$0xf]  ;;  %v10032_v40 = vld [vmem:[#allocation2 + $0x144] sm:$0xf] }
  0xd5   : > { %v1651_v36 = vsel %vm9551_vm12, %v8148_v13, %v1650_v28  ;;  %v1096_v48 = vsel %vm9064_vm6, %v1091_v15, %v1095_v56  ;;  %v1395_v55 = vunpack.c.l.b16 %v1088_v21  ;;  %v1195_v51 = vrot.slane %v13898_v39, 4 }
  0xd6   : > { %v1660_v29 = vsel %vm9551_vm12, %v1652_v16, %v1659_v1  ;;  %v2191_v63 = vunpack.c.l.b16 %v1651_v36  ;;  %v1396_v50 = vunpack.c.l.b16 %v1096_v48  ;;  %v1196_v13 = vrot.slane %v13897_v61, 5  ;;  %v2400_v1 = vpop.permute.xlu1 %2399  ;;  %v993_v36 = vld [vmem:[#allocation2 + $0x148] sm:$0x1]  ;;  %v2320_v48 = vpop.permute.xlu2 %2319  ;;  %v425_v61 = vld [vmem:[#allocation2 + $0x154] sm:$0x8] }
  0xd7   : > { %v2192_v45 = vunpack.c.l.b16 %v1660_v29  ;;  %v1199_v56 = vrot.slane %v13895_v4, 5  ;;  %v1201_v33 = vrot.slane %v13896_v20, 4  ;;  %v1205_v27 = vshll.u32 %v994_v44, 16  ;;  %2329 = vrot.lane.b32.xlu0 %v8784_v46, %s8921_s19 }
  0xd8   : > { %v3702_v28 = vsel %vm1512_vm14, %v9954_v42, %v9776_v30  ;;  %v1421_v16 = vpack.c.b16 %v1396_v50, %v1395_v55  ;;  %v1197_v34 = vor.u32 %v1196_v13, %v1195_v51  ;;  %v13916_v21 = vshrl.u32 %v10026_v18, 16 }
  0xd9   : > { %v2221_v15 = vpack.c.b16 %v2192_v45, %v2191_v63  ;;  %8355 = vmatmul.msk.bf16.gmra.mxu2 %vm2515_vm15, %v3702_v28  ;;  %v1202_v29 = vor.u32 %v1201_v33, %v1199_v56  ;;  %v1207_v4 = vrot.slane %v1205_v27, 5  ;;  %v13900_v44 = vshll.u32 %v10026_v18, 16  ;;  %v8774_v33 = vld [vmem:[#allocation2 + $0x158] sm:$0xff] }
  0xda   : > { %v13901_v20 = vshrl.u32 %v10032_v40, 16  ;;  %1443 = vrot.lane.b32.xlu2 %v1421_v16, %s8922_s20  ;;  %v1198_v42 = vrot.slane %v1197_v34, 4  ;;  %v13899_v46 = vshll.u32 %v10032_v40, 16  ;;  %v1181_v55 = vrot.slane %v13916_v21, 4  ;;  %v1436_v16 = vpop.permute.xlu0 %1435 }
  0xdb   : > { %v2435_v30 = vsel %vm1463_vm13, %v2221_v15, %v2320_v48  ;;  %v1203_v63 = vrot.slane %v1202_v29, 4  ;;  %v1182_v45 = vrot.slane %v13900_v44, 5  ;;  %v1191_v28 = vshll.u32 %v993_v36, 16  ;;  %v461_v44 = vld [vmem:[#allocation2 + $0x100] sm:$0x1] }
  0xdc   : > { %v2480_v50 = vsel %vm1512_vm14, %v2435_v30, %v2400_v1  ;;  %v1187_v51 = vrot.slane %v13901_v20, 4  ;;  %v1200_v13 = vsel %vm9064_vm6, %v1198_v42, %v1199_v56  ;;  %v1185_v27 = vrot.slane %v13899_v46, 5  ;;  %v398_v30 = vld [vmem:[#allocation2 + $0x7c] sm:$0x8] }
  0xdd   : > { %8234 = vmatmul.msk.bf16.gmra.mxu0 %vm2515_vm15, %v2480_v50  ;;  %v426_v15 = vsel %vm9518_vm10, 0, %v425_v61  ;;  %v1208_v34 = vsel %vm9064_vm6, %v1203_v63, %v1207_v4  ;;  %v1411_v1 = vunpack.c.l.b16 %v1200_v13  ;;  %v1183_v48 = vor.u32 %v1182_v45, %v1181_v55  ;;  %v500_v63 = vld [vmem:[%s9010_s18 + $0x90] sm:$0xff] }
  0xde   : > { %427 = vst [vmem:[#allocation2 + $0x154] sm:$0x8] %v426_v15  ;;  %v14316_v56 = vshrl.u32 %v9340_v60, 16  ;;  %v1412_v42 = vunpack.c.l.b16 %v1208_v34  ;;  %v1188_v50 = vor.u32 %v1187_v51, %v1185_v27  ;;  %v1193_v39 = vrot.slane %v1191_v28, 5 }
  0xdf   : > { %v14317_v36 = vshrl.u32 %v9347_v37, 16  ;;  %v3659_v61 = vsel %vm1463_vm13, %v9960_v19, %v9989_v53  ;;  %v1184_v20 = vrot.slane %v1183_v48, 4  ;;  %v1518_v55 = vsel %vm1512_vm14, %v10015_v9, %v1436_v16  ;;  %1379 = vrot.lane.b32.xlu0 %v8774_v33, %s8921_s19  ;;  %v10081_v19 = vld [vmem:[#allocation2 + $0xe0] sm:$0xf] }
  0xe0   : > { %v1889_v29 = vrot.slane %v14316_v56, 7  ;;  %v1429_v45 = vpack.c.b16 %v1412_v42, %v1411_v1  ;;  %v1189_v51 = vrot.slane %v1188_v50, 4  ;;  %v14318_v13 = vshll.u32 %v9347_v37, 16  ;;  %8254 = vmatmul.msk.bf16.gmra.mxu1 %vm2515_vm15, %v1518_v55  ;;  %v10097_v56 = vld [vmem:[#allocation2 + $0xe4] sm:$0xf] }
  0xe1   : > { %v1898_v46 = vrot.slane %v14317_v36, 7  ;;  %v399_v15 = vsel %vm9518_vm10, 0, %v398_v30  ;;  %v1186_v53 = vsel %vm9064_vm6, %v1184_v20, %v1185_v27  ;;  %v14319_v9 = vshrl.u32 %v9328_v38, 16  ;;  %v1955_v55 = vld [vmem:[#allocation2 + $0xe8] sm:$0x1] }
  0xe2   : > { %v1894_v4 = vrot.slane %v1889_v29, 4  ;;  %400 = vst [vmem:[#allocation2 + $0x7c] sm:$0x8] %v399_v15  ;;  %v14320_v33 = vshrl.u32 %v9334_v47, 16  ;;  %v462_v37 = vsel %vm8994_vm3, 0, %v461_v44  ;;  %1459 = vrot.lane.b32.xlu1 %v1429_v45, %s8922_s20  ;;  %v1194_v1 = vsel %vm9064_vm6, %v1189_v51, %v1193_v39 }
  0xe3   : > { %v1901_v28 = vor.u32 %v14318_v13, %v1898_v46  ;;  %v2893_v16 = vrot.slane %v14319_v9, 7  ;;  %v501_v46 = vld [vmem:[%s9010_s18 + $0x98] sm:$0xff]  ;;  %v1409_v48 = vunpack.c.l.b16 %v1186_v53  ;;  %463 = vst [vmem:[#allocation2 + $0x100] sm:$0x1] %v462_v37  ;;  %v532_v27 = vpack.c.bf16 %v500_v63, %v500_v63  ;;  %v8768_v9 = vld [vmem:[#allocation2 + $0xc8] sm:$0xff] }
  0xe4   : > { %v2902_v34 = vrot.slane %v14320_v33, 7  ;;  %v1410_v30 = vunpack.c.l.b16 %v1194_v1  ;;  %v14321_v42 = vshll.u32 %v9340_v60, 16  ;;  %v14322_v45 = vshll.u32 %v9334_v47, 16 }
  0xe5   : > { %v1902_v20 = vsel %vm9551_vm12, %v1894_v4, %v1901_v28  ;;  %v2898_v44 = vrot.slane %v2893_v16, 4  ;;  %v1586_v13 = vld [vmem:[#allocation2 + $0x154] sm:$0x8]  ;;  %v533_v39 = vpack.c.bf16 %v501_v46, %v501_v46  ;;  %564 = vst.msk [vmem:[#allocation2 + $0xf8] sm:$0xf] %vm367_vm0, %v532_v27  ;;  %v13905_v4 = vshrl.u32 %v10081_v19, 16 }
  0xe6   : > { %v1892_v50 = vor.u32 %v14321_v42, %v1889_v29  ;;  %v2214_v36 = vunpack.c.l.b16 %v1902_v20  ;;  %v2905_v15 = vor.u32 %v14322_v45, %v2902_v34  ;;  %v13903_v63 = vshll.u32 %v10081_v19, 16  ;;  %v1556_v29 = vld [vmem:[#allocation2 + $0x64] sm:$0x8] }
  0xe7   : > { %v1428_v51 = vpack.c.b16 %v1410_v30, %v1409_v48  ;;  %v1882_v28 = vshrl.u32 %v1586_v13, 16  ;;  %v13904_v53 = vshrl.u32 %v10097_v56, 16  ;;  %v13902_v60 = vshll.u32 %v10097_v56, 16  ;;  %565 = vst.msk [vmem:[#allocation2 + $0xfc] sm:$0xf] %vm367_vm0, %v533_v39 }
  0xe8   : > { %v14323_v33 = vshll.u32 %v9328_v38, 16  ;;  %v2075_v47 = vrot.slane %v13905_v4, 4  ;;  %v2076_v34 = vrot.slane %v13903_v63, 5  ;;  %v2085_v46 = vshll.u32 %v1955_v55, 16 }
  0xe9   : > { %1457 = vrot.lane.b32.xlu2 %v1428_v51, %s8922_s20  ;;  %v8159_v1 = vrot.slane %v1882_v28, 11  ;;  %v2906_v48 = vsel %vm9551_vm12, %v2898_v44, %v2905_v15  ;;  %v2079_v20 = vrot.slane %v13902_v60, 5  ;;  %v2081_v38 = vrot.slane %v13904_v53, 4  ;;  %v2342_v60 = vpop.permute.xlu2 %2341 }
  0xea   : > { %v2896_v37 = vor.u32 %v14323_v33, %v2893_v16  ;;  %v2780_v16 = vld [vmem:[#allocation2 + $0x7c] sm:$0x8]  ;;  %v2077_v27 = vor.u32 %v2076_v34, %v2075_v47  ;;  %v2087_v30 = vrot.slane %v2085_v46, 5  ;;  %v3704_v42 = vsel %vm1512_vm14, %v3659_v61, %v10006_v7  ;;  %v3179_v39 = vld [vmem:[#allocation2 + $0x100] sm:$0x1]  ;;  %1367 = vrot.lane.b32.xlu1 %v8768_v9, %s8921_s19  ;;  %v10130_v7 = vpop.permute.xlu1 %3545 }
  0xeb   : > { %v1662_v13 = vshrl.u32 %v1556_v29, 16  ;;  %v1893_v55 = vsel %vm9551_vm12, %v8159_v1, %v1892_v50  ;;  %v2886_v45 = vshrl.u32 %v2780_v16, 16  ;;  %v2082_v51 = vor.u32 %v2081_v38, %v2079_v20  ;;  %8356 = vmatmul.msk.bf16.gmra.mxu2 %vm2515_vm15, %v3704_v42  ;;  %v8767_v29 = vld [vmem:[#allocation2 + $0xb0] sm:$0xff] }
  0xec   : > { %v14324_v44 = vshrl.u32 %v9288_v57, 16  ;;  %v2213_v28 = vunpack.c.l.b16 %v1893_v55  ;;  %v3418_v33 = vunpack.c.l.b16 %v2906_v48  ;;  %v2078_v47 = vrot.slane %v2077_v27, 4  ;;  %v10132_v61 = vld [vmem:[#allocation2 + $0xf8] sm:$0xf] }
  0xed   : > { %v8149_v34 = vrot.slane %v1662_v13, 11  ;;  %v8271_v46 = vrot.slane %v2886_v45, 11  ;;  %v3309_v50 = vshll.u32 %v3179_v39, 16  ;;  %v2083_v1 = vrot.slane %v2082_v51, 4  ;;  %v2422_v45 = vpop.permute.xlu0 %2421 }
  0xee   : > { %v1669_v15 = vrot.slane %v14324_v44, 7  ;;  %v14325_v38 = vshll.u32 %v9288_v57, 16  ;;  %v2232_v42 = vpack.c.b16 %v2214_v36, %v2213_v28  ;;  %v13913_v55 = vshrl.u32 %v10132_v61, 16  ;;  %v10140_v13 = vld [vmem:[#allocation2 + $0xfc] sm:$0xf] }
  0xef   : > { %v13907_v9 = vshll.u32 %v10132_v61, 16  ;;  %v2897_v27 = vsel %vm9551_vm12, %v8271_v46, %v2896_v37  ;;  %v2080_v39 = vsel %vm9064_vm6, %v2078_v47, %v2079_v20  ;;  %v2088_v57 = vsel %vm9064_vm6, %v2083_v1, %v2087_v30  ;;  %v10156_v47 = vld [vmem:[#allocation2 + $0xc8] sm:$0xf] }
  0xf0   : > { %v1672_v16 = vor.u32 %v14325_v38, %v1669_v15  ;;  %v1674_v48 = vrot.slane %v1669_v15, 4  ;;  %v2468_v51 = vsel %vm1463_vm13, %v2232_v42, %v2342_v60  ;;  %v3417_v44 = vunpack.c.l.b16 %v2897_v27 }
  0xf1   : > { %v13912_v15 = vshrl.u32 %v10140_v13, 16  ;;  %v13906_v28 = vshll.u32 %v10140_v13, 16  ;;  %v3299_v37 = vrot.slane %v13913_v55, 4  ;;  %v3300_v46 = vrot.slane %v13907_v9, 5  ;;  %1365 = vrot.lane.b32.xlu2 %v8767_v29, %s8921_s19 }
  0xf2   : > { %v1673_v36 = vsel %vm9551_vm12, %v8149_v34, %v1672_v16  ;;  %v2363_v20 = vunpack.c.l.b16 %v2080_v39  ;;  %v2364_v30 = vunpack.c.l.b16 %v2088_v57  ;;  %v3311_v1 = vrot.slane %v3309_v50, 5  ;;  %v10163_v16 = vld [vmem:[#allocation2 + $0xcc] sm:$0xf]  ;;  %v988_v57 = vld [vmem:[#allocation2 + $0xd0] sm:$0x1] }
  0xf3   : > { %v3303_v60 = vrot.slane %v13906_v28, 5  ;;  %v3305_v34 = vrot.slane %v13912_v15, 4  ;;  %v2502_v38 = vsel %vm1512_vm14, %v2468_v51, %v2422_v45  ;;  %v3446_v42 = vpack.c.b16 %v3418_v33, %v3417_v44 }
  0xf4   : > { %v3301_v27 = vor.u32 %v3300_v46, %v3299_v37  ;;  %v2387_v63 = vpack.c.b16 %v2364_v30, %v2363_v20  ;;  %8245 = vmatmul.msk.bf16.gmra.mxu3 %vm2515_vm15, %v2502_v38  ;;  %v14326_v29 = vshrl.u32 %v9292_v52, 16  ;;  %v2193_v4 = vunpack.c.l.b16 %v1673_v36  ;;  %v10179_v30 = vld [vmem:[#allocation2 + $0xc8] sm:$0xf] }
  0xf5   : > { %v3306_v53 = vor.u32 %v3305_v34, %v3303_v60  ;;  %v13911_v28 = vshrl.u32 %v10156_v47, 16  ;;  %v13908_v9 = vshll.u32 %v10156_v47, 16  ;;  %v14327_v45 = vshll.u32 %v9292_v52, 16  ;;  %v10185_v34 = vpop.permute.xlu1 %2321 }
  0xf6   : > { %v1678_v39 = vrot.slane %v14326_v29, 7  ;;  %v3302_v50 = vrot.slane %v3301_v27, 4  ;;  %2411 = vrot.lane.b32.xlu1 %v2387_v63, %s8922_s20  ;;  %v13910_v51 = vshrl.u32 %v10163_v16, 16  ;;  %v13909_v44 = vshll.u32 %v10163_v16, 16  ;;  %v10191_v27 = vld [vmem:[#allocation2 + $0xcc] sm:$0xf] }
  0xf7   : > { %v3307_v37 = vrot.slane %v3306_v53, 4  ;;  %v1111_v46 = vrot.slane %v13911_v28, 4  ;;  %v1112_v36 = vrot.slane %v13908_v9, 5  ;;  %v1121_v20 = vshll.u32 %v988_v57, 16  ;;  %v10195_v57 = vpop.permute.xlu2 %3625 }
  0xf8   : > { %v1681_v33 = vor.u32 %v14327_v45, %v1678_v39  ;;  %v3304_v63 = vsel %vm9064_vm6, %v3302_v50, %v3303_v60  ;;  %v1115_v53 = vrot.slane %v13909_v44, 5  ;;  %v1117_v38 = vrot.slane %v13910_v51, 4 }
  0xf9   : > { %v3312_v29 = vsel %vm9064_vm6, %v3307_v37, %v3311_v1  ;;  %v3587_v39 = vunpack.c.l.b16 %v3304_v63  ;;  %v1113_v50 = vor.u32 %v1112_v36, %v1111_v46  ;;  %v13915_v9 = vshrl.u32 %v10179_v30, 16  ;;  %v1954_v37 = vld [vmem:[#allocation2 + $0xd0] sm:$0x1] }
  0xfa   : > { %v1682_v52 = vsel %vm9551_vm12, %v1674_v48, %v1681_v33  ;;  %v3588_v45 = vunpack.c.l.b16 %v3312_v29  ;;  %v1118_v48 = vor.u32 %v1117_v38, %v1115_v53  ;;  %v1123_v33 = vrot.slane %v1121_v20, 5  ;;  %v587_v20 = vld [vmem:[#allocation2 + $0x4c] sm:$0x8] }
  0xfb   : > { %v2194_v60 = vunpack.c.l.b16 %v1682_v52  ;;  %v10200_v44 = vsel %vm1463_vm13, %v3446_v42, %v10130_v7  ;;  %v1114_v51 = vrot.slane %v1113_v50, 4  ;;  %v13914_v28 = vshll.u32 %v10179_v30, 16  ;;  %v10207_v52 = vpop.permute.xlu0 %1357 }
  0xfc   : > { %v13917_v1 = vshrl.u32 %v10191_v27, 16  ;;  %v3611_v63 = vpack.c.b16 %v3588_v45, %v3587_v39  ;;  %v1119_v15 = vrot.slane %v1118_v48, 4  ;;  %v13921_v46 = vshll.u32 %v10191_v27, 16  ;;  %v502_v39 = vld [vmem:[%s9010_s18 + $0xa0] sm:$0xff] }
  0xfd   : > { %v2061_v36 = vrot.slane %v13915_v9, 4  ;;  %v2222_v38 = vpack.c.b16 %v2194_v60, %v2193_v4  ;;  %v1116_v7 = vsel %vm9064_vm6, %v1114_v51, %v1115_v53  ;;  %v2062_v42 = vrot.slane %v13914_v28, 5  ;;  %v503_v9 = vld [vmem:[%s9010_s18 + $0xa8] sm:$0xff] }
  0xfe   : > { %v2067_v29 = vrot.slane %v13917_v1, 4  ;;  %3635 = vrot.lane.b32.xlu0 %v3611_v63, %s8922_s20  ;;  %v1124_v50 = vsel %vm9064_vm6, %v1119_v15, %v1123_v33  ;;  %v1399_v45 = vunpack.c.l.b16 %v1116_v7  ;;  %v2065_v48 = vrot.slane %v13921_v46, 5 }
  0xff   : > { %v2071_v4 = vshll.u32 %v1954_v37, 16  ;;  %v1400_v60 = vunpack.c.l.b16 %v1124_v50  ;;  %v2063_v55 = vor.u32 %v2062_v42, %v2061_v36  ;;  %v695_v51 = vshrl.u32 %v587_v20, 16 }
 0x100   : > { %v14328_v53 = vshrl.u32 %v9424_v14, 16  ;;  %v2068_v21 = vor.u32 %v2067_v29, %v2065_v48  ;;  %v14329_v31 = vshrl.u32 %v9435_v32, 16  ;;  %v534_v3 = vpack.c.bf16 %v502_v39, %v502_v39  ;;  %v10231_v29 = vpop.permute.xlu1 %2343  ;;  %v1438_v39 = vpop.permute.xlu2 %1437 }
 0x101   : > { %v2073_v1 = vrot.slane %v2071_v4, 5  ;;  %v1423_v15 = vpack.c.b16 %v1400_v60, %v1399_v45  ;;  %v2064_v33 = vrot.slane %v2063_v55, 4  ;;  %v8069_v7 = vrot.slane %v695_v51, 11  ;;  %v995_v4 = vld [vmem:[#allocation2 + $0x178] sm:$0x1] }
 0x102   : > { %v702_v28 = vrot.slane %v14328_v53, 7  ;;  %v711_v63 = vrot.slane %v14329_v31, 7  ;;  %v14330_v46 = vshll.u32 %v9424_v14, 16  ;;  %v2069_v50 = vrot.slane %v2068_v21, 4  ;;  %566 = vst.msk [vmem:[#allocation2 + $0x110] sm:$0xf] %vm367_vm0, %v534_v3 }
 0x103   : > { %v14331_v20 = vshll.u32 %v9435_v32, 16  ;;  %v535_v53 = vpack.c.bf16 %v503_v9, %v503_v9  ;;  %v2066_v31 = vsel %vm9064_vm6, %v2064_v33, %v2065_v48  ;;  %v429_v14 = vsel %vm9518_vm10, 0, %v428_v41  ;;  %v10241_v32 = vld [vmem:[#allocation2 + $0x170] sm:$0xf]  ;;  %v10243_v9 = vld [vmem:[#allocation2 + $0x174] sm:$0xf] }
 0x104   : > { %v705_v37 = vor.u32 %v14330_v46, %v702_v28  ;;  %v707_v36 = vrot.slane %v702_v28, 4  ;;  %v14332_v21 = vshrl.u32 %v9471_v25, 16  ;;  %v2074_v3 = vsel %vm9064_vm6, %v2069_v50, %v2073_v1  ;;  %430 = vst [vmem:[#allocation2 + $0x16c] sm:$0x8] %v429_v14 }
 0x105   : > { %v714_v42 = vor.u32 %v14331_v20, %v711_v63  ;;  %v2361_v46 = vunpack.c.l.b16 %v2066_v31  ;;  %567 = vst.msk [vmem:[#allocation2 + $0x114] sm:$0xf] %vm367_vm0, %v535_v53  ;;  %v2438_v41 = vsel %vm1463_vm13, %v2222_v38, %v10185_v34  ;;  %v2362_v60 = vunpack.c.l.b16 %v2074_v3 }
 0x106   : > { %v706_v55 = vsel %vm9551_vm12, %v8069_v7, %v705_v37  ;;  %v1911_v28 = vrot.slane %v14332_v21, 7  ;;  %1447 = vrot.lane.b32.xlu0 %v1423_v15, %s8922_s20  ;;  %v14333_v33 = vshrl.u32 %v9478_v12, 16  ;;  %v13940_v7 = vshrl.u32 %v10241_v32, 16  ;;  %v401_v21 = vld [vmem:[#allocation2 + $0x94] sm:$0x8] }
 0x107   : > { %v715_v45 = vsel %vm9551_vm12, %v707_v36, %v714_v42  ;;  %v1229_v48 = vunpack.c.l.b16 %v706_v55  ;;  %v13935_v37 = vshll.u32 %v10241_v32, 16  ;;  %v13938_v50 = vshrl.u32 %v10243_v9, 16  ;;  %v2402_v36 = vpop.permute.xlu0 %2401 }
 0x108   : > { %v1230_v51 = vunpack.c.l.b16 %v715_v45  ;;  %v1916_v63 = vrot.slane %v1911_v28, 4  ;;  %v1920_v1 = vrot.slane %v14333_v33, 7  ;;  %v2386_v20 = vpack.c.b16 %v2362_v60, %v2361_v46 }
 0x109   : > { %v13934_v34 = vshll.u32 %v10243_v9, 16  ;;  %v1219_v38 = vshll.u32 %v995_v4, 16  ;;  %v14334_v53 = vshll.u32 %v9478_v12, 16  ;;  %v1209_v15 = vrot.slane %v13940_v7, 4 }
 0x10a   : > { %v1258_v42 = vpack.c.b16 %v1230_v51, %v1229_v48  ;;  %v1210_v55 = vrot.slane %v13935_v37, 5  ;;  %v1215_v14 = vrot.slane %v13938_v50, 4  ;;  %2409 = vrot.lane.b32.xlu2 %v2386_v20, %s8922_s20  ;;  %v2482_v12 = vsel %vm1512_vm14, %v2438_v41, %v2402_v36 }
 0x10b   : > { %v1923_v31 = vor.u32 %v14334_v53, %v1920_v1  ;;  %v1213_v46 = vrot.slane %v13934_v34, 5  ;;  %8235 = vmatmul.msk.bf16.gmra.mxu0 %vm2515_vm15, %v2482_v12  ;;  %v3706_v60 = vsel %vm1512_vm14, %v10200_v44, %v10195_v57  ;;  %v1221_v33 = vrot.slane %v1219_v38, 5  ;;  %v590_v1 = vld [vmem:[#allocation2 + $0x64] sm:$0x8]  ;;  %v1589_v36 = vld [vmem:[#allocation2 + $0x16c] sm:$0x8]  ;;  %v10288_v57 = vpop.permute.xlu1 %3627 }
 0x10c   : > { %v1475_v3 = vsel %vm1463_vm13, %v1258_v42, %v10207_v52  ;;  %v1211_v4 = vor.u32 %v1210_v55, %v1209_v15  ;;  %v8803_v51 = vld [vmem:[#allocation2 + $0x110] sm:$0xff]  ;;  %8357 = vmatmul.msk.bf16.gmra.mxu2 %vm2515_vm15, %v3706_v60  ;;  %v402_v41 = vsel %vm9518_vm10, 0, %v401_v21  ;;  %v14336_v20 = vshll.u32 %v9471_v25, 16  ;;  %v2424_v21 = vpop.permute.xlu2 %2423  ;;  %v14340_v60 = vld [vmem:[#allocation4_spill] sm:$0xff]  ;;  %v623_v2 = vld [vmem:[#allocation2 + $0x16c] sm:$0x8] }
 0x10d   : > { %v1924_v45 = vsel %vm9551_vm12, %v1916_v63, %v1923_v31  ;;  %v1520_v48 = vsel %vm1512_vm14, %v1475_v3, %v1438_v39  ;;  %v1216_v52 = vor.u32 %v1215_v14, %v1213_v46  ;;  %v14335_v63 = vshrl.u32 %v9374_v62, 16  ;;  %403 = vst [vmem:[#allocation2 + $0x94] sm:$0x8] %v402_v41  ;;  %3557 = vrot.lane.b32.xlu1 %v8803_v51, %s8921_s19  ;;  %v8802_v14 = vld [vmem:[#allocation2 + $0xf8] sm:$0xff]  ;;  %v8787_v7 = vld [vmem:[#allocation2 + $0x110] sm:$0xff] }
 0x10e   : > { %8255 = vmatmul.msk.bf16.gmra.mxu1 %vm2515_vm15, %v1520_v48  ;;  %v1914_v42 = vor.u32 %v14336_v20, %v1911_v28  ;;  %v2216_v53 = vunpack.c.l.b16 %v1924_v45  ;;  %v1212_v44 = vrot.slane %v1211_v4, 4  ;;  %v14337_v38 = vshrl.u32 %v9380_v58, 16  ;;  %v14342_v20 = vld [vmem:[#allocation5_spill] sm:$0xff] }
 0x10f   : > { %v2915_v39 = vrot.slane %v14335_v63, 7  ;;  %v1904_v15 = vshrl.u32 %v1589_v36, 16  ;;  %v1217_v55 = vrot.slane %v1216_v52, 4  ;;  %v14338_v3 = vshll.u32 %v9374_v62, 16 }
 0x110   : > { %v2924_v31 = vrot.slane %v14337_v38, 7  ;;  %v1214_v28 = vsel %vm9064_vm6, %v1212_v44, %v1213_v46  ;;  %v14339_v45 = vshll.u32 %v9380_v58, 16  ;;  %v717_v4 = vshrl.u32 %v590_v1, 16 }
 0x111   : > { %v10295_v12 = vor.u32 %v14338_v3, %v2915_v39  ;;  %v2920_v25 = vrot.slane %v2915_v39, 4  ;;  %v14341_v41 = vshrl.u32 %v14340_v60, 16  ;;  %v8160_v51 = vrot.slane %v1904_v15, 11  ;;  %v10307_v3 = vld [vmem:[#allocation2 + $0xf8] sm:$0xf] }
 0x112   : > { %v2927_v48 = vor.u32 %v14339_v45, %v2924_v31  ;;  %v1222_v52 = vsel %vm9064_vm6, %v1217_v55, %v1221_v33  ;;  %v1413_v36 = vunpack.c.l.b16 %v1214_v28  ;;  %v14343_v62 = vshrl.u32 %v14342_v20, 16  ;;  %v10313_v31 = vld [vmem:[#allocation2 + $0xfc] sm:$0xf]  ;;  %3555 = vrot.lane.b32.xlu2 %v8802_v14, %s8921_s19 }
 0x113   : > { %v724_v63 = vrot.slane %v14341_v41, 7  ;;  %v1414_v39 = vunpack.c.l.b16 %v1222_v52  ;;  %v8070_v58 = vrot.slane %v717_v4, 11  ;;  %v14344_v1 = vshll.u32 %v14340_v60, 16  ;;  %v8786_v33 = vld [vmem:[#allocation2 + $0xf8] sm:$0xff]  ;;  %v1956_v4 = vld [vmem:[#allocation2 + $0x100] sm:$0x1] }
 0x114   : > { %v733_v38 = vrot.slane %v14343_v62, 7  ;;  %v2928_v46 = vsel %vm9551_vm12, %v2920_v25, %v2927_v48  ;;  %v1915_v15 = vsel %vm9551_vm12, %v8160_v51, %v1914_v42  ;;  %v14345_v45 = vshll.u32 %v14342_v20, 16  ;;  %v2783_v60 = vld [vmem:[#allocation2 + $0x94] sm:$0x8] }
 0x115   : > { %v727_v44 = vor.u32 %v14344_v1, %v724_v63  ;;  %v3420_v55 = vunpack.c.l.b16 %v2928_v46  ;;  %v729_v28 = vrot.slane %v724_v63, 4  ;;  %v2215_v52 = vunpack.c.l.b16 %v1915_v15  ;;  %2333 = vrot.lane.b32.xlu1 %v8786_v33, %s8921_s19 }
 0x116   : > { %v736_v41 = vor.u32 %v14345_v45, %v733_v38  ;;  %v1430_v62 = vpack.c.b16 %v1414_v39, %v1413_v36  ;;  %v13922_v48 = vshrl.u32 %v10307_v3, 16  ;;  %v13923_v14 = vshll.u32 %v10307_v3, 16  ;;  %v1559_v39 = vld [vmem:[#allocation2 + $0x7c] sm:$0x8] }
 0x117   : > { %v728_v25 = vsel %vm9551_vm12, %v8070_v58, %v727_v44  ;;  %v13924_v63 = vshrl.u32 %v10313_v31, 16  ;;  %v2233_v46 = vpack.c.b16 %v2216_v53, %v2215_v52  ;;  %v2908_v20 = vshrl.u32 %v2783_v60, 16  ;;  %v8785_v58 = vld [vmem:[#allocation2 + $0xe0] sm:$0xff]  ;;  %v1360_v60 = vpop.permute.xlu2 %1359 }
 0x118   : > { %v737_v42 = vsel %vm9551_vm12, %v729_v28, %v736_v41  ;;  %v1231_v51 = vunpack.c.l.b16 %v728_v25  ;;  %1461 = vrot.lane.b32.xlu0 %v1430_v62, %s8922_s20  ;;  %v13929_v38 = vshll.u32 %v10313_v31, 16  ;;  %v2089_v1 = vrot.slane %v13922_v48, 4  ;;  %v3548_v41 = vpop.permute.xlu0 %3547  ;;  %v1440_v62 = vpop.permute.xlu1 %1439 }
 0x119   : > { %v1232_v36 = vunpack.c.l.b16 %v737_v42  ;;  %v2090_v44 = vrot.slane %v13923_v14, 5  ;;  %v2095_v15 = vrot.slane %v13924_v63, 4  ;;  %v2099_v53 = vshll.u32 %v1956_v4, 16  ;;  %v8769_v63 = vld [vmem:[#allocation2 + $0xe0] sm:$0xff] }
 0x11a   : > { %v2471_v28 = vsel %vm1463_vm13, %v2233_v46, %v10231_v29  ;;  %v8272_v45 = vrot.slane %v2908_v20, 11  ;;  %v2093_v33 = vrot.slane %v13929_v38, 5  ;;  %v1684_v14 = vshrl.u32 %v1559_v39, 16  ;;  %2331 = vrot.lane.b32.xlu2 %v8785_v58, %s8921_s19 }
 0x11b   : > { %v1259_v52 = vpack.c.b16 %v1232_v36, %v1231_v51  ;;  %v2504_v25 = vsel %vm1512_vm14, %v2471_v28, %v2424_v21  ;;  %v2091_v42 = vor.u32 %v2090_v44, %v2089_v1  ;;  %v2101_v48 = vrot.slane %v2099_v53, 5  ;;  %v10348_v36 = vld [vmem:[#allocation2 + $0x128] sm:$0xf]  ;;  %v8806_v1 = vld [vmem:[#allocation2 + $0x158] sm:$0xff] }
 0x11c   : > { %8246 = vmatmul.msk.bf16.gmra.mxu3 %vm2515_vm15, %v2504_v25  ;;  %v2919_v29 = vsel %vm9551_vm12, %v8272_v45, %v10295_v12  ;;  %v2096_v51 = vor.u32 %v2095_v15, %v2093_v33  ;;  %v14346_v46 = vshrl.u32 %v9641_v10, 16  ;;  %v8150_v53 = vrot.slane %v1684_v14, 11 }
 0x11d   : > { %v1478_v4 = vsel %vm1463_vm13, %v1259_v52, %v1360_v60  ;;  %v3419_v21 = vunpack.c.l.b16 %v2919_v29  ;;  %v2092_v44 = vrot.slane %v2091_v42, 4  ;;  %v14347_v25 = vshll.u32 %v9641_v10, 16  ;;  %v10356_v60 = vld [vmem:[#allocation2 + $0x12c] sm:$0xf]  ;;  %3563 = vrot.lane.b32.xlu1 %v8806_v1, %s8921_s19 }
 0x11e   : > { %v1691_v20 = vrot.slane %v14346_v46, 7  ;;  %v1522_v39 = vsel %vm1512_vm14, %v1478_v4, %v1440_v62  ;;  %v2097_v28 = vrot.slane %v2096_v51, 4  ;;  %v14348_v15 = vshrl.u32 %v9647_v26, 16  ;;  %14349 = vst [vmem:[#allocation4_spill] sm:$0xff] %v10356_v60  ;;  %v3181_v51 = vld [vmem:[#allocation2 + $0x130] sm:$0x1] }
 0x11f   : > { %v3447_v46 = vpack.c.b16 %v3420_v55, %v3419_v21  ;;  %8256 = vmatmul.msk.bf16.gmra.mxu1 %vm2515_vm15, %v1522_v39  ;;  %v2094_v58 = vsel %vm9064_vm6, %v2092_v44, %v2093_v33  ;;  %v13928_v62 = vshrl.u32 %v10348_v36, 16  ;;  %v13926_v14 = vshll.u32 %v10348_v36, 16  ;;  %v8775_v21 = vld [vmem:[#allocation2 + $0x170] sm:$0xff]  ;;  %v464_v44 = vld [vmem:[#allocation2 + $0x118] sm:$0x1] }
 0x120   : > { %v1694_v12 = vor.u32 %v14347_v25, %v1691_v20  ;;  %v1696_v45 = vrot.slane %v1691_v20, 4  ;;  %v1700_v52 = vrot.slane %v14348_v15, 7  ;;  %1369 = vrot.lane.b32.xlu0 %v8769_v63, %s8921_s19  ;;  %v2102_v10 = vsel %vm9064_vm6, %v2097_v28, %v2101_v48 }
 0x121   : > { %v2365_v42 = vunpack.c.l.b16 %v2094_v58  ;;  %v14350_v55 = vshll.u32 %v9647_v26, 16  ;;  %v3665_v20 = vsel %vm1463_vm13, %v3447_v46, %v3548_v41  ;;  %v2366_v33 = vunpack.c.l.b16 %v2102_v10  ;;  %v10380_v41 = vld [vmem:[#allocation2 + $0x110] sm:$0xf]  ;;  %v2324_v46 = vpop.permute.xlu0 %2323 }
 0x122   : > { %v1695_v29 = vsel %vm9551_vm12, %v8150_v53, %v1694_v12  ;;  %v13927_v63 = vshrl.u32 %v10356_v60, 16  ;;  %v13925_v28 = vshll.u32 %v10356_v60, 16  ;;  %v3327_v26 = vrot.slane %v13928_v62, 4  ;;  %1381 = vrot.lane.b32.xlu2 %v8775_v21, %s8921_s19 }
 0x123   : > { %v1703_v4 = vor.u32 %v14350_v55, %v1700_v52  ;;  %v2195_v39 = vunpack.c.l.b16 %v1695_v29  ;;  %v3328_v53 = vrot.slane %v13926_v14, 5  ;;  %v2388_v1 = vpack.c.b16 %v2366_v33, %v2365_v42  ;;  %v10384_v52 = vld [vmem:[#allocation2 + $0x114] sm:$0xf]  ;;  %v431_v55 = vld [vmem:[#allocation2 + $0x184] sm:$0x8] }
 0x124   : > { %v3333_v12 = vrot.slane %v13927_v63, 4  ;;  %v3337_v15 = vshll.u32 %v3181_v51, 16  ;;  %v3331_v58 = vrot.slane %v13925_v28, 5  ;;  %v3708_v10 = vsel %vm1512_vm14, %v3665_v20, %v10288_v57  ;;  %v14351_v28 = vld [vmem:[#allocation6_spill] sm:$0xff] }
 0x125   : > { %v1704_v48 = vsel %vm9551_vm12, %v1696_v45, %v1703_v4  ;;  %v3329_v45 = vor.u32 %v3328_v53, %v3327_v26  ;;  %v465_v29 = vsel %vm8994_vm3, 0, %v464_v44  ;;  %v2404_v4 = vpop.permute.xlu2 %2403  ;;  %8358 = vmatmul.msk.bf16.gmra.mxu2 %vm2515_vm15, %v3708_v10  ;;  %v13933_v51 = vshrl.u32 %v10380_v41, 16 }
 0x126   : > { %v2196_v25 = vunpack.c.l.b16 %v1704_v48  ;;  %v3339_v33 = vrot.slane %v3337_v15, 5  ;;  %466 = vst [vmem:[#allocation2 + $0x118] sm:$0x1] %v465_v29  ;;  %v13931_v48 = vshll.u32 %v10380_v41, 16  ;;  %v3334_v53 = vor.u32 %v3333_v12, %v3331_v58  ;;  %v404_v15 = vld [vmem:[#allocation2 + $0xac] sm:$0x8] }
 0x127   : > { %v3330_v26 = vrot.slane %v3329_v45, 4  ;;  %v13932_v57 = vshrl.u32 %v10384_v52, 16  ;;  %v13930_v20 = vshll.u32 %v10384_v52, 16  ;;  %v3313_v21 = vrot.slane %v13933_v51, 4 }
 0x128   : > { %v2223_v42 = vpack.c.b16 %v2196_v25, %v2195_v39  ;;  %v3314_v39 = vrot.slane %v13931_v48, 5  ;;  %v432_v25 = vsel %vm9518_vm10, 0, %v431_v55  ;;  %2413 = vrot.lane.b32.xlu0 %v2388_v1, %s8922_s20  ;;  %v3335_v45 = vrot.slane %v3334_v53, 4 }
 0x129   : > { %v3332_v12 = vsel %vm9064_vm6, %v3330_v26, %v3331_v58  ;;  %433 = vst [vmem:[#allocation2 + $0x184] sm:$0x8] %v432_v25  ;;  %v3319_v55 = vrot.slane %v13932_v57, 4  ;;  %v14352_v14 = vshrl.u32 %v14351_v28, 16  ;;  %v14353_v26 = vld [vmem:[#allocation7_spill] sm:$0xff]  ;;  %v14355_v25 = vld [vmem:[#allocation10_spill] sm:$0xff] }
 0x12a   : > { %v2441_v44 = vsel %vm1463_vm13, %v2223_v42, %v2324_v46  ;;  %v3317_v46 = vrot.slane %v13930_v20, 5  ;;  %v3591_v29 = vunpack.c.l.b16 %v3332_v12  ;;  %v3315_v42 = vor.u32 %v3314_v39, %v3313_v21  ;;  %v10428_v20 = vld [vmem:[#allocation2 + $0xfc] sm:$0xf] }
 0x12b   : > { %v2484_v10 = vsel %vm1512_vm14, %v2441_v44, %v2404_v4  ;;  %v1933_v1 = vrot.slane %v14352_v14, 7  ;;  %v3340_v58 = vsel %vm9064_vm6, %v3335_v45, %v3339_v33  ;;  %v14354_v53 = vshrl.u32 %v14353_v26, 16  ;;  %14359 = vst [vmem:[#allocation6_spill] sm:$0xff] %v10428_v20  ;;  %v8804_v33 = vld [vmem:[#allocation2 + $0x128] sm:$0xff] }
 0x12c   : > { %8236 = vmatmul.msk.bf16.gmra.mxu0 %vm2515_vm15, %v2484_v10  ;;  %v405_v44 = vsel %vm9518_vm10, 0, %v404_v15  ;;  %v14356_v12 = vshrl.u32 %v14355_v25, 16  ;;  %v10424_v10 = vld [vmem:[#allocation2 + $0xf8] sm:$0xf]  ;;  %v3592_v21 = vunpack.c.l.b16 %v3340_v58  ;;  %v3316_v39 = vrot.slane %v3315_v42, 4 }
 0x12d   : > { %v1942_v4 = vrot.slane %v14354_v53, 7  ;;  %14357 = vst [vmem:[#allocation5_spill] sm:$0xff] %v10424_v10  ;;  %v3320_v62 = vor.u32 %v3319_v55, %v3317_v46  ;;  %v14358_v38 = vshll.u32 %v14351_v28, 16  ;;  %v3180_v45 = vld [vmem:[#allocation2 + $0x118] sm:$0x1]  ;;  %v1938_v53 = vrot.slane %v1933_v1, 4 }
 0x12e   : > { %v2937_v63 = vrot.slane %v14356_v12, 7  ;;  %406 = vst [vmem:[#allocation2 + $0xac] sm:$0x8] %v405_v44  ;;  %v14360_v48 = vshll.u32 %v14353_v26, 16  ;;  %v14361_v57 = vshll.u32 %v14355_v25, 16  ;;  %v3613_v34 = vpack.c.b16 %v3592_v21, %v3591_v29  ;;  %v14362_v44 = vld [vmem:[#allocation11_spill] sm:$0xff] }
 0x12f   : > { %v1936_v14 = vor.u32 %v14358_v38, %v1933_v1  ;;  %v3318_v42 = vsel %vm9064_vm6, %v3316_v39, %v3317_v46  ;;  %v3321_v55 = vrot.slane %v3320_v62, 4  ;;  %v3323_v28 = vshll.u32 %v3180_v45, 16 }
 0x130   : > { %v1945_v15 = vor.u32 %v14360_v48, %v1942_v4  ;;  %v2940_v12 = vor.u32 %v14361_v57, %v2937_v63  ;;  %v2942_v51 = vrot.slane %v2937_v63, 4  ;;  %v3589_v38 = vunpack.c.l.b16 %v3318_v42  ;;  %v990_v48 = vld [vmem:[#allocation2 + $0x100] sm:$0x1]  ;;  %3639 = vrot.lane.b32.xlu1 %v3613_v34, %s8922_s20  ;;  %v1592_v63 = vld [vmem:[#allocation2 + $0x184] sm:$0x8]  ;;  %3559 = vrot.lane.b32.xlu0 %v8804_v33, %s8921_s19  ;;  %v2426_v42 = vpop.permute.xlu1 %2425 }
 0x131   : > { %v14363_v37 = vshrl.u32 %v14362_v44, 16  ;;  %v13936_v26 = vshrl.u32 %v10424_v10, 16  ;;  %v3325_v57 = vrot.slane %v3323_v28, 5  ;;  %v13937_v4 = vshll.u32 %v10424_v10, 16  ;;  %v593_v33 = vld [vmem:[#allocation2 + $0x7c] sm:$0x8] }
 0x132   : > { %v1946_v58 = vsel %vm9551_vm12, %v1938_v53, %v1945_v15  ;;  %v13939_v62 = vshrl.u32 %v10428_v20, 16  ;;  %v1926_v46 = vshrl.u32 %v1592_v63, 16  ;;  %v14364_v25 = vshll.u32 %v14362_v44, 16 }
 0x133   : > { %v2946_v1 = vrot.slane %v14363_v37, 7  ;;  %v2218_v29 = vunpack.c.l.b16 %v1946_v58  ;;  %v13944_v37 = vshll.u32 %v10428_v20, 16  ;;  %v1139_v39 = vrot.slane %v13936_v26, 4 }
 0x134   : > { %v3326_v34 = vsel %vm9064_vm6, %v3321_v55, %v3325_v57  ;;  %v1140_v45 = vrot.slane %v13937_v4, 5  ;;  %v1145_v53 = vrot.slane %v13939_v62, 4  ;;  %v1149_v15 = vshll.u32 %v990_v48, 16  ;;  %v10460_v4 = vld [vmem:[#allocation2 + $0xe0] sm:$0xf]  ;;  %v2346_v62 = vpop.permute.xlu0 %2345 }
 0x135   : > { %v2949_v21 = vor.u32 %v14364_v25, %v2946_v1  ;;  %v3590_v28 = vunpack.c.l.b16 %v3326_v34  ;;  %v8161_v58 = vrot.slane %v1926_v46, 11  ;;  %v2786_v44 = vld [vmem:[#allocation2 + $0xac] sm:$0x8]  ;;  %v1143_v63 = vrot.slane %v13944_v37, 5 }
 0x136   : > { %v2930_v25 = vshrl.u32 %v2786_v44, 16  ;;  %v1141_v57 = vor.u32 %v1140_v45, %v1139_v39  ;;  %v1151_v26 = vrot.slane %v1149_v15, 5  ;;  %v739_v46 = vshrl.u32 %v593_v33, 16  ;;  %v3550_v39 = vpop.permute.xlu2 %3549  ;;  %v14366_v44 = vld [vmem:[#allocation12_spill] sm:$0xff] }
 0x137   : > { %v2950_v1 = vsel %vm9551_vm12, %v2942_v51, %v2949_v21  ;;  %v3612_v50 = vpack.c.b16 %v3590_v28, %v3589_v38  ;;  %v1937_v48 = vsel %vm9551_vm12, %v8161_v58, %v1936_v14  ;;  %v1146_v34 = vor.u32 %v1145_v53, %v1143_v63 }
 0x138   : > { %v3422_v55 = vunpack.c.l.b16 %v2950_v1  ;;  %v2217_v0 = vunpack.c.l.b16 %v1937_v48  ;;  %v8273_v10 = vrot.slane %v2930_v25, 11  ;;  %v1142_v51 = vrot.slane %v1141_v57, 4  ;;  %2335 = vrot.lane.b32.xlu0 %v8787_v7, %s8921_s19 }
 0x139   : > { %v14365_v21 = vshrl.u32 %v9615_v23, 16  ;;  %3637 = vrot.lane.b32.xlu2 %v3612_v50, %s8922_s20  ;;  %v1147_v45 = vrot.slane %v1146_v34, 4  ;;  %v8071_v15 = vrot.slane %v739_v46, 11  ;;  %v14367_v38 = vshrl.u32 %v14366_v44, 16  ;;  %v10479_v46 = vld [vmem:[#allocation2 + $0xe4] sm:$0xf] }
 0x13a   : > { %v13951_v14 = vshrl.u32 %v10460_v4, 16  ;;  %v2234_v58 = vpack.c.b16 %v2218_v29, %v2217_v0  ;;  %v2941_v53 = vsel %vm9551_vm12, %v8273_v10, %v2940_v12  ;;  %v1144_v33 = vsel %vm9064_vm6, %v1142_v51, %v1143_v63 }
 0x13b   : > { %v746_v37 = vrot.slane %v14365_v21, 7  ;;  %v755_v28 = vrot.slane %v14367_v38, 7  ;;  %v14368_v1 = vshll.u32 %v9615_v23, 16  ;;  %v3421_v57 = vunpack.c.l.b16 %v2941_v53  ;;  %v10498_v53 = vld [vmem:[#allocation2 + $0x170] sm:$0xf] }
 0x13c   : > { %v1152_v50 = vsel %vm9064_vm6, %v1147_v45, %v1151_v26  ;;  %v1403_v48 = vunpack.c.l.b16 %v1144_v33  ;;  %v2474_v0 = vsel %vm1463_vm13, %v2234_v58, %v2346_v62  ;;  %v14369_v12 = vshll.u32 %v14366_v44, 16  ;;  %v1562_v45 = vld [vmem:[#allocation2 + $0x94] sm:$0x8]  ;;  %14370 = vst [vmem:[#allocation7_spill] sm:$0xff] %v10498_v53 }
 0x13d   : > { %v749_v25 = vor.u32 %v14368_v1, %v746_v37  ;;  %v751_v34 = vrot.slane %v746_v37, 4  ;;  %v1404_v29 = vunpack.c.l.b16 %v1152_v50  ;;  %v3448_v63 = vpack.c.b16 %v3422_v55, %v3421_v57  ;;  %v989_v37 = vld [vmem:[#allocation2 + $0xe8] sm:$0x1]  ;;  %v8807_v33 = vld [vmem:[#allocation2 + $0x170] sm:$0xff] }
 0x13e   : > { %v758_v23 = vor.u32 %v14369_v12, %v755_v28  ;;  %v2506_v51 = vsel %vm1512_vm14, %v2474_v0, %v2426_v42  ;;  %v13945_v26 = vshll.u32 %v10460_v4, 16  ;;  %v13947_v38 = vshrl.u32 %v10479_v46, 16  ;;  %v1362_v28 = vpop.permute.xlu1 %1361  ;;  %v14371_v0 = vld [vmem:[#allocation8_spill] sm:$0xff]  ;;  %v14373_v12 = vld [vmem:[#allocation9_spill] sm:$0xff] }
 0x13f   : > { %v750_v10 = vsel %vm9551_vm12, %v8071_v15, %v749_v25  ;;  %v1425_v7 = vpack.c.b16 %v1404_v29, %v1403_v48  ;;  %8247 = vmatmul.msk.bf16.gmra.mxu3 %vm2515_vm15, %v2506_v51  ;;  %v13946_v15 = vshll.u32 %v10479_v46, 16  ;;  %v3668_v44 = vsel %vm1463_vm13, %v3448_v63, %v3550_v39  ;;  %v10509_v51 = vld [vmem:[#allocation2 + $0x174] sm:$0xf] }
 0x140   : > { %v1233_v21 = vunpack.c.l.b16 %v750_v10  ;;  %v759_v62 = vsel %vm9551_vm12, %v751_v34, %v758_v23  ;;  %v1125_v42 = vrot.slane %v13951_v14, 4  ;;  %v1126_v58 = vrot.slane %v13945_v26, 5  ;;  %v3630_v34 = vpop.permute.xlu0 %3629  ;;  %14375 = vst [vmem:[#allocation10_spill] sm:$0xff] %v10509_v51  ;;  %3565 = vrot.lane.b32.xlu0 %v8807_v33, %s8921_s19 }
 0x141   : > { %v1234_v55 = vunpack.c.l.b16 %v759_v62  ;;  %1451 = vrot.lane.b32.xlu1 %v1425_v7, %s8922_s20  ;;  %v1129_v1 = vrot.slane %v13946_v15, 5  ;;  %v1131_v25 = vrot.slane %v13947_v38, 4  ;;  %v1135_v39 = vshll.u32 %v989_v37, 16 }
 0x142   : > { %v1706_v57 = vshrl.u32 %v1562_v45, 16  ;;  %v1127_v48 = vor.u32 %v1126_v58, %v1125_v42  ;;  %v14372_v29 = vshrl.u32 %v14371_v0, 16  ;;  %v14374_v23 = vshrl.u32 %v14373_v12, 16  ;;  %v2326_v42 = vpop.permute.xlu2 %2325 }
 0x143   : > { %v1260_v50 = vpack.c.b16 %v1234_v55, %v1233_v21  ;;  %v1132_v7 = vor.u32 %v1131_v25, %v1129_v1  ;;  %v1137_v62 = vrot.slane %v1135_v39, 5  ;;  %v13948_v15 = vshrl.u32 %v10498_v53, 16 }
 0x144   : > { %v1713_v10 = vrot.slane %v14372_v29, 7  ;;  %v1722_v63 = vrot.slane %v14374_v23, 7  ;;  %v8151_v26 = vrot.slane %v1706_v57, 11  ;;  %v1128_v37 = vrot.slane %v1127_v48, 4  ;;  %v3184_v48 = vld [vmem:[#allocation2 + $0x178] sm:$0x1] }
 0x145   : > { %v10513_v38 = vsel %vm1463_vm13, %v1260_v50, %v1362_v28  ;;  %v14376_v21 = vshll.u32 %v14371_v0, 16  ;;  %v1133_v58 = vrot.slane %v1132_v7, 4  ;;  %v14377_v29 = vshll.u32 %v14373_v12, 16  ;;  %v10529_v0 = vld [vmem:[#allocation2 + $0x158] sm:$0xf] }
 0x146   : > { %v1718_v55 = vrot.slane %v1713_v10, 4  ;;  %v13950_v25 = vshll.u32 %v10498_v53, 16  ;;  %v13952_v39 = vshrl.u32 %v10509_v51, 16  ;;  %v1130_v28 = vsel %vm9064_vm6, %v1128_v37, %v1129_v1 }
 0x147   : > { %v1716_v45 = vor.u32 %v14376_v21, %v1713_v10  ;;  %v1725_v23 = vor.u32 %v14377_v29, %v1722_v63  ;;  %v13949_v50 = vshll.u32 %v10509_v51, 16  ;;  %v3369_v33 = vrot.slane %v13948_v15, 4 }
 0x148   : > { %v1138_v10 = vsel %vm9064_vm6, %v1133_v58, %v1137_v62  ;;  %v1401_v12 = vunpack.c.l.b16 %v1130_v28  ;;  %v3375_v29 = vrot.slane %v13952_v39, 4  ;;  %v3379_v15 = vshll.u32 %v3184_v48, 16  ;;  %v419_v48 = vld [vmem:[#allocation2 + $0x124] sm:$0x8] }
 0x149   : > { %v1717_v57 = vsel %vm9551_vm12, %v8151_v26, %v1716_v45  ;;  %v1726_v63 = vsel %vm9551_vm12, %v1718_v55, %v1725_v23  ;;  %v1402_v1 = vunpack.c.l.b16 %v1138_v10  ;;  %v3370_v26 = vrot.slane %v13950_v25, 5  ;;  %v10539_v45 = vld [vmem:[#allocation2 + $0x15c] sm:$0xf] }
 0x14a   : > { %v2197_v7 = vunpack.c.l.b16 %v1717_v57  ;;  %v2198_v37 = vunpack.c.l.b16 %v1726_v63  ;;  %v3373_v21 = vrot.slane %v13949_v50, 5  ;;  %v3710_v62 = vsel %vm1512_vm14, %v3668_v44, %v3630_v34  ;;  %v2406_v57 = vpop.permute.xlu1 %2405  ;;  %v3183_v63 = vld [vmem:[#allocation2 + $0x160] sm:$0x1] }
 0x14b   : > { %v13956_v58 = vshrl.u32 %v10529_v0, 16  ;;  %v1424_v55 = vpack.c.b16 %v1402_v1, %v1401_v12  ;;  %v3371_v28 = vor.u32 %v3370_v26, %v3369_v33  ;;  %8359 = vmatmul.msk.bf16.gmra.mxu2 %vm2515_vm15, %v3710_v62  ;;  %v13955_v10 = vshll.u32 %v10529_v0, 16 }
 0x14c   : > { %v2224_v23 = vpack.c.b16 %v2198_v37, %v2197_v7  ;;  %v3376_v50 = vor.u32 %v3375_v29, %v3373_v21  ;;  %v3381_v25 = vrot.slane %v3379_v15, 5  ;;  %v13954_v14 = vshrl.u32 %v10539_v45, 16  ;;  %v1442_v7 = vpop.permute.xlu0 %1441 }
 0x14d   : > { %v13953_v39 = vshll.u32 %v10539_v45, 16  ;;  %1449 = vrot.lane.b32.xlu2 %v1424_v55, %s8922_s20  ;;  %v3372_v34 = vrot.slane %v3371_v28, 4  ;;  %v3355_v33 = vrot.slane %v13956_v58, 4  ;;  %v3356_v12 = vrot.slane %v13955_v10, 5 }
 0x14e   : > { %v2444_v44 = vsel %vm1463_vm13, %v2224_v23, %v2326_v42  ;;  %v3377_v1 = vrot.slane %v3376_v50, 4  ;;  %v3361_v26 = vrot.slane %v13954_v14, 4  ;;  %v3365_v62 = vshll.u32 %v3183_v63, 16  ;;  %v10565_v23 = vpop.permute.xlu2 %1375  ;;  %v407_v14 = vld [vmem:[#allocation2 + $0xc4] sm:$0x8] }
 0x14f   : > { %v2486_v15 = vsel %vm1512_vm14, %v2444_v44, %v2406_v57  ;;  %v3359_v37 = vrot.slane %v13953_v39, 5  ;;  %v3374_v42 = vsel %vm9064_vm6, %v3372_v34, %v3373_v21  ;;  %v3357_v29 = vor.u32 %v3356_v12, %v3355_v33  ;;  %v14379_v33 = vld [vmem:[#allocation15_spill] sm:$0xff] }
 0x150   : > { %8237 = vmatmul.msk.bf16.gmra.mxu0 %vm2515_vm15, %v2486_v15  ;;  %v420_v55 = vsel %vm9518_vm10, 0, %v419_v48  ;;  %v3382_v50 = vsel %vm9064_vm6, %v3377_v1, %v3381_v25  ;;  %v3597_v28 = vunpack.c.l.b16 %v3374_v42  ;;  %v14378_v44 = vshrl.u32 %v9781_v5, 16  ;;  %v10577_v1 = vld [vmem:[#allocation2 + $0x140] sm:$0xf] }
 0x151   : > { %v3362_v57 = vor.u32 %v3361_v26, %v3359_v37  ;;  %421 = vst [vmem:[#allocation2 + $0x124] sm:$0x8] %v420_v55  ;;  %v3598_v21 = vunpack.c.l.b16 %v3382_v50  ;;  %v3358_v34 = vrot.slane %v3357_v29, 4  ;;  %v3367_v15 = vrot.slane %v3365_v62, 5 }
 0x152   : > { %v900_v39 = vrot.slane %v14378_v44, 7  ;;  %v14380_v63 = vshrl.u32 %v14379_v33, 16  ;;  %v14381_v48 = vshll.u32 %v9781_v5, 16  ;;  %v1524_v25 = vsel %vm1512_vm14, %v10513_v38, %v1442_v7  ;;  %14382 = vst [vmem:[#allocation11_spill] sm:$0xff] %v10577_v1 }
 0x153   : > { %v3363_v10 = vrot.slane %v3362_v57, 4  ;;  %v3616_v26 = vpack.c.b16 %v3598_v21, %v3597_v28  ;;  %v3360_v42 = vsel %vm9064_vm6, %v3358_v34, %v3359_v37  ;;  %v14383_v29 = vshll.u32 %v14379_v33, 16  ;;  %8257 = vmatmul.msk.bf16.gmra.mxu1 %vm2515_vm15, %v1524_v25  ;;  %v10592_v37 = vld [vmem:[#allocation2 + $0x144] sm:$0xf]  ;;  %v3182_v34 = vld [vmem:[#allocation2 + $0x148] sm:$0x1] }
 0x154   : > { %v909_v12 = vrot.slane %v14380_v63, 7  ;;  %v903_v58 = vor.u32 %v14381_v48, %v900_v39  ;;  %v905_v51 = vrot.slane %v900_v39, 4  ;;  %v408_v55 = vsel %vm9518_vm10, 0, %v407_v14  ;;  %14386 = vst [vmem:[#allocation12_spill] sm:$0xff] %v10592_v37  ;;  %v10597_v14 = vpop.permute.xlu1 %3551 }
 0x155   : > { %v3368_v5 = vsel %vm9064_vm6, %v3363_v10, %v3367_v15  ;;  %v3595_v39 = vunpack.c.l.b16 %v3360_v42  ;;  %409 = vst [vmem:[#allocation2 + $0xc4] sm:$0x8] %v408_v55  ;;  %v14384_v38 = vshrl.u32 %v9830_v6, 16  ;;  %v14385_v50 = vshrl.u32 %v9838_v22, 16  ;;  %3645 = vrot.lane.b32.xlu1 %v3616_v26, %s8922_s20  ;;  %v10605_v26 = vld [vmem:[#allocation2 + $0x128] sm:$0xf] }
 0x156   : > { %v912_v62 = vor.u32 %v14383_v29, %v909_v12  ;;  %v3596_v57 = vunpack.c.l.b16 %v3368_v5  ;;  %v13960_v10 = vshrl.u32 %v10577_v1, 16  ;;  %v13959_v21 = vshll.u32 %v10577_v1, 16  ;;  %14389 = vst [vmem:[#allocation8_spill] sm:$0xff] %v10605_v26  ;;  %v1456_v5 = vpop.permute.xlu0 %1455 }
 0x157   : > { %v2959_v7 = vrot.slane %v14384_v38, 7  ;;  %v2968_v28 = vrot.slane %v14385_v50, 7  ;;  %v14387_v33 = vshll.u32 %v9830_v6, 16  ;;  %v14388_v48 = vshll.u32 %v9838_v22, 16  ;;  %v10615_v50 = vld [vmem:[#allocation2 + $0x12c] sm:$0xf] }
 0x158   : > { %v913_v44 = vsel %vm9551_vm12, %v905_v51, %v912_v62  ;;  %v3615_v42 = vpack.c.b16 %v3596_v57, %v3595_v39  ;;  %v614_v29 = vld [vmem:[#allocation2 + $0x124] sm:$0x8]  ;;  %v13964_v51 = vshrl.u32 %v10592_v37, 16  ;;  %v13963_v62 = vshll.u32 %v10592_v37, 16  ;;  %14390 = vst [vmem:[#allocation9_spill] sm:$0xff] %v10615_v50  ;;  %v8771_v39 = vld [vmem:[#allocation2 + $0x110] sm:$0xff] }
 0x159   : > { %v1248_v15 = vunpack.c.l.b16 %v913_v44  ;;  %v2962_v63 = vor.u32 %v14387_v33, %v2959_v7  ;;  %v2964_v12 = vrot.slane %v2959_v7, 4  ;;  %v2971_v25 = vor.u32 %v14388_v48, %v2968_v28  ;;  %v10622_v33 = vpop.permute.xlu2 %3631 }
 0x15a   : > { %v3341_v55 = vrot.slane %v13960_v10, 4  ;;  %v893_v38 = vshrl.u32 %v614_v29, 16  ;;  %v3342_v22 = vrot.slane %v13959_v21, 5  ;;  %v3351_v7 = vshll.u32 %v3182_v34, 16  ;;  %3643 = vrot.lane.b32.xlu2 %v3615_v42, %s8922_s20  ;;  %v1958_v21 = vld [vmem:[#allocation2 + $0x130] sm:$0x1] }
 0x15b   : > { %v2972_v6 = vsel %vm9551_vm12, %v2964_v12, %v2971_v25  ;;  %v3345_v57 = vrot.slane %v13963_v62, 5  ;;  %v3347_v44 = vrot.slane %v13964_v51, 4  ;;  %v13971_v12 = vshrl.u32 %v10605_v26, 16 }
 0x15c   : > { %v3424_v28 = vunpack.c.l.b16 %v2972_v6  ;;  %v8078_v48 = vrot.slane %v893_v38, 11  ;;  %v3343_v25 = vor.u32 %v3342_v22, %v3341_v55  ;;  %v3353_v29 = vrot.slane %v3351_v7, 5  ;;  %v2789_v10 = vld [vmem:[#allocation2 + $0xc4] sm:$0x8]  ;;  %v8770_v7 = vld [vmem:[#allocation2 + $0xf8] sm:$0xff] }
 0x15d   : > { %v13974_v34 = vshll.u32 %v10605_v26, 16  ;;  %v3348_v42 = vor.u32 %v3347_v44, %v3345_v57  ;;  %v13978_v6 = vshrl.u32 %v10615_v50, 16  ;;  %v13975_v1 = vshll.u32 %v10615_v50, 16  ;;  %1373 = vrot.lane.b32.xlu1 %v8771_v39, %s8921_s19 }
 0x15e   : > { %v2117_v62 = vrot.slane %v13971_v12, 4  ;;  %v904_v51 = vsel %vm9551_vm12, %v8078_v48, %v903_v58  ;;  %v2952_v37 = vshrl.u32 %v2789_v10, 16  ;;  %v3344_v53 = vrot.slane %v3343_v25, 4  ;;  %v1565_v25 = vld [vmem:[#allocation2 + $0xac] sm:$0x8] }
 0x15f   : > { %v2118_v55 = vrot.slane %v13974_v34, 5  ;;  %v1247_v38 = vunpack.c.l.b16 %v904_v51  ;;  %v3349_v22 = vrot.slane %v3348_v42, 4  ;;  %v2121_v44 = vrot.slane %v13975_v1, 5  ;;  %v10643_v34 = vpop.permute.xlu1 %2327 }
 0x160   : > { %v2123_v20 = vrot.slane %v13978_v6, 4  ;;  %v8274_v12 = vrot.slane %v2952_v37, 11  ;;  %v3346_v58 = vsel %vm9064_vm6, %v3344_v53, %v3345_v57  ;;  %v2127_v48 = vshll.u32 %v1958_v21, 16  ;;  %v10650_v57 = vpop.permute.xlu0 %1363 }
 0x161   : > { %v2119_v10 = vor.u32 %v2118_v55, %v2117_v62  ;;  %v1267_v26 = vpack.c.b16 %v1248_v15, %v1247_v38  ;;  %v3354_v51 = vsel %vm9064_vm6, %v3349_v22, %v3353_v29  ;;  %v3593_v39 = vunpack.c.l.b16 %v3346_v58  ;;  %v10657_v22 = vld [vmem:[#allocation2 + $0x110] sm:$0xf]  ;;  %v10659_v58 = vld [vmem:[#allocation2 + $0x114] sm:$0xf] }
 0x162   : > { %v2124_v42 = vor.u32 %v2123_v20, %v2121_v44  ;;  %v2963_v1 = vsel %vm9551_vm12, %v8274_v12, %v2962_v63  ;;  %v3594_v50 = vunpack.c.l.b16 %v3354_v51  ;;  %v2129_v37 = vrot.slane %v2127_v48, 5  ;;  %1371 = vrot.lane.b32.xlu2 %v8770_v7, %s8921_s19  ;;  %v14391_v63 = vld [vmem:[#allocation13_spill] sm:$0xff]  ;;  %14393 = vst [vmem:[#allocation15_spill] sm:$0xff] %v10657_v22  ;;  %v10664_v7 = vpop.permute.xlu2 %1443  ;;  %v14396_v48 = vld [vmem:[#allocation14_spill] sm:$0xff] }
 0x163   : > { %v2120_v6 = vrot.slane %v2119_v10, 4  ;;  %v1502_v53 = vsel %vm1463_vm13, %v1267_v26, %v10565_v23  ;;  %v3423_v62 = vunpack.c.l.b16 %v2963_v1  ;;  %v1728_v15 = vshrl.u32 %v1565_v25, 16  ;;  %14394 = vst [vmem:[#allocation13_spill] sm:$0xff] %v10659_v58 }
 0x164   : > { %v2125_v21 = vrot.slane %v2124_v42, 4  ;;  %v3614_v29 = vpack.c.b16 %v3594_v50, %v3593_v39  ;;  %v1538_v20 = vsel %vm1512_vm14, %v1502_v53, %v1456_v5  ;;  %v14392_v12 = vshrl.u32 %v14391_v63, 16  ;;  %v2690_v42 = vpop.f32.mrf.mxu1 }
 0x165   : > { %v2122_v55 = vsel %vm9064_vm6, %v2120_v6, %v2121_v44  ;;  %v3449_v23 = vpack.c.b16 %v3424_v28, %v3423_v62  ;;  %8264 = vmatmul.msk.bf16.vlgmr.msrb.gmra.mxu3 %vm2515_vm15, %v1538_v20  ;;  %v8152_v50 = vrot.slane %v1728_v15, 11  ;;  %v14395_v6 = vshll.u32 %v14391_v63, 16  ;;  %v10671_v28 = vld [vmem:[#allocation2 + $0x110] sm:$0xf]  ;;  %v2561_v15 = vpop.f32.mrf.mxu0 }
 0x166   : > { %v1735_v38 = vrot.slane %v14392_v12, 7  ;;  %v2130_v1 = vsel %vm9064_vm6, %v2125_v21, %v2129_v37  ;;  %v2369_v26 = vunpack.c.l.b16 %v2122_v55  ;;  %3641 = vrot.lane.b32.xlu0 %v3614_v29, %s8922_s20  ;;  %v14397_v25 = vshrl.u32 %v14396_v48, 16  ;;  %14398 = vst [vmem:[#allocation14_spill] sm:$0xff] %v10671_v28  ;;  %v991_v21 = vld [vmem:[#allocation2 + $0x118] sm:$0x1] }
 0x167   : > { %v2370_v5 = vunpack.c.l.b16 %v2130_v1  ;;  %v3671_v39 = vsel %vm1463_vm13, %v3449_v23, %v10597_v14  ;;  %v13982_v37 = vshrl.u32 %v10657_v22, 16  ;;  %v13980_v53 = vshll.u32 %v10657_v22, 16 }
 0x168   : > { %v1738_v44 = vor.u32 %v14395_v6, %v1735_v38  ;;  %v1740_v10 = vrot.slane %v1735_v38, 4  ;;  %v1744_v51 = vrot.slane %v14397_v25, 7  ;;  %v13981_v62 = vshrl.u32 %v10659_v58, 16 }
 0x169   : > { %v2390_v29 = vpack.c.b16 %v2370_v5, %v2369_v26  ;;  %v3712_v20 = vsel %vm1512_vm14, %v3671_v39, %v10622_v33  ;;  %v14399_v63 = vshll.u32 %v14396_v48, 16  ;;  %v13979_v38 = vshll.u32 %v10659_v58, 16  ;;  %v10690_v26 = vld [vmem:[#allocation2 + $0x114] sm:$0xf]  ;;  %v1957_v39 = vld [vmem:[#allocation2 + $0x118] sm:$0x1] }
 0x16a   : > { %v1739_v55 = vsel %vm9551_vm12, %v8152_v50, %v1738_v44  ;;  %8360 = vmatmul.msk.bf16.gmra.mxu2 %vm2515_vm15, %v3712_v20  ;;  %v1153_v23 = vrot.slane %v13982_v37, 4  ;;  %v1154_v1 = vrot.slane %v13980_v53, 5  ;;  %14400 = vst [vmem:[#allocation18_spill] sm:$0xff] %v10690_v26  ;;  %v1159_v50 = vrot.slane %v13981_v62, 4  ;;  %v596_v20 = vld [vmem:[#allocation2 + $0x94] sm:$0x8] }
 0x16b   : > { %v1747_v12 = vor.u32 %v14399_v63, %v1744_v51  ;;  %v2199_v14 = vunpack.c.l.b16 %v1739_v55  ;;  %2417 = vrot.lane.b32.xlu1 %v2390_v29, %s8922_s20  ;;  %v1163_v5 = vshll.u32 %v991_v21, 16  ;;  %v13986_v6 = vshrl.u32 %v10671_v28, 16  ;;  %v10701_v55 = vpop.permute.xlu1 %1377 }
 0x16c   : > { %v1155_v48 = vor.u32 %v1154_v1, %v1153_v23  ;;  %v1157_v25 = vrot.slane %v13979_v38, 5  ;;  %v13985_v51 = vshll.u32 %v10671_v28, 16  ;;  %v13989_v63 = vshll.u32 %v10690_v26, 16  ;;  %v10709_v38 = vpop.permute.xlu0 %2407 }
 0x16d   : > { %v1748_v33 = vsel %vm9551_vm12, %v1740_v10, %v1747_v12  ;;  %v1165_v29 = vrot.slane %v1163_v5, 5  ;;  %v13994_v10 = vshrl.u32 %v10690_v26, 16  ;;  %v2103_v21 = vrot.slane %v13986_v6, 4  ;;  %v8809_v26 = vld [vmem:[#allocation2 + $0x1a0] sm:$0xff] }
 0x16e   : > { %v2200_v44 = vunpack.c.l.b16 %v1748_v33  ;;  %v1156_v33 = vrot.slane %v1155_v48, 4  ;;  %v1160_v23 = vor.u32 %v1159_v50, %v1157_v25  ;;  %v2104_v1 = vrot.slane %v13985_v51, 5  ;;  %v617_v48 = vld [vmem:[#allocation2 + $0x13c] sm:$0x8]  ;;  %v10721_v51 = vpop.permute.xlu2 %1457 }
 0x16f   : > { %v2107_v53 = vrot.slane %v13989_v63, 5  ;;  %v2109_v5 = vrot.slane %v13994_v10, 4  ;;  %v2113_v62 = vshll.u32 %v1957_v39, 16  ;;  %v761_v37 = vshrl.u32 %v596_v20, 16 }
 0x170   : > { %v2225_v12 = vpack.c.b16 %v2200_v44, %v2199_v14  ;;  %v1158_v14 = vsel %vm9064_vm6, %v1156_v33, %v1157_v25  ;;  %v1161_v50 = vrot.slane %v1160_v23, 4  ;;  %v2105_v44 = vor.u32 %v2104_v1, %v2103_v21  ;;  %v2692_v33 = vpop.f32.mrf.mxu1  ;;  %v2563_v21 = vpop.f32.mrf.mxu0 }
 0x171   : > { %v1405_v6 = vunpack.c.l.b16 %v1158_v14  ;;  %v2110_v22 = vor.u32 %v2109_v5, %v2107_v53  ;;  %v2115_v63 = vrot.slane %v2113_v62, 5  ;;  %v8072_v28 = vrot.slane %v761_v37, 11 }
 0x172   : > { %v10717_v58 = vsel %vm1463_vm13, %v2225_v12, %v10643_v34  ;;  %v1166_v39 = vsel %vm9064_vm6, %v1161_v50, %v1165_v29  ;;  %v2106_v20 = vrot.slane %v2105_v44, 4  ;;  %v14401_v34 = vshrl.u32 %v9957_v54, 16 }
 0x173   : > { %v14402_v10 = vshrl.u32 %v9967_v43, 16  ;;  %v1406_v23 = vunpack.c.l.b16 %v1166_v39  ;;  %v2111_v1 = vrot.slane %v2110_v22, 4  ;;  %v10729_v60 = vadd.f32 %v2690_v42, %v2561_v15  ;;  %3569 = vrot.lane.b32.xlu1 %v8809_v26, %s8921_s19 }
 0x174   : > { %v768_v12 = vrot.slane %v14401_v34, 7  ;;  %v915_v5 = vshrl.u32 %v617_v48, 16  ;;  %v2108_v37 = vsel %vm9064_vm6, %v2106_v20, %v2107_v53  ;;  %v14403_v62 = vshll.u32 %v9957_v54, 16  ;;  %v10750_v20 = vpop.permute.xlu1 %3633 }
 0x175   : > { %v777_v25 = vrot.slane %v14402_v10, 7  ;;  %v14404_v50 = vshll.u32 %v9967_v43, 16  ;;  %v10738_v10 = vld [vmem:[#allocation2 + $0x188] sm:$0xf]  ;;  %v1426_v34 = vpack.c.b16 %v1406_v23, %v1405_v6  ;;  %v2116_v22 = vsel %vm9064_vm6, %v2111_v1, %v2115_v63  ;;  %v10748_v43 = vld [vmem:[#allocation2 + $0x18c] sm:$0xf] }
 0x176   : > { %v771_v29 = vor.u32 %v14403_v62, %v768_v12  ;;  %v773_v14 = vrot.slane %v768_v12, 4  ;;  %v2367_v42 = vunpack.c.l.b16 %v2108_v37  ;;  %v8079_v15 = vrot.slane %v915_v5, 11 }
 0x177   : > { %v780_v44 = vor.u32 %v14404_v50, %v777_v25  ;;  %v2368_v48 = vunpack.c.l.b16 %v2116_v22  ;;  %v14405_v53 = vshrl.u32 %v10026_v18, 16  ;;  %1453 = vrot.lane.b32.xlu0 %v1426_v34, %s8922_s20  ;;  %v14406_v12 = vshrl.u32 %v10032_v40, 16 }
 0x178   : > { %v772_v26 = vsel %vm9551_vm12, %v8072_v28, %v771_v29  ;;  %v14036_v23 = vshrl.u32 %v10738_v10, 16  ;;  %v3185_v28 = vld [vmem:[#allocation2 + $0x190] sm:$0x1]  ;;  %v14407_v5 = vshll.u32 %v10026_v18, 16  ;;  %v13998_v29 = vshll.u32 %v10738_v10, 16 }
 0x179   : > { %v781_v54 = vsel %vm9551_vm12, %v773_v14, %v780_v44  ;;  %v922_v39 = vrot.slane %v14405_v53, 7  ;;  %v1235_v6 = vunpack.c.l.b16 %v772_v26  ;;  %v931_v25 = vrot.slane %v14406_v12, 7  ;;  %v10759_v14 = vpop.permute.xlu0 %3553  ;;  %v410_v53 = vld [vmem:[#allocation2 + $0xdc] sm:$0x8] }
 0x17a   : > { %v1236_v63 = vunpack.c.l.b16 %v781_v54  ;;  %v2389_v1 = vpack.c.b16 %v2368_v48, %v2367_v42  ;;  %v14408_v44 = vshll.u32 %v10032_v40, 16  ;;  %v13999_v22 = vshrl.u32 %v10748_v43, 16  ;;  %v2695_v40 = vpop.f32.mrf.mxu1 }
 0x17b   : > { %v925_v37 = vor.u32 %v14407_v5, %v922_v39  ;;  %v927_v62 = vrot.slane %v922_v39, 4  ;;  %v13997_v26 = vshll.u32 %v10748_v43, 16  ;;  %v3383_v18 = vrot.slane %v14036_v23, 4  ;;  %v10772_v39 = vpop.permute.xlu2 %1365 }
 0x17c   : > { %v1261_v50 = vpack.c.b16 %v1236_v63, %v1235_v6  ;;  %v934_v34 = vor.u32 %v14408_v44, %v931_v25  ;;  %2415 = vrot.lane.b32.xlu2 %v2389_v1, %s8922_s20  ;;  %v3384_v48 = vrot.slane %v13998_v29, 5  ;;  %v3393_v54 = vshll.u32 %v3185_v28, 16  ;;  %v599_v44 = vld [vmem:[#allocation2 + $0xac] sm:$0x8] }
 0x17d   : > { %v926_v42 = vsel %vm9551_vm12, %v8079_v15, %v925_v37  ;;  %v3387_v15 = vrot.slane %v13997_v26, 5  ;;  %v3389_v28 = vrot.slane %v13999_v22, 4  ;;  %v2566_v37 = vpop.f32.mrf.mxu0  ;;  %v14412_v26 = vshrl.u32 %v9859_v11, 16 }
 0x17e   : > { %v1484_v6 = vsel %vm1463_vm13, %v1261_v50, %v10650_v57  ;;  %v935_v63 = vsel %vm9551_vm12, %v927_v62, %v934_v34  ;;  %v1249_v12 = vunpack.c.l.b16 %v926_v42  ;;  %v3385_v5 = vor.u32 %v3384_v48, %v3383_v18  ;;  %v8805_v48 = vld [vmem:[#allocation2 + $0x140] sm:$0xff] }
 0x17f   : > { %v1250_v25 = vunpack.c.l.b16 %v935_v63  ;;  %v1526_v1 = vsel %vm1512_vm14, %v1484_v6, %v10664_v7  ;;  %v3395_v57 = vrot.slane %v3393_v54, 5  ;;  %v10785_v50 = vadd.f32 %v2692_v33, %v2563_v21  ;;  %v14410_v54 = vld [vmem:[#allocation16_spill] sm:$0xff] }
 0x180   : > { %8258 = vmatmul.msk.bf16.gmra.mxu1 %vm2515_vm15, %v1526_v1  ;;  %v2488_v62 = vsel %vm1512_vm14, %v10717_v58, %v10709_v38  ;;  %v411_v34 = vsel %vm9518_vm10, 0, %v410_v53  ;;  %v3386_v7 = vrot.slane %v3385_v5, 4  ;;  %v3390_v18 = vor.u32 %v3389_v28, %v3387_v15  ;;  %v14413_v38 = vld [vmem:[#allocation17_spill] sm:$0xff] }
 0x181   : > { %v1268_v42 = vpack.c.b16 %v1250_v25, %v1249_v12  ;;  %8238 = vmatmul.msk.bf16.gmra.mxu0 %vm2515_vm15, %v2488_v62  ;;  %412 = vst [vmem:[#allocation2 + $0xdc] sm:$0x8] %v411_v34  ;;  %v14409_v6 = vshrl.u32 %v9893_v24, 16  ;;  %v14411_v33 = vshrl.u32 %v14410_v54, 16  ;;  %v783_v1 = vshrl.u32 %v599_v44, 16  ;;  %v1446_v34 = vpop.permute.xlu1 %1445 }
 0x182   : > { %v790_v58 = vrot.slane %v14412_v26, 7  ;;  %v14414_v29 = vshrl.u32 %v14413_v38, 16  ;;  %v3388_v25 = vsel %vm9064_vm6, %v3386_v7, %v3387_v15  ;;  %v3391_v5 = vrot.slane %v3390_v18, 4  ;;  %v10817_v18 = vpop.permute.xlu0 %2329 }
 0x183   : > { %v2981_v63 = vrot.slane %v14409_v6, 7  ;;  %v2990_v21 = vrot.slane %v14411_v33, 7  ;;  %v1505_v12 = vsel %vm1463_vm13, %v1268_v42, %v10701_v55  ;;  %v14415_v28 = vshll.u32 %v9893_v24, 16 }
 0x184   : > { %v799_v53 = vrot.slane %v14414_v29, 7  ;;  %v3599_v6 = vunpack.c.l.b16 %v3388_v25  ;;  %v1540_v44 = vsel %vm1512_vm14, %v1505_v12, %v10721_v51  ;;  %v14416_v26 = vshll.u32 %v14410_v54, 16  ;;  %v1568_v29 = vld [vmem:[#allocation2 + $0xc4] sm:$0x8]  ;;  %3561 = vrot.lane.b32.xlu2 %v8805_v48, %s8921_s19  ;;  %v3783_v51 = vpop.f32.mrf.mxu2 }
 0x185   : > { %v2984_v62 = vor.u32 %v14415_v28, %v2981_v63  ;;  %v2986_v33 = vrot.slane %v2981_v63, 4  ;;  %v3396_v55 = vsel %vm9064_vm6, %v3391_v5, %v3395_v57  ;;  %8265 = vmatmul.msk.bf16.gmra.mxu3 %vm2515_vm15, %v1540_v44  ;;  %v8073_v15 = vrot.slane %v783_v1, 11  ;;  %v10829_v5 = vpop.permute.xlu2 %2409  ;;  %v2697_v28 = vpop.f32.mrf.mxu1 }
 0x186   : > { %v2993_v22 = vor.u32 %v14416_v26, %v2990_v21  ;;  %v14417_v24 = vshll.u32 %v9859_v11, 16  ;;  %v795_v7 = vrot.slane %v790_v58, 4  ;;  %v3600_v63 = vunpack.c.l.b16 %v3396_v55 }
 0x187   : > { %v14418_v21 = vshll.u32 %v14413_v38, 16  ;;  %v10823_v57 = vadd.f32 %v2695_v40, %v2566_v37  ;;  %v1750_v25 = vshrl.u32 %v1568_v29, 16  ;;  %v14419_v11 = vshrl.u32 %v10179_v30, 16  ;;  %v8788_v29 = vld [vmem:[#allocation2 + $0x128] sm:$0xff] }
 0x188   : > { %v793_v42 = vor.u32 %v14417_v24, %v790_v58  ;;  %v2994_v54 = vsel %vm9551_vm12, %v2986_v33, %v2993_v22  ;;  %v3617_v44 = vpack.c.b16 %v3600_v63, %v3599_v6  ;;  %v2792_v26 = vld [vmem:[#allocation2 + $0xdc] sm:$0x8]  ;;  %v14420_v40 = vshrl.u32 %v10191_v27, 16  ;;  %v620_v63 = vld [vmem:[#allocation2 + $0x154] sm:$0x8] }
 0x189   : > { %v802_v12 = vor.u32 %v14418_v21, %v799_v53  ;;  %v3426_v48 = vunpack.c.l.b16 %v2994_v54  ;;  %v1757_v58 = vrot.slane %v14419_v11, 7  ;;  %v10838_v53 = vld [vmem:[%s13751_s2] ss:$0 sm:$0xff]  ;;  %v2974_v33 = vshrl.u32 %v2792_v26, 16 }
 0x18a   : > { %v794_v1 = vsel %vm9551_vm12, %v8073_v15, %v793_v42  ;;  %v1766_v37 = vrot.slane %v14420_v40, 7  ;;  %v8153_v15 = vrot.slane %v1750_v25, 11  ;;  %v14421_v24 = vshll.u32 %v10179_v30, 16  ;;  %v2568_v42 = vpop.f32.mrf.mxu0  ;;  %3647 = vrot.lane.b32.xlu0 %v3617_v44, %s8922_s20  ;;  %v10851_v11 = vld [vmem:[%s13752_s3] ss:$0 sm:$0xff]  ;;  %v10865_v40 = vpop.permute.xlu1 %1459 }
 0x18b   : > { %v803_v22 = vsel %vm9551_vm12, %v795_v7, %v802_v12  ;;  %v1237_v38 = vunpack.c.l.b16 %v794_v1  ;;  %v1762_v7 = vrot.slane %v1757_v58, 4  ;;  %v14422_v54 = vshll.u32 %v10191_v27, 16 }
 0x18c   : > { %v1238_v55 = vunpack.c.l.b16 %v803_v22  ;;  %v1760_v6 = vor.u32 %v14421_v24, %v1757_v58  ;;  %v10845_v12 = vadd.f32 %v2697_v28, %v2568_v42  ;;  %v3863_v1 = vadd.f32 %v3783_v51, %v10729_v60  ;;  %2337 = vrot.lane.b32.xlu2 %v8788_v29, %s8921_s19 }
 0x18d   : > { %v1769_v21 = vor.u32 %v14422_v54, %v1766_v37  ;;  %v8275_v25 = vrot.slane %v2974_v33, 11  ;;  %vm4004_vm0 = vcmask 60416   ;;  %v14423_v44 = vmov 0  }
 0x18e   : > { %v1262_v30 = vpack.c.b16 %v1238_v55, %v1237_v38  ;;  %v1761_v26 = vsel %vm9551_vm12, %v8153_v15, %v1760_v6  ;;  %v3899_v28 = vmul.f32 %v10838_v53, %v3863_v1  ;;  %4005 = vst.msk [vmem:[#allocation3 + $0x8] sm:$0xf] %vm4004_vm0, %v14423_v44  ;;  %v937_v60 = vshrl.u32 %v620_v63, 16  ;;  %v413_v55 = vld [vmem:[#allocation2 + $0xf4] sm:$0x8]  ;;  %v3785_v1 = vpop.f32.mrf.mxu2 }
 0x18f   : > { %v1770_v58 = vsel %vm9551_vm12, %v1762_v7, %v1769_v21  ;;  %v2201_v27 = vunpack.c.l.b16 %v1761_v26  ;;  %v2985_v51 = vsel %vm9551_vm12, %v8275_v25, %v2984_v62  ;;  %4006 = vst.msk [vmem:[#allocation3 + $0xc] sm:$0xf] %vm4004_vm0, %v14423_v44  ;;  %v14424_v37 = vshrl.u32 %v9987_v17, 16  ;;  %v1380_v21 = vpop.permute.xlu0 %1379 }
 0x190   : > { %v1487_v22 = vsel %vm1463_vm13, %v1262_v30, %v10772_v39  ;;  %v2202_v38 = vunpack.c.l.b16 %v1770_v58  ;;  %v3425_v15 = vunpack.c.l.b16 %v2985_v51  ;;  %v3935_v62 = vadd.f32 %v10851_v11, %v3899_v28  ;;  %4016 = vst.msk [vmem:[#allocation3 + $0x1a0] sm:$0xf] %vm4004_vm0, %v14423_v44 }
 0x191   : > { %v944_v33 = vrot.slane %v14424_v37, 7  ;;  %v1528_v24 = vsel %vm1512_vm14, %v1487_v22, %v1446_v34  ;;  %v8080_v29 = vrot.slane %v937_v60, 11  ;;  %4017 = vst.msk [vmem:[#allocation3 + $0x1a4] sm:$0xf] %vm4004_vm0, %v14423_v44  ;;  %v14425_v6 = vshll.u32 %v9987_v17, 16  ;;  %v10894_v22 = vpop.permute.xlu2 %3555 }
 0x192   : > { %v2226_v39 = vpack.c.b16 %v2202_v38, %v2201_v27  ;;  %v14426_v7 = vshrl.u32 %v10000_v59, 16  ;;  %v3450_v34 = vpack.c.b16 %v3426_v48, %v3425_v15  ;;  %8259 = vmatmul.msk.bf16.gmra.mxu1 %vm2515_vm15, %v1528_v24  ;;  %v3967_v25 = vmax.f32 %v3935_v62, 0.0  ;;  %v8808_v27 = vld [vmem:[#allocation2 + $0x188] sm:$0xff]  ;;  %v602_v38 = vld [vmem:[#allocation2 + $0xc4] sm:$0x8] }
 0x193   : > { %v947_v42 = vor.u32 %v14425_v6, %v944_v33  ;;  %v949_v63 = vrot.slane %v944_v33, 4  ;;  %v414_v30 = vsel %vm9518_vm10, 0, %v413_v55  ;;  %v14427_v26 = vshrl.u32 %v10132_v61, 16 }
 0x194   : > { %v953_v54 = vrot.slane %v14426_v7, 7  ;;  %v2450_v17 = vsel %vm1463_vm13, %v2226_v39, %v10817_v18  ;;  %v14428_v44 = vshll.u32 %v10000_v59, 16  ;;  %415 = vst [vmem:[#allocation2 + $0xf4] sm:$0x8] %v414_v30  ;;  %v14429_v48 = vshrl.u32 %v10140_v13, 16  ;;  %3567 = vrot.lane.b32.xlu2 %v8808_v27, %s8921_s19  ;;  %s8923_s19 = smov 16  }
 0x195   : > { %v3003_v58 = vrot.slane %v14427_v26, 7  ;;  %v948_v28 = vsel %vm9551_vm12, %v8080_v29, %v947_v42  ;;  %v3674_v37 = vsel %vm1463_vm13, %v3450_v34, %v10759_v14  ;;  %v2490_v18 = vsel %vm1512_vm14, %v2450_v17, %v10829_v5  ;;  %v7612_v59 = vld [vmem:[%s13756_s7] sm:$0x3]  ;;  %v5145_v5 = vld [vmem:[%s13753_s4 + $0x8] sm:$0xf] }
 0x196   : > { %v956_v60 = vor.u32 %v14428_v44, %v953_v54  ;;  %v3012_v51 = vrot.slane %v14429_v48, 7  ;;  %v4118_v33 = vpack.c.bf16 %v3967_v25, %v3967_v25  ;;  %v1251_v55 = vunpack.c.l.b16 %v948_v28  ;;  %8239 = vmatmul.msk.bf16.gmra.mxu0 %vm2515_vm15, %v2490_v18  ;;  %v8655_v25 = vld [vmem:[%s13753_s4 + $0x20] sm:$0xf] }
 0x197   : > { %v3714_v15 = vsel %vm1512_vm14, %v3674_v37, %v10750_v20  ;;  %v14430_v62 = vshll.u32 %v10132_v61, 16  ;;  %v3008_v29 = vrot.slane %v3003_v58, 4  ;;  %v14431_v20 = vshll.u32 %v10140_v13, 16 }
 0x198   : > { %v957_v24 = vsel %vm9551_vm12, %v949_v63, %v956_v60  ;;  %8361 = vmatmul.msk.bf16.gmra.mxu2 %vm2515_vm15, %v3714_v15  ;;  %4150 = vst.msk [vmem:[#allocation3 + $0x20] sm:$0xf] %vm4004_vm0, %v4118_v33  ;;  %vm7741_vm1 = vcmask 1041408   ;;  %v805_v42 = vshrl.u32 %v602_v38, 16  ;;  %v14432_v61 = vshrl.u32 %v10156_v47, 16 }
 0x199   : > { %v3006_v14 = vor.u32 %v14430_v62, %v3003_v58  ;;  %v1252_v39 = vunpack.c.l.b16 %v957_v24  ;;  %v3015_v6 = vor.u32 %v14431_v20, %v3012_v51  ;;  %v7743_v63 = vsel %vm7741_vm1, %v7612_v59, 0  ;;  %v1368_v51 = vpop.permute.xlu1 %1367  ;;  %v1571_v59 = vld [vmem:[#allocation2 + $0xdc] sm:$0x8]  ;;  %v3636_v62 = vpop.permute.xlu0 %3635 }
 0x19a   : > { %v812_v7 = vrot.slane %v14432_v61, 7  ;;  %v14433_v54 = vshrl.u32 %v10163_v16, 16  ;;  %vm6152_vm4 = vcmask 1043456   ;;  %7752 = vmatpush.bf16.msrb.mxu2 %v7743_v63  ;;  %v8074_v26 = vrot.slane %v805_v42, 11  ;;  %v2332_v63 = vpop.permute.xlu2 %2331 }
 0x19b   : > { %v1269_v30 = vpack.c.b16 %v1252_v39, %v1251_v55  ;;  %v3016_v13 = vsel %vm9551_vm12, %v3008_v29, %v3015_v6  ;;  %v6250_v58 = vunpack.c.l.b16 %v5145_v5  ;;  %v14434_v27 = vshll.u32 %v10156_v47, 16  ;;  %v2795_v37 = vld [vmem:[#allocation2 + $0xf4] sm:$0x8]  ;;  %v3788_v29 = vpop.f32.mrf.mxu2 }
 0x19c   : > { %v821_v34 = vrot.slane %v14433_v54, 7  ;;  %v3428_v17 = vunpack.c.l.b16 %v3016_v13  ;;  %v817_v44 = vrot.slane %v812_v7, 4  ;;  %v14435_v60 = vshll.u32 %v10163_v16, 16 }
 0x19d   : > { %v815_v28 = vor.u32 %v14434_v27, %v812_v7  ;;  %v1508_v38 = vsel %vm1463_vm13, %v1269_v30, %v1380_v21  ;;  %v6252_v18 = vpack.c.b16 %v6250_v58, %v6250_v58  ;;  %v3864_v33 = vadd.f32 %v3785_v1, %v10785_v50  ;;  %v382_v30 = vld [vmem:[#allocation2 + $0x1a8] sm:$0x1] }
 0x19e   : > { %v824_v48 = vor.u32 %v14435_v60, %v821_v34  ;;  %v7348_v55 = vunpack.c.l.b16 %v8655_v25  ;;  %v2996_v15 = vshrl.u32 %v2795_v37, 16  ;;  %v1542_v24 = vsel %vm1512_vm14, %v1508_v38, %v10865_v40 }
 0x19f   : > { %v816_v47 = vsel %vm9551_vm12, %v8074_v26, %v815_v28  ;;  %8266 = vmatmul.msk.bf16.gmra.mxu3 %vm2515_vm15, %v1542_v24  ;;  %v6287_v50 = vsel %vm6152_vm4, %v6252_v18, 0  ;;  %v3900_v1 = vmul.f32 %v10838_v53, %v3864_v33  ;;  %v1772_v40 = vshrl.u32 %v1571_v59, 16  ;;  %v10956_v18 = vld [vmem:[#allocation2 + $0x1a4] sm:$0xf]  ;;  %v2700_v59 = vpop.f32.mrf.mxu1 }
 0x1a0   : > { %v825_v16 = vsel %vm9551_vm12, %v817_v44, %v824_v48  ;;  %v1239_v21 = vunpack.c.l.b16 %v816_v47  ;;  %v8276_v39 = vrot.slane %v2996_v15, 11  ;;  %6295 = vmatpush.bf16.msrb.mxu0 %v6287_v50  ;;  %v7350_v20 = vpack.c.b16 %v7348_v55, %v7348_v55  ;;  %v10953_v44 = vld [vmem:[#allocation2 + $0x1a0] sm:$0xf] }
 0x1a1   : > { %v1240_v5 = vunpack.c.l.b16 %v825_v16  ;;  %v14436_v6 = vshrl.u32 %v10081_v19, 16  ;;  %v3936_v7 = vadd.f32 %v10851_v11, %v3900_v1  ;;  %v14437_v54 = vshrl.u32 %v10097_v56, 16 }
 0x1a2   : > { %v3865_v25 = vadd.f32 %v3788_v29, %v10823_v57  ;;  %v3007_v13 = vsel %vm9551_vm12, %v8276_v39, %v3006_v14  ;;  %v7385_v26 = vsel %vm6152_vm4, %v7350_v20, 0  ;;  %v8154_v58 = vrot.slane %v1772_v40, 11  ;;  %v2571_v29 = vpop.f32.mrf.mxu0 }
 0x1a3   : > { %v1779_v42 = vrot.slane %v14436_v6, 7  ;;  %v1263_v61 = vpack.c.b16 %v1240_v5, %v1239_v21  ;;  %v1788_v34 = vrot.slane %v14437_v54, 7  ;;  %v14438_v27 = vshll.u32 %v10081_v19, 16  ;;  %7393 = vmatpush.bf16.msrb.mxu1 %v7385_v26  ;;  %v2412_v21 = vpop.permute.xlu1 %2411  ;;  %v3790_v54 = vpop.f32.mrf.mxu2 }
 0x1a4   : > { %v3427_v60 = vunpack.c.l.b16 %v3007_v13  ;;  %v3968_v38 = vmax.f32 %v3936_v7, 0.0  ;;  %v14439_v14 = vshll.u32 %v10097_v56, 16  ;;  %v3901_v55 = vmul.f32 %v10838_v53, %v3865_v25  ;;  %v1448_v7 = vpop.permute.xlu0 %1447 }
 0x1a5   : > { %v1782_v28 = vor.u32 %v14438_v27, %v1779_v42  ;;  %v1490_v48 = vsel %vm1463_vm13, %v1263_v61, %v1368_v51  ;;  %v1784_v37 = vrot.slane %v1779_v42, 4  ;;  %v383_v19 = vsel %vm8994_vm3, 0, %v382_v30 }
 0x1a6   : > { %v1791_v33 = vor.u32 %v14439_v14, %v1788_v34  ;;  %v3451_v15 = vpack.c.b16 %v3428_v17, %v3427_v60  ;;  %v4119_v24 = vpack.c.bf16 %v3968_v38, %v3968_v38  ;;  %384 = vst [vmem:[#allocation2 + $0x1a8] sm:$0x1] %v383_v19  ;;  %v14034_v47 = vshrl.u32 %v10953_v44, 16  ;;  %v1382_v60 = vpop.permute.xlu2 %1381  ;;  %v416_v38 = vld [vmem:[#allocation2 + $0x10c] sm:$0x8] }
 0x1a7   : > { %v1783_v57 = vsel %vm9551_vm12, %v8154_v58, %v1782_v28  ;;  %v3937_v56 = vadd.f32 %v10851_v11, %v3901_v55  ;;  %v14032_v5 = vshll.u32 %v10953_v44, 16  ;;  %v14033_v50 = vshrl.u32 %v10956_v18, 16 }
 0x1a8   : > { %v2203_v51 = vunpack.c.l.b16 %v1783_v57  ;;  %v1792_v16 = vsel %vm9551_vm12, %v1784_v37, %v1791_v33  ;;  %v3677_v17 = vsel %vm1463_vm13, %v3451_v15, %v10894_v22  ;;  %4151 = vst.msk [vmem:[#allocation3 + $0x24] sm:$0xf] %vm4004_vm0, %v4119_v24  ;;  %v14031_v39 = vshll.u32 %v10956_v18, 16 }
 0x1a9   : > { %v2204_v1 = vunpack.c.l.b16 %v1792_v16  ;;  %v3397_v20 = vrot.slane %v14034_v47, 4  ;;  %v3716_v40 = vsel %vm1512_vm14, %v3677_v17, %v3636_v62  ;;  %v3969_v6 = vmax.f32 %v3937_v56, 0.0 }
 0x1aa   : > { %v3398_v42 = vrot.slane %v14032_v5, 5  ;;  %v3403_v61 = vrot.slane %v14033_v50, 4  ;;  %8362 = vmatmul.msk.bf16.gmra.mxu2 %vm2515_vm15, %v3716_v40  ;;  %v3401_v34 = vrot.slane %v14031_v39, 5  ;;  %v10985_v25 = vadd.f32 %v2700_v59, %v2571_v29  ;;  %v14497_v39 = vld [vmem:[#allocation8_spill] sm:$0xff] }
 0x1ab   : > { %v2227_v22 = vpack.c.b16 %v2204_v1, %v2203_v51  ;;  %v959_v30 = vshrl.u32 %v623_v2, 16  ;;  %v4120_v13 = vpack.c.bf16 %v3969_v6, %v3969_v6  ;;  %v14440_v26 = vshrl.u32 %v10241_v32, 16  ;;  %v2702_v6 = vpop.f32.mrf.mxu1 }
 0x1ac   : > { %v3399_v62 = vor.u32 %v3398_v42, %v3397_v20  ;;  %v14441_v27 = vshrl.u32 %v10243_v9, 16  ;;  %v3404_v57 = vor.u32 %v3403_v61, %v3401_v34  ;;  %v1530_v33 = vsel %vm1512_vm14, %v1490_v48, %v1448_v7 }
 0x1ad   : > { %v966_v58 = vrot.slane %v14440_v26, 7  ;;  %v2453_v37 = vsel %vm1463_vm13, %v2227_v22, %v2332_v63  ;;  %v8081_v14 = vrot.slane %v959_v30, 11  ;;  %4152 = vst.msk [vmem:[#allocation3 + $0x38] sm:$0xf] %vm4004_vm0, %v4120_v13  ;;  %v3186_v19 = vld [vmem:[#allocation2 + $0x1a8] sm:$0x1]  ;;  %8260 = vmatmul.msk.bf16.gmra.mxu1 %vm2515_vm15, %v1530_v33 }
 0x1ae   : > { %v975_v28 = vrot.slane %v14441_v27, 7  ;;  %v2492_v55 = vsel %vm1512_vm14, %v2453_v37, %v2412_v21  ;;  %v3400_v59 = vrot.slane %v3399_v62, 4  ;;  %v14442_v15 = vshll.u32 %v10241_v32, 16  ;;  %v1574_v21 = vld [vmem:[#allocation2 + $0xf4] sm:$0x8] }
 0x1af   : > { %v971_v51 = vrot.slane %v966_v58, 4  ;;  %8240 = vmatmul.msk.bf16.gmra.mxu0 %vm2515_vm15, %v2492_v55  ;;  %v3405_v16 = vrot.slane %v3404_v57, 4  ;;  %v3407_v63 = vshll.u32 %v3186_v19, 16  ;;  %v14443_v29 = vshll.u32 %v10243_v9, 16  ;;  %v8828_v9 = vld [vmem:[#allocation3 + $0x20] sm:$0xff]  ;;  %v1462_v19 = vpop.permute.xlu0 %1461 }
 0x1b0   : > { %v969_v24 = vor.u32 %v14442_v15, %v966_v58  ;;  %v417_v48 = vsel %vm9518_vm10, 0, %v416_v38  ;;  %v3402_v2 = vsel %vm9064_vm6, %v3400_v59, %v3401_v34  ;;  %v14444_v17 = vshrl.u32 %v10380_v41, 16  ;;  %v2573_v34 = vpop.f32.mrf.mxu0  ;;  %5914 = vrot.lane.b32.xlu0 %v8828_v9, %s8922_s20  ;;  %v3793_v15 = vpop.f32.mrf.mxu2 }
 0x1b1   : > { %v978_v56 = vor.u32 %v14443_v29, %v975_v28  ;;  %418 = vst [vmem:[#allocation2 + $0x10c] sm:$0x8] %v417_v48  ;;  %v14445_v20 = vshrl.u32 %v10384_v52, 16  ;;  %v3409_v42 = vrot.slane %v3407_v63, 5  ;;  %v3601_v61 = vunpack.c.l.b16 %v3402_v2  ;;  %v11017_v28 = vpop.permute.xlu1 %3557  ;;  %v11033_v48 = vpop.permute.xlu2 %3637 }
 0x1b2   : > { %v970_v32 = vsel %vm9551_vm12, %v8081_v14, %v969_v24  ;;  %v3025_v1 = vrot.slane %v14444_v17, 7  ;;  %v14446_v13 = vshll.u32 %v10380_v41, 16  ;;  %v14447_v58 = vshll.u32 %v10384_v52, 16 }
 0x1b3   : > { %v3034_v40 = vrot.slane %v14445_v20, 7  ;;  %v979_v7 = vsel %vm9551_vm12, %v971_v51, %v978_v56  ;;  %v1253_v22 = vunpack.c.l.b16 %v970_v32  ;;  %v3410_v38 = vsel %vm9064_vm6, %v3405_v16, %v3409_v42 }
 0x1b4   : > { %v1254_v30 = vunpack.c.l.b16 %v979_v7  ;;  %v3028_v62 = vor.u32 %v14446_v13, %v3025_v1  ;;  %v3030_v26 = vrot.slane %v3025_v1, 4  ;;  %v3866_v37 = vadd.f32 %v3790_v54, %v10845_v12  ;;  %v605_v54 = vld [vmem:[#allocation2 + $0xdc] sm:$0x8] }
 0x1b5   : > { %v3037_v27 = vor.u32 %v14447_v58, %v3034_v40  ;;  %v11023_v57 = vadd.f32 %v2702_v6, %v2573_v34  ;;  %v1794_v14 = vshrl.u32 %v1574_v21, 16  ;;  %v3602_v33 = vunpack.c.l.b16 %v3410_v38 }
 0x1b6   : > { %v1270_v55 = vpack.c.b16 %v1254_v30, %v1253_v22  ;;  %v14448_v52 = vshrl.u32 %v10307_v3, 16  ;;  %v3902_v51 = vmul.f32 %v10838_v53, %v3866_v37  ;;  %v14449_v16 = vshrl.u32 %v10313_v31, 16 }
 0x1b7   : > { %v3038_v41 = vsel %vm9551_vm12, %v3030_v26, %v3037_v27  ;;  %v8155_v63 = vrot.slane %v1794_v14, 11  ;;  %v3618_v29 = vpack.c.b16 %v3602_v33, %v3601_v61  ;;  %v14450_v21 = vshll.u32 %v10307_v3, 16 }
 0x1b8   : > { %v1801_v59 = vrot.slane %v14448_v52, 7  ;;  %v3430_v24 = vunpack.c.l.b16 %v3038_v41  ;;  %v1810_v12 = vrot.slane %v14449_v16, 7  ;;  %v1511_v56 = vsel %vm1463_vm13, %v1270_v55, %v1382_v60  ;;  %v2798_v17 = vld [vmem:[#allocation2 + $0x10c] sm:$0x8]  ;;  %v4009_v41 = vld [vmem:[#allocation3 + $0x10] sm:$0x1] }
 0x1b9   : > { %v3938_v1 = vadd.f32 %v10851_v11, %v3902_v51  ;;  %v1544_v20 = vsel %vm1512_vm14, %v1511_v56, %v1462_v19  ;;  %v14451_v40 = vshll.u32 %v10313_v31, 16  ;;  %v3867_v9 = vadd.f32 %v3793_v15, %v10985_v25  ;;  %3649 = vrot.lane.b32.xlu2 %v3618_v29, %s8922_s20  ;;  %v11056_v19 = vld [vmem:[#allocation3 + $0x8] sm:$0xf]  ;;  %v2334_v15 = vpop.permute.xlu1 %2333 }
 0x1ba   : > { %v1804_v2 = vor.u32 %v14450_v21, %v1801_v59  ;;  %v1806_v32 = vrot.slane %v1801_v59, 4  ;;  %v3018_v42 = vshrl.u32 %v2798_v17, 16  ;;  %8267 = vmatmul.msk.bf16.gmra.mxu3 %vm2515_vm15, %v1544_v20  ;;  %v827_v60 = vshrl.u32 %v605_v54, 16  ;;  %v2807_v20 = vld [vmem:[#allocation2 + $0x154] sm:$0x8] }
 0x1bb   : > { %v1813_v6 = vor.u32 %v14451_v40, %v1810_v12  ;;  %v14452_v61 = vshrl.u32 %v10460_v4, 16  ;;  %v3970_v22 = vmax.f32 %v3938_v1, 0.0  ;;  %v3903_v34 = vmul.f32 %v10838_v53, %v3867_v9 }
 0x1bc   : > { %v1805_v3 = vsel %vm9551_vm12, %v8155_v63, %v1804_v2  ;;  %v8277_v25 = vrot.slane %v3018_v42, 11  ;;  %v8075_v26 = vrot.slane %v827_v60, 11  ;;  %v14453_v58 = vshll.u32 %v10460_v4, 16  ;;  %v11062_v4 = vld [vmem:[#allocation3 + $0xc] sm:$0xf]  ;;  %v1370_v2 = vpop.permute.xlu0 %1369  ;;  %v1450_v60 = vpop.permute.xlu2 %1449 }
 0x1bd   : > { %v834_v7 = vrot.slane %v14452_v61, 7  ;;  %v1814_v30 = vsel %vm9551_vm12, %v1806_v32, %v1813_v6  ;;  %v2205_v31 = vunpack.c.l.b16 %v1805_v3  ;;  %v4121_v38 = vpack.c.bf16 %v3970_v22, %v3970_v22  ;;  %v8811_v63 = vld [vmem:[#allocation3 + $0x8] sm:$0xff] }
 0x1be   : > { %v2206_v13 = vunpack.c.l.b16 %v1814_v30  ;;  %v3939_v37 = vadd.f32 %v10851_v11, %v3903_v34  ;;  %v14454_v33 = vshrl.u32 %v10479_v46, 16  ;;  %v3029_v52 = vsel %vm9551_vm12, %v8277_v25, %v3028_v62  ;;  %v2576_v30 = vpop.f32.mrf.mxu0 }
 0x1bf   : > { %v837_v27 = vor.u32 %v14453_v58, %v834_v7  ;;  %v839_v14 = vrot.slane %v834_v7, 4  ;;  %vm4007_vm3 = vcmask 57344   ;;  %v3429_v16 = vunpack.c.l.b16 %v3029_v52  ;;  %4153 = vst.msk [vmem:[#allocation3 + $0x3c] sm:$0xf] %vm4004_vm0, %v4121_v38 }
 0x1c0   : > { %v843_v55 = vrot.slane %v14454_v33, 7  ;;  %v2228_v59 = vpack.c.b16 %v2206_v13, %v2205_v31  ;;  %v3971_v12 = vmax.f32 %v3939_v37, 0.0  ;;  %v14455_v54 = vshll.u32 %v10479_v46, 16  ;;  %vm11068_vm5 = vmand %vm4007_vm3, %vm371_vm2  ;;  %v3795_v46 = vpop.f32.mrf.mxu2 }
 0x1c1   : > { %v838_v51 = vsel %vm9551_vm12, %v8075_v26, %v837_v27  ;;  %v4010_v32 = vsel %vm11068_vm5, 0, %v4009_v41  ;;  %v14028_v17 = vshrl.u32 %v11056_v19, 16  ;;  %v14025_v1 = vshll.u32 %v11056_v19, 16  ;;  %4950 = vrot.lane.b32.xlu2 %v8811_v63, %s8922_s20  ;;  %v2705_v27 = vpop.f32.mrf.mxu1 }
 0x1c2   : > { %v846_v29 = vor.u32 %v14455_v54, %v843_v55  ;;  %v1241_v56 = vunpack.c.l.b16 %v838_v51  ;;  %v11073_v21 = vsel %vm1463_vm13, %v2228_v59, %v2334_v15  ;;  %v3452_v40 = vpack.c.b16 %v3430_v24, %v3429_v16  ;;  %4011 = vst [vmem:[#allocation3 + $0x10] sm:$0x1] %v4010_v32  ;;  %v11106_v16 = vld [vmem:[#allocation3 + $0x20] sm:$0xf]  ;;  %v11115_v32 = vld [vmem:[#allocation3 + $0x24] sm:$0xf] }
 0x1c3   : > { %v4122_v6 = vpack.c.bf16 %v3971_v12, %v3971_v12  ;;  %v14026_v42 = vshrl.u32 %v11062_v4, 16  ;;  %v14024_v61 = vshll.u32 %v11062_v4, 16  ;;  %v4598_v7 = vrot.slane %v14028_v17, 4 }
 0x1c4   : > { %v847_v9 = vsel %vm9551_vm12, %v839_v14, %v846_v29  ;;  %v4599_v22 = vrot.slane %v14025_v1, 5  ;;  %v3680_v24 = vsel %vm1463_vm13, %v3452_v40, %v11017_v28  ;;  %v3084_v34 = vshrl.u32 %v2807_v20, 16  ;;  %v4070_v14 = vld [vmem:[#allocation3 + $0x28] sm:$0x1] }
 0x1c5   : > { %v1242_v3 = vunpack.c.l.b16 %v847_v9  ;;  %4154 = vst.msk [vmem:[#allocation3 + $0x50] sm:$0xf] %vm4004_vm0, %v4122_v6  ;;  %v4604_v31 = vrot.slane %v14026_v42, 4  ;;  %v14458_v25 = vshrl.u32 %v10529_v0, 16  ;;  %v3718_v26 = vsel %vm1512_vm14, %v3680_v24, %v11033_v48  ;;  %v3564_v6 = vpop.permute.xlu1 %3563 }
 0x1c6   : > { %v4600_v38 = vor.u32 %v4599_v22, %v4598_v7  ;;  %v4602_v37 = vrot.slane %v14024_v61, 5  ;;  %8363 = vmatmul.msk.bf16.gmra.mxu2 %vm2515_vm15, %v3718_v26  ;;  %v8280_v28 = vrot.slane %v3084_v34, 11  ;;  %v14459_v33 = vshll.u32 %v10529_v0, 16 }
 0x1c7   : > { %v3091_v13 = vrot.slane %v14458_v25, 7  ;;  %v1264_v58 = vpack.c.b16 %v1242_v3, %v1241_v56  ;;  %v14460_v52 = vshrl.u32 %v10539_v45, 16  ;;  %v3868_v63 = vadd.f32 %v3795_v46, %v11023_v57  ;;  %v2414_v25 = vpop.permute.xlu0 %2413 }
 0x1c8   : > { %v4601_v48 = vrot.slane %v4600_v38, 4  ;;  %v4605_v51 = vor.u32 %v4604_v31, %v4602_v37  ;;  %v14461_v54 = vshll.u32 %v10539_v45, 16  ;;  %v4071_v56 = vsel %vm11068_vm5, 0, %v4070_v14 }
 0x1c9   : > { %v3094_v55 = vor.u32 %v14459_v33, %v3091_v13  ;;  %v3096_v41 = vrot.slane %v3091_v13, 4  ;;  %v3100_v59 = vrot.slane %v14460_v52, 7  ;;  %v1493_v15 = vsel %vm1463_vm13, %v1264_v58, %v1370_v2  ;;  %v11117_v2 = vpop.f32.mrf.mxu3  ;;  %v4582_v20 = vld [vmem:[#allocation3 + $0x10] sm:$0x1]  ;;  %4072 = vst [vmem:[#allocation3 + $0x28] sm:$0x1] %v4071_v56  ;;  %v3798_v13 = vpop.f32.mrf.mxu2 }
 0x1ca   : > { %v1532_v0 = vsel %vm1512_vm14, %v1493_v15, %v1450_v60  ;;  %v4603_v57 = vsel %vm9064_vm6, %v4601_v48, %v4602_v37  ;;  %v4606_v46 = vrot.slane %v4605_v51, 4  ;;  %v3904_v45 = vmul.f32 %v10838_v53, %v3868_v63  ;;  %v2578_v52 = vpop.f32.mrf.mxu0 }
 0x1cb   : > { %v3095_v12 = vsel %vm9551_vm12, %v8280_v28, %v3094_v55  ;;  %v3103_v29 = vor.u32 %v14461_v54, %v3100_v59  ;;  %8261 = vmatmul.msk.bf16.gmra.mxu1 %vm2515_vm15, %v1532_v0  ;;  %v4608_v9 = vshll.u32 %v4582_v20, 16  ;;  %v4982_v3 = vunpack.c.l.b16 %v4603_v57 }
 0x1cc   : > { %v3435_v40 = vunpack.c.l.b16 %v3095_v12  ;;  %v14020_v7 = vshrl.u32 %v11106_v16, 16  ;;  %v3940_v24 = vadd.f32 %v10851_v11, %v3904_v45  ;;  %v14013_v31 = vshll.u32 %v11106_v16, 16 }
 0x1cd   : > { %v3104_v60 = vsel %vm9551_vm12, %v3096_v41, %v3103_v29  ;;  %v14018_v34 = vshrl.u32 %v11115_v32, 16  ;;  %v4610_v26 = vrot.slane %v4608_v9, 5  ;;  %v14012_v58 = vshll.u32 %v11115_v32, 16  ;;  %v3644_v41 = vpop.permute.xlu2 %3643  ;;  %v2707_v29 = vpop.f32.mrf.mxu1 }
 0x1ce   : > { %v3436_v22 = vunpack.c.l.b16 %v3104_v60  ;;  %v5562_v38 = vrot.slane %v14020_v7, 4  ;;  %v2706_v37 = vadd.f32 %v2705_v27, %v2576_v30  ;;  %v3972_v28 = vmax.f32 %v3940_v24, 0.0  ;;  %v2801_v27 = vld [vmem:[#allocation2 + $0x124] sm:$0x8] }
 0x1cf   : > { %v5563_v33 = vrot.slane %v14013_v31, 5  ;;  %v5568_v55 = vrot.slane %v14018_v34, 4  ;;  %v4611_v59 = vsel %vm9064_vm6, %v4606_v46, %v4610_v26  ;;  %v5566_v15 = vrot.slane %v14012_v58, 5  ;;  %v11350_v34 = vld [vmem:[#allocation3 + $0x50] sm:$0xf] }
 0x1d0   : > { %v3455_v14 = vpack.c.b16 %v3436_v22, %v3435_v40  ;;  %v2494_v48 = vsel %vm1512_vm14, %v11073_v21, %v2414_v25  ;;  %v3869_v30 = vadd.f32 %v3798_v13, %v2706_v37  ;;  %v4983_v51 = vunpack.c.l.b16 %v4611_v59  ;;  %v5546_v0 = vld [vmem:[#allocation3 + $0x28] sm:$0x1]  ;;  %v608_v40 = vld [vmem:[#allocation2 + $0xf4] sm:$0x8]  ;;  %v14463_v13 = vld [vmem:[#allocation4_spill] sm:$0xff] }
 0x1d1   : > { %v4123_v12 = vpack.c.bf16 %v3972_v28, %v3972_v28  ;;  %v5564_v54 = vor.u32 %v5563_v33, %v5562_v38  ;;  %8241 = vmatmul.msk.bf16.gmra.mxu0 %vm2515_vm15, %v2494_v48  ;;  %v5569_v56 = vor.u32 %v5568_v55, %v5566_v15  ;;  %v11146_v46 = vadd.f32 %v2707_v29, %v2578_v52  ;;  %v11155_v37 = vpop.f32.mrf.mxu3  ;;  %v3640_v28 = vpop.permute.xlu1 %3639 }
 0x1d2   : > { %v3689_v63 = vsel %vm1463_vm13, %v3455_v14, %v3564_v6  ;;  %v3905_v57 = vmul.f32 %v10838_v53, %v3869_v30  ;;  %v5014_v21 = vpack.c.b16 %v4983_v51, %v4982_v3  ;;  %v5572_v9 = vshll.u32 %v5546_v0, 16  ;;  %v11168_v0 = vld [vmem:[#allocation3 + $0x20] sm:$0xf] }
 0x1d3   : > { %v3724_v20 = vsel %vm1512_vm14, %v3689_v63, %v3644_v41  ;;  %4155 = vst.msk [vmem:[#allocation3 + $0x54] sm:$0xf] %vm4004_vm0, %v4123_v12  ;;  %v5565_v45 = vrot.slane %v5564_v54, 4  ;;  %v3040_v6 = vshrl.u32 %v2801_v27, 16  ;;  %v5570_v60 = vrot.slane %v5569_v56, 4  ;;  %v14467_v54 = vld [vmem:[#allocation5_spill] sm:$0xff] }
 0x1d4   : > { %8366 = vmatmul.msk.bf16.vlgmr.msra.gmra.mxu3 %vm2515_vm15, %v3724_v20  ;;  %v3941_v22 = vadd.f32 %v10851_v11, %v3905_v57  ;;  %v14462_v24 = vshrl.u32 %v10348_v36, 16  ;;  %v14464_v26 = vshrl.u32 %v14463_v13, 16  ;;  %5030 = vrot.lane.b32.xlu0 %v5014_v21, %s8923_s19  ;;  %v5574_v14 = vrot.slane %v5572_v9, 5  ;;  %v8829_v9 = vld [vmem:[#allocation3 + $0x38] sm:$0xff] }
 0x1d5   : > { %v5567_v3 = vsel %vm9064_vm6, %v5565_v45, %v5566_v15  ;;  %v8278_v33 = vrot.slane %v3040_v6, 11  ;;  %v849_v55 = vshrl.u32 %v608_v40, 16  ;;  %v14465_v59 = vshll.u32 %v10348_v36, 16  ;;  %v14469_v36 = vld [vmem:[#allocation6_spill] sm:$0xff] }
 0x1d6   : > { %v3047_v25 = vrot.slane %v14462_v24, 7  ;;  %v3056_v38 = vrot.slane %v14464_v26, 7  ;;  %v5946_v41 = vunpack.c.l.b16 %v5567_v3  ;;  %v3973_v52 = vmax.f32 %v3941_v22, 0.0  ;;  %v11174_v45 = vld [vmem:[#allocation3 + $0x24] sm:$0xf] }
 0x1d7   : > { %v5575_v27 = vsel %vm9064_vm6, %v5570_v60, %v5574_v14  ;;  %v14466_v51 = vshll.u32 %v14463_v13, 16  ;;  %v8076_v12 = vrot.slane %v849_v55, 11  ;;  %v14468_v29 = vshrl.u32 %v14467_v54, 16  ;;  %v3560_v55 = vpop.permute.xlu0 %3559 }
 0x1d8   : > { %v3050_v48 = vor.u32 %v14465_v59, %v3047_v25  ;;  %v3052_v30 = vrot.slane %v3047_v25, 4  ;;  %v5947_v56 = vunpack.c.l.b16 %v5575_v27  ;;  %v4124_v20 = vpack.c.bf16 %v3973_v52, %v3973_v52  ;;  %v3800_v27 = vpop.f32.mrf.mxu2 }
 0x1d9   : > { %v3059_v63 = vor.u32 %v14466_v51, %v3056_v38  ;;  %v856_v15 = vrot.slane %v14468_v29, 7  ;;  %v14470_v40 = vshrl.u32 %v14469_v36, 16  ;;  %v14471_v22 = vshll.u32 %v14467_v54, 16 }
 0x1da   : > { %v3051_v57 = vsel %vm9551_vm12, %v8278_v33, %v3050_v48  ;;  %v5978_v13 = vpack.c.b16 %v5947_v56, %v5946_v41  ;;  %4156 = vst.msk [vmem:[#allocation3 + $0x68] sm:$0xf] %vm4004_vm0, %v4124_v20  ;;  %v14472_v38 = vshll.u32 %v14469_v36, 16  ;;  %v14011_v14 = vshrl.u32 %v11168_v0, 16  ;;  %v4073_v33 = vld [vmem:[#allocation3 + $0x40] sm:$0x1] }
 0x1db   : > { %v865_v21 = vrot.slane %v14470_v40, 7  ;;  %v3060_v6 = vsel %vm9551_vm12, %v3052_v30, %v3059_v63  ;;  %v3431_v60 = vunpack.c.l.b16 %v3051_v57  ;;  %v859_v24 = vor.u32 %v14471_v22, %v856_v15  ;;  %v4583_v41 = vld [vmem:[#allocation3 + $0x28] sm:$0x1]  ;;  %v11203_v36 = vld [vmem:[#allocation3 + $0x38] sm:$0xf] }
 0x1dc   : > { %v861_v25 = vrot.slane %v856_v15, 4  ;;  %v3432_v26 = vunpack.c.l.b16 %v3060_v6  ;;  %v14008_v59 = vshll.u32 %v11168_v0, 16  ;;  %v14009_v48 = vshrl.u32 %v11174_v45, 16  ;;  %5994 = vrot.lane.b32.xlu1 %v5978_v13, %s8923_s19  ;;  %v11194_v15 = vpop.f32.mrf.mxu3  ;;  %5916 = vrot.lane.b32.xlu0 %v8829_v9, %s8922_s20 }
 0x1dd   : > { %v868_v3 = vor.u32 %v14472_v38, %v865_v21  ;;  %v860_v52 = vsel %vm9551_vm12, %v8076_v12, %v859_v24  ;;  %v14006_v30 = vshll.u32 %v11174_v45, 16  ;;  %v4612_v29 = vrot.slane %v14011_v14, 4  ;;  %v1372_v38 = vpop.permute.xlu2 %1371 }
 0x1de   : > { %v3453_v51 = vpack.c.b16 %v3432_v26, %v3431_v60  ;;  %v1243_v54 = vunpack.c.l.b16 %v860_v52  ;;  %v4613_v56 = vrot.slane %v14008_v59, 5  ;;  %v4618_v57 = vrot.slane %v14009_v48, 4  ;;  %v11209_v60 = vld [vmem:[#allocation3 + $0x3c] sm:$0xf]  ;;  %v1452_v26 = vpop.permute.xlu1 %1451 }
 0x1df   : > { %v869_v63 = vsel %vm9551_vm12, %v861_v25, %v868_v3  ;;  %v4616_v20 = vrot.slane %v14006_v30, 5  ;;  %v4622_v21 = vshll.u32 %v4583_v41, 16  ;;  %v3870_v6 = vadd.f32 %v3800_v27, %v11146_v46  ;;  %v2336_v58 = vpop.permute.xlu0 %2335 }
 0x1e0   : > { %v1244_v12 = vunpack.c.l.b16 %v869_v63  ;;  %v3683_v40 = vsel %vm1463_vm13, %v3453_v51, %v3560_v55  ;;  %v4074_v9 = vsel %vm11068_vm5, 0, %v4073_v33  ;;  %v4614_v24 = vor.u32 %v4613_v56, %v4612_v29  ;;  %v8845_v33 = vld [vmem:[#allocation3 + $0x38] sm:$0xff] }
 0x1e1   : > { %v4619_v25 = vor.u32 %v4618_v57, %v4616_v20  ;;  %v3720_v13 = vsel %vm1512_vm14, %v3683_v40, %v3640_v28  ;;  %4075 = vst [vmem:[#allocation3 + $0x40] sm:$0x1] %v4074_v9  ;;  %v4624_v3 = vrot.slane %v4622_v21, 5  ;;  %v3906_v55 = vmul.f32 %v10838_v53, %v3870_v6  ;;  %v11225_v56 = vld [vmem:[#allocation3 + $0x3c] sm:$0xf] }
 0x1e2   : > { %v1265_v22 = vpack.c.b16 %v1244_v12, %v1243_v54  ;;  %8364 = vmatmul.msk.bf16.gmra.mxu2 %vm2515_vm15, %v3720_v13  ;;  %v14002_v46 = vshrl.u32 %v11203_v36, 16  ;;  %v14000_v52 = vshll.u32 %v11203_v36, 16  ;;  %v4615_v27 = vrot.slane %v4614_v24, 4  ;;  %v11223_v12 = vld [vmem:[#allocation3 + $0x38] sm:$0xf] }
 0x1e3   : > { %v4620_v51 = vrot.slane %v4619_v25, 4  ;;  %v14003_v63 = vshrl.u32 %v11209_v60, 16  ;;  %v3942_v54 = vadd.f32 %v10851_v11, %v3906_v55  ;;  %v14001_v29 = vshll.u32 %v11209_v60, 16  ;;  %v2710_v55 = vpop.f32.mrf.mxu1 }
 0x1e4   : > { %v1496_v41 = vsel %vm1463_vm13, %v1265_v22, %v1372_v38  ;;  %v6795_v53 = vrot.slane %v14002_v46, 4  ;;  %v4617_v57 = vsel %vm9064_vm6, %v4615_v27, %v4616_v20  ;;  %v6796_v11 = vrot.slane %v14000_v52, 5  ;;  %7147 = vrot.lane.b32.xlu1 %v8845_v33, %s8922_s20  ;;  %v2581_v20 = vpop.f32.mrf.mxu0 }
 0x1e5   : > { %v1534_v28 = vsel %vm1512_vm14, %v1496_v41, %v1452_v26  ;;  %v4625_v40 = vsel %vm9064_vm6, %v4620_v51, %v4624_v3  ;;  %v6801_v21 = vrot.slane %v14003_v63, 4  ;;  %v4984_v6 = vunpack.c.l.b16 %v4617_v57  ;;  %v1577_v3 = vld [vmem:[#allocation2 + $0x10c] sm:$0x8]  ;;  %v11243_v57 = vpop.f32.mrf.mxu3 }
 0x1e6   : > { %8262 = vmatmul.msk.bf16.gmra.mxu1 %vm2515_vm15, %v1534_v28  ;;  %v4985_v9 = vunpack.c.l.b16 %v4625_v40  ;;  %v3974_v22 = vmax.f32 %v3942_v54, 0.0  ;;  %v6799_v24 = vrot.slane %v14001_v29, 5  ;;  %v6797_v25 = vor.u32 %v6796_v11, %v6795_v53 }
 0x1e7   : > { %v14005_v13 = vshrl.u32 %v11223_v12, 16  ;;  %v14004_v26 = vshll.u32 %v11223_v12, 16  ;;  %v14010_v38 = vshrl.u32 %v11225_v56, 16  ;;  %v14007_v28 = vshll.u32 %v11225_v56, 16 }
 0x1e8   : > { %v5015_v41 = vpack.c.b16 %v4985_v9, %v4984_v6  ;;  %v4125_v27 = vpack.c.bf16 %v3974_v22, %v3974_v22  ;;  %v6779_v51 = vld [vmem:[#allocation3 + $0x40] sm:$0x1]  ;;  %v6802_v33 = vor.u32 %v6801_v21, %v6799_v24  ;;  %v6798_v40 = vrot.slane %v6797_v25, 4 }
 0x1e9   : > { %v5547_v54 = vld [vmem:[#allocation3 + $0x40] sm:$0x1]  ;;  %v6805_v52 = vshll.u32 %v6779_v51, 16  ;;  %v5576_v53 = vrot.slane %v14005_v13, 4  ;;  %v5577_v11 = vrot.slane %v14004_v26, 5  ;;  %v5580_v21 = vrot.slane %v14007_v28, 5 }
 0x1ea   : > { %5032 = vrot.lane.b32.xlu0 %v5015_v41, %s8923_s19  ;;  %4157 = vst.msk [vmem:[#allocation3 + $0x6c] sm:$0xf] %vm4004_vm0, %v4125_v27  ;;  %v6803_v6 = vrot.slane %v6802_v33, 4  ;;  %v5582_v9 = vrot.slane %v14010_v38, 4  ;;  %v5586_v22 = vshll.u32 %v5547_v54, 16  ;;  %v6800_v25 = vsel %vm9064_vm6, %v6798_v40, %v6799_v24  ;;  %v14473_v41 = vld [vmem:[#allocation14_spill] sm:$0xff] }
 0x1eb   : > { %v6807_v51 = vrot.slane %v6805_v52, 5  ;;  %v5578_v29 = vor.u32 %v5577_v11, %v5576_v53  ;;  %v1816_v46 = vshrl.u32 %v1577_v3, 16  ;;  %v7179_v63 = vunpack.c.l.b16 %v6800_v25  ;;  %v2810_v33 = vld [vmem:[#allocation2 + $0x16c] sm:$0x8]  ;;  %v14475_v38 = vld [vmem:[#allocation18_spill] sm:$0xff]  ;;  %v8830_v11 = vld [vmem:[#allocation3 + $0x50] sm:$0xff] }
 0x1ec   : > { %v5583_v26 = vor.u32 %v5582_v9, %v5580_v21  ;;  %v5588_v13 = vrot.slane %v5586_v22, 5  ;;  %v14474_v30 = vshrl.u32 %v14473_v41, 16  ;;  %v14476_v54 = vshrl.u32 %v14475_v38, 16  ;;  %v3803_v9 = vpop.f32.mrf.mxu2 }
 0x1ed   : > { %v6808_v28 = vsel %vm9064_vm6, %v6803_v6, %v6807_v51  ;;  %v5579_v59 = vrot.slane %v5578_v29, 4  ;;  %v8156_v48 = vrot.slane %v1816_v46, 11  ;;  %v14477_v3 = vshll.u32 %v14473_v41, 16  ;;  %v2583_v41 = vpop.f32.mrf.mxu0 }
 0x1ee   : > { %v1823_v27 = vrot.slane %v14474_v30, 7  ;;  %v1832_v14 = vrot.slane %v14476_v54, 7  ;;  %v7180_v24 = vunpack.c.l.b16 %v6808_v28  ;;  %v5584_v52 = vrot.slane %v5583_v26, 4 }
 0x1ef   : > { %v5581_v30 = vsel %vm9064_vm6, %v5579_v59, %v5580_v21  ;;  %v14478_v22 = vshll.u32 %v14475_v38, 16  ;;  %v2711_v29 = vadd.f32 %v2710_v55, %v2581_v20  ;;  %v3106_v46 = vshrl.u32 %v2810_v33, 16  ;;  %v2712_v20 = vpop.f32.mrf.mxu1  ;;  %v14481_v33 = vld [vmem:[#allocation10_spill] sm:$0xff] }
 0x1f0   : > { %v1826_v40 = vor.u32 %v14477_v3, %v1823_v27  ;;  %v1828_v53 = vrot.slane %v1823_v27, 4  ;;  %v7211_v25 = vpack.c.b16 %v7180_v24, %v7179_v63  ;;  %v5589_v51 = vsel %vm9064_vm6, %v5584_v52, %v5588_v13  ;;  %v2804_v27 = vld [vmem:[#allocation2 + $0x13c] sm:$0x8]  ;;  %v11281_v52 = vpop.f32.mrf.mxu3 }
 0x1f1   : > { %v1835_v6 = vor.u32 %v14478_v22, %v1832_v14  ;;  %v5948_v28 = vunpack.c.l.b16 %v5581_v30  ;;  %v5949_v54 = vunpack.c.l.b16 %v5589_v51  ;;  %v3871_v21 = vadd.f32 %v3803_v9, %v2711_v29  ;;  %v14479_v13 = vld [vmem:[#allocation7_spill] sm:$0xff]  ;;  %v11291_v22 = vld [vmem:[#allocation3 + $0x38] sm:$0xf]  ;;  %v2416_v29 = vpop.permute.xlu2 %2415 }
 0x1f2   : > { %v1827_v26 = vsel %vm9551_vm12, %v8156_v48, %v1826_v40  ;;  %7227 = vrot.lane.b32.xlu2 %v7211_v25, %s8923_s19  ;;  %5918 = vrot.lane.b32.xlu0 %v8830_v11, %s8922_s20  ;;  %v8281_v63 = vrot.slane %v3106_v46, 11  ;;  %v14480_v38 = vshrl.u32 %v14479_v13, 16  ;;  %v14482_v48 = vshrl.u32 %v14481_v33, 16  ;;  %v8831_v50 = vld [vmem:[#allocation3 + $0x68] sm:$0xff] }
 0x1f3   : > { %v1836_v3 = vsel %vm9551_vm12, %v1828_v53, %v1835_v6  ;;  %v2207_v59 = vunpack.c.l.b16 %v1827_v26  ;;  %v5979_v40 = vpack.c.b16 %v5949_v54, %v5948_v28  ;;  %v11286_v53 = vld [vmem:[%s13751_s2] ss:$0 sm:$0xff]  ;;  %v11289_v30 = vadd.f32 %v2712_v20, %v2583_v41 }
 0x1f4   : > { %v2208_v14 = vunpack.c.l.b16 %v1836_v3  ;;  %v3113_v55 = vrot.slane %v14480_v38, 7  ;;  %v3122_v24 = vrot.slane %v14482_v48, 7  ;;  %v3907_v9 = vmul.f32 %v11286_v53, %v3871_v21  ;;  %v11301_v54 = vld [vmem:[%s13752_s3] ss:$0 sm:$0xff]  ;;  %v14485_v3 = vld [vmem:[#allocation11_spill] sm:$0xff] }
 0x1f5   : > { %v3062_v11 = vshrl.u32 %v2804_v27, 16  ;;  %v14483_v46 = vshll.u32 %v14479_v13, 16  ;;  %v14484_v28 = vshll.u32 %v14481_v33, 16  ;;  %5996 = vrot.lane.b32.xlu1 %v5979_v40, %s8923_s19  ;;  %v11313_v48 = vld [vmem:[#allocation3 + $0x3c] sm:$0xf]  ;;  %v2586_v1 = vpop.f32.mrf.mxu0  ;;  %vm3999_vm2 = vcmask 60419  }
 0x1f6   : > { %v2229_v6 = vpack.c.b16 %v2208_v14, %v2207_v59  ;;  %v3118_v51 = vrot.slane %v3113_v55, 4  ;;  %v3943_v41 = vadd.f32 %v11301_v54, %v3907_v9  ;;  %v14486_v59 = vshrl.u32 %v14485_v3, 16  ;;  %v14487_v14 = vld [vmem:[#allocation12_spill] sm:$0xff]  ;;  %vm11705_vm7 = vmand %vm3999_vm2, %vm362_vm9 }
 0x1f7   : > { %v3116_v25 = vor.u32 %v14483_v46, %v3113_v55  ;;  %v3125_v26 = vor.u32 %v14484_v28, %v3122_v24  ;;  %v8279_v27 = vrot.slane %v3062_v11, 11  ;;  %v14488_v20 = vshrl.u32 %v14487_v14, 16  ;;  %v3566_v28 = vpop.permute.xlu0 %3565 }
 0x1f8   : > { %v3069_v21 = vrot.slane %v14486_v59, 7  ;;  %v2459_v38 = vsel %vm1463_vm13, %v2229_v6, %v2336_v58  ;;  %v14016_v24 = vshrl.u32 %v11291_v22, 16  ;;  %v3975_v9 = vmax.f32 %v3943_v41, 0.0  ;;  %v8812_v59 = vld [vmem:[#allocation3 + $0x20] sm:$0xff] }
 0x1f9   : > { %v3078_v13 = vrot.slane %v14488_v20, 7  ;;  %v3117_v55 = vsel %vm9551_vm12, %v8281_v63, %v3116_v25  ;;  %v3126_v33 = vsel %vm9551_vm12, %v3118_v51, %v3125_v26  ;;  %v2496_v40 = vsel %vm1512_vm14, %v2459_v38, %v2416_v29  ;;  %v4584_v38 = vld [vmem:[#allocation3 + $0x40] sm:$0x1] }
 0x1fa   : > { %v3437_v11 = vunpack.c.l.b16 %v3117_v55  ;;  %v3438_v46 = vunpack.c.l.b16 %v3126_v33  ;;  %8242 = vmatmul.msk.bf16.gmra.mxu0 %vm2515_vm15, %v2496_v40  ;;  %v14489_v58 = vshll.u32 %v14485_v3, 16  ;;  %v3074_v63 = vrot.slane %v3069_v21, 4  ;;  %4952 = vrot.lane.b32.xlu2 %v8812_v59, %s8922_s20  ;;  %v3646_v33 = vpop.permute.xlu1 %3645  ;;  %v8846_v40 = vld [vmem:[#allocation3 + $0x50] sm:$0xff]  ;;  %v3805_v59 = vpop.f32.mrf.mxu2 }
 0x1fb   : > { %v14490_v25 = vshll.u32 %v14487_v14, 16  ;;  %v14014_v26 = vshll.u32 %v11291_v22, 16  ;;  %v4126_v20 = vpack.c.bf16 %v3975_v9, %v3975_v9  ;;  %v14017_v29 = vshrl.u32 %v11313_v48, 16 }
 0x1fc   : > { %v3072_v6 = vor.u32 %v14489_v58, %v3069_v21  ;;  %v3456_v31 = vpack.c.b16 %v3438_v46, %v3437_v11  ;;  %v14015_v41 = vshll.u32 %v11313_v48, 16  ;;  %v4626_v21 = vrot.slane %v14016_v24, 4 }
 0x1fd   : > { %v3081_v51 = vor.u32 %v14490_v25, %v3078_v13  ;;  %v4627_v14 = vrot.slane %v14014_v26, 5  ;;  %v611_v13 = vld [vmem:[#allocation2 + $0x10c] sm:$0x8]  ;;  %4158 = vst.msk [vmem:[#allocation3 + $0x80] sm:$0xf] %vm4004_vm0, %v4126_v20  ;;  %7149 = vrot.lane.b32.xlu1 %v8846_v40, %s8922_s20  ;;  %vm5110_vm8 = vcmask 130048  }
 0x1fe   : > { %v3073_v55 = vsel %vm9551_vm12, %v8279_v27, %v3072_v6  ;;  %v3692_v9 = vsel %vm1463_vm13, %v3456_v31, %v3566_v28  ;;  %v4630_v27 = vrot.slane %v14015_v41, 5  ;;  %v4632_v6 = vrot.slane %v14017_v29, 4  ;;  %v14491_v28 = vld [vmem:[#allocation15_spill] sm:$0xff]  ;;  %v14493_v26 = vld [vmem:[#allocation13_spill] sm:$0xff] }
 0x1ff   : > { %v3082_v3 = vsel %vm9551_vm12, %v3074_v63, %v3081_v51  ;;  %v3433_v11 = vunpack.c.l.b16 %v3073_v55  ;;  %v4628_v58 = vor.u32 %v4627_v14, %v4626_v21  ;;  %v4636_v63 = vshll.u32 %v4584_v38, 16  ;;  %v11341_v51 = vpop.f32.mrf.mxu3  ;;  %v3562_v14 = vpop.permute.xlu2 %3561 }
 0x200   : > { %v3434_v46 = vunpack.c.l.b16 %v3082_v3  ;;  %v3726_v25 = vsel %vm1512_vm14, %v3692_v9, %v3646_v33  ;;  %v871_v31 = vshrl.u32 %v611_v13, 16  ;;  %v14492_v55 = vshrl.u32 %v14491_v28, 16  ;;  %v4076_v9 = vld [vmem:[#allocation3 + $0x58] sm:$0x1] }
 0x201   : > { %8367 = vmatmul.msk.bf16.gmra.mxu3 %vm2515_vm15, %v3726_v25  ;;  %v14494_v41 = vshrl.u32 %v14493_v26, 16  ;;  %v4629_v24 = vrot.slane %v4628_v58, 4  ;;  %v4633_v29 = vor.u32 %v4632_v6, %v4630_v27  ;;  %v4638_v38 = vrot.slane %v4636_v63, 5 }
 0x202   : > { %v3454_v20 = vpack.c.b16 %v3434_v46, %v3433_v11  ;;  %v878_v3 = vrot.slane %v14492_v55, 7  ;;  %v3872_v33 = vadd.f32 %v3805_v59, %v11289_v30  ;;  %v8077_v11 = vrot.slane %v871_v31, 11  ;;  %v11360_v30 = vld [vmem:[#allocation3 + $0x54] sm:$0xf] }
 0x203   : > { %v887_v21 = vrot.slane %v14494_v41, 7  ;;  %v14495_v13 = vshll.u32 %v14491_v28, 16  ;;  %v4631_v55 = vsel %vm9064_vm6, %v4629_v24, %v4630_v27  ;;  %v4634_v41 = vrot.slane %v4633_v29, 4  ;;  %v3642_v24 = vpop.permute.xlu0 %3641 }
 0x204   : > { %v3686_v40 = vsel %vm1463_vm13, %v3454_v20, %v3562_v14  ;;  %v883_v25 = vrot.slane %v878_v3, 4  ;;  %v14496_v58 = vshll.u32 %v14493_v26, 16  ;;  %v3908_v63 = vmul.f32 %v11286_v53, %v3872_v33 }
 0x205   : > { %v881_v46 = vor.u32 %v14495_v13, %v878_v3  ;;  %v4986_v59 = vunpack.c.l.b16 %v4631_v55  ;;  %v4077_v31 = vsel %vm11068_vm5, 0, %v4076_v9  ;;  %v14019_v28 = vshrl.u32 %v11350_v34, 16  ;;  %v11367_v3 = vld [vmem:[#allocation3 + $0x50] sm:$0xf]  ;;  %v11376_v13 = vld [vmem:[#allocation3 + $0x54] sm:$0xf] }
 0x206   : > { %v890_v6 = vor.u32 %v14496_v58, %v887_v21  ;;  %v4639_v26 = vsel %vm9064_vm6, %v4634_v41, %v4638_v38  ;;  %v3944_v21 = vadd.f32 %v11301_v54, %v3908_v63  ;;  %4078 = vst [vmem:[#allocation3 + $0x58] sm:$0x1] %v4077_v31  ;;  %v14023_v9 = vshrl.u32 %v11360_v30, 16  ;;  %v1580_v31 = vld [vmem:[#allocation2 + $0x124] sm:$0x8] }
 0x207   : > { %v882_v20 = vsel %vm9551_vm12, %v8077_v11, %v881_v46  ;;  %v4987_v14 = vunpack.c.l.b16 %v4639_v26  ;;  %v14021_v11 = vshll.u32 %v11350_v34, 16  ;;  %v14022_v55 = vshll.u32 %v11360_v30, 16  ;;  %v1374_v26 = vpop.permute.xlu1 %1373 }
 0x208   : > { %v891_v29 = vsel %vm9551_vm12, %v883_v25, %v890_v6  ;;  %v1245_v27 = vunpack.c.l.b16 %v882_v20  ;;  %v3976_v46 = vmax.f32 %v3944_v21, 0.0  ;;  %v6809_v38 = vrot.slane %v14019_v28, 4  ;;  %v11386_v20 = vpop.f32.mrf.mxu3 }
 0x209   : > { %v1246_v33 = vunpack.c.l.b16 %v891_v29  ;;  %v14027_v25 = vshrl.u32 %v11367_v3, 16  ;;  %v5016_v41 = vpack.c.b16 %v4987_v14, %v4986_v59  ;;  %v6810_v6 = vrot.slane %v14021_v11, 5  ;;  %v2715_v59 = vpop.f32.mrf.mxu1 }
 0x20a   : > { %v6815_v63 = vrot.slane %v14023_v9, 4  ;;  %v4127_v29 = vpack.c.bf16 %v3976_v46, %v3976_v46  ;;  %v6813_v21 = vrot.slane %v14022_v55, 5  ;;  %v14029_v28 = vshll.u32 %v11367_v3, 16 }
 0x20b   : > { %v1266_v58 = vpack.c.b16 %v1246_v33, %v1245_v27  ;;  %v14030_v7 = vshrl.u32 %v11376_v13, 16  ;;  %5034 = vrot.lane.b32.xlu0 %v5016_v41, %s8923_s19  ;;  %v6811_v14 = vor.u32 %v6810_v6, %v6809_v38  ;;  %v14035_v33 = vshll.u32 %v11376_v13, 16  ;;  %v1454_v47 = vpop.permute.xlu0 %1453 }
 0x20c   : > { %v5590_v11 = vrot.slane %v14027_v25, 4  ;;  %4159 = vst.msk [vmem:[#allocation3 + $0x84] sm:$0xf] %vm4004_vm0, %v4127_v29  ;;  %v6816_v46 = vor.u32 %v6815_v63, %v6813_v21  ;;  %v5591_v55 = vrot.slane %v14029_v28, 5  ;;  %v1838_v61 = vshrl.u32 %v1580_v31, 16 }
 0x20d   : > { %v1499_v27 = vsel %vm1463_vm13, %v1266_v58, %v1374_v26  ;;  %v5596_v9 = vrot.slane %v14030_v7, 4  ;;  %v6780_v41 = vld [vmem:[#allocation3 + $0x58] sm:$0x1]  ;;  %v6812_v42 = vrot.slane %v6811_v14, 4  ;;  %v5594_v38 = vrot.slane %v14035_v33, 5 }
 0x20e   : > { %v5548_v58 = vld [vmem:[#allocation3 + $0x58] sm:$0x1]  ;;  %v3722_v6 = vsel %vm1512_vm14, %v3686_v40, %v3642_v24  ;;  %v2716_v26 = vadd.f32 %v2715_v59, %v2586_v1  ;;  %v6817_v25 = vrot.slane %v6816_v46, 4  ;;  %v6819_v29 = vshll.u32 %v6780_v41, 16 }
 0x20f   : > { %v5592_v63 = vor.u32 %v5591_v55, %v5590_v11  ;;  %v5600_v17 = vshll.u32 %v5548_v58, 16  ;;  %8365 = vmatmul.msk.bf16.gmra.mxu2 %vm2515_vm15, %v3722_v6  ;;  %v6814_v28 = vsel %vm9064_vm6, %v6812_v42, %v6813_v21  ;;  %v5597_v31 = vor.u32 %v5596_v9, %v5594_v38  ;;  %v14500_v46 = vld [vmem:[#allocation9_spill] sm:$0xff]  ;;  %v3808_v42 = vpop.f32.mrf.mxu2  ;;  %v11419_v6 = vld [vmem:[#allocation3 + $0x50] sm:$0xf] }
 0x210   : > { %v8157_v7 = vrot.slane %v1838_v61, 11  ;;  %v14498_v14 = vshrl.u32 %v14497_v39, 16  ;;  %v6821_v33 = vrot.slane %v6819_v29, 5  ;;  %v7181_v23 = vunpack.c.l.b16 %v6814_v28 }
 0x211   : > { %v5593_v40 = vrot.slane %v5592_v63, 4  ;;  %v5602_v1 = vrot.slane %v5600_v17, 5  ;;  %v5598_v24 = vrot.slane %v5597_v31, 4  ;;  %v14499_v11 = vshll.u32 %v14497_v39, 16  ;;  %v11421_v17 = vld [vmem:[#allocation3 + $0x54] sm:$0xf] }
 0x212   : > { %v1845_v5 = vrot.slane %v14498_v14, 7  ;;  %v14501_v41 = vshrl.u32 %v14500_v46, 16  ;;  %v6822_v61 = vsel %vm9064_vm6, %v6817_v25, %v6821_v33  ;;  %v3873_v21 = vadd.f32 %v3808_v42, %v2716_v26  ;;  %v11428_v25 = vpop.f32.mrf.mxu3  ;;  %v4079_v31 = vld [vmem:[#allocation3 + $0x70] sm:$0x1] }
 0x213   : > { %v5595_v9 = vsel %vm9064_vm6, %v5593_v40, %v5594_v38  ;;  %v1536_v28 = vsel %vm1512_vm14, %v1499_v27, %v1454_v47  ;;  %v7182_v39 = vunpack.c.l.b16 %v6822_v61  ;;  %5920 = vrot.lane.b32.xlu0 %v8831_v50, %s8922_s20  ;;  %v14502_v47 = vshll.u32 %v14500_v46, 16  ;;  %v4585_v50 = vld [vmem:[#allocation3 + $0x58] sm:$0x1] }
 0x214   : > { %v1848_v55 = vor.u32 %v14499_v11, %v1845_v5  ;;  %v1850_v59 = vrot.slane %v1845_v5, 4  ;;  %v1854_v58 = vrot.slane %v14501_v41, 7  ;;  %v5603_v5 = vsel %vm9064_vm6, %v5598_v24, %v5602_v1  ;;  %8263 = vmatmul.msk.bf16.gmra.mxu1 %vm2515_vm15, %v1536_v28  ;;  %v11441_v41 = vld [vmem:[#allocation3 + $0x68] sm:$0xf] }
 0x215   : > { %v5950_v29 = vunpack.c.l.b16 %v5595_v9  ;;  %v5951_v33 = vunpack.c.l.b16 %v5603_v5  ;;  %v3909_v26 = vmul.f32 %v11286_v53, %v3873_v21  ;;  %v7212_v14 = vpack.c.b16 %v7182_v39, %v7181_v23  ;;  %v11450_v9 = vld [vmem:[#allocation3 + $0x6c] sm:$0xf]  ;;  %v2338_v21 = vpop.permute.xlu2 %2337 }
 0x216   : > { %v1849_v63 = vsel %vm9551_vm12, %v8157_v7, %v1848_v55  ;;  %v1857_v27 = vor.u32 %v14502_v47, %v1854_v58  ;;  %v14044_v40 = vshrl.u32 %v11419_v6, 16  ;;  %v14037_v1 = vshll.u32 %v11419_v6, 16  ;;  %14503 = vst [vmem:[#allocation16_spill] sm:$0xff] %v11450_v9 }
 0x217   : > { %v2209_v38 = vunpack.c.l.b16 %v1849_v63  ;;  %v14043_v7 = vshrl.u32 %v11421_v17, 16  ;;  %v5980_v24 = vpack.c.b16 %v5951_v33, %v5950_v29  ;;  %v3945_v55 = vadd.f32 %v11301_v54, %v3909_v26  ;;  %7229 = vrot.lane.b32.xlu2 %v7212_v14, %s8923_s19  ;;  %v2418_v33 = vpop.permute.xlu1 %2417 }
 0x218   : > { %v1858_v11 = vsel %vm9551_vm12, %v1850_v59, %v1857_v27  ;;  %v14038_v46 = vshll.u32 %v11421_v17, 16  ;;  %v4640_v58 = vrot.slane %v14044_v40, 4  ;;  %v4641_v42 = vrot.slane %v14037_v1, 5  ;;  %v8827_v59 = vld [vmem:[%s13753_s4] sm:$0xff]  ;;  %v11463_v1 = vld [vmem:[#allocation3 + $0x68] sm:$0xf] }
 0x219   : > { %v2210_v23 = vunpack.c.l.b16 %v1858_v11  ;;  %v4646_v61 = vrot.slane %v14043_v7, 4  ;;  %5998 = vrot.lane.b32.xlu1 %v5980_v24, %s8923_s19  ;;  %v3977_v28 = vmax.f32 %v3945_v55, 0.0  ;;  %v4650_v5 = vshll.u32 %v4585_v50, 16  ;;  %6296 = vmatpush.bf16.msrb.mxu0 %v8827_v59  ;;  %14504 = vst [vmem:[#allocation17_spill] sm:$0xff] %v11463_v1  ;;  %v2813_v7 = vld [vmem:[#allocation2 + $0x184] sm:$0x8] }
 0x21a   : > { %v4644_v39 = vrot.slane %v14038_v46, 5  ;;  %v4080_v29 = vsel %vm11068_vm5, 0, %v4079_v31  ;;  %v4642_v47 = vor.u32 %v4641_v42, %v4640_v58  ;;  %v14042_v27 = vshrl.u32 %v11441_v41, 16  ;;  %v2750_v58 = vpop.f32.mrf.mxu3 }
 0x21b   : > { %v2230_v63 = vpack.c.b16 %v2210_v23, %v2209_v38  ;;  %4081 = vst [vmem:[#allocation3 + $0x70] sm:$0x1] %v4080_v29  ;;  %v14039_v26 = vshll.u32 %v11441_v41, 16  ;;  %v4128_v14 = vpack.c.bf16 %v3977_v28, %v3977_v28  ;;  %v4652_v11 = vrot.slane %v4650_v5, 5  ;;  %v11469_v23 = vld [vmem:[#allocation3 + $0x6c] sm:$0xf] }
 0x21c   : > { %v4647_v24 = vor.u32 %v4646_v61, %v4644_v39  ;;  %v14040_v55 = vshrl.u32 %v11450_v9, 16  ;;  %v4643_v46 = vrot.slane %v4642_v47, 4  ;;  %v14041_v38 = vshll.u32 %v11450_v9, 16  ;;  %v8813_v28 = vld [vmem:[#allocation3 + $0x38] sm:$0xff]  ;;  %v2717_v47 = vpop.f32.mrf.mxu1 }
 0x21d   : > { %v2462_v50 = vsel %vm1463_vm13, %v2230_v63, %v2338_v21  ;;  %v5604_v31 = vrot.slane %v14042_v27, 4  ;;  %4160 = vst.msk [vmem:[#allocation3 + $0x98] sm:$0xf] %vm4004_vm0, %v4128_v14  ;;  %v5605_v59 = vrot.slane %v14039_v26, 5  ;;  %v14045_v63 = vshrl.u32 %v11463_v1, 16  ;;  %v8847_v14 = vld [vmem:[#allocation3 + $0x68] sm:$0xff] }
 0x21e   : > { %v2498_v42 = vsel %vm1512_vm14, %v2462_v50, %v2418_v33  ;;  %v4648_v61 = vrot.slane %v4647_v24, 4  ;;  %v5610_v21 = vrot.slane %v14040_v55, 4  ;;  %v4645_v5 = vsel %vm9064_vm6, %v4643_v46, %v4644_v39  ;;  %v2588_v55 = vpop.f32.mrf.mxu0 }
 0x21f   : > { %8243 = vmatmul.msk.bf16.gmra.mxu0 %vm2515_vm15, %v2498_v42  ;;  %v5608_v29 = vrot.slane %v14041_v38, 5  ;;  %v4988_v50 = vunpack.c.l.b16 %v4645_v5  ;;  %v5606_v26 = vor.u32 %v5605_v59, %v5604_v31  ;;  %4954 = vrot.lane.b32.xlu2 %v8813_v28, %s8922_s20  ;;  %v14046_v38 = vshll.u32 %v11469_v23, 16 }
 0x220   : > { %v4653_v24 = vsel %vm9064_vm6, %v4648_v61, %v4652_v11  ;;  %v6823_v27 = vrot.slane %v14045_v63, 4  ;;  %v14505_v31 = vshll.u32 %v11463_v1, 16  ;;  %v2718_v59 = vadd.f32 %v2717_v47, %v2588_v55 }
 0x221   : > { %v4989_v46 = vunpack.c.l.b16 %v4653_v24  ;;  %v5611_v39 = vor.u32 %v5610_v21, %v5608_v29  ;;  %7151 = vrot.lane.b32.xlu1 %v8847_v14, %s8922_s20  ;;  %v5607_v33 = vrot.slane %v5606_v26, 4  ;;  %v11495_v28 = vadd.f32 %v2750_v58, %v11117_v2  ;;  %v8861_v14 = vld [vmem:[%s13753_s4 + $0x18] sm:$0xff] }
 0x222   : > { %v5549_v40 = vld [vmem:[#allocation3 + $0x70] sm:$0x1]  ;;  %v6824_v61 = vrot.slane %v14505_v31, 5  ;;  %v6827_v42 = vrot.slane %v14046_v38, 5  ;;  %v14506_v31 = vshrl.u32 %v11469_v23, 16  ;;  %7394 = vmatpush.bf16.msrb.mxu1 %v8861_v14  ;;  %v14508_v9 = vshrl.u32 %v10748_v43, 16 }
 0x223   : > { %v6781_v11 = vld [vmem:[#allocation3 + $0x70] sm:$0x1]  ;;  %v5017_v5 = vpack.c.b16 %v4989_v46, %v4988_v50  ;;  %v5612_v21 = vrot.slane %v5611_v39, 4  ;;  %v5614_v24 = vshll.u32 %v5549_v40, 16  ;;  %v5609_v26 = vsel %vm9064_vm6, %v5607_v33, %v5608_v29 }
 0x224   : > { %v6825_v63 = vor.u32 %v6824_v61, %v6823_v27  ;;  %v6829_v55 = vrot.slane %v14506_v31, 4  ;;  %v6833_v47 = vshll.u32 %v6781_v11, 16  ;;  %v5952_v58 = vunpack.c.l.b16 %v5609_v26  ;;  %v11511_v27 = vld [vmem:[#allocation3 + $0x68] sm:$0xf]  ;;  %v3810_v26 = vpop.f32.mrf.mxu2 }
 0x225   : > { %5036 = vrot.lane.b32.xlu0 %v5017_v5, %s8923_s19  ;;  %v5616_v2 = vrot.slane %v5614_v24, 5  ;;  %v3128_v40 = vshrl.u32 %v2813_v7, 16  ;;  %v14507_v50 = vshrl.u32 %v10738_v10, 16  ;;  %v3144_v29 = vrot.slane %v14508_v9, 7  ;;  %14509 = vst [vmem:[#allocation4_spill] sm:$0xff] %v11511_v27  ;;  %v2752_v24 = vpop.f32.mrf.mxu3 }
 0x226   : > { %v6826_v39 = vrot.slane %v6825_v63, 4  ;;  %v6830_v38 = vor.u32 %v6829_v55, %v6827_v42  ;;  %v6835_v1 = vrot.slane %v6833_v47, 5  ;;  %v14510_v61 = vshll.u32 %v10738_v10, 16 }
 0x227   : > { %v3135_v46 = vrot.slane %v14507_v50, 7  ;;  %v5617_v33 = vsel %vm9064_vm6, %v5612_v21, %v5616_v2  ;;  %v8282_v11 = vrot.slane %v3128_v40, 11  ;;  %v14511_v55 = vshll.u32 %v10748_v43, 16  ;;  %v8832_v2 = vld [vmem:[#allocation3 + $0x80] sm:$0xff]  ;;  %v11523_v40 = vld [vmem:[#allocation3 + $0x6c] sm:$0xf] }
 0x228   : > { %v5953_v31 = vunpack.c.l.b16 %v5617_v33  ;;  %v6828_v63 = vsel %vm9064_vm6, %v6826_v39, %v6827_v42  ;;  %v6831_v14 = vrot.slane %v6830_v38, 4  ;;  %v3874_v21 = vadd.f32 %v3810_v26, %v2718_v59  ;;  %14512 = vst [vmem:[#allocation5_spill] sm:$0xff] %v11523_v40 }
 0x229   : > { %v3138_v5 = vor.u32 %v14510_v61, %v3135_v46  ;;  %v3140_v7 = vrot.slane %v3135_v46, 4  ;;  %v3147_v9 = vor.u32 %v14511_v55, %v3144_v29  ;;  %v7183_v47 = vunpack.c.l.b16 %v6828_v63  ;;  %v4586_v46 = vld [vmem:[#allocation3 + $0x70] sm:$0x1] }
 0x22a   : > { %v14056_v10 = vshrl.u32 %v11511_v27, 16  ;;  %v5981_v61 = vpack.c.b16 %v5953_v31, %v5952_v58  ;;  %v6836_v33 = vsel %vm9064_vm6, %v6831_v14, %v6835_v1  ;;  %v3910_v29 = vmul.f32 %v11286_v53, %v3874_v21  ;;  %v4082_v31 = vld [vmem:[#allocation3 + $0x88] sm:$0x1] }
 0x22b   : > { %v3139_v50 = vsel %vm9551_vm12, %v8282_v11, %v3138_v5  ;;  %v3148_v38 = vsel %vm9551_vm12, %v3140_v7, %v3147_v9  ;;  %v7184_v42 = vunpack.c.l.b16 %v6836_v33  ;;  %v14051_v59 = vshll.u32 %v11511_v27, 16  ;;  %v3568_v11 = vpop.permute.xlu2 %3567  ;;  %v2591_v7 = vpop.f32.mrf.mxu0 }
 0x22c   : > { %v3439_v43 = vunpack.c.l.b16 %v3139_v50  ;;  %v3440_v39 = vunpack.c.l.b16 %v3148_v38  ;;  %6000 = vrot.lane.b32.xlu1 %v5981_v61, %s8923_s19  ;;  %v14053_v5 = vshrl.u32 %v11523_v40, 16  ;;  %v14052_v58 = vshll.u32 %v11523_v40, 16  ;;  %v3648_v9 = vpop.permute.xlu0 %3647  ;;  %v2720_v50 = vpop.f32.mrf.mxu1  ;;  %v11541_v61 = vld [vmem:[#allocation3 + $0x80] sm:$0xf] }
 0x22d   : > { %v4654_v1 = vrot.slane %v14056_v10, 4  ;;  %v4664_v26 = vshll.u32 %v4586_v46, 16  ;;  %v7213_v63 = vpack.c.b16 %v7184_v42, %v7183_v47  ;;  %v3946_v55 = vadd.f32 %v11301_v54, %v3910_v29  ;;  %5922 = vrot.lane.b32.xlu0 %v8832_v2, %s8922_s20  ;;  %14513 = vst [vmem:[#allocation6_spill] sm:$0xff] %v11541_v61 }
 0x22e   : > { %v3457_v14 = vpack.c.b16 %v3440_v39, %v3439_v43  ;;  %v4655_v21 = vrot.slane %v14051_v59, 5  ;;  %v4658_v33 = vrot.slane %v14052_v58, 5  ;;  %v4660_v46 = vrot.slane %v14053_v5, 4  ;;  %v11550_v43 = vld [vmem:[#allocation3 + $0x84] sm:$0xf] }
 0x22f   : > { %v4666_v38 = vrot.slane %v4664_v26, 5  ;;  %v11548_v47 = vadd.f32 %v2752_v24, %v11155_v37  ;;  %14514 = vst [vmem:[#allocation14_spill] sm:$0xff] %v11550_v43  ;;  %7231 = vrot.lane.b32.xlu2 %v7213_v63, %s8923_s19  ;;  %v3978_v42 = vmax.f32 %v3946_v55, 0.0  ;;  %v4083_v29 = vsel %vm11068_vm5, 0, %v4082_v31  ;;  %v11556_v59 = vld [vmem:[#allocation3 + $0x80] sm:$0xf]  ;;  %v2755_v31 = vpop.f32.mrf.mxu3  ;;  %v3813_v55 = vpop.f32.mrf.mxu2 }
 0x230   : > { %v3695_v2 = vsel %vm1463_vm13, %v3457_v14, %v3568_v11  ;;  %v4656_v39 = vor.u32 %v4655_v21, %v4654_v1  ;;  %14515 = vst [vmem:[#allocation18_spill] sm:$0xff] %v11556_v59  ;;  %v4661_v5 = vor.u32 %v4660_v46, %v4658_v33  ;;  %v14055_v37 = vshrl.u32 %v11541_v61, 16  ;;  %v11564_v14 = vld [vmem:[#allocation3 + $0x84] sm:$0xf] }
 0x231   : > { %v3728_v58 = vsel %vm1512_vm14, %v3695_v2, %v3648_v9  ;;  %4084 = vst [vmem:[#allocation3 + $0x88] sm:$0x1] %v4083_v29  ;;  %v14054_v24 = vshll.u32 %v11541_v61, 16  ;;  %v4129_v26 = vpack.c.bf16 %v3978_v42, %v3978_v42  ;;  %v14062_v11 = vshrl.u32 %v11550_v43, 16  ;;  %v8848_v21 = vld [vmem:[#allocation3 + $0x80] sm:$0xff]  ;;  %v8814_v42 = vld [vmem:[#allocation3 + $0x50] sm:$0xff] }
 0x232   : > { %8368 = vmatmul.msk.bf16.gmra.mxu3 %vm2515_vm15, %v3728_v58  ;;  %v4657_v63 = vrot.slane %v4656_v39, 4  ;;  %v14059_v1 = vshll.u32 %v11550_v43, 16  ;;  %14516 = vst [vmem:[#allocation7_spill] sm:$0xff] %v11564_v14  ;;  %v4662_v9 = vrot.slane %v4661_v5, 4  ;;  %v5618_v46 = vrot.slane %v14055_v37, 4 }
 0x233   : > { %v5619_v2 = vrot.slane %v14054_v24, 5  ;;  %4161 = vst.msk [vmem:[#allocation3 + $0x9c] sm:$0xf] %vm4004_vm0, %v4129_v26  ;;  %v5624_v29 = vrot.slane %v14062_v11, 4  ;;  %v14067_v5 = vshll.u32 %v11556_v59, 16  ;;  %v14068_v26 = vshrl.u32 %v11564_v14, 16 }
 0x234   : > { %v4659_v58 = vsel %vm9064_vm6, %v4657_v63, %v4658_v33  ;;  %v5622_v39 = vrot.slane %v14059_v1, 5  ;;  %7153 = vrot.lane.b32.xlu1 %v8848_v21, %s8922_s20  ;;  %v4667_v24 = vsel %vm9064_vm6, %v4662_v9, %v4666_v38  ;;  %v14071_v63 = vshll.u32 %v11564_v14, 16  ;;  %v377_v9 = vld [vmem:[#allocation2 + $0x19c] sm:$0x8] }
 0x235   : > { %v4990_v37 = vunpack.c.l.b16 %v4659_v58  ;;  %v5620_v10 = vor.u32 %v5619_v2, %v5618_v46  ;;  %v4991_v61 = vunpack.c.l.b16 %v4667_v24  ;;  %v14517_v1 = vshrl.u32 %v11556_v59, 16  ;;  %v2593_v46 = vpop.f32.mrf.mxu0 }
 0x236   : > { %v5625_v33 = vor.u32 %v5624_v29, %v5622_v39  ;;  %v6838_v40 = vrot.slane %v14067_v5, 5  ;;  %v6843_v21 = vrot.slane %v14068_v26, 4  ;;  %v2721_v38 = vadd.f32 %v2720_v50, %v2591_v7 }
 0x237   : > { %v6837_v43 = vrot.slane %v14517_v1, 4  ;;  %v5621_v11 = vrot.slane %v5620_v10, 4  ;;  %4956 = vrot.lane.b32.xlu2 %v8814_v42, %s8922_s20  ;;  %v5018_v2 = vpack.c.b16 %v4991_v61, %v4990_v37  ;;  %v6841_v27 = vrot.slane %v14071_v63, 5  ;;  %v2722_v1 = vpop.f32.mrf.mxu1 }
 0x238   : > { %v5550_v24 = vld [vmem:[#allocation3 + $0x88] sm:$0x1]  ;;  %v5626_v58 = vrot.slane %v5625_v33, 4  ;;  %v11594_v10 = vadd.f32 %v2755_v31, %v11194_v15  ;;  %v3875_v37 = vadd.f32 %v3813_v55, %v2721_v38  ;;  %v378_v33 = vsel %vm9518_vm10, 0, %v377_v9 }
 0x239   : > { %v6782_v29 = vld [vmem:[#allocation3 + $0x88] sm:$0x1]  ;;  %v5623_v5 = vsel %vm9064_vm6, %v5621_v11, %v5622_v39  ;;  %v5628_v26 = vshll.u32 %v5550_v24, 16  ;;  %v6839_v7 = vor.u32 %v6838_v40, %v6837_v43  ;;  %5038 = vrot.lane.b32.xlu0 %v5018_v2, %s8923_s19  ;;  %v6844_v61 = vor.u32 %v6843_v21, %v6841_v27  ;;  %379 = vst [vmem:[#allocation2 + $0x19c] sm:$0x8] %v378_v33  ;;  %v3815_v21 = vpop.f32.mrf.mxu2 }
 0x23a   : > { %14518 = vst [vmem:[#allocation10_spill] sm:$0xff] %v11594_v10  ;;  %v6847_v50 = vshll.u32 %v6782_v29, 16  ;;  %v5954_v42 = vunpack.c.l.b16 %v5623_v5  ;;  %v14519_v15 = vshrl.u32 %v10953_v44, 16  ;;  %v3911_v11 = vmul.f32 %v11286_v53, %v3875_v37  ;;  %v2757_v5 = vpop.f32.mrf.mxu3  ;;  %v11612_v2 = vld [vmem:[#allocation3 + $0x80] sm:$0xf] }
 0x23b   : > { %v5630_v14 = vrot.slane %v5628_v26, 5  ;;  %v6840_v63 = vrot.slane %v6839_v7, 4  ;;  %v6845_v10 = vrot.slane %v6844_v61, 4  ;;  %v14520_v40 = vshrl.u32 %v10956_v18, 16 }
 0x23c   : > { %v6849_v59 = vrot.slane %v6847_v50, 5  ;;  %v3157_v31 = vrot.slane %v14519_v15, 7  ;;  %v2723_v39 = vadd.f32 %v2722_v1, %v2593_v46  ;;  %v14521_v26 = vshll.u32 %v10953_v44, 16  ;;  %v8833_v1 = vld [vmem:[#allocation3 + $0x98] sm:$0xff]  ;;  %v11617_v50 = vld [vmem:[#allocation3 + $0x84] sm:$0xf] }
 0x23d   : > { %v3166_v43 = vrot.slane %v14520_v40, 7  ;;  %v5631_v8 = vsel %vm9064_vm6, %v5626_v58, %v5630_v14  ;;  %v6842_v55 = vsel %vm9064_vm6, %v6840_v63, %v6841_v27  ;;  %v3947_v46 = vadd.f32 %v11301_v54, %v3911_v11  ;;  %v4587_v40 = vld [vmem:[#allocation3 + $0x88] sm:$0x1] }
 0x23e   : > { %v3160_v38 = vor.u32 %v14521_v26, %v3157_v31  ;;  %v3162_v9 = vrot.slane %v3157_v31, 4  ;;  %v5955_v24 = vunpack.c.l.b16 %v5631_v8  ;;  %v6850_v29 = vsel %vm9064_vm6, %v6845_v10, %v6849_v59 }
 0x23f   : > { %v7185_v7 = vunpack.c.l.b16 %v6842_v55  ;;  %v7186_v14 = vunpack.c.l.b16 %v6850_v29  ;;  %v14522_v58 = vshll.u32 %v10956_v18, 16  ;;  %v3876_v63 = vadd.f32 %v3815_v21, %v2723_v39  ;;  %v2725_v33 = vpop.f32.mrf.mxu1  ;;  %v4085_v39 = vld [vmem:[#allocation3 + $0xa0] sm:$0x1]  ;;  %v11635_v55 = vld [vmem:[#allocation3 + $0x98] sm:$0xf] }
 0x240   : > { %v11622_v44 = vadd.f32 %v2757_v5, %v11243_v57  ;;  %v5982_v61 = vpack.c.b16 %v5955_v24, %v5954_v42  ;;  %v3979_v37 = vmax.f32 %v3947_v46, 0.0  ;;  %v14086_v15 = vshrl.u32 %v11612_v2, 16  ;;  %v2816_v42 = vld [vmem:[#allocation2 + $0x19c] sm:$0x8] }
 0x241   : > { %v3169_v27 = vor.u32 %v14522_v58, %v3166_v43  ;;  %v14074_v59 = vshll.u32 %v11612_v2, 16  ;;  %v7214_v10 = vpack.c.b16 %v7186_v14, %v7185_v7  ;;  %v3912_v11 = vmul.f32 %v11286_v53, %v3876_v63  ;;  %v2596_v43 = vpop.f32.mrf.mxu0  ;;  %5924 = vrot.lane.b32.xlu0 %v8833_v1, %s8922_s20  ;;  %v11643_v7 = vld [vmem:[#allocation3 + $0x9c] sm:$0xf] }
 0x242   : > { %v14083_v18 = vshrl.u32 %v11617_v50, 16  ;;  %6002 = vrot.lane.b32.xlu1 %v5982_v61, %s8923_s19  ;;  %v4130_v57 = vpack.c.bf16 %v3979_v37, %v3979_v37  ;;  %v14079_v21 = vshll.u32 %v11617_v50, 16  ;;  %v4668_v8 = vrot.slane %v14086_v15, 4  ;;  %v3818_v61 = vpop.f32.mrf.mxu2 }
 0x243   : > { %v3170_v31 = vsel %vm9551_vm12, %v3162_v9, %v3169_v27  ;;  %7233 = vrot.lane.b32.xlu2 %v7214_v10, %s8923_s19  ;;  %v3150_v26 = vshrl.u32 %v2816_v42, 16  ;;  %v3948_v9 = vadd.f32 %v11301_v54, %v3912_v11  ;;  %v4669_v24 = vrot.slane %v14074_v59, 5 }
 0x244   : > { %v3442_v5 = vunpack.c.l.b16 %v3170_v31  ;;  %v4674_v29 = vrot.slane %v14083_v18, 4  ;;  %4162 = vst.msk [vmem:[#allocation3 + $0xb0] sm:$0xf] %vm4004_vm0, %v4130_v57  ;;  %v4672_v46 = vrot.slane %v14079_v21, 5  ;;  %v4678_v1 = vshll.u32 %v4587_v40, 16  ;;  %v8849_v31 = vld [vmem:[#allocation3 + $0x98] sm:$0xff] }
 0x245   : > { %v2726_v14 = vadd.f32 %v2725_v33, %v2596_v43  ;;  %v4086_v58 = vsel %vm11068_vm5, 0, %v4085_v39  ;;  %v8283_v27 = vrot.slane %v3150_v26, 11  ;;  %v3980_v63 = vmax.f32 %v3948_v9, 0.0 }
 0x246   : > { %v4670_v37 = vor.u32 %v4669_v24, %v4668_v8  ;;  %4087 = vst [vmem:[#allocation3 + $0xa0] sm:$0x1] %v4086_v58  ;;  %v14077_v10 = vshrl.u32 %v11635_v55, 16  ;;  %v4675_v11 = vor.u32 %v4674_v29, %v4672_v46  ;;  %v4680_v42 = vrot.slane %v4678_v1, 5  ;;  %v11657_v58 = vld [vmem:[#allocation3 + $0x98] sm:$0xf]  ;;  %v3570_v1 = vpop.permute.xlu1 %3569 }
 0x247   : > { %v3877_v59 = vadd.f32 %v3818_v61, %v2726_v14  ;;  %v14075_v57 = vshll.u32 %v11635_v55, 16  ;;  %v3161_v40 = vsel %vm9551_vm12, %v8283_v27, %v3160_v38  ;;  %v4131_v33 = vpack.c.bf16 %v3980_v63, %v3980_v63  ;;  %v11659_v29 = vld [vmem:[#allocation3 + $0x9c] sm:$0xf]  ;;  %v8815_v14 = vld [vmem:[#allocation3 + $0x68] sm:$0xff]  ;;  %v3650_v61 = vpop.permute.xlu2 %3649 }
 0x248   : > { %v4671_v43 = vrot.slane %v4670_v37, 4  ;;  %v14076_v39 = vshrl.u32 %v11643_v7, 16  ;;  %v3441_v26 = vunpack.c.l.b16 %v3161_v40  ;;  %v4676_v9 = vrot.slane %v4675_v11, 4 }
 0x249   : > { %v3913_v8 = vmul.f32 %v11286_v53, %v3877_v59  ;;  %v14078_v24 = vshll.u32 %v11643_v7, 16  ;;  %4163 = vst.msk [vmem:[#allocation3 + $0xb4] sm:$0xf] %vm4004_vm0, %v4131_v33  ;;  %v5632_v27 = vrot.slane %v14077_v10, 4  ;;  %v5633_v63 = vrot.slane %v14075_v57, 5 }
 0x24a   : > { %v4673_v38 = vsel %vm9064_vm6, %v4671_v43, %v4672_v46  ;;  %v5638_v53 = vrot.slane %v14076_v39, 4  ;;  %v3458_v59 = vpack.c.b16 %v3442_v5, %v3441_v26  ;;  %7155 = vrot.lane.b32.xlu1 %v8849_v31, %s8922_s20  ;;  %v4681_v37 = vsel %vm9064_vm6, %v4676_v9, %v4680_v42  ;;  %v2727_v46 = vpop.f32.mrf.mxu1  ;;  %v2760_v5 = vpop.f32.mrf.mxu3 }
 0x24b   : > { %v4992_v11 = vunpack.c.l.b16 %v4673_v38  ;;  %v3949_v40 = vadd.f32 %v11301_v54, %v3913_v8  ;;  %4958 = vrot.lane.b32.xlu2 %v8815_v14, %s8922_s20  ;;  %v4993_v33 = vunpack.c.l.b16 %v4681_v37  ;;  %v5634_v43 = vor.u32 %v5633_v63, %v5632_v27  ;;  %v2598_v54 = vpop.f32.mrf.mxu0 }
 0x24c   : > { %v5636_v57 = vrot.slane %v14078_v24, 5  ;;  %v14082_v39 = vshrl.u32 %v11657_v58, 16  ;;  %v3698_v26 = vsel %vm1463_vm13, %v3458_v59, %v3570_v1  ;;  %v14080_v42 = vshll.u32 %v11657_v58, 16  ;;  %v8532_v59 = vld [vmem:[%s13753_s4 + $0x14] sm:$0xf] }
 0x24d   : > { %v3981_v31 = vmax.f32 %v3949_v40, 0.0  ;;  %v5551_v10 = vld [vmem:[#allocation3 + $0xa0] sm:$0x1]  ;;  %v14081_v9 = vshrl.u32 %v11659_v29, 16  ;;  %v3730_v8 = vsel %vm1512_vm14, %v3698_v26, %v3650_v61  ;;  %v5019_v14 = vpack.c.b16 %v4993_v33, %v4992_v11 }
 0x24e   : > { %v5635_v38 = vrot.slane %v5634_v43, 4  ;;  %v5639_v27 = vor.u32 %v5638_v53, %v5636_v57  ;;  %v6783_v63 = vld [vmem:[#allocation3 + $0xa0] sm:$0x1]  ;;  %8369 = vmatmul.msk.bf16.gmra.mxu3 %vm2515_vm15, %v3730_v8  ;;  %v5642_v24 = vshll.u32 %v5551_v10, 16  ;;  %v14084_v21 = vshll.u32 %v11659_v29, 16 }
 0x24f   : > { %v4132_v37 = vpack.c.bf16 %v3981_v31, %v3981_v31  ;;  %v6851_v1 = vrot.slane %v14082_v39, 4  ;;  %5040 = vrot.lane.b32.xlu0 %v5019_v14, %s8923_s19  ;;  %v6852_v11 = vrot.slane %v14080_v42, 5  ;;  %v6857_v10 = vrot.slane %v14081_v9, 4  ;;  %v3820_v39 = vpop.f32.mrf.mxu2 }
 0x250   : > { %v5637_v61 = vsel %vm9064_vm6, %v5635_v38, %v5636_v57  ;;  %v5640_v53 = vrot.slane %v5639_v27, 4  ;;  %v5644_v40 = vrot.slane %v5642_v24, 5  ;;  %v6855_v43 = vrot.slane %v14084_v21, 5  ;;  %v4001_v38 = vld [vmem:[#allocation3 + $0x4] sm:$0x8] }
 0x251   : > { %4164 = vst.msk [vmem:[#allocation3 + $0xc8] sm:$0xf] %vm4004_vm0, %v4132_v37  ;;  %v5956_v33 = vunpack.c.l.b16 %v5637_v61  ;;  %v6861_v26 = vshll.u32 %v6783_v63, 16  ;;  %v6853_v31 = vor.u32 %v6852_v11, %v6851_v1  ;;  %v6115_v8 = vunpack.c.l.b16 %v8532_v59  ;;  %v8834_v63 = vld [vmem:[#allocation3 + $0xb0] sm:$0xff] }
 0x252   : > { %v2728_v14 = vadd.f32 %v2727_v46, %v2598_v54  ;;  %v11700_v57 = vadd.f32 %v2760_v5, %v11281_v52  ;;  %v5645_v27 = vsel %vm9064_vm6, %v5640_v53, %v5644_v40  ;;  %v6858_v42 = vor.u32 %v6857_v10, %v6855_v43  ;;  %v2730_v24 = vpop.f32.mrf.mxu1  ;;  %v4022_v10 = vld [vmem:[#allocation3 + $0x1c] sm:$0x8] }
 0x253   : > { %v6863_v9 = vrot.slane %v6861_v26, 5  ;;  %v5957_v37 = vunpack.c.l.b16 %v5645_v27  ;;  %v6854_v61 = vrot.slane %v6853_v31, 4  ;;  %v6117_v18 = vpack.c.b16 %v6115_v8, %v6115_v8  ;;  %v2601_v11 = vpop.f32.mrf.mxu0  ;;  %v2762_v8 = vpop.f32.mrf.mxu3 }
 0x254   : > { %v3878_v21 = vadd.f32 %v3820_v39, %v2728_v14  ;;  %v6859_v52 = vrot.slane %v6858_v42, 4  ;;  %v4002_v5 = vsel %vm11705_vm7, 0, %v4001_v38  ;;  %v14525_v54 = vshrl.u32 %v11056_v19, 16  ;;  %v11721_v42 = vld [vmem:[%s13751_s2] ss:$0 sm:$0xff] }
 0x255   : > { %v14526_v59 = vshrl.u32 %v11062_v4, 16  ;;  %v5983_v40 = vpack.c.b16 %v5957_v37, %v5956_v33  ;;  %v6856_v39 = vsel %vm9064_vm6, %v6854_v61, %v6855_v43  ;;  %v6154_v26 = vsel %vm6152_vm4, %v6117_v18, 0  ;;  %4003 = vst [vmem:[#allocation3 + $0x4] sm:$0x8] %v4002_v5  ;;  %v11724_v14 = vld [vmem:[#allocation3 + $0x98] sm:$0xf] }
 0x256   : > { %v4238_v1 = vrot.slane %v14525_v54, 7  ;;  %v3914_v31 = vmul.f32 %v11721_v42, %v3878_v21  ;;  %14527 = vst [vmem:[#allocation11_spill] sm:$0xff] %v11724_v14  ;;  %v6864_v38 = vsel %vm9064_vm6, %v6859_v52, %v6863_v9  ;;  %v7187_v33 = vunpack.c.l.b16 %v6856_v39  ;;  %6162 = vmatpush.bf16.msrb.mxu3 %v6154_v26  ;;  %v8844_v37 = vld [vmem:[%s13753_s4 + $0xc] sm:$0xff]  ;;  %v11739_v61 = vld [vmem:[%s13752_s3] ss:$0 sm:$0xff] }
 0x257   : > { %v4247_v53 = vrot.slane %v14526_v59, 7  ;;  %v14528_v43 = vshll.u32 %v11056_v19, 16  ;;  %6004 = vrot.lane.b32.xlu1 %v5983_v40, %s8923_s19  ;;  %v7188_v21 = vunpack.c.l.b16 %v6864_v38  ;;  %5926 = vrot.lane.b32.xlu0 %v8834_v63, %s8922_s20  ;;  %v14529_v19 = vshll.u32 %v11062_v4, 16  ;;  %v11747_v54 = vld [vmem:[#allocation3 + $0x9c] sm:$0xf] }
 0x258   : > { %v4243_v18 = vrot.slane %v4238_v1, 4  ;;  %v3950_v9 = vadd.f32 %v11739_v61, %v3914_v31  ;;  %v4023_v5 = vsel %vm11705_vm7, 0, %v4022_v10  ;;  %14530 = vst [vmem:[#allocation12_spill] sm:$0xff] %v11747_v54  ;;  %v14532_v40 = vshrl.u32 %v11115_v32, 16  ;;  %v4588_v38 = vld [vmem:[#allocation3 + $0xa0] sm:$0x1] }
 0x259   : > { %v11730_v27 = vor.u32 %v14528_v43, %v4238_v1  ;;  %v4250_v52 = vor.u32 %v14529_v19, %v4247_v53  ;;  %4024 = vst [vmem:[#allocation3 + $0x1c] sm:$0x8] %v4023_v5  ;;  %v14531_v1 = vshrl.u32 %v11106_v16, 16  ;;  %v11754_v26 = vadd.f32 %v2762_v8, %v11341_v51 }
 0x25a   : > { %v5211_v39 = vrot.slane %v14532_v40, 7  ;;  %v14085_v63 = vshrl.u32 %v11724_v14, 16  ;;  %v7215_v31 = vpack.c.b16 %v7188_v21, %v7187_v33  ;;  %v3982_v4 = vmax.f32 %v3950_v9, 0.0  ;;  %6163 = vmatpush.bf16.msrb.mxu3 %v8844_v37  ;;  %v8850_v21 = vld [vmem:[#allocation3 + $0xb0] sm:$0xff]  ;;  %v4088_v40 = vld [vmem:[#allocation3 + $0xb8] sm:$0x1] }
 0x25b   : > { %v5202_v59 = vrot.slane %v14531_v1, 7  ;;  %v11759_v53 = vsel %vm9551_vm12, %v4243_v18, %v4250_v52  ;;  %v14087_v10 = vshll.u32 %v11724_v14, 16  ;;  %v14533_v19 = vshll.u32 %v11106_v16, 16 }
 0x25c   : > { %v4823_v43 = vunpack.c.l.b16 %v11759_v53  ;;  %v14534_v51 = vshll.u32 %v11115_v32, 16  ;;  %7235 = vrot.lane.b32.xlu2 %v7215_v31, %s8923_s19  ;;  %v4133_v33 = vpack.c.bf16 %v3982_v4, %v3982_v4  ;;  %v14093_v18 = vshrl.u32 %v11747_v54, 16  ;;  %v4182_v16 = vld [vmem:[#allocation3 + $0x4] sm:$0x8]  ;;  %v11780_v31 = vld [vmem:[#allocation3 + $0xb0] sm:$0xf]  ;;  %v2732_v4 = vpop.f32.mrf.mxu1 }
 0x25d   : > { %v11765_v5 = vor.u32 %v14533_v19, %v5202_v59  ;;  %v5207_v1 = vrot.slane %v5202_v59, 4  ;;  %v14090_v9 = vshll.u32 %v11747_v54, 16  ;;  %v4682_v52 = vrot.slane %v14085_v63, 4  ;;  %14535 = vst [vmem:[#allocation15_spill] sm:$0xff] %v11780_v31 }
 0x25e   : > { %v5214_v8 = vor.u32 %v14534_v51, %v5211_v39  ;;  %v4683_v32 = vrot.slane %v14087_v10, 5  ;;  %v4692_v37 = vshll.u32 %v4588_v38, 16  ;;  %v2731_v39 = vadd.f32 %v2730_v24, %v2601_v11  ;;  %4165 = vst.msk [vmem:[#allocation3 + $0xcc] sm:$0xf] %vm4004_vm0, %v4133_v33  ;;  %v3823_v51 = vpop.f32.mrf.mxu2  ;;  %v11790_v11 = vld [vmem:[#allocation3 + $0xb4] sm:$0xf]  ;;  %v2603_v38 = vpop.f32.mrf.mxu0 }
 0x25f   : > { %v4231_v53 = vshrl.u32 %v4182_v16, 16  ;;  %v4686_v63 = vrot.slane %v14090_v9, 5  ;;  %v4089_v24 = vsel %vm11068_vm5, 0, %v4088_v40  ;;  %14536 = vst [vmem:[#allocation13_spill] sm:$0xff] %v11790_v11  ;;  %7157 = vrot.lane.b32.xlu1 %v8850_v21, %s8922_s20  ;;  %v14095_v9 = vshrl.u32 %v11780_v31, 16 }
 0x260   : > { %v11776_v59 = vsel %vm9551_vm12, %v5207_v1, %v5214_v8  ;;  %v4688_v1 = vrot.slane %v14093_v18, 4  ;;  %v4684_v8 = vor.u32 %v4683_v32, %v4682_v52  ;;  %v4694_v15 = vrot.slane %v4692_v37, 5  ;;  %v5146_v16 = vld [vmem:[#allocation3 + $0x1c] sm:$0x8]  ;;  %4090 = vst [vmem:[#allocation3 + $0xb8] sm:$0x1] %v4089_v24 }
 0x261   : > { %v5787_v19 = vunpack.c.l.b16 %v11776_v59  ;;  %v3879_v10 = vadd.f32 %v3823_v51, %v2731_v39  ;;  %v8370_v33 = vrot.slane %v4231_v53, 11  ;;  %v5915_v59 = vpop.permute.xlu0 %5914  ;;  %v11794_v54 = vadd.f32 %v2732_v4, %v2603_v38  ;;  %v8816_v39 = vld [vmem:[#allocation3 + $0x80] sm:$0xff]  ;;  %v4951_v53 = vpop.permute.xlu2 %4950  ;;  %v8862_v38 = vld [vmem:[#allocation2 + $0x20] sm:$0xff] }
 0x262   : > { %v4689_v14 = vor.u32 %v4688_v1, %v4686_v63  ;;  %v5195_v52 = vshrl.u32 %v5146_v16, 16  ;;  %v4685_v32 = vrot.slane %v4684_v8, 4  ;;  %v14094_v40 = vshll.u32 %v11780_v31, 16  ;;  %8740 = vmatmul.msk.bf16.vlgmr.msrb.gmra.mxu2 %vm1463_vm13, %v8862_v38 }
 0x263   : > { %v3915_v37 = vmul.f32 %v11721_v42, %v3879_v10  ;;  %v4242_v21 = vsel %vm9551_vm12, %v8370_v33, %v11730_v27  ;;  %v14099_v1 = vshrl.u32 %v11790_v11, 16  ;;  %v14098_v24 = vshll.u32 %v11790_v11, 16 }
 0x264   : > { %v4690_v51 = vrot.slane %v4689_v14, 4  ;;  %v4822_v18 = vunpack.c.l.b16 %v4242_v21  ;;  %v8450_v4 = vrot.slane %v5195_v52, 11  ;;  %v4687_v8 = vsel %vm9064_vm6, %v4685_v32, %v4686_v63  ;;  %4960 = vrot.lane.b32.xlu2 %v8816_v39, %s8922_s20  ;;  %v11813_v21 = vld [vmem:[#allocation3 + $0xb0] sm:$0xf] }
 0x265   : > { %v3951_v10 = vadd.f32 %v11739_v61, %v3915_v37  ;;  %v4994_v27 = vunpack.c.l.b16 %v4687_v8  ;;  %v5646_v14 = vrot.slane %v14095_v9, 4  ;;  %v5647_v33 = vrot.slane %v14094_v40, 5  ;;  %14537 = vst [vmem:[#allocation8_spill] sm:$0xff] %v11813_v21  ;;  %v11823_v40 = vld [vmem:[#allocation3 + $0xb4] sm:$0xf] }
 0x266   : > { %v4695_v16 = vsel %vm9064_vm6, %v4690_v51, %v4694_v15  ;;  %v4854_v52 = vpack.c.b16 %v4823_v43, %v4822_v18  ;;  %v5206_v63 = vsel %vm9551_vm12, %v8450_v4, %v11765_v5  ;;  %v5650_v51 = vrot.slane %v14098_v24, 5  ;;  %14538 = vst [vmem:[#allocation9_spill] sm:$0xff] %v11823_v40  ;;  %v4185_v24 = vld [vmem:[#allocation3 + $0x1c] sm:$0x8] }
 0x267   : > { %v4995_v32 = vunpack.c.l.b16 %v4695_v16  ;;  %v3983_v37 = vmax.f32 %v3951_v10, 0.0  ;;  %v5786_v39 = vunpack.c.l.b16 %v5206_v63  ;;  %v5648_v15 = vor.u32 %v5647_v33, %v5646_v14  ;;  %v5552_v31 = vld [vmem:[#allocation3 + $0xb8] sm:$0x1] }
 0x268   : > { %v5652_v8 = vrot.slane %v14099_v1, 4  ;;  %v5064_v43 = vsel %vm1512_vm14, %v4854_v52, %v4951_v53  ;;  %v14102_v5 = vshrl.u32 %v11813_v21, 16  ;;  %v5656_v16 = vshll.u32 %v5552_v31, 16  ;;  %v6784_v14 = vld [vmem:[#allocation3 + $0xb8] sm:$0x1] }
 0x269   : > { %v5020_v18 = vpack.c.b16 %v4995_v32, %v4994_v27  ;;  %v4134_v9 = vpack.c.bf16 %v3983_v37, %v3983_v37  ;;  %v5818_v4 = vpack.c.b16 %v5787_v19, %v5786_v39  ;;  %v5649_v10 = vrot.slane %v5648_v15, 4  ;;  %v5031_v37 = vpop.permute.xlu0 %5030  ;;  %v11843_v1 = vpop.permute.xlu2 %7227 }
 0x26a   : > { %v5653_v38 = vor.u32 %v5652_v8, %v5650_v51  ;;  %v14101_v33 = vshll.u32 %v11813_v21, 16  ;;  %v14103_v63 = vshrl.u32 %v11823_v40, 16  ;;  %v14100_v53 = vshll.u32 %v11823_v40, 16 }
 0x26b   : > { %5042 = vrot.lane.b32.xlu0 %v5020_v18, %s8923_s19  ;;  %4166 = vst.msk [vmem:[#allocation3 + $0xe0] sm:$0xf] %vm4004_vm0, %v4134_v9  ;;  %v6865_v27 = vrot.slane %v14102_v5, 4  ;;  %v6028_v52 = vsel %vm1512_vm14, %v5818_v4, %v5915_v59  ;;  %v5651_v19 = vsel %vm9064_vm6, %v5649_v10, %v5650_v51  ;;  %v5658_v32 = vrot.slane %v5656_v16, 5  ;;  %v5995_v18 = vpop.permute.xlu1 %5994  ;;  %v2765_v4 = vpop.f32.mrf.mxu3  ;;  %v4025_v5 = vld [vmem:[#allocation3 + $0x34] sm:$0x8] }
 0x26c   : > { %v5654_v31 = vrot.slane %v5653_v38, 4  ;;  %v5958_v39 = vunpack.c.l.b16 %v5651_v19  ;;  %v6866_v9 = vrot.slane %v14101_v33, 5  ;;  %v6869_v15 = vrot.slane %v14100_v53, 5  ;;  %v3825_v53 = vpop.f32.mrf.mxu2  ;;  %v8835_v33 = vld [vmem:[#allocation3 + $0xc8] sm:$0xff] }
 0x26d   : > { %v6871_v8 = vrot.slane %v14103_v63, 4  ;;  %v6875_v51 = vshll.u32 %v6784_v14, 16  ;;  %vm6119_vm9 = vcmask 195584   ;;  %v5112_v19 = vsel %vm5110_vm8, %v5064_v43, %v5031_v37 }
 0x26e   : > { %v5659_v59 = vsel %vm9064_vm6, %v5654_v31, %v5658_v32  ;;  %v6867_v38 = vor.u32 %v6866_v9, %v6865_v27  ;;  %8557 = vmatmul.msk.bf16.vlgmr.msrb.gmra.mxu0 %vm6119_vm9, %v5112_v19  ;;  %v6075_v11 = vsel %vm5110_vm8, %v6028_v52, %v5995_v18  ;;  %v3880_v40 = vadd.f32 %v3825_v53, %v11794_v54 }
 0x26f   : > { %v5959_v10 = vunpack.c.l.b16 %v5659_v59  ;;  %v6872_v16 = vor.u32 %v6871_v8, %v6869_v15  ;;  %v6877_v63 = vrot.slane %v6875_v51, 5  ;;  %v4253_v31 = vshrl.u32 %v4185_v24, 16  ;;  %8537 = vmatmul.msk.bf16.vlgmr.msrb.gmra.mxu3 %vm6119_vm9, %v6075_v11 }
 0x270   : > { %v6868_v32 = vrot.slane %v6867_v38, 4  ;;  %v14539_v59 = vshrl.u32 %v11168_v0, 16  ;;  %v3916_v43 = vmul.f32 %v11721_v42, %v3880_v40  ;;  %v14540_v9 = vshrl.u32 %v11174_v45, 16 }
 0x271   : > { %v5984_v14 = vpack.c.b16 %v5959_v10, %v5958_v39  ;;  %v6873_v21 = vrot.slane %v6872_v16, 4  ;;  %v8371_v37 = vrot.slane %v4253_v31, 11  ;;  %v4026_v52 = vsel %vm11705_vm7, 0, %v4025_v5 }
 0x272   : > { %v4260_v27 = vrot.slane %v14539_v59, 7  ;;  %v4269_v8 = vrot.slane %v14540_v9, 7  ;;  %v6870_v54 = vsel %vm9064_vm6, %v6868_v32, %v6869_v15  ;;  %v14541_v53 = vshll.u32 %v11168_v0, 16  ;;  %4027 = vst [vmem:[#allocation3 + $0x34] sm:$0x8] %v4026_v52  ;;  %v4953_v52 = vpop.permute.xlu2 %4952 }
 0x273   : > { %6006 = vrot.lane.b32.xlu1 %v5984_v14, %s8923_s19  ;;  %v6878_v24 = vsel %vm9064_vm6, %v6873_v21, %v6877_v63  ;;  %5928 = vrot.lane.b32.xlu0 %v8835_v33, %s8922_s20  ;;  %v7189_v40 = vunpack.c.l.b16 %v6870_v54  ;;  %v3952_v51 = vadd.f32 %v11739_v61, %v3916_v43  ;;  %v14542_v5 = vshll.u32 %v11174_v45, 16  ;;  %v11879_v33 = vld [vmem:[#allocation3 + $0xb0] sm:$0xf]  ;;  %v11883_v32 = vld [vmem:[#allocation3 + $0xb4] sm:$0xf] }
 0x274   : > { %v4263_v11 = vor.u32 %v14541_v53, %v4260_v27  ;;  %v4265_v39 = vrot.slane %v4260_v27, 4  ;;  %v7190_v18 = vunpack.c.l.b16 %v6878_v24  ;;  %v14543_v38 = vshrl.u32 %v11225_v56, 16 }
 0x275   : > { %v4272_v10 = vor.u32 %v14542_v5, %v4269_v8  ;;  %v14544_v0 = vshrl.u32 %v11223_v12, 16  ;;  %v11877_v16 = vadd.f32 %v2765_v4, %v11386_v20  ;;  %v3984_v31 = vmax.f32 %v3952_v51, 0.0 }
 0x276   : > { %v4264_v15 = vsel %vm9551_vm12, %v8371_v37, %v4263_v11  ;;  %v5233_v21 = vrot.slane %v14543_v38, 7  ;;  %v7216_v19 = vpack.c.b16 %v7190_v18, %v7189_v40  ;;  %v14545_v27 = vshll.u32 %v11225_v56, 16  ;;  %v11887_v37 = vpop.permute.xlu0 %5916  ;;  %v2767_v56 = vpop.f32.mrf.mxu3  ;;  %v8851_v18 = vld [vmem:[#allocation3 + $0xc8] sm:$0xff] }
 0x277   : > { %v5224_v63 = vrot.slane %v14544_v0, 7  ;;  %v4273_v45 = vsel %vm9551_vm12, %v4265_v39, %v4272_v10  ;;  %v4824_v14 = vunpack.c.l.b16 %v4264_v15  ;;  %v14546_v9 = vshll.u32 %v11223_v12, 16  ;;  %v4091_v10 = vld [vmem:[#allocation3 + $0xd0] sm:$0x1] }
 0x278   : > { %v4825_v59 = vunpack.c.l.b16 %v4273_v45  ;;  %v5236_v43 = vor.u32 %v14545_v27, %v5233_v21  ;;  %7237 = vrot.lane.b32.xlu2 %v7216_v19, %s8923_s19  ;;  %v4135_v8 = vpack.c.bf16 %v3984_v31, %v3984_v31  ;;  %v14547_v54 = vshrl.u32 %v11209_v60, 16  ;;  %v4589_v31 = vld [vmem:[#allocation3 + $0xb8] sm:$0x1] }
 0x279   : > { %v5227_v20 = vor.u32 %v14546_v9, %v5224_v63  ;;  %v5229_v4 = vrot.slane %v5224_v63, 4  ;;  %v14548_v53 = vshrl.u32 %v11203_v36, 16  ;;  %v14119_v39 = vshrl.u32 %v11879_v33, 16 }
 0x27a   : > { %v6444_v24 = vrot.slane %v14547_v54, 7  ;;  %v4855_v40 = vpack.c.b16 %v4825_v59, %v4824_v14  ;;  %v14111_v51 = vshll.u32 %v11879_v33, 16  ;;  %v14118_v5 = vshrl.u32 %v11883_v32, 16  ;;  %4167 = vst.msk [vmem:[#allocation3 + $0xe4] sm:$0xf] %vm4004_vm0, %v4135_v8  ;;  %v7148_v54 = vpop.permute.xlu1 %7147 }
 0x27b   : > { %v6435_v11 = vrot.slane %v14548_v53, 7  ;;  %v5237_v12 = vsel %vm9551_vm12, %v5229_v4, %v5236_v43  ;;  %v14549_v38 = vshll.u32 %v11209_v60, 16  ;;  %v14550_v0 = vshll.u32 %v11203_v36, 16  ;;  %7159 = vrot.lane.b32.xlu1 %v8851_v18, %s8922_s20  ;;  %v5149_v14 = vld [vmem:[#allocation3 + $0x34] sm:$0x8] }
 0x27c   : > { %v5789_v15 = vunpack.c.l.b16 %v5237_v12  ;;  %v11907_v45 = vsel %vm1512_vm14, %v4855_v40, %v4953_v52  ;;  %v6379_v59 = vld [vmem:[#allocation3 + $0x34] sm:$0x8]  ;;  %v14110_v27 = vshll.u32 %v11883_v32, 16  ;;  %v4696_v43 = vrot.slane %v14119_v39, 4  ;;  %v11920_v52 = vld [vmem:[#allocation3 + $0xc8] sm:$0xf] }
 0x27d   : > { %v6447_v21 = vor.u32 %v14549_v38, %v6444_v24  ;;  %v6438_v63 = vor.u32 %v14550_v0, %v6435_v11  ;;  %v6440_v19 = vrot.slane %v6435_v11, 4  ;;  %v11914_v60 = vadd.f32 %v2767_v56, %v11428_v25  ;;  %v11926_v56 = vld [vmem:[#allocation3 + $0xcc] sm:$0xf]  ;;  %v8817_v40 = vld [vmem:[#allocation3 + $0x98] sm:$0xff] }
 0x27e   : > { %v5217_v9 = vshrl.u32 %v5149_v14, 16  ;;  %v6428_v36 = vshrl.u32 %v6379_v59, 16  ;;  %v4697_v8 = vrot.slane %v14111_v51, 5  ;;  %v4700_v53 = vrot.slane %v14110_v27, 5  ;;  %v5033_v27 = vpop.permute.xlu0 %5032 }
 0x27f   : > { %v6448_v4 = vsel %vm9551_vm12, %v6440_v19, %v6447_v21  ;;  %v4702_v11 = vrot.slane %v14118_v5, 4  ;;  %v4706_v25 = vshll.u32 %v4589_v31, 16  ;;  %v4092_v21 = vsel %vm11068_vm5, 0, %v4091_v10  ;;  %v3828_v5 = vpop.f32.mrf.mxu2 }
 0x280   : > { %v7020_v24 = vunpack.c.l.b16 %v6448_v4  ;;  %v8451_v18 = vrot.slane %v5217_v9, 11  ;;  %v8573_v12 = vrot.slane %v6428_v36, 11  ;;  %v4698_v38 = vor.u32 %v4697_v8, %v4696_v43  ;;  %4093 = vst [vmem:[#allocation3 + $0xd0] sm:$0x1] %v4092_v21  ;;  %v8863_v4 = vld [vmem:[#allocation2 + $0x38] sm:$0xff]  ;;  %4962 = vrot.lane.b32.xlu2 %v8817_v40, %s8922_s20 }
 0x281   : > { %v4703_v0 = vor.u32 %v4702_v11, %v4700_v53  ;;  %v4708_v19 = vrot.slane %v4706_v25, 5  ;;  %v14114_v14 = vshrl.u32 %v11920_v52, 16  ;;  %v14112_v59 = vshll.u32 %v11920_v52, 16  ;;  %v11939_v21 = vld [vmem:[#allocation3 + $0xc8] sm:$0xf]  ;;  %8741 = vmatmul.msk.bf16.gmra.mxu2 %vm1463_vm13, %v8863_v4 }
 0x282   : > { %v5228_v31 = vsel %vm9551_vm12, %v8451_v18, %v5227_v20  ;;  %v6439_v9 = vsel %vm9551_vm12, %v8573_v12, %v6438_v63  ;;  %v4699_v43 = vrot.slane %v4698_v38, 4  ;;  %v14113_v36 = vshrl.u32 %v11926_v56, 16  ;;  %14551 = vst [vmem:[#allocation19_spill] sm:$0xff] %v11939_v21  ;;  %v11950_v12 = vld [vmem:[#allocation3 + $0xcc] sm:$0xf] }
 0x283   : > { %v5788_v10 = vunpack.c.l.b16 %v5228_v31  ;;  %v7019_v8 = vunpack.c.l.b16 %v6439_v9  ;;  %v4704_v11 = vrot.slane %v4703_v0, 4  ;;  %v14115_v25 = vshll.u32 %v11926_v56, 16 }
 0x284   : > { %v4701_v40 = vsel %vm9064_vm6, %v4699_v43, %v4700_v53  ;;  %v5660_v20 = vrot.slane %v14114_v14, 4  ;;  %v5661_v63 = vrot.slane %v14112_v59, 5  ;;  %v5666_v18 = vrot.slane %v14113_v36, 4 }
 0x285   : > { %v5819_v38 = vpack.c.b16 %v5789_v15, %v5788_v10  ;;  %v7051_v0 = vpack.c.b16 %v7020_v24, %v7019_v8  ;;  %v4709_v31 = vsel %vm9064_vm6, %v4704_v11, %v4708_v19  ;;  %v4996_v4 = vunpack.c.l.b16 %v4701_v40 }
 0x286   : > { %v4997_v9 = vunpack.c.l.b16 %v4709_v31  ;;  %v5662_v51 = vor.u32 %v5661_v63, %v5660_v20  ;;  %v5664_v53 = vrot.slane %v14115_v25, 5  ;;  %v14116_v43 = vshrl.u32 %v11939_v21, 16  ;;  %v2606_v20 = vpop.f32.mrf.mxu0  ;;  %v3843_v31 = vpop.f32.mrf.mxu3 }
 0x287   : > { %v6031_v59 = vsel %vm1512_vm14, %v5819_v38, %v11887_v37  ;;  %v7261_v36 = vsel %vm1512_vm14, %v7051_v0, %v7148_v54  ;;  %v14117_v14 = vshll.u32 %v11939_v21, 16  ;;  %v14120_v15 = vshrl.u32 %v11950_v12, 16  ;;  %v5553_v10 = vld [vmem:[#allocation3 + $0xd0] sm:$0x1]  ;;  %v5997_v0 = vpop.permute.xlu1 %5996 }
 0x288   : > { %v7308_v24 = vsel %vm5110_vm8, %v7261_v36, %v11843_v1  ;;  %v5021_v19 = vpack.c.b16 %v4997_v9, %v4996_v4  ;;  %v5663_v8 = vrot.slane %v5662_v51, 4  ;;  %v5667_v11 = vor.u32 %v5666_v18, %v5664_v53  ;;  %v6785_v40 = vld [vmem:[#allocation3 + $0xd0] sm:$0x1]  ;;  %v2735_v1 = vpop.f32.mrf.mxu1  ;;  %v4188_v9 = vld [vmem:[#allocation3 + $0x34] sm:$0x8] }
 0x289   : > { %8660 = vmatmul.msk.bf16.vlgmr.msrb.gmra.mxu1 %vm6119_vm9, %v7308_v24  ;;  %v5670_v63 = vshll.u32 %v5553_v10, 16  ;;  %v14155_v37 = vshll.u32 %v11950_v12, 16  ;;  %v6879_v54 = vrot.slane %v14116_v43, 4  ;;  %v6880_v38 = vrot.slane %v14117_v14, 5  ;;  %v11975_v24 = vpop.permute.xlu2 %7229 }
 0x28a   : > { %5044 = vrot.lane.b32.xlu0 %v5021_v19, %s8923_s19  ;;  %v5665_v51 = vsel %vm9064_vm6, %v5663_v8, %v5664_v53  ;;  %v5668_v36 = vrot.slane %v5667_v11, 4  ;;  %v6885_v18 = vrot.slane %v14120_v15, 4  ;;  %v6889_v4 = vshll.u32 %v6785_v40, 16  ;;  %v4028_v11 = vld [vmem:[#allocation3 + $0x4c] sm:$0x8] }
 0x28b   : > { %v5672_v10 = vrot.slane %v5670_v63, 5  ;;  %v5960_v25 = vunpack.c.l.b16 %v5665_v51  ;;  %v6881_v43 = vor.u32 %v6880_v38, %v6879_v54  ;;  %v6883_v14 = vrot.slane %v14155_v37, 5  ;;  %v11986_v54 = vpop.permute.xlu0 %5918 }
 0x28c   : > { %v6891_v19 = vrot.slane %v6889_v4, 5  ;;  %v5114_v39 = vsel %vm5110_vm8, %v11907_v45, %v5033_v27  ;;  %v2736_v53 = vadd.f32 %v2735_v1, %v2606_v20  ;;  %v6077_v8 = vsel %vm5110_vm8, %v6031_v59, %v5997_v0  ;;  %v8836_v0 = vld [vmem:[#allocation3 + $0xe0] sm:$0xff] }
 0x28d   : > { %v5673_v40 = vsel %vm9064_vm6, %v5668_v36, %v5672_v10  ;;  %v6882_v15 = vrot.slane %v6881_v43, 4  ;;  %v6886_v21 = vor.u32 %v6885_v18, %v6883_v14  ;;  %8558 = vmatmul.msk.bf16.gmra.mxu0 %vm6119_vm9, %v5114_v39  ;;  %v4275_v63 = vshrl.u32 %v4188_v9, 16  ;;  %8538 = vmatmul.msk.bf16.gmra.mxu3 %vm6119_vm9, %v6077_v8 }
 0x28e   : > { %v5961_v38 = vunpack.c.l.b16 %v5673_v40  ;;  %v3881_v51 = vadd.f32 %v3828_v5, %v2736_v53  ;;  %v14552_v45 = vshrl.u32 %v11313_v48, 16  ;;  %v14553_v59 = vshrl.u32 %v11291_v22, 16 }
 0x28f   : > { %v6884_v43 = vsel %vm9064_vm6, %v6882_v15, %v6883_v14  ;;  %v6887_v1 = vrot.slane %v6886_v21, 4  ;;  %v8372_v36 = vrot.slane %v4275_v63, 11  ;;  %v4029_v39 = vsel %vm11705_vm7, 0, %v4028_v11 }
 0x290   : > { %v4291_v27 = vrot.slane %v14552_v45, 7  ;;  %v4282_v20 = vrot.slane %v14553_v59, 7  ;;  %v5985_v18 = vpack.c.b16 %v5961_v38, %v5960_v25  ;;  %v7191_v4 = vunpack.c.l.b16 %v6884_v43  ;;  %4030 = vst [vmem:[#allocation3 + $0x4c] sm:$0x8] %v4029_v39 }
 0x291   : > { %v3917_v9 = vmul.f32 %v11721_v42, %v3881_v51  ;;  %v14554_v5 = vshll.u32 %v11313_v48, 16  ;;  %v6892_v53 = vsel %vm9064_vm6, %v6887_v1, %v6891_v19  ;;  %v14555_v8 = vshll.u32 %v11291_v22, 16  ;;  %v2608_v19 = vpop.f32.mrf.mxu0 }
 0x292   : > { %v4287_v14 = vrot.slane %v4282_v20, 4  ;;  %v14556_v21 = vshrl.u32 %v11367_v3, 16  ;;  %6008 = vrot.lane.b32.xlu1 %v5985_v18, %s8923_s19  ;;  %v7192_v25 = vunpack.c.l.b16 %v6892_v53  ;;  %v14557_v63 = vshrl.u32 %v11376_v13, 16  ;;  %5930 = vrot.lane.b32.xlu0 %v8836_v0, %s8922_s20 }
 0x293   : > { %v4294_v10 = vor.u32 %v14554_v5, %v4291_v27  ;;  %v4285_v40 = vor.u32 %v14555_v8, %v4282_v20  ;;  %v3953_v11 = vadd.f32 %v11739_v61, %v3917_v9  ;;  %v3887_v38 = vadd.f32 %v3843_v31, %v11495_v28  ;;  %v3845_v20 = vpop.f32.mrf.mxu3  ;;  %v2737_v9 = vpop.f32.mrf.mxu1 }
 0x294   : > { %v5246_v15 = vrot.slane %v14556_v21, 7  ;;  %v5255_v48 = vrot.slane %v14557_v63, 7  ;;  %v14558_v45 = vshll.u32 %v11367_v3, 16  ;;  %v7217_v43 = vpack.c.b16 %v7192_v25, %v7191_v4  ;;  %v4955_v28 = vpop.permute.xlu2 %4954  ;;  %v12022_v8 = vpop.permute.xlu1 %7149 }
 0x295   : > { %v4286_v22 = vsel %vm9551_vm12, %v8372_v36, %v4285_v40  ;;  %v4295_v51 = vsel %vm9551_vm12, %v4287_v14, %v4294_v10  ;;  %v3985_v1 = vmax.f32 %v3953_v11, 0.0  ;;  %v14559_v31 = vshll.u32 %v11376_v13, 16  ;;  %v3830_v3 = vpop.f32.mrf.mxu2  ;;  %v8852_v14 = vld [vmem:[#allocation3 + $0xe0] sm:$0xff] }
 0x296   : > { %v5249_v27 = vor.u32 %v14558_v45, %v5246_v15  ;;  %v5251_v59 = vrot.slane %v5246_v15, 4  ;;  %v4826_v39 = vunpack.c.l.b16 %v4286_v22  ;;  %v4827_v18 = vunpack.c.l.b16 %v4295_v51  ;;  %7239 = vrot.lane.b32.xlu2 %v7217_v43, %s8923_s19  ;;  %v5035_v51 = vpop.permute.xlu0 %5034 }
 0x297   : > { %v5258_v0 = vor.u32 %v14559_v31, %v5255_v48  ;;  %v3923_v5 = vmul.f32 %v11721_v42, %v3887_v38  ;;  %v2738_v36 = vadd.f32 %v2737_v9, %v2608_v19  ;;  %v14560_v53 = vshrl.u32 %v11350_v34, 16  ;;  %v5152_v25 = vld [vmem:[#allocation3 + $0x4c] sm:$0x8] }
 0x298   : > { %v4136_v4 = vpack.c.bf16 %v3985_v1, %v3985_v1  ;;  %v4856_v40 = vpack.c.b16 %v4827_v18, %v4826_v39  ;;  %v14561_v21 = vshrl.u32 %v11360_v30, 16  ;;  %v3888_v13 = vadd.f32 %v3845_v20, %v11548_v47  ;;  %v6382_v38 = vld [vmem:[#allocation3 + $0x4c] sm:$0x8]  ;;  %v12035_v47 = vld [vmem:[#allocation3 + $0xc8] sm:$0xf] }
 0x299   : > { %v6457_v10 = vrot.slane %v14560_v53, 7  ;;  %v5259_v11 = vsel %vm9551_vm12, %v5251_v59, %v5258_v0  ;;  %v3959_v63 = vadd.f32 %v11739_v61, %v3923_v5  ;;  %v3882_v48 = vadd.f32 %v3830_v3, %v2738_v36 }
 0x29a   : > { %v6466_v15 = vrot.slane %v14561_v21, 7  ;;  %v14562_v19 = vshll.u32 %v11350_v34, 16  ;;  %4168 = vst.msk [vmem:[#allocation3 + $0xf8] sm:$0xf] %vm4004_vm0, %v4136_v4  ;;  %v5070_v45 = vsel %vm1512_vm14, %v4856_v40, %v4955_v28  ;;  %v5239_v43 = vshrl.u32 %v5152_v25, 16  ;;  %7161 = vrot.lane.b32.xlu1 %v8852_v14, %s8922_s20 }
 0x29b   : > { %v5791_v1 = vunpack.c.l.b16 %v5259_v11  ;;  %v6450_v39 = vshrl.u32 %v6382_v38, 16  ;;  %v3991_v20 = vmax.f32 %v3959_v63, 0.0  ;;  %v3918_v59 = vmul.f32 %v11721_v42, %v3882_v48  ;;  %v12046_v4 = vld [vmem:[#allocation3 + $0xcc] sm:$0xf]  ;;  %v4590_v48 = vld [vmem:[#allocation3 + $0xd0] sm:$0x1] }
 0x29c   : > { %v6460_v22 = vor.u32 %v14562_v19, %v6457_v10  ;;  %v6462_v18 = vrot.slane %v6457_v10, 4  ;;  %v14563_v9 = vshll.u32 %v11360_v30, 16  ;;  %v8452_v0 = vrot.slane %v5239_v43, 11  ;;  %v8818_v30 = vld [vmem:[#allocation3 + $0xb0] sm:$0xff] }
 0x29d   : > { %v8574_v34 = vrot.slane %v6450_v39, 11  ;;  %v5116_v5 = vsel %vm5110_vm8, %v5070_v45, %v5035_v51  ;;  %v3924_v28 = vmul.f32 %v11721_v42, %v3888_v13  ;;  %v4142_v36 = vpack.c.bf16 %v3991_v20, %v3991_v20  ;;  %v4191_v51 = vld [vmem:[#allocation3 + $0x4c] sm:$0x8]  ;;  %v12062_v20 = vpop.permute.xlu2 %7231 }
 0x29e   : > { %v6469_v31 = vor.u32 %v14563_v9, %v6466_v15  ;;  %v3954_v53 = vadd.f32 %v11739_v61, %v3918_v59  ;;  %v14154_v10 = vshrl.u32 %v12035_v47, 16  ;;  %v5250_v40 = vsel %vm9551_vm12, %v8452_v0, %v5249_v27  ;;  %8559 = vmatmul.msk.bf16.gmra.mxu0 %vm6119_vm9, %v5116_v5  ;;  %4964 = vrot.lane.b32.xlu2 %v8818_v30, %s8922_s20  ;;  %v4094_v5 = vld [vmem:[#allocation3 + $0xe8] sm:$0x1]  ;;  %v12075_v30 = vld [vmem:[#allocation3 + $0xe0] sm:$0xf] }
 0x29f   : > { %v6461_v14 = vsel %vm9551_vm12, %v8574_v34, %v6460_v22  ;;  %v3960_v15 = vadd.f32 %v11739_v61, %v3924_v28  ;;  %v5790_v13 = vunpack.c.l.b16 %v5250_v40  ;;  %4174 = vst.msk [vmem:[#allocation3 + $0x140] sm:$0xf] %vm4004_vm0, %v4142_v36  ;;  %v14132_v63 = vshll.u32 %v12035_v47, 16 }
 0x2a0   : > { %v6470_v3 = vsel %vm9551_vm12, %v6462_v18, %v6469_v31  ;;  %v3986_v25 = vmax.f32 %v3954_v53, 0.0  ;;  %v7021_v11 = vunpack.c.l.b16 %v6461_v14  ;;  %v14133_v27 = vshrl.u32 %v12046_v4, 16  ;;  %v5999_v18 = vpop.permute.xlu1 %5998 }
 0x2a1   : > { %v7022_v21 = vunpack.c.l.b16 %v6470_v3  ;;  %v3992_v38 = vmax.f32 %v3960_v15, 0.0  ;;  %v14131_v19 = vshll.u32 %v12046_v4, 16  ;;  %v4710_v22 = vrot.slane %v14154_v10, 4  ;;  %v2611_v3 = vpop.f32.mrf.mxu0 }
 0x2a2   : > { %v5820_v45 = vpack.c.b16 %v5791_v1, %v5790_v13  ;;  %v4137_v43 = vpack.c.bf16 %v3986_v25, %v3986_v25  ;;  %v4711_v59 = vrot.slane %v14132_v63, 5  ;;  %v4716_v0 = vrot.slane %v14133_v27, 4  ;;  %v2740_v13 = vpop.f32.mrf.mxu1  ;;  %v14587_v63 = vld [vmem:[#allocation14_spill] sm:$0xff] }
 0x2a3   : > { %v7052_v39 = vpack.c.b16 %v7022_v21, %v7021_v11  ;;  %v4143_v9 = vpack.c.bf16 %v3992_v38, %v3992_v38  ;;  %v4714_v31 = vrot.slane %v14131_v19, 5  ;;  %v4720_v34 = vshll.u32 %v4590_v48, 16  ;;  %v4034_v19 = vld [vmem:[#allocation3 + $0x7c] sm:$0x8] }
 0x2a4   : > { %v6034_v1 = vsel %vm1512_vm14, %v5820_v45, %v11986_v54  ;;  %4169 = vst.msk [vmem:[#allocation3 + $0xfc] sm:$0xf] %vm4004_vm0, %v4137_v43  ;;  %v4712_v36 = vor.u32 %v4711_v59, %v4710_v22  ;;  %v4297_v53 = vshrl.u32 %v4191_v51, 16  ;;  %v8864_v54 = vld [vmem:[#allocation2 + $0x50] sm:$0xff]  ;;  %v14564_v11 = vshrl.u32 %v11419_v6, 16  ;;  %v3833_v59 = vpop.f32.mrf.mxu2 }
 0x2a5   : > { %v7264_v28 = vsel %vm1512_vm14, %v7052_v39, %v12022_v8  ;;  %4175 = vst.msk [vmem:[#allocation3 + $0x144] sm:$0xf] %vm4004_vm0, %v4143_v9  ;;  %v4717_v14 = vor.u32 %v4716_v0, %v4714_v31  ;;  %v4722_v21 = vrot.slane %v4720_v34, 5  ;;  %v6079_v15 = vsel %vm5110_vm8, %v6034_v1, %v5999_v18  ;;  %v12089_v43 = vld [vmem:[#allocation3 + $0xe4] sm:$0xf]  ;;  %8742 = vmatmul.msk.bf16.gmra.mxu2 %vm1463_vm13, %v8864_v54 }
 0x2a6   : > { %v7310_v40 = vsel %vm5110_vm8, %v7264_v28, %v11975_v24  ;;  %v4713_v25 = vrot.slane %v4712_v36, 4  ;;  %v8373_v8 = vrot.slane %v4297_v53, 11  ;;  %v4304_v48 = vrot.slane %v14564_v11, 7  ;;  %8539 = vmatmul.msk.bf16.gmra.mxu3 %vm6119_vm9, %v6079_v15  ;;  %v12107_v15 = vld [vmem:[#allocation3 + $0xe0] sm:$0xf]  ;;  %v12113_v11 = vpop.permute.xlu0 %5920 }
 0x2a7   : > { %8661 = vmatmul.msk.bf16.gmra.mxu1 %vm6119_vm9, %v7310_v40  ;;  %v14565_v38 = vshrl.u32 %v11421_v17, 16  ;;  %v4718_v24 = vrot.slane %v4717_v14, 4  ;;  %v2741_v51 = vadd.f32 %v2740_v13, %v2611_v3  ;;  %v4095_v45 = vsel %vm11068_vm5, 0, %v4094_v5 }
 0x2a8   : > { %v14128_v39 = vshrl.u32 %v12075_v30, 16  ;;  %v4715_v18 = vsel %vm9064_vm6, %v4713_v25, %v4714_v31  ;;  %v14566_v9 = vshll.u32 %v11419_v6, 16  ;;  %v4309_v34 = vrot.slane %v4304_v48, 4  ;;  %4096 = vst [vmem:[#allocation3 + $0xe8] sm:$0x1] %v4095_v45 }
 0x2a9   : > { %v4313_v22 = vrot.slane %v14565_v38, 7  ;;  %v14567_v1 = vshll.u32 %v11421_v17, 16  ;;  %v4723_v5 = vsel %vm9064_vm6, %v4718_v24, %v4722_v21  ;;  %v4998_v36 = vunpack.c.l.b16 %v4715_v18  ;;  %v12111_v25 = vld [vmem:[#allocation3 + $0xe4] sm:$0xf]  ;;  %v4957_v38 = vpop.permute.xlu2 %4956 }
 0x2aa   : > { %v4307_v0 = vor.u32 %v14566_v9, %v4304_v48  ;;  %v3883_v53 = vadd.f32 %v3833_v59, %v2741_v51  ;;  %v14124_v3 = vshll.u32 %v12075_v30, 16  ;;  %v4999_v40 = vunpack.c.l.b16 %v4723_v5 }
 0x2ab   : > { %v4316_v28 = vor.u32 %v14567_v1, %v4313_v22  ;;  %v14127_v31 = vshrl.u32 %v12089_v43, 16  ;;  %v14123_v21 = vshll.u32 %v12089_v43, 16  ;;  %v14130_v59 = vshrl.u32 %v12107_v15, 16  ;;  %v4031_v1 = vld [vmem:[#allocation3 + $0x64] sm:$0x8] }
 0x2ac   : > { %v4308_v14 = vsel %vm9551_vm12, %v8373_v8, %v4307_v0  ;;  %v3919_v13 = vmul.f32 %v11721_v42, %v3883_v53  ;;  %v5022_v48 = vpack.c.b16 %v4999_v40, %v4998_v36  ;;  %v5674_v8 = vrot.slane %v14128_v39, 4 }
 0x2ad   : > { %v4317_v6 = vsel %vm9551_vm12, %v4309_v34, %v4316_v28  ;;  %v4828_v17 = vunpack.c.l.b16 %v4308_v14  ;;  %v5675_v22 = vrot.slane %v14124_v3, 5  ;;  %v5680_v24 = vrot.slane %v14127_v31, 4  ;;  %v3848_v28 = vpop.f32.mrf.mxu3 }
 0x2ae   : > { %v4829_v54 = vunpack.c.l.b16 %v4317_v6  ;;  %v3955_v42 = vadd.f32 %v11739_v61, %v3919_v13  ;;  %v5678_v45 = vrot.slane %v14123_v21, 5  ;;  %5046 = vrot.lane.b32.xlu0 %v5022_v48, %s8923_s19  ;;  %v14126_v9 = vshll.u32 %v12107_v15, 16 }
 0x2af   : > { %v5676_v18 = vor.u32 %v5675_v22, %v5674_v8  ;;  %v14129_v0 = vshrl.u32 %v12111_v25, 16  ;;  %v14125_v34 = vshll.u32 %v12111_v25, 16  ;;  %v5554_v61 = vld [vmem:[#allocation3 + $0xe8] sm:$0x1]  ;;  %v6893_v14 = vrot.slane %v14130_v59, 4 }
 0x2b0   : > { %v4857_v51 = vpack.c.b16 %v4829_v54, %v4828_v17  ;;  %v3987_v36 = vmax.f32 %v3955_v42, 0.0  ;;  %v5681_v53 = vor.u32 %v5680_v24, %v5678_v45  ;;  %v6786_v40 = vld [vmem:[#allocation3 + $0xe8] sm:$0x1]  ;;  %v5684_v17 = vshll.u32 %v5554_v61, 16  ;;  %v8837_v61 = vld [vmem:[#allocation3 + $0xf8] sm:$0xff] }
 0x2b1   : > { %v5677_v6 = vrot.slane %v5676_v18, 4  ;;  %v6894_v54 = vrot.slane %v14126_v9, 5  ;;  %v6897_v13 = vrot.slane %v14125_v34, 5  ;;  %v6903_v22 = vshll.u32 %v6786_v40, 16  ;;  %v8865_v9 = vld [vmem:[#allocation2 + $0x68] sm:$0xff] }
 0x2b2   : > { %v5073_v5 = vsel %vm1512_vm14, %v4857_v51, %v4957_v38  ;;  %v4138_v48 = vpack.c.bf16 %v3987_v36, %v3987_v36  ;;  %v5682_v8 = vrot.slane %v5681_v53, 4  ;;  %v6899_v38 = vrot.slane %v14129_v0, 4  ;;  %v5037_v0 = vpop.permute.xlu0 %5036 }
 0x2b3   : > { %v5679_v24 = vsel %vm9064_vm6, %v5677_v6, %v5678_v45  ;;  %v5686_v51 = vrot.slane %v5684_v17, 5  ;;  %v6895_v42 = vor.u32 %v6894_v54, %v6893_v14  ;;  %v4032_v18 = vsel %vm11705_vm7, 0, %v4031_v1  ;;  %v14569_v45 = vld [vmem:[#allocation16_spill] sm:$0xff]  ;;  %v14571_v17 = vld [vmem:[#allocation17_spill] sm:$0xff] }
 0x2b4   : > { %4170 = vst.msk [vmem:[#allocation3 + $0x110] sm:$0xf] %vm4004_vm0, %v4138_v48  ;;  %v5962_v21 = vunpack.c.l.b16 %v5679_v24  ;;  %v6900_v3 = vor.u32 %v6899_v38, %v6897_v13  ;;  %v6905_v34 = vrot.slane %v6903_v22, 5  ;;  %v14568_v36 = vshrl.u32 %v11441_v41, 16 }
 0x2b5   : > { %v5687_v40 = vsel %vm9064_vm6, %v5682_v8, %v5686_v51  ;;  %v6896_v31 = vrot.slane %v6895_v42, 4  ;;  %4033 = vst [vmem:[#allocation3 + $0x64] sm:$0x8] %v4032_v18  ;;  %v14570_v14 = vshrl.u32 %v14569_v45, 16  ;;  %v14572_v1 = vshrl.u32 %v14571_v17, 16  ;;  %8743 = vmatmul.msk.bf16.gmra.mxu2 %vm1463_vm13, %v8865_v9  ;;  %v14578_v9 = vld [vmem:[#allocation10_spill] sm:$0xff] }
 0x2b6   : > { %v5268_v53 = vrot.slane %v14568_v36, 7  ;;  %v5963_v39 = vunpack.c.l.b16 %v5687_v40  ;;  %v6901_v48 = vrot.slane %v6900_v3, 4  ;;  %v14573_v38 = vshll.u32 %v11441_v41, 16  ;;  %v2613_v36 = vpop.f32.mrf.mxu0  ;;  %5932 = vrot.lane.b32.xlu0 %v8837_v61, %s8922_s20 }
 0x2b7   : > { %v5277_v6 = vrot.slane %v14570_v14, 7  ;;  %v6479_v54 = vrot.slane %v14572_v1, 7  ;;  %v6898_v8 = vsel %vm9064_vm6, %v6896_v31, %v6897_v13  ;;  %v14574_v51 = vshll.u32 %v14569_v45, 16  ;;  %v3835_v45 = vpop.f32.mrf.mxu2 }
 0x2b8   : > { %v12153_v22 = vor.u32 %v14573_v38, %v5268_v53  ;;  %v5273_v24 = vrot.slane %v5268_v53, 4  ;;  %v14575_v18 = vshll.u32 %v14571_v17, 16  ;;  %v5986_v3 = vpack.c.b16 %v5963_v39, %v5962_v21  ;;  %v2742_v53 = vpop.f32.mrf.mxu1  ;;  %v3850_v39 = vpop.f32.mrf.mxu3 }
 0x2b9   : > { %v5280_v42 = vor.u32 %v14574_v51, %v5277_v6  ;;  %v6484_v59 = vrot.slane %v6479_v54, 4  ;;  %v6906_v41 = vsel %vm9064_vm6, %v6901_v48, %v6905_v34  ;;  %v7193_v40 = vunpack.c.l.b16 %v6898_v8  ;;  %v12175_v48 = vpop.permute.xlu2 %7233 }
 0x2ba   : > { %v6482_v14 = vor.u32 %v14575_v18, %v6479_v54  ;;  %v14576_v1 = vshrl.u32 %v11469_v23, 16  ;;  %v7194_v31 = vunpack.c.l.b16 %v6906_v41  ;;  %v2743_v6 = vadd.f32 %v2742_v53, %v2613_v36  ;;  %6010 = vrot.lane.b32.xlu1 %v5986_v3, %s8923_s19  ;;  %v12173_v54 = vpop.permute.xlu1 %7151 }
 0x2bb   : > { %v5281_v13 = vsel %vm9551_vm12, %v5273_v24, %v5280_v42  ;;  %v5118_v61 = vsel %vm5110_vm8, %v5073_v5, %v5037_v0  ;;  %v14577_v34 = vshll.u32 %v11469_v23, 16  ;;  %v3889_v8 = vadd.f32 %v3848_v28, %v14578_v9  ;;  %v14579_v24 = vld [vmem:[#allocation4_spill] sm:$0xff]  ;;  %v14581_v5 = vld [vmem:[#allocation5_spill] sm:$0xff] }
 0x2bc   : > { %v6488_v38 = vrot.slane %v14576_v1, 7  ;;  %v5793_v21 = vunpack.c.l.b16 %v5281_v13  ;;  %8560 = vmatmul.msk.bf16.gmra.mxu0 %vm6119_vm9, %v5118_v61  ;;  %v14580_v51 = vshrl.u32 %v14579_v24, 16  ;;  %v7218_v42 = vpack.c.b16 %v7194_v31, %v7193_v40  ;;  %v5155_v41 = vld [vmem:[#allocation3 + $0x64] sm:$0x8]  ;;  %v12190_v28 = vld [vmem:[%s13751_s2] ss:$0 sm:$0xff] }
 0x2bd   : > { %v3884_v0 = vadd.f32 %v3835_v45, %v2743_v6  ;;  %v14582_v18 = vshrl.u32 %v14581_v5, 16  ;;  %v4035_v23 = vsel %vm11705_vm7, 0, %v4034_v19  ;;  %v6385_v53 = vld [vmem:[#allocation3 + $0x64] sm:$0x8]  ;;  %v14583_v31 = vshll.u32 %v14579_v24, 16  ;;  %v8853_v9 = vld [vmem:[#allocation3 + $0xf8] sm:$0xff] }
 0x2be   : > { %v6491_v17 = vor.u32 %v14577_v34, %v6488_v38  ;;  %v4326_v36 = vrot.slane %v14580_v51, 7  ;;  %v3925_v38 = vmul.f32 %v12190_v28, %v3889_v8  ;;  %v4194_v40 = vld [vmem:[#allocation3 + $0x64] sm:$0x8]  ;;  %v3890_v45 = vadd.f32 %v3850_v39, %v11622_v44  ;;  %7241 = vrot.lane.b32.xlu2 %v7218_v42, %s8923_s19  ;;  %4036 = vst [vmem:[#allocation3 + $0x7c] sm:$0x8] %v4035_v23 }
 0x2bf   : > { %v4335_v3 = vrot.slane %v14582_v18, 7  ;;  %v5261_v19 = vshrl.u32 %v5155_v41, 16  ;;  %v6472_v6 = vshrl.u32 %v6385_v53, 16  ;;  %v12201_v34 = vld [vmem:[%s13752_s3] ss:$0 sm:$0xff]  ;;  %v4319_v8 = vshrl.u32 %v4194_v40, 16 }
 0x2c0   : > { %v6492_v1 = vsel %vm9551_vm12, %v6484_v59, %v6491_v17  ;;  %v4329_v13 = vor.u32 %v14583_v31, %v4326_v36  ;;  %v3920_v59 = vmul.f32 %v12190_v28, %v3884_v0  ;;  %v3961_v17 = vadd.f32 %v12201_v34, %v3925_v38  ;;  %v14585_v41 = vld [vmem:[#allocation6_spill] sm:$0xff] }
 0x2c1   : > { %v7024_v61 = vunpack.c.l.b16 %v6492_v1  ;;  %v4331_v24 = vrot.slane %v4326_v36, 4  ;;  %v14584_v44 = vshll.u32 %v14581_v5, 16  ;;  %v8453_v51 = vrot.slane %v5261_v19, 11 }
 0x2c2   : > { %v8575_v42 = vrot.slane %v6472_v6, 11  ;;  %v3956_v18 = vadd.f32 %v12201_v34, %v3920_v59  ;;  %v14586_v0 = vshrl.u32 %v14585_v41, 16  ;;  %v3993_v53 = vmax.f32 %v3961_v17, 0.0  ;;  %7163 = vrot.lane.b32.xlu1 %v8853_v9, %s8922_s20 }
 0x2c3   : > { %v4338_v39 = vor.u32 %v14584_v44, %v4335_v3  ;;  %v8374_v1 = vrot.slane %v4319_v8, 11  ;;  %v14588_v38 = vshrl.u32 %v14587_v63, 16  ;;  %v5272_v36 = vsel %vm9551_vm12, %v8453_v51, %v12153_v22  ;;  %v12221_v8 = vld [vmem:[#allocation3 + $0xe0] sm:$0xf]  ;;  %v8819_v44 = vld [vmem:[#allocation3 + $0xc8] sm:$0xff] }
 0x2c4   : > { %v5290_v23 = vrot.slane %v14586_v0, 7  ;;  %v6483_v5 = vsel %vm9551_vm12, %v8575_v42, %v6482_v14  ;;  %v3988_v3 = vmax.f32 %v3956_v18, 0.0  ;;  %v5792_v19 = vunpack.c.l.b16 %v5272_v36  ;;  %v6001_v18 = vpop.permute.xlu1 %6000 }
 0x2c5   : > { %v4339_v31 = vsel %vm9551_vm12, %v4331_v24, %v4338_v39  ;;  %v5299_v27 = vrot.slane %v14588_v38, 7  ;;  %v7023_v6 = vunpack.c.l.b16 %v6483_v5  ;;  %v4144_v59 = vpack.c.bf16 %v3993_v53, %v3993_v53  ;;  %v4959_v53 = vpop.permute.xlu2 %4958  ;;  %v4591_v5 = vld [vmem:[#allocation3 + $0xe8] sm:$0x1] }
 0x2c6   : > { %v4831_v40 = vunpack.c.l.b16 %v4339_v31  ;;  %v4330_v17 = vsel %vm9551_vm12, %v8374_v1, %v4329_v13  ;;  %v4139_v24 = vpack.c.bf16 %v3988_v3, %v3988_v3  ;;  %v14589_v22 = vshll.u32 %v14585_v41, 16  ;;  %v5158_v31 = vld [vmem:[#allocation3 + $0x7c] sm:$0x8]  ;;  %v12229_v1 = vld [vmem:[#allocation3 + $0xe4] sm:$0xf]  ;;  %4966 = vrot.lane.b32.xlu2 %v8819_v44, %s8922_s20 }
 0x2c7   : > { %v4830_v39 = vunpack.c.l.b16 %v4330_v17  ;;  %v5295_v0 = vrot.slane %v5290_v23, 4  ;;  %v5821_v14 = vpack.c.b16 %v5793_v21, %v5792_v19  ;;  %v7053_v42 = vpack.c.b16 %v7024_v61, %v7023_v6  ;;  %4176 = vst.msk [vmem:[#allocation3 + $0x158] sm:$0xf] %vm4004_vm0, %v4144_v59  ;;  %v6388_v44 = vld [vmem:[#allocation3 + $0x7c] sm:$0x8] }
 0x2c8   : > { %v5293_v51 = vor.u32 %v14589_v22, %v5290_v23  ;;  %v14590_v9 = vshll.u32 %v14587_v63, 16  ;;  %v3926_v13 = vmul.f32 %v12190_v28, %v3890_v45  ;;  %4171 = vst.msk [vmem:[#allocation3 + $0x114] sm:$0xf] %vm4004_vm0, %v4139_v24  ;;  %v5283_v23 = vshrl.u32 %v5158_v31, 16  ;;  %v2745_v24 = vpop.f32.mrf.mxu1 }
 0x2c9   : > { %v4858_v41 = vpack.c.b16 %v4831_v40, %v4830_v39  ;;  %v14145_v21 = vshrl.u32 %v12221_v8, 16  ;;  %v14135_v61 = vshll.u32 %v12221_v8, 16  ;;  %v6037_v36 = vsel %vm1512_vm14, %v5821_v14, %v12113_v11  ;;  %v2616_v14 = vpop.f32.mrf.mxu0 }
 0x2ca   : > { %v5302_v38 = vor.u32 %v14590_v9, %v5299_v27  ;;  %v7267_v63 = vsel %vm1512_vm14, %v7053_v42, %v12173_v54  ;;  %v3962_v45 = vadd.f32 %v12201_v34, %v3926_v13  ;;  %v6081_v40 = vsel %vm5110_vm8, %v6037_v36, %v6001_v18  ;;  %v4097_v9 = vld [vmem:[#allocation3 + $0x100] sm:$0x1]  ;;  %v5923_v13 = vpop.permute.xlu0 %5922 }
 0x2cb   : > { %v7312_v3 = vsel %vm5110_vm8, %v7267_v63, %v12062_v20  ;;  %v12246_v19 = vsel %vm1512_vm14, %v4858_v41, %v4959_v53  ;;  %v8454_v6 = vrot.slane %v5283_v23, 11  ;;  %8540 = vmatmul.msk.bf16.gmra.mxu3 %vm6119_vm9, %v6081_v40  ;;  %v14144_v59 = vshrl.u32 %v12229_v1, 16 }
 0x2cc   : > { %v5303_v27 = vsel %vm9551_vm12, %v5295_v0, %v5302_v38  ;;  %8662 = vmatmul.msk.bf16.gmra.mxu1 %vm6119_vm9, %v7312_v3  ;;  %v3994_v54 = vmax.f32 %v3962_v45, 0.0  ;;  %v14134_v17 = vshll.u32 %v12229_v1, 16  ;;  %v4724_v39 = vrot.slane %v14145_v21, 4  ;;  %v8866_v38 = vld [vmem:[#allocation2 + $0x80] sm:$0xff] }
 0x2cd   : > { %v5795_v11 = vunpack.c.l.b16 %v5303_v27  ;;  %v5294_v20 = vsel %vm9551_vm12, %v8454_v6, %v5293_v51  ;;  %v4725_v22 = vrot.slane %v14135_v61, 5  ;;  %v4734_v0 = vshll.u32 %v4591_v5, 16  ;;  %v3838_v27 = vpop.f32.mrf.mxu2  ;;  %v14591_v5 = vld [vmem:[#allocation18_spill] sm:$0xff]  ;;  %v14593_v6 = vld [vmem:[#allocation7_spill] sm:$0xff]  ;;  %8744 = vmatmul.msk.bf16.gmra.mxu2 %vm1463_vm13, %v8866_v38 }
 0x2ce   : > { %v5794_v42 = vunpack.c.l.b16 %v5294_v20  ;;  %v4145_v18 = vpack.c.bf16 %v3994_v54, %v3994_v54  ;;  %v4728_v53 = vrot.slane %v14134_v17, 5  ;;  %v4730_v31 = vrot.slane %v14144_v59, 4  ;;  %v12267_v17 = vld [vmem:[#allocation3 + $0xf8] sm:$0xf] }
 0x2cf   : > { %v4726_v51 = vor.u32 %v4725_v22, %v4724_v39  ;;  %v4736_v41 = vrot.slane %v4734_v0, 5  ;;  %v2746_v23 = vadd.f32 %v2745_v24, %v2616_v14  ;;  %v6494_v36 = vshrl.u32 %v6388_v44, 16 }
 0x2d0   : > { %v5822_v63 = vpack.c.b16 %v5795_v11, %v5794_v42  ;;  %4177 = vst.msk [vmem:[#allocation3 + $0x15c] sm:$0xf] %vm4004_vm0, %v4145_v18  ;;  %v4731_v45 = vor.u32 %v4730_v31, %v4728_v53  ;;  %v14592_v3 = vshrl.u32 %v14591_v5, 16  ;;  %v14594_v54 = vshrl.u32 %v14593_v6, 16  ;;  %v7154_v18 = vpop.permute.xlu1 %7153 }
 0x2d1   : > { %v4727_v61 = vrot.slane %v4726_v51, 4  ;;  %v3885_v39 = vadd.f32 %v3838_v27, %v2746_v23  ;;  %v8576_v22 = vrot.slane %v6494_v36, 11  ;;  %v4098_v11 = vsel %vm11068_vm5, 0, %v4097_v9  ;;  %v12282_v36 = vld [vmem:[#allocation3 + $0xfc] sm:$0xf] }
 0x2d2   : > { %v6501_v40 = vrot.slane %v14592_v3, 7  ;;  %v6510_v20 = vrot.slane %v14594_v54, 7  ;;  %v12273_v24 = vsel %vm1512_vm14, %v5822_v63, %v5923_v13  ;;  %v4732_v44 = vrot.slane %v4731_v45, 4  ;;  %4099 = vst [vmem:[#allocation3 + $0x100] sm:$0x1] %v4098_v11 }
 0x2d3   : > { %v14595_v0 = vshll.u32 %v14591_v5, 16  ;;  %v4729_v31 = vsel %vm9064_vm6, %v4727_v61, %v4728_v53  ;;  %v3921_v38 = vmul.f32 %v12190_v28, %v3885_v39  ;;  %v14596_v51 = vshll.u32 %v14593_v6, 16  ;;  %v12290_v5 = vld [vmem:[#allocation3 + $0xf8] sm:$0xf]  ;;  %v12299_v39 = vld [vmem:[#allocation3 + $0xfc] sm:$0xf] }
 0x2d4   : > { %v6506_v42 = vrot.slane %v6501_v40, 4  ;;  %v14139_v9 = vshrl.u32 %v12267_v17, 16  ;;  %v4737_v13 = vsel %vm9064_vm6, %v4732_v44, %v4736_v41  ;;  %v5000_v63 = vunpack.c.l.b16 %v4729_v31 }
 0x2d5   : > { %v6504_v14 = vor.u32 %v14595_v0, %v6501_v40  ;;  %v6513_v23 = vor.u32 %v14596_v51, %v6510_v20  ;;  %v14138_v45 = vshll.u32 %v12267_v17, 16  ;;  %v5001_v61 = vunpack.c.l.b16 %v4737_v13 }
 0x2d6   : > { %v3957_v53 = vadd.f32 %v12201_v34, %v3921_v38  ;;  %v14137_v54 = vshrl.u32 %v12282_v36, 16  ;;  %v14136_v41 = vshll.u32 %v12282_v36, 16  ;;  %v5688_v20 = vrot.slane %v14139_v9, 4 }
 0x2d7   : > { %v6505_v27 = vsel %vm9551_vm12, %v8576_v22, %v6504_v14  ;;  %v6514_v3 = vsel %vm9551_vm12, %v6506_v42, %v6513_v23  ;;  %v5023_v22 = vpack.c.b16 %v5001_v61, %v5000_v63  ;;  %v5689_v44 = vrot.slane %v14138_v45, 5 }
 0x2d8   : > { %v7025_v40 = vunpack.c.l.b16 %v6505_v27  ;;  %v7026_v6 = vunpack.c.l.b16 %v6514_v3  ;;  %v3989_v11 = vmax.f32 %v3957_v53, 0.0  ;;  %v14143_v0 = vshrl.u32 %v12290_v5, 16  ;;  %v6003_v9 = vpop.permute.xlu1 %6002 }
 0x2d9   : > { %v5692_v42 = vrot.slane %v14136_v41, 5  ;;  %v5694_v31 = vrot.slane %v14137_v54, 4  ;;  %v14140_v38 = vshll.u32 %v12290_v5, 16  ;;  %5048 = vrot.lane.b32.xlu0 %v5023_v22, %s8923_s19  ;;  %v5555_v23 = vld [vmem:[#allocation3 + $0x100] sm:$0x1]  ;;  %v5690_v13 = vor.u32 %v5689_v44, %v5688_v20  ;;  %v5039_v41 = vpop.permute.xlu0 %5038  ;;  %v2747_v44 = vpop.f32.mrf.mxu1 }
 0x2da   : > { %v7054_v14 = vpack.c.b16 %v7026_v6, %v7025_v40  ;;  %v4140_v51 = vpack.c.bf16 %v3989_v11, %v3989_v11  ;;  %v14142_v63 = vshrl.u32 %v12299_v39, 16  ;;  %v14141_v27 = vshll.u32 %v12299_v39, 16  ;;  %v6787_v61 = vld [vmem:[#allocation3 + $0x100] sm:$0x1] }
 0x2db   : > { %v5695_v3 = vor.u32 %v5694_v31, %v5692_v42  ;;  %v5698_v40 = vshll.u32 %v5555_v23, 16  ;;  %v6907_v6 = vrot.slane %v14143_v0, 4  ;;  %v5691_v54 = vrot.slane %v5690_v13, 4  ;;  %v2618_v23 = vpop.f32.mrf.mxu0 }
 0x2dc   : > { %v7270_v53 = vsel %vm1512_vm14, %v7054_v14, %v7154_v18  ;;  %4172 = vst.msk [vmem:[#allocation3 + $0x128] sm:$0xf] %vm4004_vm0, %v4140_v51  ;;  %v6908_v22 = vrot.slane %v14140_v38, 5  ;;  %v6911_v20 = vrot.slane %v14141_v27, 5  ;;  %v6913_v11 = vrot.slane %v14142_v63, 4  ;;  %v12327_v27 = vpop.permute.xlu2 %7235 }
 0x2dd   : > { %v5696_v18 = vrot.slane %v5695_v3, 4  ;;  %v5700_v14 = vrot.slane %v5698_v40, 5  ;;  %v6917_v31 = vshll.u32 %v6787_v61, 16  ;;  %v7314_v45 = vsel %vm5110_vm8, %v7270_v53, %v12175_v48  ;;  %v8838_v3 = vld [vmem:[#allocation3 + $0x110] sm:$0xff]  ;;  %v4197_v40 = vld [vmem:[#allocation3 + $0x7c] sm:$0x8]  ;;  %v3853_v61 = vpop.f32.mrf.mxu3 }
 0x2de   : > { %v5693_v51 = vsel %vm9064_vm6, %v5691_v54, %v5692_v42  ;;  %v6909_v13 = vor.u32 %v6908_v22, %v6907_v6  ;;  %v6914_v38 = vor.u32 %v6913_v11, %v6911_v20  ;;  %8663 = vmatmul.msk.bf16.gmra.mxu1 %vm6119_vm9, %v7314_v45  ;;  %v5120_v63 = vsel %vm5110_vm8, %v12246_v19, %v5039_v41  ;;  %v3840_v45 = vpop.f32.mrf.mxu2 }
 0x2df   : > { %v5701_v0 = vsel %vm9064_vm6, %v5696_v18, %v5700_v14  ;;  %v5964_v48 = vunpack.c.l.b16 %v5693_v51  ;;  %v6919_v53 = vrot.slane %v6917_v31, 5  ;;  %8561 = vmatmul.msk.bf16.gmra.mxu0 %vm6119_vm9, %v5120_v63  ;;  %v2748_v54 = vadd.f32 %v2747_v44, %v2618_v23 }
 0x2e0   : > { %v5965_v42 = vunpack.c.l.b16 %v5701_v0  ;;  %v6910_v6 = vrot.slane %v6909_v13, 4  ;;  %v6915_v22 = vrot.slane %v6914_v38, 4  ;;  %v6083_v11 = vsel %vm5110_vm8, %v12273_v24, %v6003_v9  ;;  %v12347_v9 = vld [vmem:[#allocation3 + $0xf8] sm:$0xf]  ;;  %v12350_v13 = vld [vmem:[#allocation3 + $0xfc] sm:$0xf] }
 0x2e1   : > { %v3886_v59 = vadd.f32 %v3840_v45, %v2748_v54  ;;  %8541 = vmatmul.msk.bf16.gmra.mxu3 %vm6119_vm9, %v6083_v11  ;;  %v4341_v19 = vshrl.u32 %v4197_v40, 16  ;;  %v14597_v41 = vshrl.u32 %v11612_v2, 16  ;;  %v14598_v18 = vshrl.u32 %v11617_v50, 16  ;;  %5934 = vrot.lane.b32.xlu0 %v8838_v3, %s8922_s20 }
 0x2e2   : > { %v5987_v31 = vpack.c.b16 %v5965_v42, %v5964_v48  ;;  %v6912_v0 = vsel %vm9064_vm6, %v6910_v6, %v6911_v20  ;;  %v6920_v38 = vsel %vm9064_vm6, %v6915_v22, %v6919_v53  ;;  %v3891_v24 = vadd.f32 %v3853_v61, %v11700_v57  ;;  %v4592_v22 = vld [vmem:[#allocation3 + $0x100] sm:$0x1] }
 0x2e3   : > { %v4348_v21 = vrot.slane %v14597_v41, 7  ;;  %v4357_v14 = vrot.slane %v14598_v18, 7  ;;  %v7195_v63 = vunpack.c.l.b16 %v6912_v0  ;;  %v7196_v44 = vunpack.c.l.b16 %v6920_v38  ;;  %v4037_v18 = vld [vmem:[#allocation3 + $0x94] sm:$0x8] }
 0x2e4   : > { %v3922_v23 = vmul.f32 %v12190_v28, %v3886_v59  ;;  %v8375_v51 = vrot.slane %v4341_v19, 11  ;;  %6012 = vrot.lane.b32.xlu1 %v5987_v31, %s8923_s19  ;;  %v14599_v20 = vshll.u32 %v11612_v2, 16  ;;  %v14600_v53 = vshll.u32 %v11617_v50, 16  ;;  %v4961_v31 = vpop.permute.xlu2 %4960 }
 0x2e5   : > { %v4353_v48 = vrot.slane %v4348_v21, 4  ;;  %v3927_v57 = vmul.f32 %v12190_v28, %v3891_v24  ;;  %v7219_v61 = vpack.c.b16 %v7196_v44, %v7195_v63  ;;  %v14153_v42 = vshrl.u32 %v12347_v9, 16  ;;  %v12377_v44 = vpop.f32.mrf.mxu3 }
 0x2e6   : > { %v4351_v40 = vor.u32 %v14599_v20, %v4348_v21  ;;  %v4360_v3 = vor.u32 %v14600_v53, %v4357_v14  ;;  %v3958_v54 = vadd.f32 %v12201_v34, %v3922_v23  ;;  %v14151_v59 = vshll.u32 %v12347_v9, 16  ;;  %v12369_v14 = vpop.permute.xlu0 %5924 }
 0x2e7   : > { %v3963_v21 = vadd.f32 %v12201_v34, %v3927_v57  ;;  %v14152_v50 = vshrl.u32 %v12350_v13, 16  ;;  %7243 = vrot.lane.b32.xlu2 %v7219_v61, %s8923_s19  ;;  %v14146_v41 = vshll.u32 %v12350_v13, 16  ;;  %v4738_v38 = vrot.slane %v14153_v42, 4 }
 0x2e8   : > { %v4352_v6 = vsel %vm9551_vm12, %v8375_v51, %v4351_v40  ;;  %v4361_v2 = vsel %vm9551_vm12, %v4353_v48, %v4360_v3  ;;  %v3990_v45 = vmax.f32 %v3958_v54, 0.0  ;;  %v4739_v24 = vrot.slane %v14151_v59, 5  ;;  %v8854_v51 = vld [vmem:[#allocation3 + $0x110] sm:$0xff] }
 0x2e9   : > { %v4832_v11 = vunpack.c.l.b16 %v4352_v6  ;;  %v4833_v19 = vunpack.c.l.b16 %v4361_v2  ;;  %v3995_v0 = vmax.f32 %v3963_v21, 0.0  ;;  %v4744_v63 = vrot.slane %v14152_v50, 4  ;;  %v4100_v6 = vld [vmem:[#allocation3 + $0x118] sm:$0x1]  ;;  %v12385_v2 = vld [vmem:[#allocation3 + $0x110] sm:$0xf] }
 0x2ea   : > { %v4141_v23 = vpack.c.bf16 %v3990_v45, %v3990_v45  ;;  %v4742_v40 = vrot.slane %v14146_v41, 5  ;;  %v4748_v48 = vshll.u32 %v4592_v22, 16  ;;  %v4740_v3 = vor.u32 %v4739_v24, %v4738_v38 }
 0x2eb   : > { %v4859_v20 = vpack.c.b16 %v4833_v19, %v4832_v11  ;;  %v4146_v53 = vpack.c.bf16 %v3995_v0, %v3995_v0  ;;  %v4038_v57 = vsel %vm11705_vm7, 0, %v4037_v18  ;;  %v14601_v61 = vshrl.u32 %v11657_v58, 16  ;;  %v12391_v0 = vld [vmem:[#allocation3 + $0x114] sm:$0xf] }
 0x2ec   : > { %4173 = vst.msk [vmem:[#allocation3 + $0x12c] sm:$0xf] %vm4004_vm0, %v4141_v23  ;;  %v4745_v45 = vor.u32 %v4744_v63, %v4742_v40  ;;  %v4750_v11 = vrot.slane %v4748_v48, 5  ;;  %v14602_v19 = vshrl.u32 %v11659_v29, 16  ;;  %7165 = vrot.lane.b32.xlu1 %v8854_v51, %s8922_s20  ;;  %v4741_v18 = vrot.slane %v4740_v3, 4  ;;  %v8820_v63 = vld [vmem:[#allocation3 + $0xe0] sm:$0xff] }
 0x2ed   : > { %v6523_v54 = vrot.slane %v14601_v61, 7  ;;  %v5079_v21 = vsel %vm1512_vm14, %v4859_v20, %v4961_v31  ;;  %4178 = vst.msk [vmem:[#allocation3 + $0x170] sm:$0xf] %vm4004_vm0, %v4146_v53  ;;  %v14603_v38 = vshll.u32 %v11657_v58, 16  ;;  %v14604_v23 = vshrl.u32 %v11635_v55, 16 }
 0x2ee   : > { %v6532_v22 = vrot.slane %v14602_v19, 7  ;;  %v4746_v20 = vrot.slane %v4745_v45, 4  ;;  %4039 = vst [vmem:[#allocation3 + $0x94] sm:$0x8] %v4038_v57  ;;  %v14605_v48 = vshll.u32 %v11659_v29, 16  ;;  %v14606_v41 = vshrl.u32 %v11643_v7, 16 }
 0x2ef   : > { %v12397_v24 = vor.u32 %v14603_v38, %v6523_v54  ;;  %v6528_v61 = vrot.slane %v6523_v54, 4  ;;  %v5312_v31 = vrot.slane %v14604_v23, 7  ;;  %v4101_v53 = vsel %vm11068_vm5, 0, %v4100_v6  ;;  %v12414_v45 = vld [vmem:[#allocation3 + $0x110] sm:$0xf]  ;;  %4968 = vrot.lane.b32.xlu2 %v8820_v63, %s8922_s20 }
 0x2f0   : > { %v6535_v19 = vor.u32 %v14605_v48, %v6532_v22  ;;  %v5321_v51 = vrot.slane %v14606_v41, 7  ;;  %v4743_v58 = vsel %vm9064_vm6, %v4741_v18, %v4742_v40  ;;  %v14607_v3 = vshll.u32 %v11635_v55, 16  ;;  %4102 = vst [vmem:[#allocation3 + $0x118] sm:$0x1] %v4101_v53  ;;  %v12428_v48 = vld [vmem:[#allocation3 + $0x114] sm:$0xf] }
 0x2f1   : > { %v5317_v38 = vrot.slane %v5312_v31, 4  ;;  %v14150_v57 = vshrl.u32 %v12385_v2, 16  ;;  %v4751_v29 = vsel %vm9064_vm6, %v4746_v20, %v4750_v11  ;;  %v5002_v41 = vunpack.c.l.b16 %v4743_v58  ;;  %v5041_v20 = vpop.permute.xlu0 %5040 }
 0x2f2   : > { %v12411_v54 = vor.u32 %v14607_v3, %v5312_v31  ;;  %v12421_v6 = vsel %vm9551_vm12, %v6528_v61, %v6535_v19  ;;  %v14608_v55 = vshll.u32 %v11643_v7, 16  ;;  %v5003_v22 = vunpack.c.l.b16 %v4751_v29  ;;  %v8867_v19 = vld [vmem:[#allocation2 + $0x98] sm:$0xff]  ;;  %v3858_v29 = vpop.f32.mrf.mxu3 }
 0x2f3   : > { %v7028_v18 = vunpack.c.l.b16 %v12421_v6  ;;  %v14147_v23 = vshll.u32 %v12385_v2, 16  ;;  %v14148_v31 = vshrl.u32 %v12391_v0, 16  ;;  %v14149_v63 = vshll.u32 %v12391_v0, 16  ;;  %8745 = vmatmul.msk.bf16.gmra.mxu2 %vm1463_vm13, %v8867_v19 }
 0x2f4   : > { %v5324_v40 = vor.u32 %v14608_v55, %v5321_v51  ;;  %v5702_v61 = vrot.slane %v14150_v57, 4  ;;  %v14167_v7 = vshrl.u32 %v12414_v45, 16  ;;  %v5024_v51 = vpack.c.b16 %v5003_v22, %v5002_v41  ;;  %v7156_v22 = vpop.permute.xlu1 %7155 }
 0x2f5   : > { %v5703_v58 = vrot.slane %v14147_v23, 5  ;;  %v5708_v3 = vrot.slane %v14148_v31, 4  ;;  %v14157_v6 = vshll.u32 %v12414_v45, 16  ;;  %v6391_v41 = vld [vmem:[#allocation3 + $0x94] sm:$0x8]  ;;  %v5122_v57 = vsel %vm5110_vm8, %v5079_v21, %v5041_v20 }
 0x2f6   : > { %v5325_v11 = vsel %vm9551_vm12, %v5317_v38, %v5324_v40  ;;  %v5706_v38 = vrot.slane %v14149_v63, 5  ;;  %v14156_v40 = vshll.u32 %v12428_v48, 16  ;;  %5050 = vrot.lane.b32.xlu0 %v5024_v51, %s8923_s19  ;;  %v6921_v31 = vrot.slane %v14167_v7, 4  ;;  %8562 = vmatmul.msk.bf16.gmra.mxu0 %vm6119_vm9, %v5122_v57 }
 0x2f7   : > { %v5797_v53 = vunpack.c.l.b16 %v5325_v11  ;;  %v5161_v11 = vld [vmem:[#allocation3 + $0x94] sm:$0x8]  ;;  %v5704_v23 = vor.u32 %v5703_v58, %v5702_v61  ;;  %v3892_v63 = vadd.f32 %v12377_v44, %v11754_v26  ;;  %v6516_v59 = vshrl.u32 %v6391_v41, 16  ;;  %v5556_v42 = vld [vmem:[#allocation3 + $0x118] sm:$0x1] }
 0x2f8   : > { %v5305_v50 = vshrl.u32 %v5161_v11, 16  ;;  %v5709_v10 = vor.u32 %v5708_v3, %v5706_v38  ;;  %v6788_v37 = vld [vmem:[#allocation3 + $0x118] sm:$0x1]  ;;  %v3893_v19 = vadd.f32 %v3858_v29, %v11877_v16  ;;  %v5712_v55 = vshll.u32 %v5556_v42, 16 }
 0x2f9   : > { %v5705_v51 = vrot.slane %v5704_v23, 4  ;;  %v6922_v61 = vrot.slane %v14157_v6, 5  ;;  %v6925_v58 = vrot.slane %v14156_v40, 5  ;;  %v8577_v26 = vrot.slane %v6516_v59, 11  ;;  %v8839_v23 = vld [vmem:[#allocation3 + $0x128] sm:$0xff] }
 0x2fa   : > { %v8455_v44 = vrot.slane %v5305_v50, 11  ;;  %v5710_v21 = vrot.slane %v5709_v10, 4  ;;  %v14609_v20 = vshrl.u32 %v12428_v48, 16  ;;  %v5714_v57 = vrot.slane %v5712_v55, 5 }
 0x2fb   : > { %v5707_v3 = vsel %vm9064_vm6, %v5705_v51, %v5706_v38  ;;  %v6923_v11 = vor.u32 %v6922_v61, %v6921_v31  ;;  %v6931_v16 = vshll.u32 %v6788_v37, 16  ;;  %v6527_v42 = vsel %vm9551_vm12, %v8577_v26, %v12397_v24 }
 0x2fc   : > { %v6927_v41 = vrot.slane %v14609_v20, 4  ;;  %v5316_v59 = vsel %vm9551_vm12, %v8455_v44, %v12411_v54  ;;  %v5966_v50 = vunpack.c.l.b16 %v5707_v3  ;;  %v7027_v29 = vunpack.c.l.b16 %v6527_v42  ;;  %v6005_v26 = vpop.permute.xlu1 %6004  ;;  %v12473_v54 = vpop.permute.xlu2 %7237 }
 0x2fd   : > { %v5796_v40 = vunpack.c.l.b16 %v5316_v59  ;;  %v5715_v20 = vsel %vm9064_vm6, %v5710_v21, %v5714_v57  ;;  %v6924_v38 = vrot.slane %v6923_v11, 4  ;;  %v6933_v37 = vrot.slane %v6931_v16, 5  ;;  %v3860_v11 = vpop.f32.mrf.mxu3 }
 0x2fe   : > { %v6928_v10 = vor.u32 %v6927_v41, %v6925_v58  ;;  %v5967_v55 = vunpack.c.l.b16 %v5715_v20  ;;  %v3928_v51 = vmul.f32 %v12190_v28, %v3892_v63  ;;  %v7055_v61 = vpack.c.b16 %v7028_v18, %v7027_v29  ;;  %5936 = vrot.lane.b32.xlu0 %v8839_v23, %s8922_s20  ;;  %v4200_v41 = vld [vmem:[#allocation3 + $0x94] sm:$0x8] }
 0x2ff   : > { %v5823_v6 = vpack.c.b16 %v5797_v53, %v5796_v40  ;;  %v6926_v24 = vsel %vm9064_vm6, %v6924_v38, %v6925_v58  ;;  %v3929_v44 = vmul.f32 %v12190_v28, %v3893_v19  ;;  %v12484_v19 = vld [vmem:[#allocation3 + $0x110] sm:$0xf]  ;;  %v4363_v59 = vshrl.u32 %v4200_v41, 16 }
 0x300   : > { %v6929_v31 = vrot.slane %v6928_v10, 4  ;;  %v5988_v21 = vpack.c.b16 %v5967_v55, %v5966_v50  ;;  %v7197_v57 = vunpack.c.l.b16 %v6926_v24  ;;  %v3964_v63 = vadd.f32 %v12201_v34, %v3928_v51  ;;  %v14612_v29 = vld [vmem:[#allocation12_spill] sm:$0xff]  ;;  %v12500_v24 = vpop.permute.xlu0 %5926 }
 0x301   : > { %v7273_v18 = vsel %vm1512_vm14, %v7055_v61, %v7156_v22  ;;  %v6043_v53 = vsel %vm1512_vm14, %v5823_v6, %v12369_v14  ;;  %v3965_v58 = vadd.f32 %v12201_v34, %v3929_v44  ;;  %v14610_v14 = vld [vmem:[#allocation11_spill] sm:$0xff]  ;;  %v14613_v20 = vshrl.u32 %v14612_v29, 16  ;;  %v12496_v55 = vld [vmem:[#allocation3 + $0x114] sm:$0xf]  ;;  %v4593_v61 = vld [vmem:[#allocation3 + $0x118] sm:$0x1] }
 0x302   : > { %v6934_v3 = vsel %vm9064_vm6, %v6929_v31, %v6933_v37  ;;  %6014 = vrot.lane.b32.xlu1 %v5988_v21, %s8923_s19  ;;  %v7316_v16 = vsel %vm5110_vm8, %v7273_v18, %v12327_v27  ;;  %v3996_v23 = vmax.f32 %v3964_v63, 0.0  ;;  %v6085_v42 = vsel %vm5110_vm8, %v6043_v53, %v6005_v26  ;;  %v4040_v63 = vld [vmem:[#allocation3 + $0xac] sm:$0x8] }
 0x303   : > { %v7198_v40 = vunpack.c.l.b16 %v6934_v3  ;;  %8664 = vmatmul.msk.bf16.gmra.mxu1 %vm6119_vm9, %v7316_v16  ;;  %v3997_v22 = vmax.f32 %v3965_v58, 0.0  ;;  %8542 = vmatmul.msk.bf16.gmra.mxu3 %vm6119_vm9, %v6085_v42  ;;  %v14611_v6 = vshrl.u32 %v14610_v14, 16  ;;  %v4379_v38 = vrot.slane %v14613_v20, 7  ;;  %v8855_v18 = vld [vmem:[#allocation3 + $0x128] sm:$0xff] }
 0x304   : > { %v4147_v31 = vpack.c.bf16 %v3996_v23, %v3996_v23  ;;  %v8376_v27 = vrot.slane %v4363_v59, 11  ;;  %v3894_v37 = vadd.f32 %v3860_v11, %v11914_v60  ;;  %v14166_v51 = vshrl.u32 %v12484_v19, 16 }
 0x305   : > { %v7220_v50 = vpack.c.b16 %v7198_v40, %v7197_v57  ;;  %v4370_v10 = vrot.slane %v14611_v6, 7  ;;  %v4148_v26 = vpack.c.bf16 %v3997_v22, %v3997_v22  ;;  %v14614_v44 = vshll.u32 %v14610_v14, 16  ;;  %v4963_v14 = vpop.permute.xlu2 %4962 }
 0x306   : > { %v14615_v3 = vshll.u32 %v14612_v29, 16  ;;  %4179 = vst.msk [vmem:[#allocation3 + $0x174] sm:$0xf] %vm4004_vm0, %v4147_v31  ;;  %v3930_v60 = vmul.f32 %v12190_v28, %v3894_v37  ;;  %v14163_v53 = vshll.u32 %v12484_v19, 16  ;;  %v14165_v40 = vshrl.u32 %v12496_v55, 16 }
 0x307   : > { %7245 = vrot.lane.b32.xlu2 %v7220_v50, %s8923_s19  ;;  %v4373_v41 = vor.u32 %v14614_v44, %v4370_v10  ;;  %v4375_v21 = vrot.slane %v4370_v10, 4  ;;  %v14158_v58 = vshll.u32 %v12496_v55, 16  ;;  %4180 = vst.msk [vmem:[#allocation3 + $0x188] sm:$0xf] %vm4004_vm0, %v4148_v26  ;;  %v4752_v23 = vrot.slane %v14166_v51, 4  ;;  %v8821_v26 = vld [vmem:[#allocation3 + $0xf8] sm:$0xff] }
 0x308   : > { %v4382_v57 = vor.u32 %v14615_v3, %v4379_v38  ;;  %v4762_v42 = vshll.u32 %v4593_v61, 16  ;;  %v3966_v50 = vadd.f32 %v12201_v34, %v3930_v60  ;;  %v4753_v22 = vrot.slane %v14163_v53, 5  ;;  %v14616_v34 = vld [vmem:[#allocation8_spill] sm:$0xff] }
 0x309   : > { %v4374_v11 = vsel %vm9551_vm12, %v8376_v27, %v4373_v41  ;;  %v4756_v6 = vrot.slane %v14158_v58, 5  ;;  %v4758_v10 = vrot.slane %v14165_v40, 4  ;;  %v4041_v20 = vsel %vm11705_vm7, 0, %v4040_v63  ;;  %v14618_v41 = vld [vmem:[#allocation9_spill] sm:$0xff]  ;;  %v4103_v58 = vld [vmem:[#allocation3 + $0x130] sm:$0x1] }
 0x30a   : > { %v4383_v16 = vsel %vm9551_vm12, %v4375_v21, %v4382_v57  ;;  %v4834_v59 = vunpack.c.l.b16 %v4374_v11  ;;  %v4764_v29 = vrot.slane %v4762_v42, 5  ;;  %7167 = vrot.lane.b32.xlu1 %v8855_v18, %s8922_s20  ;;  %v3998_v31 = vmax.f32 %v3966_v50, 0.0  ;;  %4042 = vst [vmem:[#allocation3 + $0xac] sm:$0x8] %v4041_v20  ;;  %v14620_v57 = vld [vmem:[#allocation15_spill] sm:$0xff] }
 0x30b   : > { %v4835_v28 = vunpack.c.l.b16 %v4383_v16  ;;  %v4754_v27 = vor.u32 %v4753_v22, %v4752_v23  ;;  %v14617_v37 = vshrl.u32 %v14616_v34, 16  ;;  %v4759_v44 = vor.u32 %v4758_v10, %v4756_v6  ;;  %v14622_v16 = vld [vmem:[#allocation13_spill] sm:$0xff]  ;;  %v12540_v22 = vld [vmem:[#allocation3 + $0x128] sm:$0xf] }
 0x30c   : > { %v14619_v21 = vshrl.u32 %v14618_v41, 16  ;;  %v14621_v60 = vshrl.u32 %v14620_v57, 16  ;;  %v14623_v42 = vshrl.u32 %v14622_v16, 16  ;;  %14625 = vst [vmem:[#allocation16_spill] sm:$0xff] %v12540_v22 }
 0x30d   : > { %v4860_v38 = vpack.c.b16 %v4835_v28, %v4834_v59  ;;  %v6545_v61 = vrot.slane %v14617_v37, 7  ;;  %v4149_v59 = vpack.c.bf16 %v3998_v31, %v3998_v31  ;;  %v4755_v23 = vrot.slane %v4754_v27, 4 }
 0x30e   : > { %v6554_v3 = vrot.slane %v14619_v21, 7  ;;  %v5334_v11 = vrot.slane %v14621_v60, 7  ;;  %v5343_v63 = vrot.slane %v14623_v42, 7  ;;  %v14624_v28 = vshll.u32 %v14616_v34, 16 }
 0x30f   : > { %v5082_v18 = vsel %vm1512_vm14, %v4860_v38, %v4963_v14  ;;  %4970 = vrot.lane.b32.xlu2 %v8821_v26, %s8922_s20  ;;  %v4760_v10 = vrot.slane %v4759_v44, 4  ;;  %v6550_v20 = vrot.slane %v6545_v61, 4  ;;  %v14626_v37 = vshll.u32 %v14618_v41, 16  ;;  %4181 = vst.msk [vmem:[#allocation3 + $0x18c] sm:$0xf] %vm4004_vm0, %v4149_v59 }
 0x310   : > { %v6548_v50 = vor.u32 %v14624_v28, %v6545_v61  ;;  %v14627_v60 = vshll.u32 %v14620_v57, 16  ;;  %v4757_v14 = vsel %vm9064_vm6, %v4755_v23, %v4756_v6  ;;  %v5339_v38 = vrot.slane %v5334_v11, 4  ;;  %v12554_v26 = vld [vmem:[#allocation3 + $0x12c] sm:$0xf]  ;;  %v5043_v61 = vpop.permute.xlu0 %5042 }
 0x311   : > { %v6557_v21 = vor.u32 %v14626_v37, %v6554_v3  ;;  %v14628_v31 = vshll.u32 %v14622_v16, 16  ;;  %v4104_v34 = vsel %vm11068_vm5, 0, %v4103_v58  ;;  %14629 = vst [vmem:[#allocation17_spill] sm:$0xff] %v12554_v26  ;;  %v4765_v44 = vsel %vm9064_vm6, %v4760_v10, %v4764_v29  ;;  %v12566_v59 = vld [vmem:[#allocation3 + $0x12c] sm:$0xf] }
 0x312   : > { %v5337_v42 = vor.u32 %v14627_v60, %v5334_v11  ;;  %v5004_v41 = vunpack.c.l.b16 %v4757_v14  ;;  %4105 = vst [vmem:[#allocation3 + $0x130] sm:$0x1] %v4104_v34  ;;  %v14162_v6 = vshrl.u32 %v12540_v22, 16  ;;  %v5005_v57 = vunpack.c.l.b16 %v4765_v44  ;;  %v6394_v23 = vld [vmem:[#allocation3 + $0xac] sm:$0x8]  ;;  %v7158_v14 = vpop.permute.xlu1 %7157 }
 0x313   : > { %v5346_v27 = vor.u32 %v14628_v31, %v5343_v63  ;;  %v6558_v3 = vsel %vm9551_vm12, %v6550_v20, %v6557_v21  ;;  %v14159_v58 = vshll.u32 %v12540_v22, 16  ;;  %v12564_v63 = vld [vmem:[#allocation3 + $0x128] sm:$0xf]  ;;  %v5164_v29 = vld [vmem:[#allocation3 + $0xac] sm:$0x8]  ;;  %v14161_v10 = vshrl.u32 %v12554_v26, 16 }
 0x314   : > { %v7030_v11 = vunpack.c.l.b16 %v6558_v3  ;;  %v14160_v20 = vshll.u32 %v12554_v26, 16  ;;  %v5124_v37 = vsel %vm5110_vm8, %v5082_v18, %v5043_v61  ;;  %v5025_v21 = vpack.c.b16 %v5005_v57, %v5004_v41 }
 0x315   : > { %v5347_v16 = vsel %vm9551_vm12, %v5339_v38, %v5346_v27  ;;  %v6538_v60 = vshrl.u32 %v6394_v23, 16  ;;  %v5327_v31 = vshrl.u32 %v5164_v29, 16  ;;  %v5716_v38 = vrot.slane %v14162_v6, 4  ;;  %8563 = vmatmul.msk.bf16.gmra.mxu0 %vm6119_vm9, %v5124_v37 }
 0x316   : > { %v5799_v28 = vunpack.c.l.b16 %v5347_v16  ;;  %v5717_v27 = vrot.slane %v14159_v58, 5  ;;  %v5720_v34 = vrot.slane %v14160_v20, 5  ;;  %v5722_v44 = vrot.slane %v14161_v10, 4  ;;  %5052 = vrot.lane.b32.xlu0 %v5025_v21, %s8923_s19  ;;  %v4203_v58 = vld [vmem:[#allocation3 + $0xac] sm:$0x8] }
 0x317   : > { %v14164_v18 = vshrl.u32 %v12564_v63, 16  ;;  %v8578_v61 = vrot.slane %v6538_v60, 11  ;;  %v8456_v41 = vrot.slane %v5327_v31, 11  ;;  %v14168_v3 = vshll.u32 %v12564_v63, 16 }
 0x318   : > { %v14173_v57 = vshrl.u32 %v12566_v59, 16  ;;  %v5718_v16 = vor.u32 %v5717_v27, %v5716_v38  ;;  %v5723_v23 = vor.u32 %v5722_v44, %v5720_v34  ;;  %v14186_v29 = vshll.u32 %v12566_v59, 16 }
 0x319   : > { %v6935_v37 = vrot.slane %v14164_v18, 4  ;;  %v6549_v20 = vsel %vm9551_vm12, %v8578_v61, %v6548_v50  ;;  %v5338_v21 = vsel %vm9551_vm12, %v8456_v41, %v5337_v42  ;;  %v5557_v60 = vld [vmem:[#allocation3 + $0x130] sm:$0x1]  ;;  %v6936_v10 = vrot.slane %v14168_v3, 5 }
 0x31a   : > { %v6789_v31 = vld [vmem:[#allocation3 + $0x130] sm:$0x1]  ;;  %v6941_v38 = vrot.slane %v14173_v57, 4  ;;  %v7029_v27 = vunpack.c.l.b16 %v6549_v20  ;;  %v5798_v44 = vunpack.c.l.b16 %v5338_v21  ;;  %v5719_v6 = vrot.slane %v5718_v16, 4  ;;  %v12599_v20 = vpop.permute.xlu2 %7239  ;;  %v8840_v16 = vld [vmem:[#allocation3 + $0x140] sm:$0xff] }
 0x31b   : > { %v5724_v53 = vrot.slane %v5723_v23, 4  ;;  %v5726_v18 = vshll.u32 %v5557_v60, 16  ;;  %v6937_v40 = vor.u32 %v6936_v10, %v6935_v37  ;;  %v6939_v50 = vrot.slane %v14186_v29, 5  ;;  %v6007_v23 = vpop.permute.xlu1 %6006  ;;  %v12617_v60 = vld [vmem:[#allocation3 + $0x12c] sm:$0xf] }
 0x31c   : > { %v6945_v61 = vshll.u32 %v6789_v31, 16  ;;  %v7056_v51 = vpack.c.b16 %v7030_v11, %v7029_v27  ;;  %v5824_v42 = vpack.c.b16 %v5799_v28, %v5798_v44  ;;  %v5721_v41 = vsel %vm9064_vm6, %v5719_v6, %v5720_v34  ;;  %v12604_v28 = vld [vmem:[#allocation3 + $0x128] sm:$0xf]  ;;  %v12626_v27 = vpop.permute.xlu0 %5928  ;;  %v4109_v29 = vld [vmem:[#allocation3 + $0x160] sm:$0x1] }
 0x31d   : > { %v4385_v7 = vshrl.u32 %v4203_v58, 16  ;;  %v5728_v3 = vrot.slane %v5726_v18, 5  ;;  %v5968_v26 = vunpack.c.l.b16 %v5721_v41  ;;  %v6938_v22 = vrot.slane %v6937_v40, 4 }
 0x31e   : > { %v6942_v57 = vor.u32 %v6941_v38, %v6939_v50  ;;  %v7276_v10 = vsel %vm1512_vm14, %v7056_v51, %v7158_v14  ;;  %v6046_v37 = vsel %vm1512_vm14, %v5824_v42, %v12500_v24  ;;  %v6947_v21 = vrot.slane %v6945_v61, 5  ;;  %5938 = vrot.lane.b32.xlu0 %v8840_v16, %s8922_s20  ;;  %v4594_v38 = vld [vmem:[#allocation3 + $0x130] sm:$0x1] }
 0x31f   : > { %v8377_v11 = vrot.slane %v4385_v7, 11  ;;  %v5729_v6 = vsel %vm9064_vm6, %v5724_v53, %v5728_v3  ;;  %v6940_v40 = vsel %vm9064_vm6, %v6938_v22, %v6939_v50  ;;  %v7318_v34 = vsel %vm5110_vm8, %v7276_v10, %v12473_v54  ;;  %v8868_v53 = vld [vmem:[#allocation2 + $0xb0] sm:$0xff] }
 0x320   : > { %v6943_v58 = vrot.slane %v6942_v57, 4  ;;  %v5969_v51 = vunpack.c.l.b16 %v5729_v6  ;;  %v7199_v14 = vunpack.c.l.b16 %v6940_v40  ;;  %8665 = vmatmul.msk.bf16.gmra.mxu1 %vm6119_vm9, %v7318_v34  ;;  %v6087_v7 = vsel %vm5110_vm8, %v6046_v37, %v6007_v23  ;;  %8746 = vmatmul.msk.bf16.gmra.mxu2 %vm1463_vm13, %v8868_v53  ;;  %v4106_v6 = vld [vmem:[#allocation3 + $0x148] sm:$0x1]  ;;  %v12644_v34 = vld [vmem:[#allocation3 + $0x144] sm:$0xf] }
 0x321   : > { %v14630_v24 = vshrl.u32 %v11879_v33, 16  ;;  %v14631_v3 = vshrl.u32 %v11883_v32, 16  ;;  %8543 = vmatmul.msk.bf16.gmra.mxu3 %vm6119_vm9, %v6087_v7  ;;  %v14185_v57 = vshrl.u32 %v12604_v28, 16  ;;  %v14184_v31 = vshll.u32 %v12604_v28, 16 }
 0x322   : > { %v6948_v22 = vsel %vm9064_vm6, %v6943_v58, %v6947_v21  ;;  %v5989_v44 = vpack.c.b16 %v5969_v51, %v5968_v26  ;;  %v14632_v61 = vshll.u32 %v11879_v33, 16  ;;  %v14633_v16 = vshll.u32 %v11883_v32, 16  ;;  %v12642_v32 = vld [vmem:[#allocation3 + $0x140] sm:$0xf] }
 0x323   : > { %v4392_v18 = vrot.slane %v14630_v24, 7  ;;  %v4401_v54 = vrot.slane %v14631_v3, 7  ;;  %v7200_v50 = vunpack.c.l.b16 %v6948_v22  ;;  %v14179_v10 = vshrl.u32 %v12617_v60, 16 }
 0x324   : > { %v14175_v37 = vshll.u32 %v12617_v60, 16  ;;  %v4766_v21 = vrot.slane %v14185_v57, 4  ;;  %6016 = vrot.lane.b32.xlu1 %v5989_v44, %s8923_s19  ;;  %v4767_v40 = vrot.slane %v14184_v31, 5  ;;  %v4776_v58 = vshll.u32 %v4594_v38, 16 }
 0x325   : > { %v4395_v42 = vor.u32 %v14632_v61, %v4392_v18  ;;  %v4397_v41 = vrot.slane %v4392_v18, 4  ;;  %v4404_v23 = vor.u32 %v14633_v16, %v4401_v54  ;;  %v7221_v26 = vpack.c.b16 %v7200_v50, %v7199_v14  ;;  %v12652_v18 = vld [vmem:[#allocation3 + $0x140] sm:$0xf]  ;;  %v4965_v54 = vpop.permute.xlu2 %4964 }
 0x326   : > { %v4770_v24 = vrot.slane %v14175_v37, 5  ;;  %v4772_v14 = vrot.slane %v14179_v10, 4  ;;  %v4768_v53 = vor.u32 %v4767_v40, %v4766_v21  ;;  %v4778_v22 = vrot.slane %v4776_v58, 5  ;;  %v8856_v58 = vld [vmem:[#allocation3 + $0x140] sm:$0xff] }
 0x327   : > { %v4396_v33 = vsel %vm9551_vm12, %v8377_v11, %v4395_v42  ;;  %v4405_v51 = vsel %vm9551_vm12, %v4397_v41, %v4404_v23  ;;  %7247 = vrot.lane.b32.xlu2 %v7221_v26, %s8923_s19  ;;  %v4107_v3 = vsel %vm11068_vm5, 0, %v4106_v6  ;;  %v14177_v44 = vshrl.u32 %v12642_v32, 16  ;;  %v12661_v23 = vld [vmem:[#allocation3 + $0x144] sm:$0xf] }
 0x328   : > { %v4836_v7 = vunpack.c.l.b16 %v4396_v33  ;;  %v4837_v11 = vunpack.c.l.b16 %v4405_v51  ;;  %v4773_v38 = vor.u32 %v4772_v14, %v4770_v24  ;;  %4108 = vst [vmem:[#allocation3 + $0x148] sm:$0x1] %v4107_v3  ;;  %v14174_v50 = vshll.u32 %v12642_v32, 16 }
 0x329   : > { %v14176_v61 = vshrl.u32 %v12644_v34, 16  ;;  %v4769_v41 = vrot.slane %v4768_v53, 4  ;;  %v14178_v16 = vshll.u32 %v12644_v34, 16  ;;  %v14181_v21 = vshrl.u32 %v12652_v18, 16  ;;  %v4043_v53 = vld [vmem:[#allocation3 + $0xc4] sm:$0x8] }
 0x32a   : > { %v4861_v42 = vpack.c.b16 %v4837_v11, %v4836_v7  ;;  %v4774_v26 = vrot.slane %v4773_v38, 4  ;;  %v5730_v6 = vrot.slane %v14177_v44, 4  ;;  %v5731_v33 = vrot.slane %v14174_v50, 5 }
 0x32b   : > { %v5736_v40 = vrot.slane %v14176_v61, 4  ;;  %v4771_v7 = vsel %vm9064_vm6, %v4769_v41, %v4770_v24  ;;  %v5734_v14 = vrot.slane %v14178_v16, 5  ;;  %v14180_v11 = vshll.u32 %v12652_v18, 16  ;;  %v5045_v61 = vpop.permute.xlu0 %5044 }
 0x32c   : > { %v5085_v51 = vsel %vm1512_vm14, %v4861_v42, %v4965_v54  ;;  %v4779_v3 = vsel %vm9064_vm6, %v4774_v26, %v4778_v22  ;;  %v5006_v38 = vunpack.c.l.b16 %v4771_v7  ;;  %v5732_v50 = vor.u32 %v5731_v33, %v5730_v6  ;;  %7169 = vrot.lane.b32.xlu1 %v8856_v58, %s8922_s20  ;;  %v8822_v54 = vld [vmem:[#allocation3 + $0x110] sm:$0xff] }
 0x32d   : > { %v14182_v37 = vshrl.u32 %v12661_v23, 16  ;;  %v5007_v42 = vunpack.c.l.b16 %v4779_v3  ;;  %v5737_v44 = vor.u32 %v5736_v40, %v5734_v14  ;;  %v14183_v24 = vshll.u32 %v12661_v23, 16 }
 0x32e   : > { %v6949_v41 = vrot.slane %v14181_v21, 4  ;;  %v5733_v16 = vrot.slane %v5732_v50, 4  ;;  %v6950_v10 = vrot.slane %v14180_v11, 5  ;;  %v4044_v26 = vsel %vm11705_vm7, 0, %v4043_v53 }
 0x32f   : > { %v6955_v22 = vrot.slane %v14182_v37, 4  ;;  %4972 = vrot.lane.b32.xlu2 %v8822_v54, %s8922_s20  ;;  %v5026_v6 = vpack.c.b16 %v5007_v42, %v5006_v38  ;;  %v5558_v33 = vld [vmem:[#allocation3 + $0x148] sm:$0x1]  ;;  %v5738_v40 = vrot.slane %v5737_v44, 4  ;;  %v6953_v7 = vrot.slane %v14183_v24, 5 }
 0x330   : > { %v6790_v58 = vld [vmem:[#allocation3 + $0x148] sm:$0x1]  ;;  %v5126_v50 = vsel %vm5110_vm8, %v5085_v51, %v5045_v61  ;;  %v5735_v3 = vsel %vm9064_vm6, %v5733_v16, %v5734_v14  ;;  %v5740_v11 = vshll.u32 %v5558_v33, 16  ;;  %v6951_v21 = vor.u32 %v6950_v10, %v6949_v41  ;;  %4045 = vst [vmem:[#allocation3 + $0xc4] sm:$0x8] %v4044_v26  ;;  %v8869_v61 = vld [vmem:[#allocation2 + $0xc8] sm:$0xff] }
 0x331   : > { %v6959_v37 = vshll.u32 %v6790_v58, 16  ;;  %8564 = vmatmul.msk.bf16.gmra.mxu0 %vm6119_vm9, %v5126_v50  ;;  %5054 = vrot.lane.b32.xlu0 %v5026_v6, %s8923_s19  ;;  %v5970_v53 = vunpack.c.l.b16 %v5735_v3  ;;  %v6956_v38 = vor.u32 %v6955_v22, %v6953_v7  ;;  %v14634_v44 = vshrl.u32 %v11920_v52, 16  ;;  %v14636_v14 = vld [vmem:[#allocation19_spill] sm:$0xff]  ;;  %v12707_v3 = vld [vmem:[#allocation3 + $0x140] sm:$0xf] }
 0x332   : > { %v14635_v42 = vshrl.u32 %v11926_v56, 16  ;;  %v5742_v51 = vrot.slane %v5740_v11, 5  ;;  %v6952_v31 = vrot.slane %v6951_v21, 4  ;;  %v14637_v10 = vshrl.u32 %v14636_v14, 16  ;;  %8747 = vmatmul.msk.bf16.gmra.mxu2 %vm1463_vm13, %v8869_v61 }
 0x333   : > { %v5356_v54 = vrot.slane %v14634_v44, 7  ;;  %v6961_v16 = vrot.slane %v6959_v37, 5  ;;  %v6957_v26 = vrot.slane %v6956_v38, 4  ;;  %v14638_v33 = vshll.u32 %v11920_v52, 16  ;;  %v12716_v52 = vld [vmem:[#allocation3 + $0x144] sm:$0xf] }
 0x334   : > { %v5365_v24 = vrot.slane %v14635_v42, 7  ;;  %v6567_v41 = vrot.slane %v14637_v10, 7  ;;  %v14639_v22 = vshll.u32 %v11926_v56, 16  ;;  %v5743_v11 = vsel %vm9064_vm6, %v5738_v40, %v5742_v51  ;;  %14641 = vst [vmem:[#allocation10_spill] sm:$0xff] %v12716_v52  ;;  %v12722_v10 = vpop.permute.xlu1 %7159 }
 0x335   : > { %v5359_v58 = vor.u32 %v14638_v33, %v5356_v54  ;;  %v5361_v6 = vrot.slane %v5356_v54, 4  ;;  %v6954_v37 = vsel %vm9064_vm6, %v6952_v31, %v6953_v7  ;;  %v14640_v21 = vshll.u32 %v14636_v14, 16  ;;  %v6165_v54 = vpop.f32.mrf.mxu3  ;;  %v8841_v14 = vld [vmem:[#allocation3 + $0x158] sm:$0xff] }
 0x336   : > { %v5368_v50 = vor.u32 %v14639_v22, %v5365_v24  ;;  %v6572_v44 = vrot.slane %v6567_v41, 4  ;;  %v5971_v42 = vunpack.c.l.b16 %v5743_v11  ;;  %v6962_v56 = vsel %vm9064_vm6, %v6957_v26, %v6961_v16  ;;  %v4595_v22 = vld [vmem:[#allocation3 + $0x148] sm:$0x1] }
 0x337   : > { %v6570_v38 = vor.u32 %v14640_v21, %v6567_v41  ;;  %v7201_v24 = vunpack.c.l.b16 %v6954_v37  ;;  %v7202_v40 = vunpack.c.l.b16 %v6962_v56  ;;  %v14642_v31 = vshrl.u32 %v11950_v12, 16  ;;  %v6298_v41 = vpop.f32.mrf.mxu0  ;;  %v5167_v21 = vld [vmem:[#allocation3 + $0xc4] sm:$0x8] }
 0x338   : > { %v5369_v61 = vsel %vm9551_vm12, %v5361_v6, %v5368_v50  ;;  %v14190_v33 = vshrl.u32 %v12707_v3, 16  ;;  %v5990_v11 = vpack.c.b16 %v5971_v42, %v5970_v53  ;;  %v6397_v57 = vld [vmem:[#allocation3 + $0xc4] sm:$0x8]  ;;  %v14187_v16 = vshll.u32 %v12707_v3, 16 }
 0x339   : > { %v5801_v51 = vunpack.c.l.b16 %v5369_v61  ;;  %v6576_v7 = vrot.slane %v14642_v31, 7  ;;  %v14188_v26 = vshrl.u32 %v12716_v52, 16  ;;  %v12729_v6 = vadd.f32 %v6298_v41, %v6165_v54  ;;  %5940 = vrot.lane.b32.xlu0 %v8841_v14, %s8922_s20 }
 0x33a   : > { %v7222_v50 = vpack.c.b16 %v7202_v40, %v7201_v24  ;;  %v5349_v37 = vshrl.u32 %v5167_v21, 16  ;;  %v6560_v56 = vshrl.u32 %v6397_v57, 16  ;;  %v14643_v61 = vshll.u32 %v11950_v12, 16  ;;  %6018 = vrot.lane.b32.xlu1 %v5990_v11, %s8923_s19  ;;  %v12742_v57 = vld [vmem:[#allocation3 + $0x158] sm:$0xf] }
 0x33b   : > { %v14189_v53 = vshll.u32 %v12716_v52, 16  ;;  %v4780_v42 = vrot.slane %v14190_v33, 4  ;;  %v4781_v54 = vrot.slane %v14187_v16, 5  ;;  %v4786_v24 = vrot.slane %v14188_v26, 4  ;;  %14644 = vst [vmem:[#allocation4_spill] sm:$0xff] %v12742_v57 }
 0x33c   : > { %v6579_v31 = vor.u32 %v14643_v61, %v6576_v7  ;;  %7249 = vrot.lane.b32.xlu2 %v7222_v50, %s8923_s19  ;;  %v8457_v12 = vrot.slane %v5349_v37, 11  ;;  %v8579_v40 = vrot.slane %v6560_v56, 11  ;;  %v4790_v14 = vshll.u32 %v4595_v22, 16  ;;  %v12751_v16 = vld [vmem:[#allocation3 + $0x15c] sm:$0xf] }
 0x33d   : > { %v4782_v11 = vor.u32 %v4781_v54, %v4780_v42  ;;  %v4784_v21 = vrot.slane %v14189_v53, 5  ;;  %v4110_v61 = vsel %vm11068_vm5, 0, %v4109_v29  ;;  %14645 = vst [vmem:[#allocation5_spill] sm:$0xff] %v12751_v16  ;;  %v14194_v54 = vshll.u32 %v12742_v57, 16  ;;  %v12773_v52 = vld [vmem:[#allocation3 + $0x15c] sm:$0xf] }
 0x33e   : > { %v6580_v7 = vsel %vm9551_vm12, %v6572_v44, %v6579_v31  ;;  %v5360_v26 = vsel %vm9551_vm12, %v8457_v12, %v5359_v58  ;;  %v6571_v50 = vsel %vm9551_vm12, %v8579_v40, %v6570_v38  ;;  %v4792_v37 = vrot.slane %v4790_v14, 5  ;;  %4111 = vst [vmem:[#allocation3 + $0x160] sm:$0x1] %v4110_v61  ;;  %v12763_v12 = vld [vmem:[#allocation3 + $0x158] sm:$0xf]  ;;  %v6009_v61 = vpop.permute.xlu1 %6008 }
 0x33f   : > { %v7032_v41 = vunpack.c.l.b16 %v6580_v7  ;;  %v14191_v44 = vshrl.u32 %v12742_v57, 16  ;;  %v5800_v22 = vunpack.c.l.b16 %v5360_v26  ;;  %v7031_v56 = vunpack.c.l.b16 %v6571_v50  ;;  %14646 = vst [vmem:[#allocation6_spill] sm:$0xff] %v12763_v12  ;;  %v8857_v14 = vld [vmem:[#allocation3 + $0x158] sm:$0xff] }
 0x340   : > { %v4783_v31 = vrot.slane %v4782_v11, 4  ;;  %v4787_v42 = vor.u32 %v4786_v24, %v4784_v21  ;;  %v14198_v29 = vshrl.u32 %v12751_v16, 16  ;;  %v14195_v7 = vshll.u32 %v12751_v16, 16  ;;  %v8823_v24 = vld [vmem:[#allocation3 + $0x128] sm:$0xff]  ;;  %14647 = vst [vmem:[#allocation14_spill] sm:$0xff] %v12773_v52 }
 0x341   : > { %v5744_v58 = vrot.slane %v14191_v44, 4  ;;  %v5825_v38 = vpack.c.b16 %v5801_v51, %v5800_v22  ;;  %v7057_v40 = vpack.c.b16 %v7032_v41, %v7031_v56  ;;  %v5745_v53 = vrot.slane %v14194_v54, 5 }
 0x342   : > { %v4785_v26 = vsel %vm9064_vm6, %v4783_v31, %v4784_v21  ;;  %v4788_v11 = vrot.slane %v4787_v42, 4  ;;  %v5748_v33 = vrot.slane %v14195_v7, 5  ;;  %v5750_v44 = vrot.slane %v14198_v29, 4  ;;  %7171 = vrot.lane.b32.xlu1 %v8857_v14, %s8922_s20  ;;  %v4046_v29 = vld [vmem:[#allocation3 + $0xdc] sm:$0x8] }
 0x343   : > { %v5008_v50 = vunpack.c.l.b16 %v4785_v26  ;;  %v6049_v51 = vsel %vm1512_vm14, %v5825_v38, %v12626_v27  ;;  %v7279_v41 = vsel %vm1512_vm14, %v7057_v40, %v12722_v10  ;;  %v14197_v22 = vshrl.u32 %v12763_v12, 16  ;;  %v4206_v27 = vld [vmem:[#allocation3 + $0xc4] sm:$0x8] }
 0x344   : > { %v4793_v21 = vsel %vm9064_vm6, %v4788_v11, %v4792_v37  ;;  %v7320_v56 = vsel %vm5110_vm8, %v7279_v41, %v12599_v20  ;;  %4974 = vrot.lane.b32.xlu2 %v8823_v24, %s8922_s20  ;;  %v6089_v31 = vsel %vm5110_vm8, %v6049_v51, %v6009_v61  ;;  %v5746_v26 = vor.u32 %v5745_v53, %v5744_v58  ;;  %v7396_v20 = vpop.f32.mrf.mxu1  ;;  %v12792_v11 = vpop.permute.xlu2 %7241 }
 0x345   : > { %v5009_v42 = vunpack.c.l.b16 %v4793_v21  ;;  %8666 = vmatmul.msk.bf16.gmra.mxu1 %vm6119_vm9, %v7320_v56  ;;  %8544 = vmatmul.msk.bf16.gmra.mxu3 %vm6119_vm9, %v6089_v31  ;;  %v5559_v10 = vld [vmem:[#allocation3 + $0x160] sm:$0x1]  ;;  %v5751_v38 = vor.u32 %v5750_v44, %v5748_v33  ;;  %v14196_v37 = vshll.u32 %v12763_v12, 16  ;;  %v14200_v40 = vshrl.u32 %v12773_v52, 16 }
 0x346   : > { %v14199_v14 = vshll.u32 %v12773_v52, 16  ;;  %v5747_v61 = vrot.slane %v5746_v26, 4  ;;  %v5754_v51 = vshll.u32 %v5559_v10, 16  ;;  %v6791_v53 = vld [vmem:[#allocation3 + $0x160] sm:$0x1]  ;;  %v6963_v58 = vrot.slane %v14197_v22, 4  ;;  %v7754_v10 = vpop.f32.mrf.mxu2 }
 0x347   : > { %v5027_v24 = vpack.c.b16 %v5009_v42, %v5008_v50  ;;  %v5752_v41 = vrot.slane %v5751_v38, 4  ;;  %v6964_v44 = vrot.slane %v14196_v37, 5  ;;  %v6969_v56 = vrot.slane %v14200_v40, 4  ;;  %v4596_v16 = vld [vmem:[#allocation3 + $0x160] sm:$0x1] }
 0x348   : > { %v6967_v21 = vrot.slane %v14199_v14, 5  ;;  %v5749_v50 = vsel %vm9064_vm6, %v5747_v61, %v5748_v33  ;;  %v5756_v31 = vrot.slane %v5754_v51, 5  ;;  %v6973_v42 = vshll.u32 %v6791_v53, 16 }
 0x349   : > { %5056 = vrot.lane.b32.xlu0 %v5027_v24, %s8923_s19  ;;  %v4407_v26 = vshrl.u32 %v4206_v27, 16  ;;  %v5972_v54 = vunpack.c.l.b16 %v5749_v50  ;;  %v6965_v38 = vor.u32 %v6964_v44, %v6963_v58  ;;  %v14648_v37 = vshrl.u32 %v12035_v47, 16  ;;  %v12816_v58 = vld [vmem:[%s13754_s5] ss:$0 sm:$0xff] }
 0x34a   : > { %v6970_v7 = vor.u32 %v6969_v56, %v6967_v21  ;;  %v5757_v14 = vsel %vm9064_vm6, %v5752_v41, %v5756_v31  ;;  %v6975_v40 = vrot.slane %v6973_v42, 5  ;;  %v14649_v24 = vshrl.u32 %v12046_v4, 16  ;;  %v8842_v42 = vld [vmem:[#allocation3 + $0x170] sm:$0xff] }
 0x34b   : > { %v4414_v22 = vrot.slane %v14648_v37, 7  ;;  %v8378_v52 = vrot.slane %v4407_v26, 11  ;;  %v5973_v33 = vunpack.c.l.b16 %v5757_v14  ;;  %v6966_v61 = vrot.slane %v6965_v38, 4  ;;  %v12823_v14 = vpop.permute.xlu0 %5930 }
 0x34c   : > { %v4423_v12 = vrot.slane %v14649_v24, 7  ;;  %v6971_v51 = vrot.slane %v6970_v7, 4  ;;  %v14650_v27 = vshll.u32 %v12035_v47, 16  ;;  %v14651_v44 = vshll.u32 %v12046_v4, 16  ;;  %v12828_v47 = vld [vmem:[%s13757_s8] ss:$0 sm:$0xff] }
 0x34d   : > { %v4419_v37 = vrot.slane %v4414_v22, 4  ;;  %v7476_v56 = vadd.f32 %v7396_v20, %v12729_v6  ;;  %v4047_v50 = vsel %vm11705_vm7, 0, %v4046_v29  ;;  %v5991_v7 = vpack.c.b16 %v5973_v33, %v5972_v54  ;;  %v12839_v29 = vld [vmem:[%s13755_s6] ss:$0 sm:$0xff] }
 0x34e   : > { %v4417_v53 = vor.u32 %v14650_v27, %v4414_v22  ;;  %v4426_v41 = vor.u32 %v14651_v44, %v4423_v12  ;;  %v6968_v31 = vsel %vm9064_vm6, %v6966_v61, %v6967_v21  ;;  %v6976_v4 = vsel %vm9064_vm6, %v6971_v51, %v6975_v40  ;;  %4048 = vst [vmem:[#allocation3 + $0xdc] sm:$0x8] %v4047_v50  ;;  %v6167_v21 = vpop.f32.mrf.mxu3  ;;  %v6300_v40 = vpop.f32.mrf.mxu0  ;;  %v12852_v51 = vld [vmem:[%s13758_s9] ss:$0 sm:$0xff] }
 0x34f   : > { %v7203_v12 = vunpack.c.l.b16 %v6968_v31  ;;  %v7204_v22 = vunpack.c.l.b16 %v6976_v4  ;;  %6020 = vrot.lane.b32.xlu1 %v5991_v7, %s8923_s19  ;;  %v14652_v38 = vshrl.u32 %v12107_v15, 16  ;;  %v14653_v33 = vshrl.u32 %v12111_v25, 16  ;;  %v7398_v27 = vpop.f32.mrf.mxu1  ;;  %v12860_v31 = vld [vmem:[#allocation3 + $0x158] sm:$0xf] }
 0x350   : > { %v4418_v6 = vsel %vm9551_vm12, %v8378_v52, %v4417_v53  ;;  %v4427_v54 = vsel %vm9551_vm12, %v4419_v37, %v4426_v41  ;;  %v7512_v52 = vmul.f32 %v12816_v58, %v7476_v56  ;;  %v4967_v37 = vpop.permute.xlu2 %4966  ;;  %v14654_v44 = vshrl.u32 %v12075_v30, 16  ;;  %14656 = vst [vmem:[#allocation18_spill] sm:$0xff] %v12860_v31 }
 0x351   : > { %v4838_v20 = vunpack.c.l.b16 %v4418_v6  ;;  %v4839_v26 = vunpack.c.l.b16 %v4427_v54  ;;  %v6589_v24 = vrot.slane %v14652_v38, 7  ;;  %v6598_v61 = vrot.slane %v14653_v33, 7  ;;  %5942 = vrot.lane.b32.xlu0 %v8842_v42, %s8922_s20 }
 0x352   : > { %v7223_v53 = vpack.c.b16 %v7204_v22, %v7203_v12  ;;  %v5378_v41 = vrot.slane %v14654_v44, 7  ;;  %v14655_v56 = vshrl.u32 %v12089_v43, 16  ;;  %v7838_v7 = vmul.f32 %v12828_v47, %v7754_v10  ;;  %v12865_v22 = vld [vmem:[#allocation3 + $0x15c] sm:$0xf] }
 0x353   : > { %v4862_v4 = vpack.c.b16 %v4839_v26, %v4838_v20  ;;  %v7548_v6 = vadd.f32 %v12839_v29, %v7512_v52  ;;  %v14657_v54 = vshll.u32 %v12107_v15, 16  ;;  %v6594_v12 = vrot.slane %v6589_v24, 4  ;;  %14658 = vst [vmem:[#allocation7_spill] sm:$0xff] %v12865_v22  ;;  %v7756_v26 = vpop.f32.mrf.mxu2 }
 0x354   : > { %v5387_v50 = vrot.slane %v14655_v56, 7  ;;  %7251 = vrot.lane.b32.xlu2 %v7223_v53, %s8923_s19  ;;  %v14659_v42 = vshll.u32 %v12111_v25, 16  ;;  %v14660_v44 = vshll.u32 %v12075_v30, 16  ;;  %v5383_v10 = vrot.slane %v5378_v41, 4 }
 0x355   : > { %v6592_v38 = vor.u32 %v14657_v54, %v6589_v24  ;;  %v14661_v57 = vshll.u32 %v12089_v43, 16  ;;  %v5088_v52 = vsel %vm1512_vm14, %v4862_v4, %v4967_v37  ;;  %v7874_v15 = vadd.f32 %v12852_v51, %v7838_v7  ;;  %v6400_v53 = vld [vmem:[#allocation3 + $0xdc] sm:$0x8] }
 0x356   : > { %v6601_v33 = vor.u32 %v14659_v42, %v6598_v61  ;;  %v5381_v56 = vor.u32 %v14660_v44, %v5378_v41  ;;  %v6301_v24 = vadd.f32 %v6300_v40, %v6167_v21  ;;  %v14210_v54 = vshrl.u32 %v12860_v31, 16  ;;  %v5170_v61 = vld [vmem:[#allocation3 + $0xdc] sm:$0x8]  ;;  %v8858_v40 = vld [vmem:[#allocation3 + $0x170] sm:$0xff] }
 0x357   : > { %v5390_v20 = vor.u32 %v14661_v57, %v5387_v50  ;;  %v14209_v43 = vshll.u32 %v12860_v31, 16  ;;  %v14211_v57 = vshrl.u32 %v12865_v22, 16  ;;  %v6582_v37 = vshrl.u32 %v6400_v53, 16  ;;  %7173 = vrot.lane.b32.xlu1 %v8858_v40, %s8922_s20  ;;  %v7162_v53 = vpop.permute.xlu1 %7161 }
 0x358   : > { %v6602_v25 = vsel %vm9551_vm12, %v6594_v12, %v6601_v33  ;;  %v5371_v50 = vshrl.u32 %v5170_v61, 16  ;;  %v7906_v7 = vadd.f32 %v7874_v15, %v7548_v6  ;;  %v14214_v4 = vshll.u32 %v12865_v22, 16  ;;  %v5047_v33 = vpop.permute.xlu0 %5046  ;;  %v8824_v6 = vld [vmem:[#allocation3 + $0x140] sm:$0xff] }
 0x359   : > { %v5391_v30 = vsel %vm9551_vm12, %v5383_v10, %v5390_v20  ;;  %v7034_v41 = vunpack.c.l.b16 %v6602_v25  ;;  %v4794_v12 = vrot.slane %v14210_v54, 4  ;;  %v4795_v42 = vrot.slane %v14209_v43, 5  ;;  %v12900_v43 = vld [vmem:[#allocation3 + $0x170] sm:$0xf]  ;;  %v12902_v54 = vpop.f32.mrf.mxu3 }
 0x35a   : > { %v5803_v21 = vunpack.c.l.b16 %v5391_v30  ;;  %v8580_v44 = vrot.slane %v6582_v37, 11  ;;  %v8458_v10 = vrot.slane %v5371_v50, 11  ;;  %v4800_v20 = vrot.slane %v14211_v57, 4  ;;  %v4112_v50 = vld [vmem:[#allocation3 + $0x178] sm:$0x1]  ;;  %14662 = vst [vmem:[#allocation11_spill] sm:$0xff] %v12900_v43 }
 0x35b   : > { %v4804_v15 = vshll.u32 %v4596_v16, 16  ;;  %v7938_v25 = vmax.f32 %v7906_v7, 0.0  ;;  %v4796_v61 = vor.u32 %v4795_v42, %v4794_v12  ;;  %v4798_v30 = vrot.slane %v14214_v4, 5  ;;  %v6303_v16 = vpop.f32.mrf.mxu0  ;;  %v12909_v12 = vpop.f32.mrf.mxu1 }
 0x35c   : > { %v7477_v37 = vadd.f32 %v7398_v27, %v6301_v24  ;;  %v6593_v40 = vsel %vm9551_vm12, %v8580_v44, %v6592_v38  ;;  %v5382_v57 = vsel %vm9551_vm12, %v8458_v10, %v5381_v56  ;;  %v5128_v7 = vsel %vm5110_vm8, %v5088_v52, %v5047_v33  ;;  %4976 = vrot.lane.b32.xlu2 %v8824_v6, %s8922_s20  ;;  %v12919_v52 = vld [vmem:[#allocation3 + $0x174] sm:$0xf] }
 0x35d   : > { %v4806_v31 = vrot.slane %v4804_v15, 5  ;;  %v7033_v42 = vunpack.c.l.b16 %v6593_v40  ;;  %v5802_v4 = vunpack.c.l.b16 %v5382_v57  ;;  %7970 = vst.msk [vmem:[%s12893_s28] sm:$0xff] %vm1512_vm14, %v7938_v25  ;;  %v4797_v27 = vrot.slane %v4796_v61, 4  ;;  %8565 = vmatmul.msk.bf16.gmra.mxu0 %vm6119_vm9, %v5128_v7  ;;  %v8870_v57 = vld [vmem:[#allocation2 + $0xe0] sm:$0xff]  ;;  %v7759_v25 = vpop.f32.mrf.mxu2 }
 0x35e   : > { %v4801_v24 = vor.u32 %v4800_v20, %v4798_v30  ;;  %v7513_v38 = vmul.f32 %v12816_v58, %v7477_v37  ;;  %v7839_v56 = vmul.f32 %v12828_v47, %v7756_v26  ;;  %v4113_v44 = vsel %vm11068_vm5, 0, %v4112_v50  ;;  %14663 = vst [vmem:[#allocation12_spill] sm:$0xff] %v12919_v52  ;;  %v12927_v40 = vld [vmem:[#allocation3 + $0x170] sm:$0xf]  ;;  %8748 = vmatmul.msk.bf16.gmra.mxu2 %vm1463_vm13, %v8870_v57 }
 0x35f   : > { %v14217_v33 = vshrl.u32 %v12900_v43, 16  ;;  %v7058_v10 = vpack.c.b16 %v7034_v41, %v7033_v42  ;;  %v5826_v15 = vpack.c.b16 %v5803_v21, %v5802_v4  ;;  %v4799_v6 = vsel %vm9064_vm6, %v4797_v27, %v4798_v30  ;;  %4114 = vst [vmem:[#allocation3 + $0x178] sm:$0x1] %v4113_v44 }
 0x360   : > { %v4802_v20 = vrot.slane %v4801_v24, 4  ;;  %v5010_v61 = vunpack.c.l.b16 %v4799_v6  ;;  %v7549_v37 = vadd.f32 %v12839_v29, %v7513_v38  ;;  %v7875_v26 = vadd.f32 %v12852_v51, %v7839_v56  ;;  %14664 = vst [vmem:[#allocation8_spill] sm:$0xff] %v12927_v40  ;;  %v12939_v38 = vld [vmem:[#allocation3 + $0x174] sm:$0xf]  ;;  %v6011_v56 = vpop.permute.xlu1 %6010 }
 0x361   : > { %v14215_v50 = vshll.u32 %v12900_v43, 16  ;;  %v7282_v41 = vsel %vm1512_vm14, %v7058_v10, %v7162_v53  ;;  %v6052_v21 = vsel %vm1512_vm14, %v5826_v15, %v12823_v14  ;;  %v14220_v30 = vshrl.u32 %v12919_v52, 16  ;;  %14665 = vst [vmem:[#allocation9_spill] sm:$0xff] %v12939_v38 }
 0x362   : > { %v4807_v4 = vsel %vm9064_vm6, %v4802_v20, %v4806_v31  ;;  %v7322_v7 = vsel %vm5110_vm8, %v7282_v41, %v12792_v11  ;;  %v7907_v27 = vadd.f32 %v7875_v26, %v7549_v37  ;;  %v14216_v24 = vshll.u32 %v12919_v52, 16  ;;  %v6172_v41 = vpop.f32.mrf.mxu3 }
 0x363   : > { %v5011_v42 = vunpack.c.l.b16 %v4807_v4  ;;  %8667 = vmatmul.msk.bf16.gmra.mxu1 %vm6119_vm9, %v7322_v7  ;;  %v5758_v14 = vrot.slane %v14217_v33, 4  ;;  %v5759_v31 = vrot.slane %v14215_v50, 5  ;;  %v5764_v53 = vrot.slane %v14220_v30, 4  ;;  %v12963_v50 = vpop.f32.mrf.mxu1 }
 0x364   : > { %v14218_v11 = vshrl.u32 %v12927_v40, 16  ;;  %v7939_v57 = vmax.f32 %v7907_v27, 0.0  ;;  %v5762_v10 = vrot.slane %v14216_v24, 5  ;;  %v14219_v15 = vshll.u32 %v12927_v40, 16  ;;  %v6305_v27 = vpop.f32.mrf.mxu0 }
 0x365   : > { %v5028_v44 = vpack.c.b16 %v5011_v42, %v5010_v61  ;;  %v5760_v6 = vor.u32 %v5759_v31, %v5758_v14  ;;  %v14222_v20 = vshrl.u32 %v12939_v38, 16  ;;  %v14221_v37 = vshll.u32 %v12939_v38, 16 }
 0x366   : > { %v6977_v26 = vrot.slane %v14218_v11, 4  ;;  %7971 = vst.msk [vmem:[%s12893_s28 + $0x8] sm:$0xff] %vm1512_vm14, %v7939_v57  ;;  %v5560_v61 = vld [vmem:[#allocation3 + $0x178] sm:$0x1]  ;;  %v5765_v4 = vor.u32 %v5764_v53, %v5762_v10  ;;  %v6978_v42 = vrot.slane %v14219_v15, 5  ;;  %v6091_v14 = vsel %vm5110_vm8, %v6052_v21, %v6011_v56 }
 0x367   : > { %5058 = vrot.lane.b32.xlu0 %v5028_v44, %s8923_s19  ;;  %v6792_v7 = vld [vmem:[#allocation3 + $0x178] sm:$0x1]  ;;  %v6304_v31 = vadd.f32 %v6303_v16, %v12902_v54  ;;  %v5761_v24 = vrot.slane %v5760_v6, 4  ;;  %v5768_v33 = vshll.u32 %v5560_v61, 16  ;;  %v6981_v44 = vrot.slane %v14221_v37, 5  ;;  %8545 = vmatmul.msk.bf16.gmra.mxu3 %vm6119_vm9, %v6091_v14  ;;  %v12973_v6 = vpop.permute.xlu2 %7243  ;;  %v12976_v37 = vpop.f32.mrf.mxu2 }
 0x368   : > { %v6983_v57 = vrot.slane %v14222_v20, 4  ;;  %v5766_v53 = vrot.slane %v5765_v4, 4  ;;  %v6979_v11 = vor.u32 %v6978_v42, %v6977_v26  ;;  %v6987_v15 = vshll.u32 %v6792_v7, 16  ;;  %v4209_v21 = vld [vmem:[#allocation3 + $0xdc] sm:$0x8]  ;;  %v8843_v42 = vld [vmem:[#allocation3 + $0x188] sm:$0xff] }
 0x369   : > { %v7478_v30 = vadd.f32 %v12909_v12, %v6304_v31  ;;  %v5763_v54 = vsel %vm9064_vm6, %v5761_v24, %v5762_v10  ;;  %v5770_v16 = vrot.slane %v5768_v33, 5  ;;  %v7840_v61 = vmul.f32 %v12828_v47, %v7759_v25 }
 0x36a   : > { %v6984_v56 = vor.u32 %v6983_v57, %v6981_v44  ;;  %v5974_v20 = vunpack.c.l.b16 %v5763_v54  ;;  %v6980_v43 = vrot.slane %v6979_v11, 4  ;;  %v6989_v14 = vrot.slane %v6987_v15, 5  ;;  %v12987_v15 = vld [vmem:[#allocation3 + $0x170] sm:$0xf] }
 0x36b   : > { %v7514_v26 = vmul.f32 %v12816_v58, %v7478_v30  ;;  %v5771_v12 = vsel %vm9064_vm6, %v5766_v53, %v5770_v16  ;;  %v7876_v7 = vadd.f32 %v12852_v51, %v7840_v61  ;;  %v4429_v24 = vshrl.u32 %v4209_v21, 16  ;;  %14667 = vst [vmem:[#allocation15_spill] sm:$0xff] %v12987_v15 }
 0x36c   : > { %v6985_v4 = vrot.slane %v6984_v56, 4  ;;  %v5975_v33 = vunpack.c.l.b16 %v5771_v12  ;;  %v6982_v10 = vsel %vm9064_vm6, %v6980_v43, %v6981_v44  ;;  %v14666_v31 = vshrl.u32 %v12221_v8, 16  ;;  %v12998_v12 = vpop.permute.xlu0 %5932 }
 0x36d   : > { %v7550_v25 = vadd.f32 %v12839_v29, %v7514_v26  ;;  %v7205_v57 = vunpack.c.l.b16 %v6982_v10  ;;  %v8379_v53 = vrot.slane %v4429_v24, 11  ;;  %v14668_v54 = vshrl.u32 %v12229_v1, 16  ;;  %v12996_v26 = vld [vmem:[#allocation3 + $0x174] sm:$0xf] }
 0x36e   : > { %v4436_v11 = vrot.slane %v14666_v31, 7  ;;  %v6990_v30 = vsel %vm9064_vm6, %v6985_v4, %v6989_v14  ;;  %v5992_v16 = vpack.c.b16 %v5975_v33, %v5974_v20  ;;  %v14669_v44 = vshll.u32 %v12221_v8, 16  ;;  %14670 = vst [vmem:[#allocation13_spill] sm:$0xff] %v12996_v26  ;;  %v4597_v20 = vld [vmem:[#allocation3 + $0x178] sm:$0x1]  ;;  %v13003_v33 = vpop.f32.mrf.mxu3 }
 0x36f   : > { %v4445_v21 = vrot.slane %v14668_v54, 7  ;;  %v7206_v56 = vunpack.c.l.b16 %v6990_v30  ;;  %5944 = vrot.lane.b32.xlu0 %v8843_v42, %s8922_s20  ;;  %v7908_v43 = vadd.f32 %v7876_v7, %v7550_v25  ;;  %v14671_v14 = vshll.u32 %v12229_v1, 16  ;;  %v13008_v25 = vpop.f32.mrf.mxu0  ;;  %v4049_v1 = vld [vmem:[#allocation3 + $0xf4] sm:$0x8]  ;;  %v13011_v30 = vpop.f32.mrf.mxu1 }
 0x370   : > { %v4439_v61 = vor.u32 %v14669_v44, %v4436_v11  ;;  %v4441_v31 = vrot.slane %v4436_v11, 4  ;;  %v6306_v24 = vadd.f32 %v6305_v27, %v6172_v41  ;;  %v14227_v10 = vshrl.u32 %v12987_v15, 16  ;;  %6022 = vrot.lane.b32.xlu1 %v5992_v16, %s8923_s19 }
 0x371   : > { %v4448_v4 = vor.u32 %v14671_v14, %v4445_v21  ;;  %v7224_v7 = vpack.c.b16 %v7206_v56, %v7205_v57  ;;  %v7940_v8 = vmax.f32 %v7908_v43, 0.0  ;;  %v14225_v11 = vshll.u32 %v12987_v15, 16  ;;  %v4969_v43 = vpop.permute.xlu2 %4968  ;;  %v8859_v15 = vld [vmem:[#allocation3 + $0x188] sm:$0xff] }
 0x372   : > { %v4440_v42 = vsel %vm9551_vm12, %v8379_v53, %v4439_v61  ;;  %v14228_v54 = vshrl.u32 %v12996_v26, 16  ;;  %v14226_v21 = vshll.u32 %v12996_v26, 16  ;;  %v4808_v53 = vrot.slane %v14227_v10, 4 }
 0x373   : > { %v4449_v41 = vsel %vm9551_vm12, %v4441_v31, %v4448_v4  ;;  %v4840_v27 = vunpack.c.l.b16 %v4440_v42  ;;  %7253 = vrot.lane.b32.xlu2 %v7224_v7, %s8923_s19  ;;  %7972 = vst.msk [vmem:[%s12893_s28 + $0x10] sm:$0xff] %vm1512_vm14, %v7940_v8  ;;  %v4809_v16 = vrot.slane %v14225_v11, 5  ;;  %v4818_v56 = vshll.u32 %v4597_v20, 16  ;;  %v13031_v4 = vpop.f32.mrf.mxu2 }
 0x374   : > { %v4841_v57 = vunpack.c.l.b16 %v4449_v41  ;;  %v4812_v44 = vrot.slane %v14226_v21, 5  ;;  %v4814_v61 = vrot.slane %v14228_v54, 4  ;;  %v7479_v31 = vadd.f32 %v12963_v50, %v6306_v24 }
 0x375   : > { %v4050_v14 = vsel %vm11705_vm7, 0, %v4049_v1  ;;  %v4810_v8 = vor.u32 %v4809_v16, %v4808_v53  ;;  %v4820_v42 = vrot.slane %v4818_v56, 5  ;;  %v14672_v20 = vshrl.u32 %v12290_v5, 16  ;;  %v4115_v16 = vld [vmem:[#allocation3 + $0x190] sm:$0x1] }
 0x376   : > { %v4863_v7 = vpack.c.b16 %v4841_v57, %v4840_v27  ;;  %4051 = vst [vmem:[#allocation3 + $0xf4] sm:$0x8] %v4050_v14  ;;  %v4815_v11 = vor.u32 %v4814_v61, %v4812_v44  ;;  %v7515_v21 = vmul.f32 %v12816_v58, %v7479_v31  ;;  %v14673_v10 = vshrl.u32 %v12299_v39, 16 }
 0x377   : > { %v6611_v41 = vrot.slane %v14672_v20, 7  ;;  %v14674_v50 = vshrl.u32 %v12267_v17, 16  ;;  %v4811_v26 = vrot.slane %v4810_v8, 4  ;;  %v14675_v27 = vshll.u32 %v12290_v5, 16 }
 0x378   : > { %v6620_v54 = vrot.slane %v14673_v10, 7  ;;  %v5091_v1 = vsel %vm1512_vm14, %v4863_v7, %v4969_v43  ;;  %v4816_v56 = vrot.slane %v4815_v11, 4  ;;  %v7551_v61 = vadd.f32 %v12839_v29, %v7515_v21  ;;  %7175 = vrot.lane.b32.xlu1 %v8859_v15, %s8922_s20  ;;  %v13057_v21 = vld [vmem:[#allocation3 + $0x188] sm:$0xf] }
 0x379   : > { %v5400_v24 = vrot.slane %v14674_v50, 7  ;;  %v13043_v57 = vor.u32 %v14675_v27, %v6611_v41  ;;  %v6616_v53 = vrot.slane %v6611_v41, 4  ;;  %v14676_v31 = vshll.u32 %v12299_v39, 16  ;;  %v8825_v50 = vld [vmem:[#allocation3 + $0x158] sm:$0xff]  ;;  %14679 = vst [vmem:[#allocation19_spill] sm:$0xff] %v13057_v21  ;;  %v5049_v39 = vpop.permute.xlu0 %5048 }
 0x37a   : > { %v14677_v10 = vshll.u32 %v12267_v17, 16  ;;  %v4813_v43 = vsel %vm9064_vm6, %v4811_v26, %v4812_v44  ;;  %v14678_v7 = vshrl.u32 %v12282_v36, 16  ;;  %v7841_v11 = vmul.f32 %v12828_v47, %v12976_v37  ;;  %v13065_v26 = vpop.permute.xlu1 %7163 }
 0x37b   : > { %v6623_v14 = vor.u32 %v14676_v31, %v6620_v54  ;;  %v5405_v5 = vrot.slane %v5400_v24, 4  ;;  %v13059_v54 = vpop.f32.mrf.mxu3  ;;  %v4821_v17 = vsel %vm9064_vm6, %v4816_v56, %v4820_v42  ;;  %v5012_v15 = vunpack.c.l.b16 %v4813_v43  ;;  %4978 = vrot.lane.b32.xlu2 %v8825_v50, %s8922_s20  ;;  %v13073_v42 = vld [vmem:[#allocation3 + $0x18c] sm:$0xf]  ;;  %v13075_v56 = vpop.f32.mrf.mxu0 }
 0x37c   : > { %v5403_v20 = vor.u32 %v14677_v10, %v5400_v24  ;;  %v5409_v8 = vrot.slane %v14678_v7, 7  ;;  %v4116_v44 = vsel %vm11068_vm5, 0, %v4115_v16  ;;  %v5013_v37 = vunpack.c.l.b16 %v4821_v17  ;;  %14681 = vst [vmem:[#allocation20_spill] sm:$0xff] %v13073_v42 }
 0x37d   : > { %v6624_v41 = vsel %vm9551_vm12, %v6616_v53, %v6623_v14  ;;  %v14680_v27 = vshll.u32 %v12282_v36, 16  ;;  %v7877_v10 = vadd.f32 %v12852_v51, %v7841_v11  ;;  %4117 = vst [vmem:[#allocation3 + $0x190] sm:$0x1] %v4116_v44  ;;  %v13077_v53 = vpop.f32.mrf.mxu1  ;;  %v6403_v14 = vld [vmem:[#allocation3 + $0xf4] sm:$0x8]  ;;  %v13083_v7 = vadd.f32 %v13008_v25, %v13003_v33  ;;  %v13093_v33 = vpop.f32.mrf.mxu2 }
 0x37e   : > { %v7036_v24 = vunpack.c.l.b16 %v6624_v41  ;;  %v5173_v43 = vld [vmem:[#allocation3 + $0xf4] sm:$0x8]  ;;  %v5130_v36 = vsel %vm5110_vm8, %v5091_v1, %v5049_v39  ;;  %v6604_v11 = vshrl.u32 %v6403_v14, 16  ;;  %v13088_v44 = vld [vmem:[#allocation3 + $0x188] sm:$0xf]  ;;  %v14238_v50 = vshrl.u32 %v13073_v42, 16 }
 0x37f   : > { %v5412_v31 = vor.u32 %v14680_v27, %v5409_v8  ;;  %v5029_v8 = vpack.c.b16 %v5013_v37, %v5012_v15  ;;  %v5393_v17 = vshrl.u32 %v5173_v43, 16  ;;  %8566 = vmatmul.msk.bf16.gmra.mxu0 %vm6119_vm9, %v5130_v36  ;;  %v7909_v16 = vadd.f32 %v7877_v10, %v7551_v61  ;;  %v13102_v61 = vpop.permute.xlu2 %7245 }
 0x380   : > { %v14235_v40 = vshll.u32 %v13073_v42, 16  ;;  %v8581_v25 = vrot.slane %v6604_v11, 11  ;;  %v14682_v39 = vshrl.u32 %v13057_v21, 16  ;;  %v14683_v15 = vshll.u32 %v13057_v21, 16 }
 0x381   : > { %v5413_v41 = vsel %vm9551_vm12, %v5405_v5, %v5412_v31  ;;  %5060 = vrot.lane.b32.xlu0 %v5029_v8, %s8923_s19  ;;  %v8459_v1 = vrot.slane %v5393_v17, 11  ;;  %v13100_v31 = vld [vmem:[#allocation3 + $0x18c] sm:$0xf]  ;;  %v7941_v10 = vmax.f32 %v7909_v16, 0.0  ;;  %v5778_v43 = vrot.slane %v14238_v50, 4 }
 0x382   : > { %v5805_v27 = vunpack.c.l.b16 %v5413_v41  ;;  %v5772_v5 = vrot.slane %v14682_v39, 4  ;;  %v5773_v37 = vrot.slane %v14683_v15, 5  ;;  %v5776_v14 = vrot.slane %v14235_v40, 5  ;;  %v8871_v39 = vld [vmem:[#allocation2 + $0xf8] sm:$0xff]  ;;  %v6013_v36 = vpop.permute.xlu1 %6012 }
 0x383   : > { %v6615_v8 = vsel %vm9551_vm12, %v8581_v25, %v13043_v57  ;;  %v5404_v11 = vsel %vm9551_vm12, %v8459_v1, %v5403_v20  ;;  %v14247_v41 = vshll.u32 %v13088_v44, 16  ;;  %7973 = vst.msk [vmem:[%s12893_s28 + $0x18] sm:$0xff] %vm1512_vm14, %v7941_v10  ;;  %v6750_v50 = vshrl.u32 %v13100_v31, 16  ;;  %v13121_v1 = vpop.permute.xlu0 %5934  ;;  %8749 = vmatmul.msk.bf16.gmra.mxu2 %vm1463_vm13, %v8871_v39  ;;  %v13134_v39 = vpop.f32.mrf.mxu0 }
 0x384   : > { %v5774_v17 = vor.u32 %v5773_v37, %v5772_v5  ;;  %v7035_v16 = vunpack.c.l.b16 %v6615_v8  ;;  %v5804_v15 = vunpack.c.l.b16 %v5404_v11  ;;  %v5561_v40 = vld [vmem:[#allocation3 + $0x190] sm:$0x1]  ;;  %v5779_v21 = vor.u32 %v5778_v43, %v5776_v14  ;;  %v13124_v5 = vpop.f32.mrf.mxu3 }
 0x385   : > { %v5782_v52 = vshll.u32 %v5561_v40, 16  ;;  %v14248_v57 = vshll.u32 %v13100_v31, 16  ;;  %v14684_v25 = vshrl.u32 %v13088_v44, 16  ;;  %v6793_v43 = vld [vmem:[#allocation3 + $0x190] sm:$0x1]  ;;  %v6992_v11 = vrot.slane %v14247_v41, 5  ;;  %v13136_v22 = vpop.f32.mrf.mxu1 }
 0x386   : > { %v5775_v42 = vrot.slane %v5774_v17, 4  ;;  %v7059_v37 = vpack.c.b16 %v7036_v24, %v7035_v16  ;;  %v5827_v10 = vpack.c.b16 %v5805_v27, %v5804_v15  ;;  %v5780_v8 = vrot.slane %v5779_v21, 4 }
 0x387   : > { %v6991_v20 = vrot.slane %v14684_v25, 4  ;;  %v5784_v17 = vrot.slane %v5782_v52, 5  ;;  %v6995_v25 = vrot.slane %v14248_v57, 5  ;;  %v6997_v38 = vrot.slane %v6750_v50, 4 }
 0x388   : > { %v5777_v40 = vsel %vm9064_vm6, %v5775_v42, %v5776_v14  ;;  %v7285_v21 = vsel %vm1512_vm14, %v7059_v37, %v13065_v26  ;;  %v6055_v24 = vsel %vm1512_vm14, %v5827_v10, %v12998_v12  ;;  %v7001_v14 = vshll.u32 %v6793_v43, 16  ;;  %v4212_v37 = vld [vmem:[#allocation3 + $0xf4] sm:$0x8] }
 0x389   : > { %v5976_v27 = vunpack.c.l.b16 %v5777_v40  ;;  %v6993_v16 = vor.u32 %v6992_v11, %v6991_v20  ;;  %v5785_v52 = vsel %vm9064_vm6, %v5780_v8, %v5784_v17  ;;  %v6998_v42 = vor.u32 %v6997_v38, %v6995_v25  ;;  %v7769_v20 = vpop.f32.mrf.mxu2 }
 0x38a   : > { %v7324_v15 = vsel %vm5110_vm8, %v7285_v21, %v12973_v6  ;;  %v5977_v41 = vunpack.c.l.b16 %v5785_v52  ;;  %v7480_v26 = vadd.f32 %v13011_v30, %v13083_v7  ;;  %v7842_v12 = vmul.f32 %v12828_v47, %v13031_v4  ;;  %v13154_v6 = vpop.permute.xlu2 %4970 }
 0x38b   : > { %v6994_v57 = vrot.slane %v6993_v16, 4  ;;  %8668 = vmatmul.msk.bf16.gmra.mxu1 %vm6119_vm9, %v7324_v15  ;;  %v6999_v10 = vrot.slane %v6998_v42, 4  ;;  %v7003_v11 = vrot.slane %v7001_v14, 5  ;;  %v6093_v38 = vsel %vm5110_vm8, %v6055_v24, %v6013_v36  ;;  %v13170_v16 = vpop.permute.xlu1 %7165 }
 0x38c   : > { %v6311_v8 = vadd.f32 %v13075_v56, %v13059_v54  ;;  %v5993_v43 = vpack.c.b16 %v5977_v41, %v5976_v27  ;;  %v7516_v30 = vmul.f32 %v12816_v58, %v7480_v26  ;;  %v7878_v7 = vadd.f32 %v12852_v51, %v7842_v12  ;;  %8546 = vmatmul.msk.bf16.gmra.mxu3 %vm6119_vm9, %v6093_v38  ;;  %v4052_v27 = vld [vmem:[#allocation3 + $0x10c] sm:$0x8]  ;;  %v5051_v12 = vpop.permute.xlu0 %5050 }
 0x38d   : > { %v6996_v40 = vsel %vm9064_vm6, %v6994_v57, %v6995_v25  ;;  %v7004_v4 = vsel %vm9064_vm6, %v6999_v10, %v7003_v11  ;;  %v4451_v36 = vshrl.u32 %v4212_v37, 16  ;;  %v14685_v21 = vshrl.u32 %v12347_v9, 16  ;;  %v6182_v37 = vpop.f32.mrf.mxu3 }
 0x38e   : > { %v7207_v17 = vunpack.c.l.b16 %v6996_v40  ;;  %6024 = vrot.lane.b32.xlu1 %v5993_v43, %s8923_s19  ;;  %v7208_v56 = vunpack.c.l.b16 %v7004_v4  ;;  %v7552_v41 = vadd.f32 %v12839_v29, %v7516_v30  ;;  %v14686_v57 = vshrl.u32 %v12350_v13, 16  ;;  %v6315_v4 = vpop.f32.mrf.mxu0 }
 0x38f   : > { %v4458_v54 = vrot.slane %v14685_v21, 7  ;;  %v7481_v24 = vadd.f32 %v13077_v53, %v6311_v8  ;;  %v8380_v52 = vrot.slane %v4451_v36, 11  ;;  %v14687_v42 = vshll.u32 %v12347_v9, 16  ;;  %v8860_v36 = vld [vmem:[#allocation3 + $0x1a0] sm:$0xff] }
 0x390   : > { %v4467_v25 = vrot.slane %v14686_v57, 7  ;;  %v7843_v26 = vmul.f32 %v12828_v47, %v13093_v33  ;;  %v7225_v10 = vpack.c.b16 %v7208_v56, %v7207_v17  ;;  %v7910_v11 = vadd.f32 %v7878_v7, %v7552_v41  ;;  %v7413_v17 = vpop.f32.mrf.mxu1  ;;  %v8872_v7 = vld [vmem:[#allocation2 + $0x110] sm:$0xff] }
 0x391   : > { %v4461_v14 = vor.u32 %v14687_v42, %v4458_v54  ;;  %v4463_v15 = vrot.slane %v4458_v54, 4  ;;  %v14688_v38 = vshll.u32 %v12350_v13, 16  ;;  %v7517_v53 = vmul.f32 %v12816_v58, %v7481_v24 }
 0x392   : > { %v7879_v40 = vadd.f32 %v12852_v51, %v7843_v26  ;;  %v4053_v9 = vsel %vm11705_vm7, 0, %v4052_v27  ;;  %v14689_v30 = vshrl.u32 %v12385_v2, 16  ;;  %7255 = vrot.lane.b32.xlu2 %v7225_v10, %s8923_s19  ;;  %v7942_v13 = vmax.f32 %v7910_v11, 0.0  ;;  %v13196_v42 = vpop.permute.xlu2 %7247 }
 0x393   : > { %v4470_v43 = vor.u32 %v14688_v38, %v4467_v25  ;;  %v4462_v8 = vsel %vm9551_vm12, %v8380_v52, %v4461_v14  ;;  %v7553_v56 = vadd.f32 %v12839_v29, %v7517_v53  ;;  %4054 = vst [vmem:[#allocation3 + $0x10c] sm:$0x8] %v4053_v9  ;;  %v14690_v57 = vshll.u32 %v12385_v2, 16  ;;  %v7771_v38 = vpop.f32.mrf.mxu2  ;;  %8750 = vmatmul.msk.bf16.gmra.mxu2 %vm1463_vm13, %v8872_v7  ;;  %v13221_v7 = vld [vmem:[#allocation3 + $0x1a0] sm:$0xf] }
 0x394   : > { %v5422_v33 = vrot.slane %v14689_v30, 7  ;;  %v4842_v54 = vunpack.c.l.b16 %v4462_v8  ;;  %v14691_v27 = vshrl.u32 %v12391_v0, 16  ;;  %7974 = vst.msk [vmem:[%s12893_s28 + $0x20] sm:$0xff] %vm1512_vm14, %v7942_v13  ;;  %v14693_v10 = vshrl.u32 %v12428_v48, 16 }
 0x395   : > { %v4471_v21 = vsel %vm9551_vm12, %v4463_v15, %v4470_v43  ;;  %v7911_v14 = vadd.f32 %v7879_v40, %v7553_v56  ;;  %v14692_v15 = vshrl.u32 %v12414_v45, 16  ;;  %v6314_v2 = vadd.f32 %v13134_v39, %v13124_v5 }
 0x396   : > { %v4843_v41 = vunpack.c.l.b16 %v4471_v21  ;;  %v13192_v25 = vor.u32 %v14690_v57, %v5422_v33  ;;  %v5427_v24 = vrot.slane %v5422_v33, 4  ;;  %v5431_v52 = vrot.slane %v14691_v27, 7  ;;  %7177 = vrot.lane.b32.xlu1 %v8860_v36, %s8922_s20  ;;  %v13223_v36 = vpop.permute.xlu0 %5936  ;;  %v13230_v57 = vld [vmem:[#allocation3 + $0x1a4] sm:$0xf] }
 0x397   : > { %v6633_v26 = vrot.slane %v14692_v15, 7  ;;  %v6642_v11 = vrot.slane %v14693_v10, 7  ;;  %v14694_v53 = vshll.u32 %v12391_v0, 16  ;;  %v7844_v9 = vmul.f32 %v12828_v47, %v7769_v20  ;;  %v13237_v10 = vpop.f32.mrf.mxu3 }
 0x398   : > { %v4864_v43 = vpack.c.b16 %v4843_v41, %v4842_v54  ;;  %v6316_v30 = vadd.f32 %v6315_v4, %v6182_v37  ;;  %v7943_v40 = vmax.f32 %v7911_v14, 0.0  ;;  %v14695_v33 = vshll.u32 %v12414_v45, 16  ;;  %v4018_v54 = vld [vmem:[#allocation3 + $0x1a8] sm:$0x1]  ;;  %v8826_v45 = vld [vmem:[#allocation3 + $0x170] sm:$0xff]  ;;  %v6015_v14 = vpop.permute.xlu1 %6014 }
 0x399   : > { %v5434_v8 = vor.u32 %v14694_v53, %v5431_v52  ;;  %v6638_v21 = vrot.slane %v6633_v26, 4  ;;  %v14696_v5 = vshll.u32 %v12428_v48, 16  ;;  %v7482_v37 = vadd.f32 %v13136_v22, %v6314_v2  ;;  %v6318_v53 = vpop.f32.mrf.mxu0 }
 0x39a   : > { %v6636_v13 = vor.u32 %v14695_v33, %v6633_v26  ;;  %v5094_v0 = vsel %vm1512_vm14, %v4864_v43, %v13154_v6  ;;  %v7880_v4 = vadd.f32 %v12852_v51, %v7844_v9  ;;  %7975 = vst.msk [vmem:[%s12893_s28 + $0x28] sm:$0xff] %vm1512_vm14, %v7943_v40  ;;  %v7483_v41 = vadd.f32 %v7413_v17, %v6316_v30  ;;  %v6406_v22 = vld [vmem:[#allocation3 + $0x10c] sm:$0x8]  ;;  %v13246_v9 = vpop.f32.mrf.mxu1 }
 0x39b   : > { %v6645_v39 = vor.u32 %v14696_v5, %v6642_v11  ;;  %v5435_v20 = vsel %vm9551_vm12, %v5427_v24, %v5434_v8  ;;  %v5132_v6 = vsel %vm5110_vm8, %v5094_v0, %v5051_v12  ;;  %v5176_v24 = vld [vmem:[#allocation3 + $0x10c] sm:$0x8]  ;;  %v7518_v52 = vmul.f32 %v12816_v58, %v7482_v37  ;;  %4980 = vrot.lane.b32.xlu2 %v8826_v45, %s8922_s20  ;;  %v13256_v37 = vpop.permute.xlu2 %4972 }
 0x39c   : > { %v5807_v48 = vunpack.c.l.b16 %v5435_v20  ;;  %8567 = vmatmul.msk.bf16.gmra.mxu0 %vm6119_vm9, %v5132_v6  ;;  %v7845_v15 = vmul.f32 %v12828_v47, %v7771_v38  ;;  %v4019_v26 = vsel %vm11068_vm5, 0, %v4018_v54  ;;  %v5415_v12 = vshrl.u32 %v5176_v24, 16  ;;  %v4215_v20 = vld [vmem:[#allocation3 + $0x10c] sm:$0x8] }
 0x39d   : > { %v6646_v56 = vsel %vm9551_vm12, %v6638_v21, %v6645_v39  ;;  %v6626_v17 = vshrl.u32 %v6406_v22, 16  ;;  %v7519_v11 = vmul.f32 %v12816_v58, %v7483_v41  ;;  %4020 = vst [vmem:[#allocation3 + $0x1a8] sm:$0x1] %v4019_v26  ;;  %v6763_v2 = vshrl.u32 %v13221_v7, 16  ;;  %v13265_v41 = vpop.f32.mrf.mxu2 }
 0x39e   : > { %v7038_v27 = vunpack.c.l.b16 %v6646_v56  ;;  %v7554_v43 = vadd.f32 %v12839_v29, %v7518_v52  ;;  %v7881_v8 = vadd.f32 %v12852_v51, %v7845_v15  ;;  %v6766_v38 = vshll.u32 %v13221_v7, 16  ;;  %v13267_v26 = vpop.permute.xlu0 %5052 }
 0x39f   : > { %v6772_v62 = vshrl.u32 %v13230_v57, 16  ;;  %v8460_v30 = vrot.slane %v5415_v12, 11  ;;  %v8582_v40 = vrot.slane %v6626_v17, 11  ;;  %v7555_v33 = vadd.f32 %v12839_v29, %v7519_v11 }
 0x3a0   : > { %v6775_v21 = vshll.u32 %v13230_v57, 16  ;;  %v7912_v5 = vadd.f32 %v7880_v4, %v7554_v43  ;;  %v7005_v39 = vrot.slane %v6763_v2, 4  ;;  %v7006_v54 = vrot.slane %v6766_v38, 5  ;;  %v4055_v43 = vld [vmem:[#allocation3 + $0x124] sm:$0x8] }
 0x3a1   : > { %v7011_v0 = vrot.slane %v6772_v62, 4  ;;  %v5426_v45 = vsel %vm9551_vm12, %v8460_v30, %v13192_v25  ;;  %v6637_v56 = vsel %vm9551_vm12, %v8582_v40, %v6636_v13  ;;  %v7913_v4 = vadd.f32 %v7881_v8, %v7555_v33 }
 0x3a2   : > { %v7009_v6 = vrot.slane %v6775_v21, 5  ;;  %v5806_v24 = vunpack.c.l.b16 %v5426_v45  ;;  %v7037_v22 = vunpack.c.l.b16 %v6637_v56  ;;  %v7944_v52 = vmax.f32 %v7912_v5, 0.0  ;;  %v13275_v5 = vpop.permute.xlu1 %7167 }
 0x3a3   : > { %v7007_v15 = vor.u32 %v7006_v54, %v7005_v39  ;;  %v7945_v12 = vmax.f32 %v7913_v4, 0.0  ;;  %v4473_v25 = vshrl.u32 %v4215_v20, 16  ;;  %v14697_v11 = vshrl.u32 %v12484_v19, 16  ;;  %v13311_v49 = vpop.permute.xlu2 %7249 }
 0x3a4   : > { %v7012_v17 = vor.u32 %v7011_v0, %v7009_v6  ;;  %v5828_v8 = vpack.c.b16 %v5807_v48, %v5806_v24  ;;  %v7060_v30 = vpack.c.b16 %v7038_v27, %v7037_v22  ;;  %7976 = vst.msk [vmem:[%s12893_s28 + $0x30] sm:$0xff] %vm1512_vm14, %v7944_v52  ;;  %v6794_v40 = vld [vmem:[#allocation3 + $0x1a8] sm:$0x1]  ;;  %v14698_v45 = vshrl.u32 %v12496_v55, 16  ;;  %v6187_v52 = vpop.f32.mrf.mxu3 }
 0x3a5   : > { %v4480_v13 = vrot.slane %v14697_v11, 7  ;;  %v7008_v33 = vrot.slane %v7007_v15, 4  ;;  %7977 = vst.msk [vmem:[%s12893_s28 + $0x38] sm:$0xff] %vm1512_vm14, %v7945_v12  ;;  %v7015_v54 = vshll.u32 %v6794_v40, 16  ;;  %v8381_v0 = vrot.slane %v4473_v25, 11  ;;  %v8873_v11 = vld [vmem:[#allocation2 + $0x128] sm:$0xff] }
 0x3a6   : > { %v4489_v56 = vrot.slane %v14698_v45, 7  ;;  %v7013_v39 = vrot.slane %v7012_v17, 4  ;;  %v14699_v20 = vshll.u32 %v12484_v19, 16  ;;  %v6058_v48 = vsel %vm1512_vm14, %v5828_v8, %v13121_v1  ;;  %v7418_v8 = vpop.f32.mrf.mxu1  ;;  %8751 = vmatmul.msk.bf16.gmra.mxu2 %vm1463_vm13, %v8873_v11 }
 0x3a7   : > { %v7288_v27 = vsel %vm1512_vm14, %v7060_v30, %v13170_v16  ;;  %v7010_v24 = vsel %vm9064_vm6, %v7008_v33, %v7009_v6  ;;  %v4485_v22 = vrot.slane %v4480_v13, 4  ;;  %v6095_v12 = vsel %vm5110_vm8, %v6058_v48, %v6015_v14  ;;  %v6320_v6 = vpop.f32.mrf.mxu0 }
 0x3a8   : > { %v4483_v4 = vor.u32 %v14699_v20, %v4480_v13  ;;  %v7326_v15 = vsel %vm5110_vm8, %v7288_v27, %v13102_v61  ;;  %v7017_v17 = vrot.slane %v7015_v54, 5  ;;  %v7209_v19 = vunpack.c.l.b16 %v7010_v24  ;;  %8547 = vmatmul.msk.bf16.gmra.mxu3 %vm6119_vm9, %v6095_v12  ;;  %v7776_v27 = vpop.f32.mrf.mxu2 }
 0x3a9   : > { %8669 = vmatmul.msk.bf16.gmra.mxu1 %vm6119_vm9, %v7326_v15  ;;  %v14700_v16 = vshll.u32 %v12496_v55, 16  ;;  %v6319_v13 = vadd.f32 %v6318_v53, %v13237_v10  ;;  %v4056_v61 = vsel %vm11705_vm7, 0, %v4055_v43  ;;  %v14701_v30 = vshrl.u32 %v12564_v63, 16  ;;  %v14703_v43 = vld [vmem:[#allocation16_spill] sm:$0xff] }
 0x3aa   : > { %v4484_v1 = vsel %vm9551_vm12, %v8381_v0, %v4483_v4  ;;  %v7018_v14 = vsel %vm9064_vm6, %v7013_v39, %v7017_v17  ;;  %4057 = vst [vmem:[#allocation3 + $0x124] sm:$0x8] %v4056_v61  ;;  %v14702_v33 = vshrl.u32 %v12566_v59, 16  ;;  %v14705_v4 = vshll.u32 %v12566_v59, 16  ;;  %v13318_v12 = vpop.permute.xlu1 %6016 }
 0x3ab   : > { %v4492_v25 = vor.u32 %v14700_v16, %v4489_v56  ;;  %v6655_v40 = vrot.slane %v14701_v30, 7  ;;  %v7210_v55 = vunpack.c.l.b16 %v7018_v14  ;;  %v7484_v53 = vadd.f32 %v13246_v9, %v6319_v13  ;;  %v13320_v9 = vpop.permute.xlu0 %5938  ;;  %v14707_v16 = vld [vmem:[#allocation17_spill] sm:$0xff] }
 0x3ac   : > { %v6664_v45 = vrot.slane %v14702_v33, 7  ;;  %v14704_v56 = vshrl.u32 %v14703_v43, 16  ;;  %v4844_v39 = vunpack.c.l.b16 %v4484_v1  ;;  %v14706_v11 = vshll.u32 %v12564_v63, 16  ;;  %v6190_v14 = vpop.f32.mrf.mxu3 }
 0x3ad   : > { %v4493_v10 = vsel %vm9551_vm12, %v4485_v22, %v4492_v25  ;;  %v6660_v20 = vrot.slane %v6655_v40, 4  ;;  %v7226_v24 = vpack.c.b16 %v7210_v55, %v7209_v19  ;;  %v7520_v22 = vmul.f32 %v12816_v58, %v7484_v53 }
 0x3ae   : > { %v5444_v54 = vrot.slane %v14704_v56, 7  ;;  %v4845_v0 = vunpack.c.l.b16 %v4493_v10  ;;  %v6667_v48 = vor.u32 %v14705_v4, %v6664_v45  ;;  %v6658_v15 = vor.u32 %v14706_v11, %v6655_v40 }
 0x3af   : > { %v14708_v25 = vshrl.u32 %v14707_v16, 16  ;;  %v7846_v19 = vmul.f32 %v12828_v47, %v13265_v41  ;;  %7257 = vrot.lane.b32.xlu2 %v7226_v24, %s8923_s19  ;;  %v7556_v63 = vadd.f32 %v12839_v29, %v7520_v22  ;;  %v6321_v13 = vadd.f32 %v6320_v6, %v6187_v52 }
 0x3b0   : > { %v4865_v17 = vpack.c.b16 %v4845_v0, %v4844_v39  ;;  %v13324_v1 = vsel %vm9551_vm12, %v6660_v20, %v6667_v48  ;;  %v5449_v58 = vrot.slane %v5444_v54, 4  ;;  %v7847_v61 = vmul.f32 %v12828_v47, %v7776_v27  ;;  %v6323_v47 = vpop.f32.mrf.mxu0  ;;  %v13345_v0 = vpop.f32.mrf.mxu1  ;;  %v4058_v27 = vld [vmem:[#allocation3 + $0x13c] sm:$0x8] }
 0x3b1   : > { %v5453_v59 = vrot.slane %v14708_v25, 7  ;;  %v14709_v40 = vshll.u32 %v14707_v16, 16  ;;  %v7882_v45 = vadd.f32 %v12852_v51, %v7846_v19  ;;  %v14710_v55 = vshrl.u32 %v12604_v28, 16  ;;  %v6409_v10 = vld [vmem:[#allocation3 + $0x124] sm:$0x8] }
 0x3b2   : > { %v5097_v30 = vsel %vm1512_vm14, %v4865_v17, %v13256_v37  ;;  %v7040_v53 = vunpack.c.l.b16 %v13324_v1  ;;  %v5179_v29 = vld [vmem:[#allocation3 + $0x124] sm:$0x8]  ;;  %v14711_v52 = vshll.u32 %v14703_v43, 16  ;;  %v7485_v56 = vadd.f32 %v7418_v8, %v6321_v13  ;;  %v13353_v43 = vld [vmem:[%s13754_s5] ss:$0 sm:$0xff] }
 0x3b3   : > { %v5456_v33 = vor.u32 %v14709_v40, %v5453_v59  ;;  %v4502_v41 = vrot.slane %v14710_v55, 7  ;;  %v5134_v37 = vsel %vm5110_vm8, %v5097_v30, %v13267_v26  ;;  %v4218_v39 = vld [vmem:[#allocation3 + $0x124] sm:$0x8]  ;;  %v6648_v20 = vshrl.u32 %v6409_v10, 16  ;;  %v13359_v26 = vld [vmem:[%s13758_s9] ss:$0 sm:$0xff] }
 0x3b4   : > { %v5447_v6 = vor.u32 %v14711_v52, %v5444_v54  ;;  %v5437_v51 = vshrl.u32 %v5179_v29, 16  ;;  %v7914_v48 = vadd.f32 %v7882_v45, %v7556_v63  ;;  %8568 = vmatmul.msk.bf16.gmra.mxu0 %vm6119_vm9, %v5134_v37  ;;  %v7521_v8 = vmul.f32 %v13353_v43, %v7485_v56  ;;  %v13367_v59 = vld [vmem:[%s13755_s6] ss:$0 sm:$0xff]  ;;  %v7779_v29 = vpop.f32.mrf.mxu2 }
 0x3b5   : > { %v5457_v4 = vsel %vm9551_vm12, %v5449_v58, %v5456_v33  ;;  %v7883_v54 = vadd.f32 %v13359_v26, %v7847_v61  ;;  %v4495_v24 = vshrl.u32 %v4218_v39, 16  ;;  %v14712_v11 = vshll.u32 %v12604_v28, 16  ;;  %v4975_v61 = vpop.permute.xlu2 %4974  ;;  %v8874_v52 = vld [vmem:[#allocation2 + $0x140] sm:$0xff] }
 0x3b6   : > { %v8583_v17 = vrot.slane %v6648_v20, 11  ;;  %v8461_v1 = vrot.slane %v5437_v51, 11  ;;  %v5809_v16 = vunpack.c.l.b16 %v5457_v4  ;;  %v7946_v25 = vmax.f32 %v7914_v48, 0.0  ;;  %8752 = vmatmul.msk.bf16.gmra.mxu2 %vm1463_vm13, %v8874_v52 }
 0x3b7   : > { %v4505_v22 = vor.u32 %v14712_v11, %v4502_v41  ;;  %v7557_v19 = vadd.f32 %v13367_v59, %v7521_v8  ;;  %v8382_v63 = vrot.slane %v4495_v24, 11  ;;  %v14713_v58 = vshrl.u32 %v12617_v60, 16 }
 0x3b8   : > { %v4059_v28 = vsel %vm11705_vm7, 0, %v4058_v27  ;;  %v6659_v30 = vsel %vm9551_vm12, %v8583_v17, %v6658_v15  ;;  %v5448_v40 = vsel %vm9551_vm12, %v8461_v1, %v5447_v6  ;;  %7978 = vst.msk [vmem:[%s12893_s28 + $0x40] sm:$0xff] %vm1512_vm14, %v7946_v25  ;;  %v14714_v33 = vshrl.u32 %v12642_v32, 16  ;;  %v13386_v15 = vpop.permute.xlu1 %7169  ;;  %v5055_v6 = vpop.permute.xlu0 %5054 }
 0x3b9   : > { %v4511_v13 = vrot.slane %v14713_v58, 7  ;;  %v14715_v55 = vshrl.u32 %v12644_v34, 16  ;;  %v7039_v56 = vunpack.c.l.b16 %v6659_v30  ;;  %v5808_v37 = vunpack.c.l.b16 %v5448_v40  ;;  %4060 = vst [vmem:[#allocation3 + $0x13c] sm:$0x8] %v4059_v28  ;;  %v6192_v25 = vpop.f32.mrf.mxu3 }
 0x3ba   : > { %v5466_v45 = vrot.slane %v14714_v33, 7  ;;  %v7915_v39 = vadd.f32 %v7883_v54, %v7557_v19  ;;  %v4506_v20 = vsel %vm9551_vm12, %v8382_v63, %v4505_v22  ;;  %v4507_v51 = vrot.slane %v4502_v41, 4 }
 0x3bb   : > { %v5475_v10 = vrot.slane %v14715_v55, 7  ;;  %v14716_v4 = vshll.u32 %v12617_v60, 16  ;;  %v6324_v27 = vadd.f32 %v6323_v47, %v6190_v14  ;;  %v7061_v24 = vpack.c.b16 %v7040_v53, %v7039_v56  ;;  %v6325_v47 = vpop.f32.mrf.mxu0 }
 0x3bc   : > { %v5471_v8 = vrot.slane %v5466_v45, 4  ;;  %v5829_v11 = vpack.c.b16 %v5809_v16, %v5808_v37  ;;  %v7947_v17 = vmax.f32 %v7915_v39, 0.0  ;;  %v14717_v1 = vshll.u32 %v12644_v34, 16 }
 0x3bd   : > { %v4514_v48 = vor.u32 %v14716_v4, %v4511_v13  ;;  %v4846_v19 = vunpack.c.l.b16 %v4506_v20  ;;  %v14718_v63 = vshrl.u32 %v12652_v18, 16  ;;  %v14719_v60 = vshrl.u32 %v12661_v23, 16  ;;  %v7423_v13 = vpop.f32.mrf.mxu1 }
 0x3be   : > { %v5478_v54 = vor.u32 %v14717_v1, %v5475_v10  ;;  %v7291_v14 = vsel %vm1512_vm14, %v7061_v24, %v13275_v5  ;;  %v6061_v34 = vsel %vm1512_vm14, %v5829_v11, %v13223_v36  ;;  %7979 = vst.msk [vmem:[%s12893_s28 + $0x48] sm:$0xff] %vm1512_vm14, %v7947_v17  ;;  %v14720_v40 = vshll.u32 %v12642_v32, 16  ;;  %v13423_v32 = vld [vmem:[%s13757_s8] ss:$0 sm:$0xff] }
 0x3bf   : > { %v4515_v22 = vsel %vm9551_vm12, %v4507_v51, %v4514_v48  ;;  %v6677_v41 = vrot.slane %v14718_v63, 7  ;;  %v6686_v58 = vrot.slane %v14719_v60, 7  ;;  %v7328_v28 = vsel %vm5110_vm8, %v7291_v14, %v13196_v42 }
 0x3c0   : > { %v4847_v53 = vunpack.c.l.b16 %v4515_v22  ;;  %v5479_v16 = vsel %vm9551_vm12, %v5471_v8, %v5478_v54  ;;  %v6097_v30 = vsel %vm5110_vm8, %v6061_v34, %v13318_v12  ;;  %v5469_v5 = vor.u32 %v14720_v40, %v5466_v45  ;;  %8670 = vmatmul.msk.bf16.gmra.mxu1 %vm6119_vm9, %v7328_v28  ;;  %v5182_v37 = vld [vmem:[#allocation3 + $0x13c] sm:$0x8]  ;;  %v6019_v22 = vpop.permute.xlu1 %6018 }
 0x3c1   : > { %v6326_v33 = vadd.f32 %v6325_v47, %v6192_v25  ;;  %8548 = vmatmul.msk.bf16.gmra.mxu3 %vm6119_vm9, %v6097_v30  ;;  %v6682_v55 = vrot.slane %v6677_v41, 4  ;;  %v14721_v10 = vshll.u32 %v12661_v23, 16  ;;  %v7486_v56 = vadd.f32 %v13345_v0, %v6324_v27  ;;  %v6412_v39 = vld [vmem:[#allocation3 + $0x13c] sm:$0x8]  ;;  %v13429_v27 = vpop.permute.xlu2 %7251 }
 0x3c2   : > { %v4866_v36 = vpack.c.b16 %v4847_v53, %v4846_v19  ;;  %v5811_v42 = vunpack.c.l.b16 %v5479_v16  ;;  %v14722_v12 = vshll.u32 %v12652_v18, 16  ;;  %v7848_v45 = vmul.f32 %v13423_v32, %v7779_v29  ;;  %v4221_v51 = vld [vmem:[#allocation3 + $0x13c] sm:$0x8]  ;;  %v4061_v18 = vld [vmem:[#allocation3 + $0x154] sm:$0x8]  ;;  %v7781_v29 = vpop.f32.mrf.mxu2 }
 0x3c3   : > { %v6689_v52 = vor.u32 %v14721_v10, %v6686_v58  ;;  %v7487_v4 = vadd.f32 %v7423_v13, %v6326_v33  ;;  %v5459_v48 = vshrl.u32 %v5182_v37, 16  ;;  %v6670_v8 = vshrl.u32 %v6412_v39, 16  ;;  %v14724_v58 = vld [vmem:[#allocation10_spill] sm:$0xff] }
 0x3c4   : > { %v6680_v20 = vor.u32 %v14722_v12, %v6677_v41  ;;  %v5100_v23 = vsel %vm1512_vm14, %v4866_v36, %v4975_v61  ;;  %v7522_v11 = vmul.f32 %v13353_v43, %v7486_v56  ;;  %v7884_v1 = vadd.f32 %v13359_v26, %v7848_v45  ;;  %v13436_v41 = vpop.permute.xlu0 %5940  ;;  %v8875_v45 = vld [vmem:[#allocation2 + $0x158] sm:$0xff] }
 0x3c5   : > { %v6690_v0 = vsel %vm9551_vm12, %v6682_v55, %v6689_v52  ;;  %v5136_v17 = vsel %vm5110_vm8, %v5100_v23, %v5055_v6  ;;  %v8462_v54 = vrot.slane %v5459_v48, 11  ;;  %v8584_v25 = vrot.slane %v6670_v8, 11  ;;  %v6195_v55 = vpop.f32.mrf.mxu3  ;;  %v14728_v23 = vld [vmem:[#allocation5_spill] sm:$0xff] }
 0x3c6   : > { %v7042_v24 = vunpack.c.l.b16 %v6690_v0  ;;  %v4517_v61 = vshrl.u32 %v4221_v51, 16  ;;  %v14723_v19 = vshrl.u32 %v12707_v3, 16  ;;  %v7558_v60 = vadd.f32 %v13367_v59, %v7522_v11  ;;  %8569 = vmatmul.msk.bf16.gmra.mxu0 %vm6119_vm9, %v5136_v17  ;;  %v14730_v11 = vld [vmem:[#allocation4_spill] sm:$0xff]  ;;  %8753 = vmatmul.msk.bf16.gmra.mxu2 %vm1463_vm13, %v8875_v45 }
 0x3c7   : > { %v14725_v14 = vshrl.u32 %v14724_v58, 16  ;;  %v7523_v6 = vmul.f32 %v13353_v43, %v7487_v4  ;;  %v4062_v53 = vsel %vm11705_vm7, 0, %v4061_v18  ;;  %v5470_v47 = vsel %vm9551_vm12, %v8462_v54, %v5469_v5 }
 0x3c8   : > { %v4524_v63 = vrot.slane %v14723_v19, 7  ;;  %v6681_v16 = vsel %vm9551_vm12, %v8584_v25, %v6680_v20  ;;  %v8383_v13 = vrot.slane %v4517_v61, 11  ;;  %v14726_v28 = vshll.u32 %v12707_v3, 16  ;;  %4063 = vst [vmem:[#allocation3 + $0x154] sm:$0x8] %v4062_v53  ;;  %v6328_v20 = vpop.f32.mrf.mxu0  ;;  %v14732_v19 = vld [vmem:[#allocation6_spill] sm:$0xff] }
 0x3c9   : > { %v4533_v34 = vrot.slane %v14725_v14, 7  ;;  %v7041_v40 = vunpack.c.l.b16 %v6681_v16  ;;  %v7916_v33 = vadd.f32 %v7884_v1, %v7558_v60  ;;  %v7849_v36 = vmul.f32 %v13423_v32, %v7781_v29  ;;  %v4977_v61 = vpop.permute.xlu2 %4976 }
 0x3ca   : > { %v4527_v30 = vor.u32 %v14726_v28, %v4524_v63  ;;  %v5810_v10 = vunpack.c.l.b16 %v5470_v47  ;;  %v4529_v52 = vrot.slane %v4524_v63, 4  ;;  %v14727_v56 = vshll.u32 %v14724_v58, 16  ;;  %v14735_v47 = vld [vmem:[#allocation14_spill] sm:$0xff] }
 0x3cb   : > { %v7062_v5 = vpack.c.b16 %v7042_v24, %v7041_v40  ;;  %v7948_v39 = vmax.f32 %v7916_v33, 0.0  ;;  %v7559_v3 = vadd.f32 %v13367_v59, %v7523_v6  ;;  %v14729_v48 = vshrl.u32 %v14728_v23, 16  ;;  %v7172_v33 = vpop.permute.xlu1 %7171 }
 0x3cc   : > { %v4536_v37 = vor.u32 %v14727_v56, %v4533_v34  ;;  %v4528_v12 = vsel %vm9551_vm12, %v8383_v13, %v4527_v30  ;;  %v5830_v51 = vpack.c.b16 %v5811_v42, %v5810_v10  ;;  %v6329_v0 = vadd.f32 %v6328_v20, %v6195_v55 }
 0x3cd   : > { %v5497_v8 = vrot.slane %v14729_v48, 7  ;;  %v7294_v18 = vsel %vm1512_vm14, %v7062_v5, %v13386_v15  ;;  %7980 = vst.msk [vmem:[%s12893_s28 + $0x50] sm:$0xff] %vm1512_vm14, %v7948_v39  ;;  %v14731_v17 = vshrl.u32 %v14730_v11, 16  ;;  %v7885_v29 = vadd.f32 %v13359_v26, %v7849_v36  ;;  %v14740_v48 = vld [vmem:[#allocation18_spill] sm:$0xff] }
 0x3ce   : > { %v4537_v4 = vsel %vm9551_vm12, %v4529_v52, %v4536_v37  ;;  %v6064_v42 = vsel %vm1512_vm14, %v5830_v51, %v13320_v9  ;;  %v7330_v54 = vsel %vm5110_vm8, %v7294_v18, %v13311_v49  ;;  %v4848_v25 = vunpack.c.l.b16 %v4528_v12  ;;  %v7784_v9 = vpop.f32.mrf.mxu2  ;;  %v7426_v37 = vpop.f32.mrf.mxu1 }
 0x3cf   : > { %v4849_v24 = vunpack.c.l.b16 %v4537_v4  ;;  %v5488_v1 = vrot.slane %v14731_v17, 7  ;;  %v14733_v63 = vshrl.u32 %v14732_v19, 16  ;;  %v6099_v15 = vsel %vm5110_vm8, %v6064_v42, %v6019_v22  ;;  %v5185_v58 = vld [vmem:[#allocation3 + $0x154] sm:$0x8]  ;;  %v5057_v22 = vpop.permute.xlu0 %5056 }
 0x3d0   : > { %v14734_v14 = vshll.u32 %v14728_v23, 16  ;;  %v7917_v6 = vadd.f32 %v7885_v29, %v7559_v3  ;;  %v6415_v53 = vld [vmem:[#allocation3 + $0x154] sm:$0x8]  ;;  %v14736_v16 = vshrl.u32 %v14735_v47, 16  ;;  %v5481_v49 = vshrl.u32 %v5185_v58, 16  ;;  %8671 = vmatmul.msk.bf16.gmra.mxu1 %vm6119_vm9, %v7330_v54 }
 0x3d1   : > { %v6699_v60 = vrot.slane %v14733_v63, 7  ;;  %v6692_v28 = vshrl.u32 %v6415_v53, 16  ;;  %v14737_v30 = vshll.u32 %v14732_v19, 16  ;;  %v4867_v36 = vpack.c.b16 %v4849_v24, %v4848_v25  ;;  %8549 = vmatmul.msk.bf16.gmra.mxu3 %vm6119_vm9, %v6099_v15  ;;  %v4224_v45 = vld [vmem:[#allocation3 + $0x154] sm:$0x8] }
 0x3d2   : > { %v5500_v34 = vor.u32 %v14734_v14, %v5497_v8  ;;  %v6708_v13 = vrot.slane %v14736_v16, 7  ;;  %v14738_v55 = vshll.u32 %v14730_v11, 16  ;;  %v5493_v52 = vrot.slane %v5488_v1, 4  ;;  %v4064_v54 = vld [vmem:[#allocation3 + $0x16c] sm:$0x8]  ;;  %v6330_v14 = vpop.f32.mrf.mxu0  ;;  %v13512_v16 = vpop.permute.xlu2 %7253 }
 0x3d3   : > { %v6702_v40 = vor.u32 %v14737_v30, %v6699_v60  ;;  %v7949_v56 = vmax.f32 %v7917_v6, 0.0  ;;  %v8463_v5 = vrot.slane %v5481_v49, 11  ;;  %v8585_v39 = vrot.slane %v6692_v28, 11 }
 0x3d4   : > { %v5491_v10 = vor.u32 %v14738_v55, %v5488_v1  ;;  %v6704_v12 = vrot.slane %v6699_v60, 4  ;;  %v14739_v20 = vshll.u32 %v14735_v47, 16  ;;  %v5103_v51 = vsel %vm1512_vm14, %v4867_v36, %v4977_v61  ;;  %v14742_v1 = vld [vmem:[#allocation7_spill] sm:$0xff] }
 0x3d5   : > { %v5501_v4 = vsel %vm9551_vm12, %v5493_v52, %v5500_v34  ;;  %7981 = vst.msk [vmem:[%s12893_s28 + $0x58] sm:$0xff] %vm1512_vm14, %v7949_v56  ;;  %v7488_v23 = vadd.f32 %v7426_v37, %v6329_v0  ;;  %v14741_v8 = vshrl.u32 %v14740_v48, 16  ;;  %v6703_v24 = vsel %vm9551_vm12, %v8585_v39, %v6702_v40  ;;  %v6197_v0 = vpop.f32.mrf.mxu3  ;;  %v6021_v52 = vpop.permute.xlu1 %6020 }
 0x3d6   : > { %v6711_v3 = vor.u32 %v14739_v20, %v6708_v13  ;;  %v5138_v17 = vsel %vm5110_vm8, %v5103_v51, %v5057_v22  ;;  %v14743_v29 = vshrl.u32 %v14742_v1, 16  ;;  %v4539_v19 = vshrl.u32 %v4224_v45, 16  ;;  %v7428_v55 = vpop.f32.mrf.mxu1  ;;  %v8876_v20 = vld [vmem:[#allocation2 + $0x170] sm:$0xff]  ;;  %v14746_v45 = vld [vmem:[#allocation9_spill] sm:$0xff] }
 0x3d7   : > { %v4546_v18 = vrot.slane %v14741_v8, 7  ;;  %v7524_v61 = vmul.f32 %v13353_v43, %v7488_v23  ;;  %v5492_v63 = vsel %vm9551_vm12, %v8463_v5, %v5491_v10  ;;  %v5813_v60 = vunpack.c.l.b16 %v5501_v4  ;;  %8570 = vmatmul.msk.bf16.gmra.mxu0 %vm6119_vm9, %v5138_v17  ;;  %v7786_v10 = vpop.f32.mrf.mxu2  ;;  %v13517_v37 = vpop.permute.xlu0 %5942  ;;  %v14750_v17 = vld [vmem:[#allocation8_spill] sm:$0xff]  ;;  %8754 = vmatmul.msk.bf16.gmra.mxu2 %vm1463_vm13, %v8876_v20 }
 0x3d8   : > { %v6712_v11 = vsel %vm9551_vm12, %v6704_v12, %v6711_v3  ;;  %v4555_v42 = vrot.slane %v14743_v29, 7  ;;  %v7850_v15 = vmul.f32 %v13423_v32, %v7784_v9  ;;  %v7043_v58 = vunpack.c.l.b16 %v6703_v24 }
 0x3d9   : > { %v7044_v25 = vunpack.c.l.b16 %v6712_v11  ;;  %v7560_v34 = vadd.f32 %v13367_v59, %v7524_v61  ;;  %v14744_v6 = vshll.u32 %v14742_v1, 16  ;;  %v4065_v47 = vsel %vm11705_vm7, 0, %v4064_v54  ;;  %v14752_v54 = vld [vmem:[#allocation11_spill] sm:$0xff] }
 0x3da   : > { %v14745_v13 = vshll.u32 %v14740_v48, 16  ;;  %v7886_v28 = vadd.f32 %v13359_v26, %v7850_v15  ;;  %v6331_v9 = vadd.f32 %v6330_v14, %v6197_v0  ;;  %4066 = vst [vmem:[#allocation3 + $0x16c] sm:$0x8] %v4065_v47  ;;  %v5812_v30 = vunpack.c.l.b16 %v5492_v63  ;;  %v4067_v47 = vld [vmem:[#allocation3 + $0x184] sm:$0x8] }
 0x3db   : > { %v4558_v53 = vor.u32 %v14744_v6, %v4555_v42  ;;  %v7063_v40 = vpack.c.b16 %v7044_v25, %v7043_v58  ;;  %v8384_v22 = vrot.slane %v4539_v19, 11  ;;  %v4551_v36 = vrot.slane %v4546_v18, 4 }
 0x3dc   : > { %v4549_v49 = vor.u32 %v14745_v13, %v4546_v18  ;;  %v7918_v56 = vadd.f32 %v7886_v28, %v7560_v34  ;;  %v5831_v5 = vpack.c.b16 %v5813_v60, %v5812_v30  ;;  %v14747_v51 = vshrl.u32 %v14746_v45, 16  ;;  %v14748_v18 = vld [vmem:[#allocation12_spill] sm:$0xff]  ;;  %v4979_v13 = vpop.permute.xlu2 %4978 }
 0x3dd   : > { %v7297_v39 = vsel %vm1512_vm14, %v7063_v40, %v7172_v33  ;;  %v4559_v12 = vsel %vm9551_vm12, %v4551_v36, %v4558_v53  ;;  %v7489_v23 = vadd.f32 %v7428_v55, %v6331_v9  ;;  %v7851_v48 = vmul.f32 %v13423_v32, %v7786_v10 }
 0x3de   : > { %v7950_v3 = vmax.f32 %v7918_v56, 0.0  ;;  %v6730_v4 = vrot.slane %v14747_v51, 7  ;;  %v4550_v8 = vsel %vm9551_vm12, %v8384_v22, %v4549_v49  ;;  %v14749_v24 = vshrl.u32 %v14748_v18, 16 }
 0x3df   : > { %v14751_v1 = vshrl.u32 %v14750_v17, 16  ;;  %v6067_v29 = vsel %vm1512_vm14, %v5831_v5, %v13436_v41  ;;  %v4851_v42 = vunpack.c.l.b16 %v4559_v12  ;;  %v14753_v25 = vshrl.u32 %v14752_v54, 16 }
 0x3e0   : > { %v5519_v11 = vrot.slane %v14749_v24, 7  ;;  %7982 = vst.msk [vmem:[%s12893_s28 + $0x60] sm:$0xff] %vm1512_vm14, %v7950_v3  ;;  %v7525_v19 = vmul.f32 %v13353_v43, %v7489_v23  ;;  %v7332_v0 = vsel %vm5110_vm8, %v7297_v39, %v13429_v27  ;;  %v6101_v63 = vsel %vm5110_vm8, %v6067_v29, %v6021_v52  ;;  %v7174_v3 = vpop.permute.xlu1 %7173  ;;  %v7789_v24 = vpop.f32.mrf.mxu2 }
 0x3e1   : > { %v6721_v33 = vrot.slane %v14751_v1, 7  ;;  %v5510_v61 = vrot.slane %v14753_v25, 7  ;;  %v5188_v60 = vld [vmem:[#allocation3 + $0x16c] sm:$0x8]  ;;  %v14754_v58 = vshll.u32 %v14746_v45, 16  ;;  %v7887_v41 = vadd.f32 %v13359_v26, %v7851_v48  ;;  %8672 = vmatmul.msk.bf16.gmra.mxu1 %vm6119_vm9, %v7332_v0  ;;  %8550 = vmatmul.msk.bf16.gmra.mxu3 %vm6119_vm9, %v6101_v63  ;;  %v5059_v45 = vpop.permute.xlu0 %5058  ;;  %v6333_v1 = vpop.f32.mrf.mxu0  ;;  %v8877_v63 = vld [vmem:[#allocation2 + $0x188] sm:$0xff] }
 0x3e2   : > { %v6418_v15 = vld [vmem:[#allocation3 + $0x16c] sm:$0x8]  ;;  %v4850_v34 = vunpack.c.l.b16 %v4550_v8  ;;  %v5503_v6 = vshrl.u32 %v5188_v60, 16  ;;  %v14755_v49 = vshll.u32 %v14748_v18, 16  ;;  %v14756_v27 = vshll.u32 %v14750_v17, 16  ;;  %v6200_v18 = vpop.f32.mrf.mxu3 }
 0x3e3   : > { %v6733_v14 = vor.u32 %v14754_v58, %v6730_v4  ;;  %v6714_v53 = vshrl.u32 %v6418_v15, 16  ;;  %v6726_v30 = vrot.slane %v6721_v33, 4  ;;  %v7561_v40 = vadd.f32 %v13367_v59, %v7525_v19  ;;  %v14758_v58 = vld [vmem:[#allocation13_spill] sm:$0xff] }
 0x3e4   : > { %v5522_v28 = vor.u32 %v14755_v49, %v5519_v11  ;;  %v6724_v9 = vor.u32 %v14756_v27, %v6721_v33  ;;  %v4868_v22 = vpack.c.b16 %v4851_v42, %v4850_v34  ;;  %v14757_v36 = vshll.u32 %v14752_v54, 16  ;;  %v7431_v34 = vpop.f32.mrf.mxu1 }
 0x3e5   : > { %v5515_v10 = vrot.slane %v5510_v61, 4  ;;  %v8586_v52 = vrot.slane %v6714_v53, 11  ;;  %v8464_v56 = vrot.slane %v5503_v6, 11  ;;  %v6734_v5 = vsel %vm9551_vm12, %v6726_v30, %v6733_v14  ;;  %v4013_v6 = vld [vmem:[#allocation3 + $0x19c] sm:$0x8]  ;;  %v14761_v30 = vld [vmem:[#allocation15_spill] sm:$0xff] }
 0x3e6   : > { %v5513_v55 = vor.u32 %v14757_v36, %v5510_v61  ;;  %v7919_v39 = vadd.f32 %v7887_v41, %v7561_v40  ;;  %v4068_v12 = vsel %vm11705_vm7, 0, %v4067_v47  ;;  %v5106_v20 = vsel %vm1512_vm14, %v4868_v22, %v4979_v13  ;;  %v4227_v61 = vld [vmem:[#allocation3 + $0x16c] sm:$0x8] }
 0x3e7   : > { %4069 = vst [vmem:[#allocation3 + $0x184] sm:$0x8] %v4068_v12  ;;  %v5523_v51 = vsel %vm9551_vm12, %v5515_v10, %v5522_v28  ;;  %v6725_v4 = vsel %vm9551_vm12, %v8586_v52, %v6724_v9  ;;  %v5140_v48 = vsel %vm5110_vm8, %v5106_v20, %v5059_v45  ;;  %v7046_v8 = vunpack.c.l.b16 %v6734_v5  ;;  %8755 = vmatmul.msk.bf16.gmra.mxu2 %vm1463_vm13, %v8877_v63 }
 0x3e8   : > { %v7951_v23 = vmax.f32 %v7919_v39, 0.0  ;;  %v5514_v11 = vsel %vm9551_vm12, %v8464_v56, %v5513_v55  ;;  %8571 = vmatmul.msk.bf16.gmra.mxu0 %vm6119_vm9, %v5140_v48  ;;  %v5815_v17 = vunpack.c.l.b16 %v5523_v51  ;;  %v7045_v33 = vunpack.c.l.b16 %v6725_v4  ;;  %v6023_v27 = vpop.permute.xlu1 %6022  ;;  %v7791_v12 = vpop.f32.mrf.mxu2 }
 0x3e9   : > { %v5814_v29 = vunpack.c.l.b16 %v5514_v11  ;;  %v7852_v54 = vmul.f32 %v13423_v32, %v7789_v24  ;;  %v6334_v25 = vadd.f32 %v6333_v1, %v6200_v18  ;;  %v6752_v0 = vrot.slane %v6750_v50, 7  ;;  %v6335_v4 = vpop.f32.mrf.mxu0  ;;  %v5945_v18 = vpop.permute.xlu0 %5944 }
 0x3ea   : > { %7983 = vst.msk [vmem:[%s12893_s28 + $0x68] sm:$0xff] %vm1512_vm14, %v7951_v23  ;;  %v7064_v42 = vpack.c.b16 %v7046_v8, %v7045_v33  ;;  %v14759_v14 = vshrl.u32 %v14758_v58, 16  ;;  %v14760_v13 = vshrl.u32 %v13088_v44, 16  ;;  %v4014_v28 = vsel %vm11705_vm7, 0, %v4013_v6  ;;  %v6202_v39 = vpop.f32.mrf.mxu3 }
 0x3eb   : > { %v5832_v60 = vpack.c.b16 %v5815_v17, %v5814_v29  ;;  %v7490_v53 = vadd.f32 %v7431_v34, %v6334_v25  ;;  %v4561_v9 = vshrl.u32 %v4227_v61, 16  ;;  %v14762_v40 = vshrl.u32 %v14761_v30, 16  ;;  %4015 = vst [vmem:[#allocation3 + $0x19c] sm:$0x8] %v4014_v28  ;;  %v14767_v61 = vld [vmem:[#allocation20_spill] sm:$0xff]  ;;  %v14769_v34 = vld [vmem:[#allocation19_spill] sm:$0xff] }
 0x3ec   : > { %v7300_v15 = vsel %vm1512_vm14, %v7064_v42, %v7174_v3  ;;  %v4577_v41 = vrot.slane %v14759_v14, 7  ;;  %v6743_v49 = vrot.slane %v14760_v13, 7  ;;  %v7888_v36 = vadd.f32 %v13359_v26, %v7852_v54  ;;  %v7433_v1 = vpop.f32.mrf.mxu1  ;;  %v7256_v33 = vpop.permute.xlu2 %7255 }
 0x3ed   : > { %v6070_v50 = vsel %vm1512_vm14, %v5832_v60, %v13517_v37  ;;  %v4568_v22 = vrot.slane %v14762_v40, 7  ;;  %v7334_v55 = vsel %vm5110_vm8, %v7300_v15, %v13512_v16  ;;  %v7526_v52 = vmul.f32 %v13353_v43, %v7490_v53 }
 0x3ee   : > { %v6421_v19 = vld [vmem:[#allocation3 + $0x184] sm:$0x8]  ;;  %v6103_v10 = vsel %vm5110_vm8, %v6070_v50, %v6023_v27  ;;  %v14763_v46 = vshll.u32 %v13100_v31, 16  ;;  %v14764_v37 = vshll.u32 %v14758_v58, 16  ;;  %v14765_v45 = vshll.u32 %v13088_v44, 16 }
 0x3ef   : > { %v6736_v47 = vshrl.u32 %v6421_v19, 16  ;;  %v7562_v20 = vadd.f32 %v13367_v59, %v7526_v52  ;;  %v6748_v51 = vrot.slane %v6743_v49, 4  ;;  %v8385_v23 = vrot.slane %v4561_v9, 11  ;;  %v5191_v15 = vld [vmem:[#allocation3 + $0x184] sm:$0x8] }
 0x3f0   : > { %v6755_v56 = vor.u32 %v14763_v46, %v6752_v0  ;;  %v4580_v5 = vor.u32 %v14764_v37, %v4577_v41  ;;  %v6746_v16 = vor.u32 %v14765_v45, %v6743_v49  ;;  %v14766_v31 = vshll.u32 %v14761_v30, 16  ;;  %v7176_v13 = vpop.permute.xlu1 %7175 }
 0x3f1   : > { %v8587_v3 = vrot.slane %v6736_v47, 11  ;;  %8673 = vmatmul.msk.bf16.gmra.mxu1 %vm6119_vm9, %v7334_v55  ;;  %v4573_v8 = vrot.slane %v4568_v22, 4  ;;  %8551 = vmatmul.msk.bf16.gmra.mxu3 %vm6119_vm9, %v6103_v10  ;;  %v6336_v24 = vadd.f32 %v6335_v4, %v6202_v39  ;;  %v7920_v11 = vadd.f32 %v7888_v36, %v7562_v20 }
 0x3f2   : > { %v4571_v48 = vor.u32 %v14766_v31, %v4568_v22  ;;  %v6756_v17 = vsel %vm9551_vm12, %v6748_v51, %v6755_v56  ;;  %v7853_v44 = vmul.f32 %v13423_v32, %v7791_v12  ;;  %v14768_v19 = vshrl.u32 %v14767_v61, 16  ;;  %v6424_v52 = vld [vmem:[#allocation3 + $0x19c] sm:$0x8]  ;;  %v6205_v7 = vpop.f32.mrf.mxu3 }
 0x3f3   : > { %v4581_v29 = vsel %vm9551_vm12, %v4573_v8, %v4580_v5  ;;  %v7952_v42 = vmax.f32 %v7920_v11, 0.0  ;;  %v6747_v54 = vsel %vm9551_vm12, %v8587_v3, %v6746_v16  ;;  %v7491_v25 = vadd.f32 %v7433_v1, %v6336_v24  ;;  %v5061_v10 = vpop.permute.xlu0 %5060 }
 0x3f4   : > { %v5541_v0 = vrot.slane %v14768_v19, 7  ;;  %v7048_v63 = vunpack.c.l.b16 %v6756_v17  ;;  %v4572_v60 = vsel %vm9551_vm12, %v8385_v23, %v4571_v48  ;;  %v7889_v14 = vadd.f32 %v13359_v26, %v7853_v44  ;;  %v7794_v48 = vpop.f32.mrf.mxu2  ;;  %v6338_v17 = vpop.f32.mrf.mxu0 }
 0x3f5   : > { %7984 = vst.msk [vmem:[%s12893_s28 + $0x70] sm:$0xff] %vm1512_vm14, %v7952_v42  ;;  %v7527_v58 = vmul.f32 %v13353_v43, %v7491_v25  ;;  %v4853_v41 = vunpack.c.l.b16 %v4581_v29  ;;  %v14770_v6 = vshrl.u32 %v14769_v34, 16  ;;  %v7047_v47 = vunpack.c.l.b16 %v6747_v54  ;;  %v4981_v46 = vpop.permute.xlu2 %4980 }
 0x3f6   : > { %v4852_v28 = vunpack.c.l.b16 %v4572_v60  ;;  %v5525_v50 = vshrl.u32 %v5191_v15, 16  ;;  %v14771_v27 = vshll.u32 %v14767_v61, 16  ;;  %v14772_v56 = vshll.u32 %v14769_v34, 16 }
 0x3f7   : > { %v5532_v53 = vrot.slane %v14770_v6, 7  ;;  %v7563_v49 = vadd.f32 %v13367_v59, %v7527_v58  ;;  %v7065_v30 = vpack.c.b16 %v7048_v63, %v7047_v47  ;;  %v6765_v3 = vrot.slane %v6763_v2, 7 }
 0x3f8   : > { %v5544_v9 = vor.u32 %v14771_v27, %v5541_v0  ;;  %v4869_v22 = vpack.c.b16 %v4853_v41, %v4852_v28  ;;  %v8465_v12 = vrot.slane %v5525_v50, 11  ;;  %v6758_v51 = vshrl.u32 %v6424_v52, 16 }
 0x3f9   : > { %v7921_v40 = vadd.f32 %v7889_v14, %v7563_v49  ;;  %v5537_v36 = vrot.slane %v5532_v53, 4  ;;  %v7303_v55 = vsel %vm1512_vm14, %v7065_v30, %v7176_v13  ;;  %v5535_v37 = vor.u32 %v14772_v56, %v5532_v53 }
 0x3fa   : > { %v5109_v39 = vsel %vm1512_vm14, %v4869_v22, %v4981_v46  ;;  %v7336_v45 = vsel %vm5110_vm8, %v7303_v55, %v7256_v33  ;;  %v6774_v4 = vrot.slane %v6772_v62, 7  ;;  %v8588_v2 = vrot.slane %v6758_v51, 11  ;;  %v6207_v34 = vpop.f32.mrf.mxu3 }
 0x3fb   : > { %v7953_v5 = vmax.f32 %v7921_v40, 0.0  ;;  %v5545_v20 = vsel %vm9551_vm12, %v5537_v36, %v5544_v9  ;;  %v5142_v16 = vsel %vm5110_vm8, %v5109_v39, %v5061_v10  ;;  %v5536_v23 = vsel %vm9551_vm12, %v8465_v12, %v5535_v37 }
 0x3fc   : > { %8572 = vmatmul.msk.bf16.gmra.mxu0 %vm6119_vm9, %v5142_v16  ;;  %v5817_v31 = vunpack.c.l.b16 %v5545_v20  ;;  %v6768_v8 = vor.u32 %v6766_v38, %v6765_v3  ;;  %v6770_v24 = vrot.slane %v6765_v3, 4  ;;  %v6777_v11 = vor.u32 %v6775_v21, %v6774_v4  ;;  %v7796_v57 = vpop.f32.mrf.mxu2  ;;  %v6340_v21 = vpop.f32.mrf.mxu0 }
 0x3fd   : > { %7985 = vst.msk [vmem:[%s12893_s28 + $0x78] sm:$0xff] %vm1512_vm14, %v7953_v5  ;;  %v5816_v44 = vunpack.c.l.b16 %v5536_v23  ;;  %v6339_v19 = vadd.f32 %v6338_v17, %v6205_v7  ;;  %v7854_v0 = vmul.f32 %v13423_v32, %v7794_v48  ;;  %v6341_v13 = vadd.f32 %v6340_v21, %v6207_v34 }
 0x3fe   : > { %v6769_v1 = vsel %vm9551_vm12, %v8588_v2, %v6768_v8  ;;  %v6778_v33 = vsel %vm9551_vm12, %v6770_v24, %v6777_v11  ;;  %v7855_v28 = vmul.f32 %v13423_v32, %v7796_v57 }
 0x3ff   : > { %v5833_v62 = vpack.c.b16 %v5817_v31, %v5816_v44  ;;  %v7049_v38 = vunpack.c.l.b16 %v6769_v1  ;;  %v7050_v25 = vunpack.c.l.b16 %v6778_v33  ;;  %v7890_v41 = vadd.f32 %v13359_v26, %v7854_v0 }
 0x400   : > { %v6025_v42 = vpop.permute.xlu1 %6024  ;;  %v7891_v40 = vadd.f32 %v13359_v26, %v7855_v28 }
 0x401   : > { %8674 = vmatmul.msk.bf16.gmra.mxu1 %vm6119_vm9, %v7336_v45  ;;  %v6073_v29 = vsel %vm1512_vm14, %v5833_v62, %v5945_v18  ;;  %v7066_v61 = vpack.c.b16 %v7050_v25, %v7049_v38 }
 0x402   : > { %v6105_v54 = vsel %vm5110_vm8, %v6073_v29, %v6025_v42 }
 0x403   : > { %8552 = vmatmul.msk.bf16.gmra.mxu3 %vm6119_vm9, %v6105_v54 }
 0x404   : > { %v6343_v47 = vpop.f32.mrf.mxu0 }
 0x406   : > { %v7799_v6 = vpop.f32.mrf.mxu2 }
 0x407   : > { %v7856_v39 = vmul.f32 %v13423_v32, %v7799_v6 }
 0x408   : > { %v7436_v60 = vpop.f32.mrf.mxu1  ;;  %v7178_v35 = vpop.permute.xlu1 %7177 }
 0x409   : > { %v7258_v63 = vpop.permute.xlu2 %7257  ;;  %v7492_v15 = vadd.f32 %v7436_v60, %v6339_v19  ;;  %v7306_v18 = vsel %vm1512_vm14, %v7066_v61, %v7178_v35  ;;  %v7892_v16 = vadd.f32 %v13359_v26, %v7856_v39 }
 0x40a   : > { %v7338_v58 = vsel %vm5110_vm8, %v7306_v18, %v7258_v63 }
 0x40b   : > { %v7528_v14 = vmul.f32 %v13353_v43, %v7492_v15 }
 0x40c   : > { %v6345_v52 = vpop.f32.mrf.mxu0 }
 0x40d   : > { %v7564_v53 = vadd.f32 %v13367_v59, %v7528_v14 }
 0x40e   : > { %v7801_v36 = vpop.f32.mrf.mxu2 }
 0x40f   : > { %v7922_v49 = vadd.f32 %v7890_v41, %v7564_v53  ;;  %v6210_v10 = vpop.f32.mrf.mxu3  ;;  %v7857_v31 = vmul.f32 %v13423_v32, %v7801_v36 }
 0x410   : > { %v7438_v50 = vpop.f32.mrf.mxu1  ;;  %v6344_v56 = vadd.f32 %v6343_v47, %v6210_v10 }
 0x411   : > { %8675 = vmatmul.msk.bf16.gmra.mxu1 %vm6119_vm9, %v7338_v58  ;;  %v7954_v27 = vmax.f32 %v7922_v49, 0.0  ;;  %v7493_v9 = vadd.f32 %v7438_v50, %v6341_v13  ;;  %v7893_v62 = vadd.f32 %v13359_v26, %v7857_v31 }
 0x413   : > { %7986 = vst.msk [vmem:[%s12893_s28 + $0x80] sm:$0xff] %vm1512_vm14, %v7954_v27  ;;  %v7529_v30 = vmul.f32 %v13353_v43, %v7493_v9 }
 0x415   : > { %v7565_v22 = vadd.f32 %v13367_v59, %v7529_v30 }
 0x416   : > { %v7804_v37 = vpop.f32.mrf.mxu2 }
 0x417   : > { %v7923_v55 = vadd.f32 %v7891_v40, %v7565_v22  ;;  %v6212_v5 = vpop.f32.mrf.mxu3  ;;  %v7858_v25 = vmul.f32 %v13423_v32, %v7804_v37 }
 0x418   : > { %v6346_v4 = vadd.f32 %v6345_v52, %v6212_v5 }
 0x419   : > { %v7955_v46 = vmax.f32 %v7923_v55, 0.0  ;;  %v6348_v12 = vpop.f32.mrf.mxu0  ;;  %v7894_v61 = vadd.f32 %v13359_v26, %v7858_v25 }
 0x41b   : > { %7987 = vst.msk [vmem:[%s12893_s28 + $0x88] sm:$0xff] %vm1512_vm14, %v7955_v46 }
 0x41e   : > { %v7806_v48 = vpop.f32.mrf.mxu2 }
 0x41f   : > { %v7859_v41 = vmul.f32 %v13423_v32, %v7806_v48 }
 0x421   : > { %v6350_v17 = vpop.f32.mrf.mxu0  ;;  %v7895_v53 = vadd.f32 %v13359_v26, %v7859_v41 }
 0x426   : > { %v7441_v20 = vpop.f32.mrf.mxu1 }
 0x427   : > { %v7494_v3 = vadd.f32 %v7441_v20, %v6344_v56 }
 0x429   : > { %v7530_v45 = vmul.f32 %v13353_v43, %v7494_v3  ;;  %v7809_v7 = vpop.f32.mrf.mxu2 }
 0x42a   : > { %v7860_v50 = vmul.f32 %v13423_v32, %v7809_v7 }
 0x42b   : > { %v7566_v51 = vadd.f32 %v13367_v59, %v7530_v45  ;;  %v6215_v8 = vpop.f32.mrf.mxu3 }
 0x42c   : > { %v6349_v38 = vadd.f32 %v6348_v12, %v6215_v8  ;;  %v7896_v36 = vadd.f32 %v13359_v26, %v7860_v50 }
 0x42d   : > { %v7924_v23 = vadd.f32 %v7892_v16, %v7566_v51 }
 0x42e   : > { %v7443_v2 = vpop.f32.mrf.mxu1 }
 0x42f   : > { %v7956_v24 = vmax.f32 %v7924_v23, 0.0  ;;  %v7495_v11 = vadd.f32 %v7443_v2, %v6346_v4 }
 0x431   : > { %7988 = vst.msk [vmem:[%s12893_s28 + $0x90] sm:$0xff] %vm1512_vm14, %v7956_v24  ;;  %v7531_v44 = vmul.f32 %v13353_v43, %v7495_v11  ;;  %v6353_v42 = vpop.f32.mrf.mxu0  ;;  %v7811_v58 = vpop.f32.mrf.mxu2 }
 0x432   : > { %v7861_v39 = vmul.f32 %v13423_v32, %v7811_v58 }
 0x433   : > { %v7567_v1 = vadd.f32 %v13367_v59, %v7531_v44  ;;  %v6217_v54 = vpop.f32.mrf.mxu3 }
 0x434   : > { %v6351_v35 = vadd.f32 %v6350_v17, %v6217_v54  ;;  %v7897_v16 = vadd.f32 %v13359_v26, %v7861_v39  ;;  %v8909_v39 = vld [vmem:[%s13758_s9] ss:$0 sm:$0xff] }
 0x435   : > { %v7925_v33 = vadd.f32 %v7893_v62, %v7567_v1 }
 0x437   : > { %v7957_v29 = vmax.f32 %v7925_v33, 0.0 }
 0x439   : > { %7989 = vst.msk [vmem:[%s12893_s28 + $0x98] sm:$0xff] %vm1512_vm14, %v7957_v29  ;;  %v6355_v15 = vpop.f32.mrf.mxu0  ;;  %v7814_v22 = vpop.f32.mrf.mxu2 }
 0x43a   : > { %v7862_v48 = vmul.f32 %v13423_v32, %v7814_v22 }
 0x43c   : > { %v7898_v11 = vadd.f32 %v13359_v26, %v7862_v48 }
 0x43d   : > { %v7446_v57 = vpop.f32.mrf.mxu1 }
 0x43e   : > { %v7496_v21 = vadd.f32 %v7446_v57, %v6349_v38 }
 0x440   : > { %v7532_v19 = vmul.f32 %v13353_v43, %v7496_v21 }
 0x441   : > { %v7816_v45 = vpop.f32.mrf.mxu2 }
 0x442   : > { %v7568_v0 = vadd.f32 %v13367_v59, %v7532_v19  ;;  %v7863_v38 = vmul.f32 %v13423_v32, %v7816_v45 }
 0x443   : > { %v6358_v40 = vpop.f32.mrf.mxu0 }
 0x444   : > { %v6220_v63 = vpop.f32.mrf.mxu3  ;;  %v7926_v60 = vadd.f32 %v7894_v61, %v7568_v0  ;;  %v7899_v21 = vadd.f32 %v13359_v26, %v7863_v38 }
 0x445   : > { %v7448_v18 = vpop.f32.mrf.mxu1  ;;  %v6354_v13 = vadd.f32 %v6353_v42, %v6220_v63 }
 0x446   : > { %v7958_v14 = vmax.f32 %v7926_v60, 0.0  ;;  %v7497_v34 = vadd.f32 %v7448_v18, %v6351_v35 }
 0x448   : > { %7990 = vst.msk [vmem:[%s12893_s28 + $0xa0] sm:$0xff] %vm1512_vm14, %v7958_v14  ;;  %v7533_v6 = vmul.f32 %v13353_v43, %v7497_v34 }
 0x449   : > { %v7819_v33 = vpop.f32.mrf.mxu2 }
 0x44a   : > { %v7569_v47 = vadd.f32 %v13367_v59, %v7533_v6  ;;  %v7864_v60 = vmul.f32 %v13423_v32, %v7819_v33 }
 0x44b   : > { %v6360_v3 = vpop.f32.mrf.mxu0 }
 0x44c   : > { %v6222_v49 = vpop.f32.mrf.mxu3  ;;  %v7927_v28 = vadd.f32 %v7895_v53, %v7569_v47  ;;  %v7900_v41 = vadd.f32 %v13359_v26, %v7864_v60 }
 0x44d   : > { %v7451_v27 = vpop.f32.mrf.mxu1  ;;  %v6356_v52 = vadd.f32 %v6355_v15, %v6222_v49 }
 0x44e   : > { %v7959_v9 = vmax.f32 %v7927_v28, 0.0  ;;  %v7498_v30 = vadd.f32 %v7451_v27, %v6354_v13 }
 0x450   : > { %7991 = vst.msk [vmem:[%s12893_s28 + $0xa8] sm:$0xff] %vm1512_vm14, %v7959_v9  ;;  %v7534_v55 = vmul.f32 %v13353_v43, %v7498_v30 }
 0x451   : > { %v7821_v18 = vpop.f32.mrf.mxu2 }
 0x452   : > { %v7570_v10 = vadd.f32 %v13367_v59, %v7534_v55  ;;  %v7865_v50 = vmul.f32 %v13423_v32, %v7821_v18 }
 0x454   : > { %v6225_v46 = vpop.f32.mrf.mxu3  ;;  %v7928_v56 = vadd.f32 %v7896_v36, %v7570_v10  ;;  %v6363_v62 = vpop.f32.mrf.mxu0  ;;  %v7901_v22 = vadd.f32 %v13359_v26, %v7865_v50  ;;  %v8910_v26 = vld [vmem:[%s13754_s5] ss:$0 sm:$0xff] }
 0x455   : > { %v7453_v37 = vpop.f32.mrf.mxu1  ;;  %v6359_v4 = vadd.f32 %v6358_v40, %v6225_v46 }
 0x456   : > { %v7960_v5 = vmax.f32 %v7928_v56, 0.0  ;;  %v7499_v12 = vadd.f32 %v7453_v37, %v6356_v52 }
 0x458   : > { %7992 = vst.msk [vmem:[%s12893_s28 + $0xb0] sm:$0xff] %vm1512_vm14, %v7960_v5  ;;  %v7535_v20 = vmul.f32 %v13353_v43, %v7499_v12 }
 0x45a   : > { %v7571_v51 = vadd.f32 %v13367_v59, %v7535_v20  ;;  %v7824_v30 = vpop.f32.mrf.mxu2 }
 0x45b   : > { %v7866_v52 = vmul.f32 %v13423_v32, %v7824_v30 }
 0x45c   : > { %v6227_v23 = vpop.f32.mrf.mxu3  ;;  %v7929_v31 = vadd.f32 %v7897_v16, %v7571_v51  ;;  %v6365_v35 = vpop.f32.mrf.mxu0 }
 0x45d   : > { %v6361_v1 = vadd.f32 %v6360_v3, %v6227_v23 }
 0x45e   : > { %v7456_v2 = vpop.f32.mrf.mxu1  ;;  %v7961_v8 = vmax.f32 %v7929_v31, 0.0 }
 0x45f   : > { %v7500_v24 = vadd.f32 %v7456_v2, %v6359_v4 }
 0x460   : > { %7993 = vst.msk [vmem:[%s12893_s28 + $0xb8] sm:$0xff] %vm1512_vm14, %v7961_v8 }
 0x461   : > { %v7536_v17 = vmul.f32 %v13353_v43, %v7500_v24 }
 0x462   : > { %v7826_v3 = vpop.f32.mrf.mxu2 }
 0x463   : > { %v7572_v44 = vadd.f32 %v13367_v59, %v7536_v17  ;;  %v7867_v31 = vmul.f32 %v13423_v32, %v7826_v3 }
 0x464   : > { %v6230_v29 = vpop.f32.mrf.mxu3 }
 0x465   : > { %v7930_v42 = vadd.f32 %v7898_v11, %v7572_v44  ;;  %v6364_v19 = vadd.f32 %v6363_v62, %v6230_v29  ;;  %v6368_v27 = vpop.f32.mrf.mxu0  ;;  %v7903_v8 = vadd.f32 %v8909_v39, %v7867_v31  ;;  %v8911_v11 = vld [vmem:[%s13755_s6] ss:$0 sm:$0xff] }
 0x466   : > { %v7458_v54 = vpop.f32.mrf.mxu1 }
 0x467   : > { %v7962_v7 = vmax.f32 %v7930_v42, 0.0  ;;  %v7501_v25 = vadd.f32 %v7458_v54, %v6361_v1 }
 0x469   : > { %7994 = vst.msk [vmem:[%s12893_s28 + $0xc0] sm:$0xff] %vm1512_vm14, %v7962_v7  ;;  %v7537_v57 = vmul.f32 %v13353_v43, %v7501_v25 }
 0x46a   : > { %v7829_v44 = vpop.f32.mrf.mxu2 }
 0x46b   : > { %v7573_v61 = vadd.f32 %v13367_v59, %v7537_v57  ;;  %v7868_v29 = vmul.f32 %v13423_v32, %v7829_v44 }
 0x46c   : > { %v6232_v0 = vpop.f32.mrf.mxu3 }
 0x46d   : > { %v7931_v63 = vadd.f32 %v7899_v21, %v7573_v61  ;;  %v6366_v53 = vadd.f32 %v6365_v35, %v6232_v0  ;;  %v6370_v12 = vpop.f32.mrf.mxu0  ;;  %v7904_v7 = vadd.f32 %v8909_v39, %v7868_v29 }
 0x46e   : > { %v7461_v15 = vpop.f32.mrf.mxu1 }
 0x46f   : > { %v7963_v58 = vmax.f32 %v7931_v63, 0.0  ;;  %v7502_v14 = vadd.f32 %v7461_v15, %v6364_v19 }
 0x471   : > { %7995 = vst.msk [vmem:[%s12893_s28 + $0xc8] sm:$0xff] %vm1512_vm14, %v7963_v58  ;;  %v7538_v34 = vmul.f32 %v13353_v43, %v7502_v14 }
 0x472   : > { %v7831_v61 = vpop.f32.mrf.mxu2 }
 0x473   : > { %v7574_v6 = vadd.f32 %v13367_v59, %v7538_v34  ;;  %v7869_v35 = vmul.f32 %v13423_v32, %v7831_v61 }
 0x474   : > { %v6235_v49 = vpop.f32.mrf.mxu3 }
 0x475   : > { %v7932_v47 = vadd.f32 %v7900_v41, %v7574_v6  ;;  %v6369_v55 = vadd.f32 %v6368_v27, %v6235_v49  ;;  %v7905_v58 = vadd.f32 %v8909_v39, %v7869_v35 }
 0x476   : > { %v7463_v13 = vpop.f32.mrf.mxu1 }
 0x477   : > { %v7964_v28 = vmax.f32 %v7932_v47, 0.0  ;;  %v7503_v9 = vadd.f32 %v7463_v13, %v6366_v53 }
 0x479   : > { %7996 = vst.msk [vmem:[%s12893_s28 + $0xd0] sm:$0xff] %vm1512_vm14, %v7964_v28  ;;  %v7539_v40 = vmul.f32 %v13353_v43, %v7503_v9  ;;  %v7902_v43 = vadd.f32 %v8909_v39, %v7866_v52  ;;  %v6373_v24 = vpop.f32.mrf.mxu0 }
 0x47b   : > { %v7575_v36 = vadd.f32 %v13367_v59, %v7539_v40 }
 0x47c   : > { %v6237_v5 = vpop.f32.mrf.mxu3 }
 0x47d   : > { %v7933_v10 = vadd.f32 %v7901_v22, %v7575_v36  ;;  %v6371_v16 = vadd.f32 %v6370_v12, %v6237_v5 }
 0x47e   : > { %v7466_v46 = vpop.f32.mrf.mxu1 }
 0x47f   : > { %v7965_v56 = vmax.f32 %v7933_v10, 0.0  ;;  %v7504_v37 = vadd.f32 %v7466_v46, %v6369_v55 }
 0x481   : > { %7997 = vst.msk [vmem:[%s12893_s28 + $0xd8] sm:$0xff] %vm1512_vm14, %v7965_v56  ;;  %v7540_v20 = vmul.f32 %v8910_v26, %v7504_v37  ;;  %v6375_v25 = vpop.f32.mrf.mxu0 }
 0x483   : > { %v7576_v45 = vadd.f32 %v13367_v59, %v7540_v20 }
 0x485   : > { %v7934_v51 = vadd.f32 %v7902_v43, %v7576_v45 }
 0x486   : > { %v7468_v4 = vpop.f32.mrf.mxu1  ;;  %v6240_v62 = vpop.f32.mrf.mxu3 }
 0x487   : > { %v7966_v23 = vmax.f32 %v7934_v51, 0.0  ;;  %v7505_v48 = vadd.f32 %v7468_v4, %v6371_v16  ;;  %v6374_v1 = vadd.f32 %v6373_v24, %v6240_v62 }
 0x489   : > { %7998 = vst.msk [vmem:[%s12893_s28 + $0xe0] sm:$0xff] %vm1512_vm14, %v7966_v23  ;;  %v7541_v2 = vmul.f32 %v8910_v26, %v7505_v48 }
 0x48b   : > { %v7577_v17 = vadd.f32 %v8911_v11, %v7541_v2 }
 0x48d   : > { %v7935_v59 = vadd.f32 %v7903_v8, %v7577_v17 }
 0x48e   : > { %v7471_v42 = vpop.f32.mrf.mxu1  ;;  %v6242_v21 = vpop.f32.mrf.mxu3 }
 0x48f   : > { %v7967_v33 = vmax.f32 %v7935_v59, 0.0  ;;  %v7506_v54 = vadd.f32 %v7471_v42, %v6374_v1  ;;  %v6376_v19 = vadd.f32 %v6375_v25, %v6242_v21 }
 0x491   : > { %7999 = vst.msk [vmem:[%s12893_s28 + $0xe8] sm:$0xff] %vm1512_vm14, %v7967_v33  ;;  %v7542_v38 = vmul.f32 %v8910_v26, %v7506_v54 }
 0x493   : > { %v7578_v57 = vadd.f32 %v8911_v11, %v7542_v38 }
 0x495   : > { %v7936_v0 = vadd.f32 %v7904_v7, %v7578_v57 }
 0x496   : > { %v7473_v63 = vpop.f32.mrf.mxu1 }
 0x497   : > { %v7968_v60 = vmax.f32 %v7936_v0, 0.0  ;;  %v7507_v15 = vadd.f32 %v7473_v63, %v6376_v19 }
 0x499   : > { %8000 = vst.msk [vmem:[%s12893_s28 + $0xf0] sm:$0xff] %vm1512_vm14, %v7968_v60  ;;  %v7543_v18 = vmul.f32 %v8910_v26, %v7507_v15 }
 0x49b   : > { %v7579_v14 = vadd.f32 %v8911_v11, %v7543_v18 }
 0x49d   : > { %v7937_v41 = vadd.f32 %v7905_v58, %v7579_v14 }
 0x49f   : > { %v7969_v34 = vmax.f32 %v7937_v41, 0.0 }
 0x4a1   : > { %8001 = vst.msk [vmem:[%s12893_s28 + $0xf8] sm:$0xff] %vm1512_vm14, %v7969_v34 }
 0x4a2 PF: > { %s20_s13 = sadd.s32 1, %s8918_s13  }
 0x4a3   : > { %p17_p4 = scmp.ge.s32.totalorder %s20_s13, 4  }
 0x4a5   :  { %19 = sbr.rel (!%p17_p4) target bundleno = 1 (0x1), region = 100 }

</bundles_post_ra>
